<compile_context>
chip_gen: v5e
topology: v5e:2x2
jax: 0.10.0
libtpu: 0.0.40
codegen_flags: <defaults>
</compile_context>

<pallas_src>
import functools

import jax
import jax.numpy as jnp
from jax.experimental import pallas as pl
from jax.experimental.pallas import tpu as pltpu

_VMEM = pl.BlockSpec(memory_space=pltpu.MemorySpace.VMEM)
_LANE = 128


def _round_up(x, m):
    return (x + m - 1) // m * m


def _leaky(x, slope):
    # LeakyReLU for 0 < slope < 1: one mul + one max (no compare/select).
    return jnp.maximum(x, slope * x)


@functools.lru_cache(maxsize=1)
def _num_tensorcores():
    """TensorCores per chip (2 on megacore / v7x-style parts, else 1)."""
    try:
        kind = jax.devices()[0].device_kind.lower()
    except Exception:
        return 1
    return 2 if any(t in kind for t in ("v4", "v5p", "v7", "7x")) else 1


def _pick_ct(cout_p, n_batch):
    """Channel-tile width: prefer 256 (fewer grid steps; v5e/v6e) unless that
    would starve a 2-TensorCore chip (v7x) of parallel grid steps at small batch."""
    if cout_p % 256 == 0 and n_batch * (cout_p // 256) >= 2 * _num_tensorcores():
        return 256
    return _LANE if cout_p % _LANE == 0 else cout_p


def _space_to_depth2(x):
    """(N, H, W, C) -> (N, H//2, W//2, 4C); channel index = (2p + q) * C + c."""
    n, h, w, c = x.shape
    x = x.reshape(n, h // 2, 2, w // 2, 2, c)
    x = x.transpose(0, 1, 3, 2, 4, 5)
    return x.reshape(n, h // 2, w // 2, 4 * c)


def _fold_w_s2(w):
    """(4, 4, Cin, Cout) stride-2 conv weight -> (4 taps, 4*Cin, Cout) matching
    the space-to-depth plane; tap t = 2a + b, row index = (2p + q)*Cin + c."""
    _, _, cin, cout = w.shape
    w = w.reshape(2, 2, 2, 2, cin, cout)       # (a, p, b, q, c, o)
    w = w.transpose(0, 2, 1, 3, 4, 5)          # (a, b, p, q, c, o)
    return w.reshape(4, 4 * cin, cout)


# ----------------------------------------------------------------------------
# Fused conv stage kernel: 4-tap s2d conv + bias [+ InstanceNorm] + LeakyReLU
# ----------------------------------------------------------------------------
def _conv_s2d_kernel(x_ref, w_ref, b_ref, o_ref, acc_ref, *,
                     plane_w, oh, ow, instnorm, slope, eps):
    # x_ref : (1, Hs*Ws, K)   bf16  flattened space-to-depth input plane
    # w_ref : (4, K, Ct)      bf16  per-tap weight slabs (tap t = 2a + b)
    # b_ref : (1, Ct)         f32   bias
    # o_ref : (1, oh, ow, Ct) bf16  fused-epilogue output tile
    # acc_ref: (oh, ow, Ct)   f32   VMEM accumulator
    x = x_ref[0]                                           # (Hs*Ws, K) bf16
    for t in range(4):                                     # unrolled: 4 taps
        a, b = t // 2, t % 2
        # One big MXU matmul per tap: M = Hs*Ws, K = 4*Cin, N = Ct.
        p = jnp.dot(x, w_ref[t], preferred_element_type=jnp.float32)
        for r in range(oh):                                # unrolled, static slices
            s = (a + r) * plane_w + b
            win = p[s:s + ow]                              # (ow, Ct)
            if t == 0:
                acc_ref[r] = win
            else:
                acc_ref[r] = acc_ref[r] + win

    y = acc_ref[...] + b_ref[...]                          # (oh, ow, Ct) f32
    if instnorm:
        # InstanceNorm2d(affine=False): per-(image, channel) stats, biased var.
        inv_hw = 1.0 / float(oh * ow)
        mu = jnp.sum(jnp.sum(y, axis=0), axis=0, keepdims=True) * inv_hw
        yc = y - mu
        var = jnp.sum(jnp.sum(yc * yc, axis=0), axis=0, keepdims=True) * inv_hw
        y = yc * jax.lax.rsqrt(var + eps)
    o_ref[0] = _leaky(y, slope).astype(o_ref.dtype)


def conv_stage(x_nhwc, w_hwio, bias, *, padding, fold_avg_pool, instnorm,
               slope, eps=1e-5):
    """One fused stage:
         Conv2d(k=4, s=2, padding)                    [+ InstanceNorm] + LeakyReLU
      or Conv2d(k=4, s=1, padding) + AvgPool2d(2, 2)  + LeakyReLU   (fold_avg_pool)
    Returns NHWC bf16 with Cout zero-padded to a multiple of 128 lanes."""
    n = x_nhwc.shape[0]
    k1, k2, cin, cout = w_hwio.shape
    assert k1 == 4 and k2 == 4, "stage expects 4x4 conv kernels"

    x = x_nhwc[..., :cin]                                  # drop prev layer's lane padding
    if padding:
        x = jnp.pad(x, ((0, 0), (padding, padding), (padding, padding), (0, 0)))
    if fold_avg_pool:
        # Exact: AvgPool2d(2,2)(conv_s1(x)) == conv_s2(avg2x2(x)); LeakyReLU after.
        xf = x.astype(jnp.float32)
        x = 0.25 * (xf[:, :-1, :-1] + xf[:, :-1, 1:] + xf[:, 1:, :-1] + xf[:, 1:, 1:])
    hp, wp = x.shape[1], x.shape[2]
    assert hp >= 4 and wp >= 4, "spatial too small for a 4x4 conv"
    oh = (hp - 4) // 2 + 1
    ow = (wp - 4) // 2 + 1

    # Space-to-depth (zero-pad to even first; the pad rows/cols are never read
    # back by any output window) -> stride-1 2x2-tap conv with K = 4*Cin.
    he, we = _round_up(hp, 2), _round_up(wp, 2)
    if (he, we) != (hp, wp):
        x = jnp.pad(x, ((0, 0), (0, he - hp), (0, we - wp), (0, 0)))
    xs = _space_to_depth2(x)
    hs, ws2 = he // 2, we // 2
    k4 = 4 * cin
    k4p = _round_up(k4, 16)                                # bf16 sublane packing
    if k4p != k4:
        xs = jnp.pad(xs, ((0, 0), (0, 0), (0, 0), (0, k4p - k4)))
    x2 = xs.reshape(n, hs * ws2, k4p).astype(jnp.bfloat16)  # bf16 slab, cast once

    wf = _fold_w_s2(w_hwio)                                # (4, 4*Cin, Cout)
    if k4p != k4:
        wf = jnp.pad(wf, ((0, 0), (0, k4p - k4), (0, 0)))
    cout_p = _round_up(cout, _LANE)                        # lane-dense output stores
    if cout_p != cout:
        wf = jnp.pad(wf, ((0, 0), (0, 0), (0, cout_p - cout)))
        bias = jnp.pad(bias, ((0, cout_p - cout),))
    wf = wf.astype(jnp.bfloat16)
    b2 = bias.reshape(1, cout_p).astype(jnp.float32)

    ct = _pick_ct(cout_p, n)
    n_ct = cout_p // ct
    # Channel-tile axis OUTER: the per-tap weight slab stays VMEM-resident across
    # the inner batch loop (no per-image weight re-fetch: matters most on v5e).
    grid = (n_ct, n)

    # TODO(synk): for large resolutions add an output-row-band grid axis so the
    # input block is a row band (v7x 64 MiB VMEM budget); unnecessary here.
    return pl.pallas_call(
        functools.partial(_conv_s2d_kernel, plane_w=ws2, oh=oh, ow=ow,
                          instnorm=instnorm, slope=slope, eps=eps),
        out_shape=jax.ShapeDtypeStruct((n, oh, ow, cout_p), jnp.bfloat16),
        grid_spec=pltpu.PrefetchScalarGridSpec(
            num_scalar_prefetch=0,
            grid=grid,
            in_specs=[
                pl.BlockSpec((1, hs * ws2, k4p), lambda jc, ib: (ib, 0, 0)),
                pl.BlockSpec((4, k4p, ct), lambda jc, ib: (0, 0, jc)),
                pl.BlockSpec((1, ct), lambda jc, ib: (0, jc)),
            ],
            out_specs=pl.BlockSpec((1, oh, ow, ct), lambda jc, ib: (ib, 0, 0, jc)),
            scratch_shapes=[pltpu.VMEM((oh, ow, ct), jnp.float32)],
        ),
        compiler_params=pltpu.CompilerParams(
            dimension_semantics=("parallel", "parallel")),
    )(x2, wf, b2)


# ----------------------------------------------------------------------------
# Fused head: last 2x2 conv (+ folded AvgPool) + LeakyReLU + 5-layer FC head
# ----------------------------------------------------------------------------
def _head_kernel(x_ref, wl_ref, bl_ref, wf_ref, bf_ref, o_ref, *, n_fc, slope):
    h = jnp.dot(x_ref[...], wl_ref[...], preferred_element_type=jnp.float32)
    h = _leaky(h + bl_ref[...], slope)                     # last conv + LeakyReLU()
    for i in range(n_fc):
        h = jnp.dot(h.astype(jnp.bfloat16), wf_ref[i],
                    preferred_element_type=jnp.float32) + bf_ref[i]
        if i < n_fc - 1:
            h = _leaky(h, slope)
    o_ref[...] = h


def head_stage(x_nhwc, w_last, b_last, fc_params, *, slope=0.01):
    """Conv2d(k=2, s=1, p=0) + AvgPool2d(2,2) + LeakyReLU + Flatten + FC head in
    ONE pallas_call.  Requires the pooled feature map to be 1x1 (the PyTorch
    module hard-codes Linear(in_features=64*1*1))."""
    n, hh, ww, _ = x_nhwc.shape
    k1, k2, cin, cout = w_last.shape
    assert k1 == 2 and k2 == 2
    assert 3 <= hh <= 4 and 3 <= ww <= 4, "FC head expects 1x1 pooled features"
    x = x_nhwc[..., :cin].astype(jnp.float32)
    # Exact fold of conv(k2,s1) + AvgPool(2,2)->1x1: average the four 2x2 input
    # neighbourhoods, flatten in (kh, kw, c) order, one (N, 4*Cin)@(4*Cin, 64).
    xb = 0.25 * (x[:, 0:2, 0:2] + x[:, 0:2, 1:3] + x[:, 1:3, 0:2] + x[:, 1:3, 1:3])
    feats = xb.reshape(n, 4 * cin)
    wl = w_last.reshape(4 * cin, cout)                     # same (kh, kw, c) order

    kin = 4 * cin
    kin_p = _round_up(kin, 16)
    if kin_p != kin:
        feats = jnp.pad(feats, ((0, 0), (0, kin_p - kin)))
        wl = jnp.pad(wl, ((0, kin_p - kin), (0, 0)))
    out_dim = fc_params[-1][0].shape[1]
    width = _round_up(max([cout] + [w.shape[0] for w, _ in fc_params]
                          + [w.shape[1] for w, _ in fc_params]), _LANE)
    wl = jnp.pad(wl, ((0, 0), (0, width - cout)))
    bl = jnp.pad(b_last, ((0, width - cout),)).reshape(1, width).astype(jnp.float32)
    ws, bs = [], []
    for wfc, bfc in fc_params:
        din, dout = wfc.shape
        ws.append(jnp.zeros((width, width), jnp.float32).at[:din, :dout].set(wfc))
        bs.append(jnp.zeros((1, width), jnp.float32).at[0, :dout].set(bfc))
    wstack = jnp.stack(ws).astype(jnp.bfloat16)            # (L, 128, 128)
    bstack = jnp.stack(bs)                                 # (L, 1, 128)

    out = pl.pallas_call(
        functools.partial(_head_kernel, n_fc=len(fc_params), slope=slope),
        out_shape=jax.ShapeDtypeStruct((n, width), jnp.float32),
        in_specs=[_VMEM] * 5,
        out_specs=_VMEM,
    )(feats.astype(jnp.bfloat16), wl.astype(jnp.bfloat16), bl, wstack, bstack)
    return out[:, :out_dim]                                # (N, 2)


# ----------------------------------------------------------------------------
# Parameters (deterministic synthetic init, shapes per module __init__)
# ----------------------------------------------------------------------------
def init_params(key, input_nc, num_layers):
    ks = iter(jax.random.split(key, 32 + 2 * num_layers))

    def rnd(shape, scale=0.02):
        return scale * jax.random.normal(next(ks), shape, jnp.float32)

    p = {}
    p["w1"], p["b1"] = rnd((4, 4, input_nc, 64)), rnd((64,))
    p["w2"], p["b2"] = rnd((4, 4, 64, 128)), rnd((128,))
    in_f, out_f = 128, 256
    p["loop"] = []
    for _ in range(num_layers):
        p["loop"].append((rnd((4, 4, in_f, out_f)), rnd((out_f,))))
        in_f = out_f
        out_f = max(in_f * 2, 512)
    p["wlast"], p["blast"] = rnd((2, 2, in_f, 64)), rnd((64,))
    fcs = [(rnd((64, 64)), rnd((64,))) for _ in range(4)]
    fcs.append((rnd((64, 2)), rnd((2,))))
    p["fc"] = fcs
    return p


# ----------------------------------------------------------------------------
# Full forward pass (mirrors LightCoordsEstimator_V2.forward)
# ----------------------------------------------------------------------------
def light_coords_estimator_v2(x_nchw, params):
    x = jnp.transpose(x_nchw.astype(jnp.float32), (0, 2, 3, 1))   # NCHW -> NHWC

    # Conv(in, 64, k4, s2, p1) + LeakyReLU(0.2)
    x = conv_stage(x, params["w1"], params["b1"], padding=1,
                   fold_avg_pool=False, instnorm=False, slope=0.2)
    # Conv(64, 128, k4, s2, p1) + InstanceNorm2d(128) + LeakyReLU(0.2)
    x = conv_stage(x, params["w2"], params["b2"], padding=1,
                   fold_avg_pool=False, instnorm=True, slope=0.2)
    # num_layers x [Conv(k4, s1, p1) + AvgPool2d(2,2) + LeakyReLU(0.2)]
    for wc, bc in params["loop"]:
        x = conv_stage(x, wc, bc, padding=1,
                       fold_avg_pool=True, instnorm=False, slope=0.2)
    # Conv(in, 64, k2, s1, p0) + AvgPool2d(2,2) + LeakyReLU() + Flatten + FC head.
    # TODO(synk): general (>1x1) pooled spatial sizes would need a NCHW-order
    # flatten to match PyTorch; the module hard-codes Linear(64*1*1).
    return head_stage(x, params["wlast"], params["blast"], params["fc"], slope=0.01)


if __name__ == "__main__":
    key = jax.random.PRNGKey(0)
    kx, kp = jax.random.split(key)

    input_nc, num_layers = 4, 1
    # 32x32 -> conv1 16 -> conv2 8 -> loop conv+pool 3 -> last conv+pool 1x1
    x = jax.random.normal(kx, (2, input_nc, 32, 32), jnp.float32)
    params = init_params(kp, input_nc, num_layers)

    fwd = jax.jit(light_coords_estimator_v2)
    out = jax.block_until_ready(fwd(x, params))
    assert out.shape == (2, 2), out.shape
    assert bool(jnp.all(jnp.isfinite(out)))
    print("KERNEL_OK")
</pallas_src>

<mosaic_0001>
module attributes {stable_mosaic.version = 11 : i64} {
  func.func @_conv_s2d_kernel(%arg0: i32, %arg1: i32, %arg2: memref<1x289x16xbf16, #tpu.memory_space<vmem>>, %arg3: memref<4x16x128xbf16, #tpu.memory_space<vmem>>, %arg4: memref<1x128xf32, #tpu.memory_space<vmem>>, %arg5: memref<1x16x16x128xbf16, #tpu.memory_space<vmem>>, %arg6: memref<16x16x128xf32, #tpu.memory_space<vmem>>) attributes {dimension_semantics = [#tpu.dimension_semantics<parallel>, #tpu.dimension_semantics<parallel>], iteration_bounds = array<i64: 1, 2>, scalar_prefetch = 0 : i64, scratch_operands = 1 : i64, tpu.core_type = #tpu.core_type<tc>, window_params = [{transform_indices = @transform_0, window_bounds = array<i64: 1, 289, 16>}, {transform_indices = @transform_1, window_bounds = array<i64: 4, 16, 128>}, {transform_indices = @transform_2, window_bounds = array<i64: 1, 128>}, {transform_indices = @transform_3, window_bounds = array<i64: 1, 16, 16, 128>}]} {
    %c0 = arith.constant 0 : index
    %c0_0 = arith.constant 0 : index
    %c0_1 = arith.constant 0 : index
    %0 = vector.load %arg2[%c0, %c0_0, %c0_1] : memref<1x289x16xbf16, #tpu.memory_space<vmem>>, vector<1x289x16xbf16>
    %1 = vector.shape_cast %0 : vector<1x289x16xbf16> to vector<289x16xbf16>
    %c0_2 = arith.constant 0 : index
    %c0_3 = arith.constant 0 : index
    %c0_4 = arith.constant 0 : index
    %2 = vector.load %arg3[%c0_2, %c0_3, %c0_4] : memref<4x16x128xbf16, #tpu.memory_space<vmem>>, vector<1x16x128xbf16>
    %3 = vector.shape_cast %2 : vector<1x16x128xbf16> to vector<16x128xbf16>
    %cst = arith.constant dense<0.000000e+00> : vector<289x128xf32>
    %4 = tpu.matmul %1, %3, %cst {dimension_numbers = #tpu.dot_dimension_numbers<[1], [0], [0], [1], [0, 0, 1, 1], [], []>} : vector<289x16xbf16>, vector<16x128xbf16>, vector<289x128xf32> -> vector<289x128xf32>
    %5 = vector.extract_strided_slice %4 {offsets = [0, 0], sizes = [16, 128], strides = [1, 1]} : vector<289x128xf32> to vector<16x128xf32>
    %c0_5 = arith.constant 0 : index
    %c0_6 = arith.constant 0 : index
    %c0_7 = arith.constant 0 : index
    %6 = vector.load %arg6[%c0_5, %c0_6, %c0_7] : memref<16x16x128xf32, #tpu.memory_space<vmem>>, vector<1x16x128xf32>
    %7 = vector.shape_cast %6 : vector<1x16x128xf32> to vector<16x128xf32>
    %8 = vector.shape_cast %5 : vector<16x128xf32> to vector<1x16x128xf32>
    tpu.vector_store %arg6[%c0_5, %c0_6, %c0_7], %8 {strides = array<i32>} : memref<16x16x128xf32, #tpu.memory_space<vmem>>, vector<1x16x128xf32>,
    %9 = vector.extract_strided_slice %4 {offsets = [17, 0], sizes = [16, 128], strides = [1, 1]} : vector<289x128xf32> to vector<16x128xf32>
    %c1 = arith.constant 1 : index
    %c0_8 = arith.constant 0 : index
    %c0_9 = arith.constant 0 : index
    %10 = vector.load %arg6[%c1, %c0_8, %c0_9] : memref<16x16x128xf32, #tpu.memory_space<vmem>>, vector<1x16x128xf32>
    %11 = vector.shape_cast %10 : vector<1x16x128xf32> to vector<16x128xf32>
    %12 = vector.shape_cast %9 : vector<16x128xf32> to vector<1x16x128xf32>
    tpu.vector_store %arg6[%c1, %c0_8, %c0_9], %12 {strides = array<i32>} : memref<16x16x128xf32, #tpu.memory_space<vmem>>, vector<1x16x128xf32>,
    %13 = vector.extract_strided_slice %4 {offsets = [34, 0], sizes = [16, 128], strides = [1, 1]} : vector<289x128xf32> to vector<16x128xf32>
    %c2 = arith.constant 2 : index
    %c0_10 = arith.constant 0 : index
    %c0_11 = arith.constant 0 : index
    %14 = vector.load %arg6[%c2, %c0_10, %c0_11] : memref<16x16x128xf32, #tpu.memory_space<vmem>>, vector<1x16x128xf32>
    %15 = vector.shape_cast %14 : vector<1x16x128xf32> to vector<16x128xf32>
    %16 = vector.shape_cast %13 : vector<16x128xf32> to vector<1x16x128xf32>
    tpu.vector_store %arg6[%c2, %c0_10, %c0_11], %16 {strides = array<i32>} : memref<16x16x128xf32, #tpu.memory_space<vmem>>, vector<1x16x128xf32>,
    %17 = vector.extract_strided_slice %4 {offsets = [51, 0], sizes = [16, 128], strides = [1, 1]} : vector<289x128xf32> to vector<16x128xf32>
    %c3 = arith.constant 3 : index
    %c0_12 = arith.constant 0 : index
    %c0_13 = arith.constant 0 : index
    %18 = vector.load %arg6[%c3, %c0_12, %c0_13] : memref<16x16x128xf32, #tpu.memory_space<vmem>>, vector<1x16x128xf32>
    %19 = vector.shape_cast %18 : vector<1x16x128xf32> to vector<16x128xf32>
    %20 = vector.shape_cast %17 : vector<16x128xf32> to vector<1x16x128xf32>
    tpu.vector_store %arg6[%c3, %c0_12, %c0_13], %20 {strides = array<i32>} : memref<16x16x128xf32, #tpu.memory_space<vmem>>, vector<1x16x128xf32>,
    %21 = vector.extract_strided_slice %4 {offsets = [68, 0], sizes = [16, 128], strides = [1, 1]} : vector<289x128xf32> to vector<16x128xf32>
    %c4 = arith.constant 4 : index
    %c0_14 = arith.constant 0 : index
    %c0_15 = arith.constant 0 : index
    %22 = vector.load %arg6[%c4, %c0_14, %c0_15] : memref<16x16x128xf32, #tpu.memory_space<vmem>>, vector<1x16x128xf32>
    %23 = vector.shape_cast %22 : vector<1x16x128xf32> to vector<16x128xf32>
    %24 = vector.shape_cast %21 : vector<16x128xf32> to vector<1x16x128xf32>
    tpu.vector_store %arg6[%c4, %c0_14, %c0_15], %24 {strides = array<i32>} : memref<16x16x128xf32, #tpu.memory_space<vmem>>, vector<1x16x128xf32>,
    %25 = vector.extract_strided_slice %4 {offsets = [85, 0], sizes = [16, 128], strides = [1, 1]} : vector<289x128xf32> to vector<16x128xf32>
    %c5 = arith.constant 5 : index
    %c0_16 = arith.constant 0 : index
    %c0_17 = arith.constant 0 : index
    %26 = vector.load %arg6[%c5, %c0_16, %c0_17] : memref<16x16x128xf32, #tpu.memory_space<vmem>>, vector<1x16x128xf32>
    %27 = vector.shape_cast %26 : vector<1x16x128xf32> to vector<16x128xf32>
    %28 = vector.shape_cast %25 : vector<16x128xf32> to vector<1x16x128xf32>
    tpu.vector_store %arg6[%c5, %c0_16, %c0_17], %28 {strides = array<i32>} : memref<16x16x128xf32, #tpu.memory_space<vmem>>, vector<1x16x128xf32>,
    %29 = vector.extract_strided_slice %4 {offsets = [102, 0], sizes = [16, 128], strides = [1, 1]} : vector<289x128xf32> to vector<16x128xf32>
    %c6 = arith.constant 6 : index
    %c0_18 = arith.constant 0 : index
    %c0_19 = arith.constant 0 : index
    %30 = vector.load %arg6[%c6, %c0_18, %c0_19] : memref<16x16x128xf32, #tpu.memory_space<vmem>>, vector<1x16x128xf32>
    %31 = vector.shape_cast %30 : vector<1x16x128xf32> to vector<16x128xf32>
    %32 = vector.shape_cast %29 : vector<16x128xf32> to vector<1x16x128xf32>
    tpu.vector_store %arg6[%c6, %c0_18, %c0_19], %32 {strides = array<i32>} : memref<16x16x128xf32, #tpu.memory_space<vmem>>, vector<1x16x128xf32>,
    %33 = vector.extract_strided_slice %4 {offsets = [119, 0], sizes = [16, 128], strides = [1, 1]} : vector<289x128xf32> to vector<16x128xf32>
    %c7 = arith.constant 7 : index
    %c0_20 = arith.constant 0 : index
    %c0_21 = arith.constant 0 : index
    %34 = vector.load %arg6[%c7, %c0_20, %c0_21] : memref<16x16x128xf32, #tpu.memory_space<vmem>>, vector<1x16x128xf32>
    %35 = vector.shape_cast %34 : vector<1x16x128xf32> to vector<16x128xf32>
    %36 = vector.shape_cast %33 : vector<16x128xf32> to vector<1x16x128xf32>
    tpu.vector_store %arg6[%c7, %c0_20, %c0_21], %36 {strides = array<i32>} : memref<16x16x128xf32, #tpu.memory_space<vmem>>, vector<1x16x128xf32>,
    %37 = vector.extract_strided_slice %4 {offsets = [136, 0], sizes = [16, 128], strides = [1, 1]} : vector<289x128xf32> to vector<16x128xf32>
    %c8 = arith.constant 8 : index
    %c0_22 = arith.constant 0 : index
    %c0_23 = arith.constant 0 : index
    %38 = vector.load %arg6[%c8, %c0_22, %c0_23] : memref<16x16x128xf32, #tpu.memory_space<vmem>>, vector<1x16x128xf32>
    %39 = vector.shape_cast %38 : vector<1x16x128xf32> to vector<16x128xf32>
    %40 = vector.shape_cast %37 : vector<16x128xf32> to vector<1x16x128xf32>
    tpu.vector_store %arg6[%c8, %c0_22, %c0_23], %40 {strides = array<i32>} : memref<16x16x128xf32, #tpu.memory_space<vmem>>, vector<1x16x128xf32>,
    %41 = vector.extract_strided_slice %4 {offsets = [153, 0], sizes = [16, 128], strides = [1, 1]} : vector<289x128xf32> to vector<16x128xf32>
    %c9 = arith.constant 9 : index
    %c0_24 = arith.constant 0 : index
    %c0_25 = arith.constant 0 : index
    %42 = vector.load %arg6[%c9, %c0_24, %c0_25] : memref<16x16x128xf32, #tpu.memory_space<vmem>>, vector<1x16x128xf32>
    %43 = vector.shape_cast %42 : vector<1x16x128xf32> to vector<16x128xf32>
    %44 = vector.shape_cast %41 : vector<16x128xf32> to vector<1x16x128xf32>
    tpu.vector_store %arg6[%c9, %c0_24, %c0_25], %44 {strides = array<i32>} : memref<16x16x128xf32, #tpu.memory_space<vmem>>, vector<1x16x128xf32>,
    %45 = vector.extract_strided_slice %4 {offsets = [170, 0], sizes = [16, 128], strides = [1, 1]} : vector<289x128xf32> to vector<16x128xf32>
    %c10 = arith.constant 10 : index
    %c0_26 = arith.constant 0 : index
    %c0_27 = arith.constant 0 : index
    %46 = vector.load %arg6[%c10, %c0_26, %c0_27] : memref<16x16x128xf32, #tpu.memory_space<vmem>>, vector<1x16x128xf32>
    %47 = vector.shape_cast %46 : vector<1x16x128xf32> to vector<16x128xf32>
    %48 = vector.shape_cast %45 : vector<16x128xf32> to vector<1x16x128xf32>
    tpu.vector_store %arg6[%c10, %c0_26, %c0_27], %48 {strides = array<i32>} : memref<16x16x128xf32, #tpu.memory_space<vmem>>, vector<1x16x128xf32>,
    %49 = vector.extract_strided_slice %4 {offsets = [187, 0], sizes = [16, 128], strides = [1, 1]} : vector<289x128xf32> to vector<16x128xf32>
    %c11 = arith.constant 11 : index
    %c0_28 = arith.constant 0 : index
    %c0_29 = arith.constant 0 : index
    %50 = vector.load %arg6[%c11, %c0_28, %c0_29] : memref<16x16x128xf32, #tpu.memory_space<vmem>>, vector<1x16x128xf32>
    %51 = vector.shape_cast %50 : vector<1x16x128xf32> to vector<16x128xf32>
    %52 = vector.shape_cast %49 : vector<16x128xf32> to vector<1x16x128xf32>
    tpu.vector_store %arg6[%c11, %c0_28, %c0_29], %52 {strides = array<i32>} : memref<16x16x128xf32, #tpu.memory_space<vmem>>, vector<1x16x128xf32>,
    %53 = vector.extract_strided_slice %4 {offsets = [204, 0], sizes = [16, 128], strides = [1, 1]} : vector<289x128xf32> to vector<16x128xf32>
    %c12 = arith.constant 12 : index
    %c0_30 = arith.constant 0 : index
    %c0_31 = arith.constant 0 : index
    %54 = vector.load %arg6[%c12, %c0_30, %c0_31] : memref<16x16x128xf32, #tpu.memory_space<vmem>>, vector<1x16x128xf32>
    %55 = vector.shape_cast %54 : vector<1x16x128xf32> to vector<16x128xf32>
    %56 = vector.shape_cast %53 : vector<16x128xf32> to vector<1x16x128xf32>
    tpu.vector_store %arg6[%c12, %c0_30, %c0_31], %56 {strides = array<i32>} : memref<16x16x128xf32, #tpu.memory_space<vmem>>, vector<1x16x128xf32>,
    %57 = vector.extract_strided_slice %4 {offsets = [221, 0], sizes = [16, 128], strides = [1, 1]} : vector<289x128xf32> to vector<16x128xf32>
    %c13 = arith.constant 13 : index
    %c0_32 = arith.constant 0 : index
    %c0_33 = arith.constant 0 : index
    %58 = vector.load %arg6[%c13, %c0_32, %c0_33] : memref<16x16x128xf32, #tpu.memory_space<vmem>>, vector<1x16x128xf32>
    %59 = vector.shape_cast %58 : vector<1x16x128xf32> to vector<16x128xf32>
    %60 = vector.shape_cast %57 : vector<16x128xf32> to vector<1x16x128xf32>
    tpu.vector_store %arg6[%c13, %c0_32, %c0_33], %60 {strides = array<i32>} : memref<16x16x128xf32, #tpu.memory_space<vmem>>, vector<1x16x128xf32>,
    %61 = vector.extract_strided_slice %4 {offsets = [238, 0], sizes = [16, 128], strides = [1, 1]} : vector<289x128xf32> to vector<16x128xf32>
    %c14 = arith.constant 14 : index
    %c0_34 = arith.constant 0 : index
    %c0_35 = arith.constant 0 : index
    %62 = vector.load %arg6[%c14, %c0_34, %c0_35] : memref<16x16x128xf32, #tpu.memory_space<vmem>>, vector<1x16x128xf32>
    %63 = vector.shape_cast %62 : vector<1x16x128xf32> to vector<16x128xf32>
    %64 = vector.shape_cast %61 : vector<16x128xf32> to vector<1x16x128xf32>
    tpu.vector_store %arg6[%c14, %c0_34, %c0_35], %64 {strides = array<i32>} : memref<16x16x128xf32, #tpu.memory_space<vmem>>, vector<1x16x128xf32>,
    %65 = vector.extract_strided_slice %4 {offsets = [255, 0], sizes = [16, 128], strides = [1, 1]} : vector<289x128xf32> to vector<16x128xf32>
    %c15 = arith.constant 15 : index
    %c0_36 = arith.constant 0 : index
    %c0_37 = arith.constant 0 : index
    %66 = vector.load %arg6[%c15, %c0_36, %c0_37] : memref<16x16x128xf32, #tpu.memory_space<vmem>>, vector<1x16x128xf32>
    %67 = vector.shape_cast %66 : vector<1x16x128xf32> to vector<16x128xf32>
    %68 = vector.shape_cast %65 : vector<16x128xf32> to vector<1x16x128xf32>
    tpu.vector_store %arg6[%c15, %c0_36, %c0_37], %68 {strides = array<i32>} : memref<16x16x128xf32, #tpu.memory_space<vmem>>, vector<1x16x128xf32>,
    %c1_38 = arith.constant 1 : index
    %c0_39 = arith.constant 0 : index
    %c0_40 = arith.constant 0 : index
    %69 = vector.load %arg3[%c1_38, %c0_39, %c0_40] : memref<4x16x128xbf16, #tpu.memory_space<vmem>>, vector<1x16x128xbf16>
    %70 = vector.shape_cast %69 : vector<1x16x128xbf16> to vector<16x128xbf16>
    %cst_41 = arith.constant dense<0.000000e+00> : vector<289x128xf32>
    %71 = tpu.matmul %1, %70, %cst_41 {dimension_numbers = #tpu.dot_dimension_numbers<[1], [0], [0], [1], [0, 0, 1, 1], [], []>} : vector<289x16xbf16>, vector<16x128xbf16>, vector<289x128xf32> -> vector<289x128xf32>
    %72 = vector.extract_strided_slice %71 {offsets = [1, 0], sizes = [16, 128], strides = [1, 1]} : vector<289x128xf32> to vector<16x128xf32>
    %c0_42 = arith.constant 0 : index
    %c0_43 = arith.constant 0 : index
    %c0_44 = arith.constant 0 : index
    %73 = vector.load %arg6[%c0_42, %c0_43, %c0_44] : memref<16x16x128xf32, #tpu.memory_space<vmem>>, vector<1x16x128xf32>
    %74 = vector.shape_cast %73 : vector<1x16x128xf32> to vector<16x128xf32>
    %75 = arith.addf %74, %72 : vector<16x128xf32>
    %c0_45 = arith.constant 0 : index
    %c0_46 = arith.constant 0 : index
    %c0_47 = arith.constant 0 : index
    %76 = vector.load %arg6[%c0_45, %c0_46, %c0_47] : memref<16x16x128xf32, #tpu.memory_space<vmem>>, vector<1x16x128xf32>
    %77 = vector.shape_cast %76 : vector<1x16x128xf32> to vector<16x128xf32>
    %78 = vector.shape_cast %75 : vector<16x128xf32> to vector<1x16x128xf32>
    tpu.vector_store %arg6[%c0_45, %c0_46, %c0_47], %78 {strides = array<i32>} : memref<16x16x128xf32, #tpu.memory_space<vmem>>, vector<1x16x128xf32>,
    %79 = vector.extract_strided_slice %71 {offsets = [18, 0], sizes = [16, 128], strides = [1, 1]} : vector<289x128xf32> to vector<16x128xf32>
    %c1_48 = arith.constant 1 : index
    %c0_49 = arith.constant 0 : index
    %c0_50 = arith.constant 0 : index
    %80 = vector.load %arg6[%c1_48, %c0_49, %c0_50] : memref<16x16x128xf32, #tpu.memory_space<vmem>>, vector<1x16x128xf32>
    %81 = vector.shape_cast %80 : vector<1x16x128xf32> to vector<16x128xf32>
    %82 = arith.addf %81, %79 : vector<16x128xf32>
    %c1_51 = arith.constant 1 : index
    %c0_52 = arith.constant 0 : index
    %c0_53 = arith.constant 0 : index
    %83 = vector.load %arg6[%c1_51, %c0_52, %c0_53] : memref<16x16x128xf32, #tpu.memory_space<vmem>>, vector<1x16x128xf32>
    %84 = vector.shape_cast %83 : vector<1x16x128xf32> to vector<16x128xf32>
    %85 = vector.shape_cast %82 : vector<16x128xf32> to vector<1x16x128xf32>
    tpu.vector_store %arg6[%c1_51, %c0_52, %c0_53], %85 {strides = array<i32>} : memref<16x16x128xf32, #tpu.memory_space<vmem>>, vector<1x16x128xf32>,
    %86 = vector.extract_strided_slice %71 {offsets = [35, 0], sizes = [16, 128], strides = [1, 1]} : vector<289x128xf32> to vector<16x128xf32>
    %c2_54 = arith.constant 2 : index
    %c0_55 = arith.constant 0 : index
    %c0_56 = arith.constant 0 : index
    %87 = vector.load %arg6[%c2_54, %c0_55, %c0_56] : memref<16x16x128xf32, #tpu.memory_space<vmem>>, vector<1x16x128xf32>
    %88 = vector.shape_cast %87 : vector<1x16x128xf32> to vector<16x128xf32>
    %89 = arith.addf %88, %86 : vector<16x128xf32>
    %c2_57 = arith.constant 2 : index
    %c0_58 = arith.constant 0 : index
    %c0_59 = arith.constant 0 : index
    %90 = vector.load %arg6[%c2_57, %c0_58, %c0_59] : memref<16x16x128xf32, #tpu.memory_space<vmem>>, vector<1x16x128xf32>
    %91 = vector.shape_cast %90 : vector<1x16x128xf32> to vector<16x128xf32>
    %92 = vector.shape_cast %89 : vector<16x128xf32> to vector<1x16x128xf32>
    tpu.vector_store %arg6[%c2_57, %c0_58, %c0_59], %92 {strides = array<i32>} : memref<16x16x128xf32, #tpu.memory_space<vmem>>, vector<1x16x128xf32>,
    %93 = vector.extract_strided_slice %71 {offsets = [52, 0], sizes = [16, 128], strides = [1, 1]} : vector<289x128xf32> to vector<16x128xf32>
    %c3_60 = arith.constant 3 : index
    %c0_61 = arith.constant 0 : index
    %c0_62 = arith.constant 0 : index
    %94 = vector.load %arg6[%c3_60, %c0_61, %c0_62] : memref<16x16x128xf32, #tpu.memory_space<vmem>>, vector<1x16x128xf32>
    %95 = vector.shape_cast %94 : vector<1x16x128xf32> to vector<16x128xf32>
    %96 = arith.addf %95, %93 : vector<16x128xf32>
    %c3_63 = arith.constant 3 : index
    %c0_64 = arith.constant 0 : index
    %c0_65 = arith.constant 0 : index
    %97 = vector.load %arg6[%c3_63, %c0_64, %c0_65] : memref<16x16x128xf32, #tpu.memory_space<vmem>>, vector<1x16x128xf32>
    %98 = vector.shape_cast %97 : vector<1x16x128xf32> to vector<16x128xf32>
    %99 = vector.shape_cast %96 : vector<16x128xf32> to vector<1x16x128xf32>
    tpu.vector_store %arg6[%c3_63, %c0_64, %c0_65], %99 {strides = array<i32>} : memref<16x16x128xf32, #tpu.memory_space<vmem>>, vector<1x16x128xf32>,
    %100 = vector.extract_strided_slice %71 {offsets = [69, 0], sizes = [16, 128], strides = [1, 1]} : vector<289x128xf32> to vector<16x128xf32>
    %c4_66 = arith.constant 4 : index
    %c0_67 = arith.constant 0 : index
    %c0_68 = arith.constant 0 : index
    %101 = vector.load %arg6[%c4_66, %c0_67, %c0_68] : memref<16x16x128xf32, #tpu.memory_space<vmem>>, vector<1x16x128xf32>
    %102 = vector.shape_cast %101 : vector<1x16x128xf32> to vector<16x128xf32>
    %103 = arith.addf %102, %100 : vector<16x128xf32>
    %c4_69 = arith.constant 4 : index
    %c0_70 = arith.constant 0 : index
    %c0_71 = arith.constant 0 : index
    %104 = vector.load %arg6[%c4_69, %c0_70, %c0_71] : memref<16x16x128xf32, #tpu.memory_space<vmem>>, vector<1x16x128xf32>
    %105 = vector.shape_cast %104 : vector<1x16x128xf32> to vector<16x128xf32>
    %106 = vector.shape_cast %103 : vector<16x128xf32> to vector<1x16x128xf32>
    tpu.vector_store %arg6[%c4_69, %c0_70, %c0_71], %106 {strides = array<i32>} : memref<16x16x128xf32, #tpu.memory_space<vmem>>, vector<1x16x128xf32>,
    %107 = vector.extract_strided_slice %71 {offsets = [86, 0], sizes = [16, 128], strides = [1, 1]} : vector<289x128xf32> to vector<16x128xf32>
    %c5_72 = arith.constant 5 : index
    %c0_73 = arith.constant 0 : index
    %c0_74 = arith.constant 0 : index
    %108 = vector.load %arg6[%c5_72, %c0_73, %c0_74] : memref<16x16x128xf32, #tpu.memory_space<vmem>>, vector<1x16x128xf32>
    %109 = vector.shape_cast %108 : vector<1x16x128xf32> to vector<16x128xf32>
    %110 = arith.addf %109, %107 : vector<16x128xf32>
    %c5_75 = arith.constant 5 : index
    %c0_76 = arith.constant 0 : index
    %c0_77 = arith.constant 0 : index
    %111 = vector.load %arg6[%c5_75, %c0_76, %c0_77] : memref<16x16x128xf32, #tpu.memory_space<vmem>>, vector<1x16x128xf32>
    %112 = vector.shape_cast %111 : vector<1x16x128xf32> to vector<16x128xf32>
    %113 = vector.shape_cast %110 : vector<16x128xf32> to vector<1x16x128xf32>
    tpu.vector_store %arg6[%c5_75, %c0_76, %c0_77], %113 {strides = array<i32>} : memref<16x16x128xf32, #tpu.memory_space<vmem>>, vector<1x16x128xf32>,
    %114 = vector.extract_strided_slice %71 {offsets = [103, 0], sizes = [16, 128], strides = [1, 1]} : vector<289x128xf32> to vector<16x128xf32>
    %c6_78 = arith.constant 6 : index
    %c0_79 = arith.constant 0 : index
    %c0_80 = arith.constant 0 : index
    %115 = vector.load %arg6[%c6_78, %c0_79, %c0_80] : memref<16x16x128xf32, #tpu.memory_space<vmem>>, vector<1x16x128xf32>
    %116 = vector.shape_cast %115 : vector<1x16x128xf32> to vector<16x128xf32>
    %117 = arith.addf %116, %114 : vector<16x128xf32>
    %c6_81 = arith.constant 6 : index
    %c0_82 = arith.constant 0 : index
    %c0_83 = arith.constant 0 : index
    %118 = vector.load %arg6[%c6_81, %c0_82, %c0_83] : memref<16x16x128xf32, #tpu.memory_space<vmem>>, vector<1x16x128xf32>
    %119 = vector.shape_cast %118 : vector<1x16x128xf32> to vector<16x128xf32>
    %120 = vector.shape_cast %117 : vector<16x128xf32> to vector<1x16x128xf32>
    tpu.vector_store %arg6[%c6_81, %c0_82, %c0_83], %120 {strides = array<i32>} : memref<16x16x128xf32, #tpu.memory_space<vmem>>, vector<1x16x128xf32>,
    %121 = vector.extract_strided_slice %71 {offsets = [120, 0], sizes = [16, 128], strides = [1, 1]} : vector<289x128xf32> to vector<16x128xf32>
    %c7_84 = arith.constant 7 : index
    %c0_85 = arith.constant 0 : index
    %c0_86 = arith.constant 0 : index
    %122 = vector.load %arg6[%c7_84, %c0_85, %c0_86] : memref<16x16x128xf32, #tpu.memory_space<vmem>>, vector<1x16x128xf32>
    %123 = vector.shape_cast %122 : vector<1x16x128xf32> to vector<16x128xf32>
    %124 = arith.addf %123, %121 : vector<16x128xf32>
    %c7_87 = arith.constant 7 : index
    %c0_88 = arith.constant 0 : index
    %c0_89 = arith.constant 0 : index
    %125 = vector.load %arg6[%c7_87, %c0_88, %c0_89] : memref<16x16x128xf32, #tpu.memory_space<vmem>>, vector<1x16x128xf32>
    %126 = vector.shape_cast %125 : vector<1x16x128xf32> to vector<16x128xf32>
    %127 = vector.shape_cast %124 : vector<16x128xf32> to vector<1x16x128xf32>
    tpu.vector_store %arg6[%c7_87, %c0_88, %c0_89], %127 {strides = array<i32>} : memref<16x16x128xf32, #tpu.memory_space<vmem>>, vector<1x16x128xf32>,
    %128 = vector.extract_strided_slice %71 {offsets = [137, 0], sizes = [16, 128], strides = [1, 1]} : vector<289x128xf32> to vector<16x128xf32>
    %c8_90 = arith.constant 8 : index
    %c0_91 = arith.constant 0 : index
    %c0_92 = arith.constant 0 : index
    %129 = vector.load %arg6[%c8_90, %c0_91, %c0_92] : memref<16x16x128xf32, #tpu.memory_space<vmem>>, vector<1x16x128xf32>
    %130 = vector.shape_cast %129 : vector<1x16x128xf32> to vector<16x128xf32>
    %131 = arith.addf %130, %128 : vector<16x128xf32>
    %c8_93 = arith.constant 8 : index
    %c0_94 = arith.constant 0 : index
    %c0_95 = arith.constant 0 : index
    %132 = vector.load %arg6[%c8_93, %c0_94, %c0_95] : memref<16x16x128xf32, #tpu.memory_space<vmem>>, vector<1x16x128xf32>
    %133 = vector.shape_cast %132 : vector<1x16x128xf32> to vector<16x128xf32>
    %134 = vector.shape_cast %131 : vector<16x128xf32> to vector<1x16x128xf32>
    tpu.vector_store %arg6[%c8_93, %c0_94, %c0_95], %134 {strides = array<i32>} : memref<16x16x128xf32, #tpu.memory_space<vmem>>, vector<1x16x128xf32>,
    %135 = vector.extract_strided_slice %71 {offsets = [154, 0], sizes = [16, 128], strides = [1, 1]} : vector<289x128xf32> to vector<16x128xf32>
    %c9_96 = arith.constant 9 : index
    %c0_97 = arith.constant 0 : index
    %c0_98 = arith.constant 0 : index
    %136 = vector.load %arg6[%c9_96, %c0_97, %c0_98] : memref<16x16x128xf32, #tpu.memory_space<vmem>>, vector<1x16x128xf32>
    %137 = vector.shape_cast %136 : vector<1x16x128xf32> to vector<16x128xf32>
    %138 = arith.addf %137, %135 : vector<16x128xf32>
    %c9_99 = arith.constant 9 : index
    %c0_100 = arith.constant 0 : index
    %c0_101 = arith.constant 0 : index
    %139 = vector.load %arg6[%c9_99, %c0_100, %c0_101] : memref<16x16x128xf32, #tpu.memory_space<vmem>>, vector<1x16x128xf32>
    %140 = vector.shape_cast %139 : vector<1x16x128xf32> to vector<16x128xf32>
    %141 = vector.shape_cast %138 : vector<16x128xf32> to vector<1x16x128xf32>
    tpu.vector_store %arg6[%c9_99, %c0_100, %c0_101], %141 {strides = array<i32>} : memref<16x16x128xf32, #tpu.memory_space<vmem>>, vector<1x16x128xf32>,
    %142 = vector.extract_strided_slice %71 {offsets = [171, 0], sizes = [16, 128], strides = [1, 1]} : vector<289x128xf32> to vector<16x128xf32>
    %c10_102 = arith.constant 10 : index
    %c0_103 = arith.constant 0 : index
    %c0_104 = arith.constant 0 : index
    %143 = vector.load %arg6[%c10_102, %c0_103, %c0_104] : memref<16x16x128xf32, #tpu.memory_space<vmem>>, vector<1x16x128xf32>
    %144 = vector.shape_cast %143 : vector<1x16x128xf32> to vector<16x128xf32>
    %145 = arith.addf %144, %142 : vector<16x128xf32>
    %c10_105 = arith.constant 10 : index
    %c0_106 = arith.constant 0 : index
    %c0_107 = arith.constant 0 : index
    %146 = vector.load %arg6[%c10_105, %c0_106, %c0_107] : memref<16x16x128xf32, #tpu.memory_space<vmem>>, vector<1x16x128xf32>
    %147 = vector.shape_cast %146 : vector<1x16x128xf32> to vector<16x128xf32>
    %148 = vector.shape_cast %145 : vector<16x128xf32> to vector<1x16x128xf32>
    tpu.vector_store %arg6[%c10_105, %c0_106, %c0_107], %148 {strides = array<i32>} : memref<16x16x128xf32, #tpu.memory_space<vmem>>, vector<1x16x128xf32>,
    %149 = vector.extract_strided_slice %71 {offsets = [188, 0], sizes = [16, 128], strides = [1, 1]} : vector<289x128xf32> to vector<16x128xf32>
    %c11_108 = arith.constant 11 : index
    %c0_109 = arith.constant 0 : index
    %c0_110 = arith.constant 0 : index
    %150 = vector.load %arg6[%c11_108, %c0_109, %c0_110] : memref<16x16x128xf32, #tpu.memory_space<vmem>>, vector<1x16x128xf32>
    %151 = vector.shape_cast %150 : vector<1x16x128xf32> to vector<16x128xf32>
    %152 = arith.addf %151, %149 : vector<16x128xf32>
    %c11_111 = arith.constant 11 : index
    %c0_112 = arith.constant 0 : index
    %c0_113 = arith.constant 0 : index
    %153 = vector.load %arg6[%c11_111, %c0_112, %c0_113] : memref<16x16x128xf32, #tpu.memory_space<vmem>>, vector<1x16x128xf32>
    %154 = vector.shape_cast %153 : vector<1x16x128xf32> to vector<16x128xf32>
    %155 = vector.shape_cast %152 : vector<16x128xf32> to vector<1x16x128xf32>
    tpu.vector_store %arg6[%c11_111, %c0_112, %c0_113], %155 {strides = array<i32>} : memref<16x16x128xf32, #tpu.memory_space<vmem>>, vector<1x16x128xf32>,
    %156 = vector.extract_strided_slice %71 {offsets = [205, 0], sizes = [16, 128], strides = [1, 1]} : vector<289x128xf32> to vector<16x128xf32>
    %c12_114 = arith.constant 12 : index
    %c0_115 = arith.constant 0 : index
    %c0_116 = arith.constant 0 : index
    %157 = vector.load %arg6[%c12_114, %c0_115, %c0_116] : memref<16x16x128xf32, #tpu.memory_space<vmem>>, vector<1x16x128xf32>
    %158 = vector.shape_cast %157 : vector<1x16x128xf32> to vector<16x128xf32>
    %159 = arith.addf %158, %156 : vector<16x128xf32>
    %c12_117 = arith.constant 12 : index
    %c0_118 = arith.constant 0 : index
    %c0_119 = arith.constant 0 : index
    %160 = vector.load %arg6[%c12_117, %c0_118, %c0_119] : memref<16x16x128xf32, #tpu.memory_space<vmem>>, vector<1x16x128xf32>
    %161 = vector.shape_cast %160 : vector<1x16x128xf32> to vector<16x128xf32>
    %162 = vector.shape_cast %159 : vector<16x128xf32> to vector<1x16x128xf32>
    tpu.vector_store %arg6[%c12_117, %c0_118, %c0_119], %162 {strides = array<i32>} : memref<16x16x128xf32, #tpu.memory_space<vmem>>, vector<1x16x128xf32>,
    %163 = vector.extract_strided_slice %71 {offsets = [222, 0], sizes = [16, 128], strides = [1, 1]} : vector<289x128xf32> to vector<16x128xf32>
    %c13_120 = arith.constant 13 : index
    %c0_121 = arith.constant 0 : index
    %c0_122 = arith.constant 0 : index
    %164 = vector.load %arg6[%c13_120, %c0_121, %c0_122] : memref<16x16x128xf32, #tpu.memory_space<vmem>>, vector<1x16x128xf32>
    %165 = vector.shape_cast %164 : vector<1x16x128xf32> to vector<16x128xf32>
    %166 = arith.addf %165, %163 : vector<16x128xf32>
    %c13_123 = arith.constant 13 : index
    %c0_124 = arith.constant 0 : index
    %c0_125 = arith.constant 0 : index
    %167 = vector.load %arg6[%c13_123, %c0_124, %c0_125] : memref<16x16x128xf32, #tpu.memory_space<vmem>>, vector<1x16x128xf32>
    %168 = vector.shape_cast %167 : vector<1x16x128xf32> to vector<16x128xf32>
    %169 = vector.shape_cast %166 : vector<16x128xf32> to vector<1x16x128xf32>
    tpu.vector_store %arg6[%c13_123, %c0_124, %c0_125], %169 {strides = array<i32>} : memref<16x16x128xf32, #tpu.memory_space<vmem>>, vector<1x16x128xf32>,
    %170 = vector.extract_strided_slice %71 {offsets = [239, 0], sizes = [16, 128], strides = [1, 1]} : vector<289x128xf32> to vector<16x128xf32>
    %c14_126 = arith.constant 14 : index
    %c0_127 = arith.constant 0 : index
    %c0_128 = arith.constant 0 : index
    %171 = vector.load %arg6[%c14_126, %c0_127, %c0_128] : memref<16x16x128xf32, #tpu.memory_space<vmem>>, vector<1x16x128xf32>
    %172 = vector.shape_cast %171 : vector<1x16x128xf32> to vector<16x128xf32>
    %173 = arith.addf %172, %170 : vector<16x128xf32>
    %c14_129 = arith.constant 14 : index
    %c0_130 = arith.constant 0 : index
    %c0_131 = arith.constant 0 : index
    %174 = vector.load %arg6[%c14_129, %c0_130, %c0_131] : memref<16x16x128xf32, #tpu.memory_space<vmem>>, vector<1x16x128xf32>
    %175 = vector.shape_cast %174 : vector<1x16x128xf32> to vector<16x128xf32>
    %176 = vector.shape_cast %173 : vector<16x128xf32> to vector<1x16x128xf32>
    tpu.vector_store %arg6[%c14_129, %c0_130, %c0_131], %176 {strides = array<i32>} : memref<16x16x128xf32, #tpu.memory_space<vmem>>, vector<1x16x128xf32>,
    %177 = vector.extract_strided_slice %71 {offsets = [256, 0], sizes = [16, 128], strides = [1, 1]} : vector<289x128xf32> to vector<16x128xf32>
    %c15_132 = arith.constant 15 : index
    %c0_133 = arith.constant 0 : index
    %c0_134 = arith.constant 0 : index
    %178 = vector.load %arg6[%c15_132, %c0_133, %c0_134] : memref<16x16x128xf32, #tpu.memory_space<vmem>>, vector<1x16x128xf32>
    %179 = vector.shape_cast %178 : vector<1x16x128xf32> to vector<16x128xf32>
    %180 = arith.addf %179, %177 : vector<16x128xf32>
    %c15_135 = arith.constant 15 : index
    %c0_136 = arith.constant 0 : index
    %c0_137 = arith.constant 0 : index
    %181 = vector.load %arg6[%c15_135, %c0_136, %c0_137] : memref<16x16x128xf32, #tpu.memory_space<vmem>>, vector<1x16x128xf32>
    %182 = vector.shape_cast %181 : vector<1x16x128xf32> to vector<16x128xf32>
    %183 = vector.shape_cast %180 : vector<16x128xf32> to vector<1x16x128xf32>
    tpu.vector_store %arg6[%c15_135, %c0_136, %c0_137], %183 {strides = array<i32>} : memref<16x16x128xf32, #tpu.memory_space<vmem>>, vector<1x16x128xf32>,
    %c2_138 = arith.constant 2 : index
    %c0_139 = arith.constant 0 : index
    %c0_140 = arith.constant 0 : index
    %184 = vector.load %arg3[%c2_138, %c0_139, %c0_140] : memref<4x16x128xbf16, #tpu.memory_space<vmem>>, vector<1x16x128xbf16>
    %185 = vector.shape_cast %184 : vector<1x16x128xbf16> to vector<16x128xbf16>
    %cst_141 = arith.constant dense<0.000000e+00> : vector<289x128xf32>
    %186 = tpu.matmul %1, %185, %cst_141 {dimension_numbers = #tpu.dot_dimension_numbers<[1], [0], [0], [1], [0, 0, 1, 1], [], []>} : vector<289x16xbf16>, vector<16x128xbf16>, vector<289x128xf32> -> vector<289x128xf32>
    %187 = vector.extract_strided_slice %186 {offsets = [17, 0], sizes = [16, 128], strides = [1, 1]} : vector<289x128xf32> to vector<16x128xf32>
    %c0_142 = arith.constant 0 : index
    %c0_143 = arith.constant 0 : index
    %c0_144 = arith.constant 0 : index
    %188 = vector.load %arg6[%c0_142, %c0_143, %c0_144] : memref<16x16x128xf32, #tpu.memory_space<vmem>>, vector<1x16x128xf32>
    %189 = vector.shape_cast %188 : vector<1x16x128xf32> to vector<16x128xf32>
    %190 = arith.addf %189, %187 : vector<16x128xf32>
    %c0_145 = arith.constant 0 : index
    %c0_146 = arith.constant 0 : index
    %c0_147 = arith.constant 0 : index
    %191 = vector.load %arg6[%c0_145, %c0_146, %c0_147] : memref<16x16x128xf32, #tpu.memory_space<vmem>>, vector<1x16x128xf32>
    %192 = vector.shape_cast %191 : vector<1x16x128xf32> to vector<16x128xf32>
    %193 = vector.shape_cast %190 : vector<16x128xf32> to vector<1x16x128xf32>
    tpu.vector_store %arg6[%c0_145, %c0_146, %c0_147], %193 {strides = array<i32>} : memref<16x16x128xf32, #tpu.memory_space<vmem>>, vector<1x16x128xf32>,
    %194 = vector.extract_strided_slice %186 {offsets = [34, 0], sizes = [16, 128], strides = [1, 1]} : vector<289x128xf32> to vector<16x128xf32>
    %c1_148 = arith.constant 1 : index
    %c0_149 = arith.constant 0 : index
    %c0_150 = arith.constant 0 : index
    %195 = vector.load %arg6[%c1_148, %c0_149, %c0_150] : memref<16x16x128xf32, #tpu.memory_space<vmem>>, vector<1x16x128xf32>
    %196 = vector.shape_cast %195 : vector<1x16x128xf32> to vector<16x128xf32>
    %197 = arith.addf %196, %194 : vector<16x128xf32>
    %c1_151 = arith.constant 1 : index
    %c0_152 = arith.constant 0 : index
    %c0_153 = arith.constant 0 : index
    %198 = vector.load %arg6[%c1_151, %c0_152, %c0_153] : memref<16x16x128xf32, #tpu.memory_space<vmem>>, vector<1x16x128xf32>
    %199 = vector.shape_cast %198 : vector<1x16x128xf32> to vector<16x128xf32>
    %200 = vector.shape_cast %197 : vector<16x128xf32> to vector<1x16x128xf32>
    tpu.vector_store %arg6[%c1_151, %c0_152, %c0_153], %200 {strides = array<i32>} : memref<16x16x128xf32, #tpu.memory_space<vmem>>, vector<1x16x128xf32>,
    %201 = vector.extract_strided_slice %186 {offsets = [51, 0], sizes = [16, 128], strides = [1, 1]} : vector<289x128xf32> to vector<16x128xf32>
    %c2_154 = arith.constant 2 : index
    %c0_155 = arith.constant 0 : index
    %c0_156 = arith.constant 0 : index
    %202 = vector.load %arg6[%c2_154, %c0_155, %c0_156] : memref<16x16x128xf32, #tpu.memory_space<vmem>>, vector<1x16x128xf32>
    %203 = vector.shape_cast %202 : vector<1x16x128xf32> to vector<16x128xf32>
    %204 = arith.addf %203, %201 : vector<16x128xf32>
    %c2_157 = arith.constant 2 : index
    %c0_158 = arith.constant 0 : index
    %c0_159 = arith.constant 0 : index
    %205 = vector.load %arg6[%c2_157, %c0_158, %c0_159] : memref<16x16x128xf32, #tpu.memory_space<vmem>>, vector<1x16x128xf32>
    %206 = vector.shape_cast %205 : vector<1x16x128xf32> to vector<16x128xf32>
    %207 = vector.shape_cast %204 : vector<16x128xf32> to vector<1x16x128xf32>
    tpu.vector_store %arg6[%c2_157, %c0_158, %c0_159], %207 {strides = array<i32>} : memref<16x16x128xf32, #tpu.memory_space<vmem>>, vector<1x16x128xf32>,
    %208 = vector.extract_strided_slice %186 {offsets = [68, 0], sizes = [16, 128], strides = [1, 1]} : vector<289x128xf32> to vector<16x128xf32>
    %c3_160 = arith.constant 3 : index
    %c0_161 = arith.constant 0 : index
    %c0_162 = arith.constant 0 : index
    %209 = vector.load %arg6[%c3_160, %c0_161, %c0_162] : memref<16x16x128xf32, #tpu.memory_space<vmem>>, vector<1x16x128xf32>
    %210 = vector.shape_cast %209 : vector<1x16x128xf32> to vector<16x128xf32>
    %211 = arith.addf %210, %208 : vector<16x128xf32>
    %c3_163 = arith.constant 3 : index
    %c0_164 = arith.constant 0 : index
    %c0_165 = arith.constant 0 : index
    %212 = vector.load %arg6[%c3_163, %c0_164, %c0_165] : memref<16x16x128xf32, #tpu.memory_space<vmem>>, vector<1x16x128xf32>
    %213 = vector.shape_cast %212 : vector<1x16x128xf32> to vector<16x128xf32>
    %214 = vector.shape_cast %211 : vector<16x128xf32> to vector<1x16x128xf32>
    tpu.vector_store %arg6[%c3_163, %c0_164, %c0_165], %214 {strides = array<i32>} : memref<16x16x128xf32, #tpu.memory_space<vmem>>, vector<1x16x128xf32>,
    %215 = vector.extract_strided_slice %186 {offsets = [85, 0], sizes = [16, 128], strides = [1, 1]} : vector<289x128xf32> to vector<16x128xf32>
    %c4_166 = arith.constant 4 : index
    %c0_167 = arith.constant 0 : index
    %c0_168 = arith.constant 0 : index
    %216 = vector.load %arg6[%c4_166, %c0_167, %c0_168] : memref<16x16x128xf32, #tpu.memory_space<vmem>>, vector<1x16x128xf32>
    %217 = vector.shape_cast %216 : vector<1x16x128xf32> to vector<16x128xf32>
    %218 = arith.addf %217, %215 : vector<16x128xf32>
    %c4_169 = arith.constant 4 : index
    %c0_170 = arith.constant 0 : index
    %c0_171 = arith.constant 0 : index
    %219 = vector.load %arg6[%c4_169, %c0_170, %c0_171] : memref<16x16x128xf32, #tpu.memory_space<vmem>>, vector<1x16x128xf32>
    %220 = vector.shape_cast %219 : vector<1x16x128xf32> to vector<16x128xf32>
    %221 = vector.shape_cast %218 : vector<16x128xf32> to vector<1x16x128xf32>
    tpu.vector_store %arg6[%c4_169, %c0_170, %c0_171], %221 {strides = array<i32>} : memref<16x16x128xf32, #tpu.memory_space<vmem>>, vector<1x16x128xf32>,
    %222 = vector.extract_strided_slice %186 {offsets = [102, 0], sizes = [16, 128], strides = [1, 1]} : vector<289x128xf32> to vector<16x128xf32>
    %c5_172 = arith.constant 5 : index
    %c0_173 = arith.constant 0 : index
    %c0_174 = arith.constant 0 : index
    %223 = vector.load %arg6[%c5_172, %c0_173, %c0_174] : memref<16x16x128xf32, #tpu.memory_space<vmem>>, vector<1x16x128xf32>
    %224 = vector.shape_cast %223 : vector<1x16x128xf32> to vector<16x128xf32>
    %225 = arith.addf %224, %222 : vector<16x128xf32>
    %c5_175 = arith.constant 5 : index
    %c0_176 = arith.constant 0 : index
    %c0_177 = arith.constant 0 : index
    %226 = vector.load %arg6[%c5_175, %c0_176, %c0_177] : memref<16x16x128xf32, #tpu.memory_space<vmem>>, vector<1x16x128xf32>
    %227 = vector.shape_cast %226 : vector<1x16x128xf32> to vector<16x128xf32>
    %228 = vector.shape_cast %225 : vector<16x128xf32> to vector<1x16x128xf32>
    tpu.vector_store %arg6[%c5_175, %c0_176, %c0_177], %228 {strides = array<i32>} : memref<16x16x128xf32, #tpu.memory_space<vmem>>, vector<1x16x128xf32>,
    %229 = vector.extract_strided_slice %186 {offsets = [119, 0], sizes = [16, 128], strides = [1, 1]} : vector<289x128xf32> to vector<16x128xf32>
    %c6_178 = arith.constant 6 : index
    %c0_179 = arith.constant 0 : index
    %c0_180 = arith.constant 0 : index
    %230 = vector.load %arg6[%c6_178, %c0_179, %c0_180] : memref<16x16x128xf32, #tpu.memory_space<vmem>>, vector<1x16x128xf32>
    %231 = vector.shape_cast %230 : vector<1x16x128xf32> to vector<16x128xf32>
    %232 = arith.addf %231, %229 : vector<16x128xf32>
    %c6_181 = arith.constant 6 : index
    %c0_182 = arith.constant 0 : index
    %c0_183 = arith.constant 0 : index
    %233 = vector.load %arg6[%c6_181, %c0_182, %c0_183] : memref<16x16x128xf32, #tpu.memory_space<vmem>>, vector<1x16x128xf32>
    %234 = vector.shape_cast %233 : vector<1x16x128xf32> to vector<16x128xf32>
    %235 = vector.shape_cast %232 : vector<16x128xf32> to vector<1x16x128xf32>
    tpu.vector_store %arg6[%c6_181, %c0_182, %c0_183], %235 {strides = array<i32>} : memref<16x16x128xf32, #tpu.memory_space<vmem>>, vector<1x16x128xf32>,
    %236 = vector.extract_strided_slice %186 {offsets = [136, 0], sizes = [16, 128], strides = [1, 1]} : vector<289x128xf32> to vector<16x128xf32>
    %c7_184 = arith.constant 7 : index
    %c0_185 = arith.constant 0 : index
    %c0_186 = arith.constant 0 : index
    %237 = vector.load %arg6[%c7_184, %c0_185, %c0_186] : memref<16x16x128xf32, #tpu.memory_space<vmem>>, vector<1x16x128xf32>
    %238 = vector.shape_cast %237 : vector<1x16x128xf32> to vector<16x128xf32>
    %239 = arith.addf %238, %236 : vector<16x128xf32>
    %c7_187 = arith.constant 7 : index
    %c0_188 = arith.constant 0 : index
    %c0_189 = arith.constant 0 : index
    %240 = vector.load %arg6[%c7_187, %c0_188, %c0_189] : memref<16x16x128xf32, #tpu.memory_space<vmem>>, vector<1x16x128xf32>
    %241 = vector.shape_cast %240 : vector<1x16x128xf32> to vector<16x128xf32>
    %242 = vector.shape_cast %239 : vector<16x128xf32> to vector<1x16x128xf32>
    tpu.vector_store %arg6[%c7_187, %c0_188, %c0_189], %242 {strides = array<i32>} : memref<16x16x128xf32, #tpu.memory_space<vmem>>, vector<1x16x128xf32>,
    %243 = vector.extract_strided_slice %186 {offsets = [153, 0], sizes = [16, 128], strides = [1, 1]} : vector<289x128xf32> to vector<16x128xf32>
    %c8_190 = arith.constant 8 : index
    %c0_191 = arith.constant 0 : index
    %c0_192 = arith.constant 0 : index
    %244 = vector.load %arg6[%c8_190, %c0_191, %c0_192] : memref<16x16x128xf32, #tpu.memory_space<vmem>>, vector<1x16x128xf32>
    %245 = vector.shape_cast %244 : vector<1x16x128xf32> to vector<16x128xf32>
    %246 = arith.addf %245, %243 : vector<16x128xf32>
    %c8_193 = arith.constant 8 : index
    %c0_194 = arith.constant 0 : index
    %c0_195 = arith.constant 0 : index
    %247 = vector.load %arg6[%c8_193, %c0_194, %c0_195] : memref<16x16x128xf32, #tpu.memory_space<vmem>>, vector<1x16x128xf32>
    %248 = vector.shape_cast %247 : vector<1x16x128xf32> to vector<16x128xf32>
    %249 = vector.shape_cast %246 : vector<16x128xf32> to vector<1x16x128xf32>
    tpu.vector_store %arg6[%c8_193, %c0_194, %c0_195], %249 {strides = array<i32>} : memref<16x16x128xf32, #tpu.memory_space<vmem>>, vector<1x16x128xf32>,
    %250 = vector.extract_strided_slice %186 {offsets = [170, 0], sizes = [16, 128], strides = [1, 1]} : vector<289x128xf32> to vector<16x128xf32>
    %c9_196 = arith.constant 9 : index
    %c0_197 = arith.constant 0 : index
    %c0_198 = arith.constant 0 : index
    %251 = vector.load %arg6[%c9_196, %c0_197, %c0_198] : memref<16x16x128xf32, #tpu.memory_space<vmem>>, vector<1x16x128xf32>
    %252 = vector.shape_cast %251 : vector<1x16x128xf32> to vector<16x128xf32>
    %253 = arith.addf %252, %250 : vector<16x128xf32>
    %c9_199 = arith.constant 9 : index
    %c0_200 = arith.constant 0 : index
    %c0_201 = arith.constant 0 : index
    %254 = vector.load %arg6[%c9_199, %c0_200, %c0_201] : memref<16x16x128xf32, #tpu.memory_space<vmem>>, vector<1x16x128xf32>
    %255 = vector.shape_cast %254 : vector<1x16x128xf32> to vector<16x128xf32>
    %256 = vector.shape_cast %253 : vector<16x128xf32> to vector<1x16x128xf32>
    tpu.vector_store %arg6[%c9_199, %c0_200, %c0_201], %256 {strides = array<i32>} : memref<16x16x128xf32, #tpu.memory_space<vmem>>, vector<1x16x128xf32>,
    %257 = vector.extract_strided_slice %186 {offsets = [187, 0], sizes = [16, 128], strides = [1, 1]} : vector<289x128xf32> to vector<16x128xf32>
    %c10_202 = arith.constant 10 : index
    %c0_203 = arith.constant 0 : index
    %c0_204 = arith.constant 0 : index
    %258 = vector.load %arg6[%c10_202, %c0_203, %c0_204] : memref<16x16x128xf32, #tpu.memory_space<vmem>>, vector<1x16x128xf32>
    %259 = vector.shape_cast %258 : vector<1x16x128xf32> to vector<16x128xf32>
    %260 = arith.addf %259, %257 : vector<16x128xf32>
    %c10_205 = arith.constant 10 : index
    %c0_206 = arith.constant 0 : index
    %c0_207 = arith.constant 0 : index
    %261 = vector.load %arg6[%c10_205, %c0_206, %c0_207] : memref<16x16x128xf32, #tpu.memory_space<vmem>>, vector<1x16x128xf32>
    %262 = vector.shape_cast %261 : vector<1x16x128xf32> to vector<16x128xf32>
    %263 = vector.shape_cast %260 : vector<16x128xf32> to vector<1x16x128xf32>
    tpu.vector_store %arg6[%c10_205, %c0_206, %c0_207], %263 {strides = array<i32>} : memref<16x16x128xf32, #tpu.memory_space<vmem>>, vector<1x16x128xf32>,
    %264 = vector.extract_strided_slice %186 {offsets = [204, 0], sizes = [16, 128], strides = [1, 1]} : vector<289x128xf32> to vector<16x128xf32>
    %c11_208 = arith.constant 11 : index
    %c0_209 = arith.constant 0 : index
    %c0_210 = arith.constant 0 : index
    %265 = vector.load %arg6[%c11_208, %c0_209, %c0_210] : memref<16x16x128xf32, #tpu.memory_space<vmem>>, vector<1x16x128xf32>
    %266 = vector.shape_cast %265 : vector<1x16x128xf32> to vector<16x128xf32>
    %267 = arith.addf %266, %264 : vector<16x128xf32>
    %c11_211 = arith.constant 11 : index
    %c0_212 = arith.constant 0 : index
    %c0_213 = arith.constant 0 : index
    %268 = vector.load %arg6[%c11_211, %c0_212, %c0_213] : memref<16x16x128xf32, #tpu.memory_space<vmem>>, vector<1x16x128xf32>
    %269 = vector.shape_cast %268 : vector<1x16x128xf32> to vector<16x128xf32>
    %270 = vector.shape_cast %267 : vector<16x128xf32> to vector<1x16x128xf32>
    tpu.vector_store %arg6[%c11_211, %c0_212, %c0_213], %270 {strides = array<i32>} : memref<16x16x128xf32, #tpu.memory_space<vmem>>, vector<1x16x128xf32>,
    %271 = vector.extract_strided_slice %186 {offsets = [221, 0], sizes = [16, 128], strides = [1, 1]} : vector<289x128xf32> to vector<16x128xf32>
    %c12_214 = arith.constant 12 : index
    %c0_215 = arith.constant 0 : index
    %c0_216 = arith.constant 0 : index
    %272 = vector.load %arg6[%c12_214, %c0_215, %c0_216] : memref<16x16x128xf32, #tpu.memory_space<vmem>>, vector<1x16x128xf32>
    %273 = vector.shape_cast %272 : vector<1x16x128xf32> to vector<16x128xf32>
    %274 = arith.addf %273, %271 : vector<16x128xf32>
    %c12_217 = arith.constant 12 : index
    %c0_218 = arith.constant 0 : index
    %c0_219 = arith.constant 0 : index
    %275 = vector.load %arg6[%c12_217, %c0_218, %c0_219] : memref<16x16x128xf32, #tpu.memory_space<vmem>>, vector<1x16x128xf32>
    %276 = vector.shape_cast %275 : vector<1x16x128xf32> to vector<16x128xf32>
    %277 = vector.shape_cast %274 : vector<16x128xf32> to vector<1x16x128xf32>
    tpu.vector_store %arg6[%c12_217, %c0_218, %c0_219], %277 {strides = array<i32>} : memref<16x16x128xf32, #tpu.memory_space<vmem>>, vector<1x16x128xf32>,
    %278 = vector.extract_strided_slice %186 {offsets = [238, 0], sizes = [16, 128], strides = [1, 1]} : vector<289x128xf32> to vector<16x128xf32>
    %c13_220 = arith.constant 13 : index
    %c0_221 = arith.constant 0 : index
    %c0_222 = arith.constant 0 : index
    %279 = vector.load %arg6[%c13_220, %c0_221, %c0_222] : memref<16x16x128xf32, #tpu.memory_space<vmem>>, vector<1x16x128xf32>
    %280 = vector.shape_cast %279 : vector<1x16x128xf32> to vector<16x128xf32>
    %281 = arith.addf %280, %278 : vector<16x128xf32>
    %c13_223 = arith.constant 13 : index
    %c0_224 = arith.constant 0 : index
    %c0_225 = arith.constant 0 : index
    %282 = vector.load %arg6[%c13_223, %c0_224, %c0_225] : memref<16x16x128xf32, #tpu.memory_space<vmem>>, vector<1x16x128xf32>
    %283 = vector.shape_cast %282 : vector<1x16x128xf32> to vector<16x128xf32>
    %284 = vector.shape_cast %281 : vector<16x128xf32> to vector<1x16x128xf32>
    tpu.vector_store %arg6[%c13_223, %c0_224, %c0_225], %284 {strides = array<i32>} : memref<16x16x128xf32, #tpu.memory_space<vmem>>, vector<1x16x128xf32>,
    %285 = vector.extract_strided_slice %186 {offsets = [255, 0], sizes = [16, 128], strides = [1, 1]} : vector<289x128xf32> to vector<16x128xf32>
    %c14_226 = arith.constant 14 : index
    %c0_227 = arith.constant 0 : index
    %c0_228 = arith.constant 0 : index
    %286 = vector.load %arg6[%c14_226, %c0_227, %c0_228] : memref<16x16x128xf32, #tpu.memory_space<vmem>>, vector<1x16x128xf32>
    %287 = vector.shape_cast %286 : vector<1x16x128xf32> to vector<16x128xf32>
    %288 = arith.addf %287, %285 : vector<16x128xf32>
    %c14_229 = arith.constant 14 : index
    %c0_230 = arith.constant 0 : index
    %c0_231 = arith.constant 0 : index
    %289 = vector.load %arg6[%c14_229, %c0_230, %c0_231] : memref<16x16x128xf32, #tpu.memory_space<vmem>>, vector<1x16x128xf32>
    %290 = vector.shape_cast %289 : vector<1x16x128xf32> to vector<16x128xf32>
    %291 = vector.shape_cast %288 : vector<16x128xf32> to vector<1x16x128xf32>
    tpu.vector_store %arg6[%c14_229, %c0_230, %c0_231], %291 {strides = array<i32>} : memref<16x16x128xf32, #tpu.memory_space<vmem>>, vector<1x16x128xf32>,
    %292 = vector.extract_strided_slice %186 {offsets = [272, 0], sizes = [16, 128], strides = [1, 1]} : vector<289x128xf32> to vector<16x128xf32>
    %c15_232 = arith.constant 15 : index
    %c0_233 = arith.constant 0 : index
    %c0_234 = arith.constant 0 : index
    %293 = vector.load %arg6[%c15_232, %c0_233, %c0_234] : memref<16x16x128xf32, #tpu.memory_space<vmem>>, vector<1x16x128xf32>
    %294 = vector.shape_cast %293 : vector<1x16x128xf32> to vector<16x128xf32>
    %295 = arith.addf %294, %292 : vector<16x128xf32>
    %c15_235 = arith.constant 15 : index
    %c0_236 = arith.constant 0 : index
    %c0_237 = arith.constant 0 : index
    %296 = vector.load %arg6[%c15_235, %c0_236, %c0_237] : memref<16x16x128xf32, #tpu.memory_space<vmem>>, vector<1x16x128xf32>
    %297 = vector.shape_cast %296 : vector<1x16x128xf32> to vector<16x128xf32>
    %298 = vector.shape_cast %295 : vector<16x128xf32> to vector<1x16x128xf32>
    tpu.vector_store %arg6[%c15_235, %c0_236, %c0_237], %298 {strides = array<i32>} : memref<16x16x128xf32, #tpu.memory_space<vmem>>, vector<1x16x128xf32>,
    %c3_238 = arith.constant 3 : index
    %c0_239 = arith.constant 0 : index
    %c0_240 = arith.constant 0 : index
    %299 = vector.load %arg3[%c3_238, %c0_239, %c0_240] : memref<4x16x128xbf16, #tpu.memory_space<vmem>>, vector<1x16x128xbf16>
    %300 = vector.shape_cast %299 : vector<1x16x128xbf16> to vector<16x128xbf16>
    %cst_241 = arith.constant dense<0.000000e+00> : vector<289x128xf32>
    %301 = tpu.matmul %1, %300, %cst_241 {dimension_numbers = #tpu.dot_dimension_numbers<[1], [0], [0], [1], [0, 0, 1, 1], [], []>} : vector<289x16xbf16>, vector<16x128xbf16>, vector<289x128xf32> -> vector<289x128xf32>
    %302 = vector.extract_strided_slice %301 {offsets = [18, 0], sizes = [16, 128], strides = [1, 1]} : vector<289x128xf32> to vector<16x128xf32>
    %c0_242 = arith.constant 0 : index
    %c0_243 = arith.constant 0 : index
    %c0_244 = arith.constant 0 : index
    %303 = vector.load %arg6[%c0_242, %c0_243, %c0_244] : memref<16x16x128xf32, #tpu.memory_space<vmem>>, vector<1x16x128xf32>
    %304 = vector.shape_cast %303 : vector<1x16x128xf32> to vector<16x128xf32>
    %305 = arith.addf %304, %302 : vector<16x128xf32>
    %c0_245 = arith.constant 0 : index
    %c0_246 = arith.constant 0 : index
    %c0_247 = arith.constant 0 : index
    %306 = vector.load %arg6[%c0_245, %c0_246, %c0_247] : memref<16x16x128xf32, #tpu.memory_space<vmem>>, vector<1x16x128xf32>
    %307 = vector.shape_cast %306 : vector<1x16x128xf32> to vector<16x128xf32>
    %308 = vector.shape_cast %305 : vector<16x128xf32> to vector<1x16x128xf32>
    tpu.vector_store %arg6[%c0_245, %c0_246, %c0_247], %308 {strides = array<i32>} : memref<16x16x128xf32, #tpu.memory_space<vmem>>, vector<1x16x128xf32>,
    %309 = vector.extract_strided_slice %301 {offsets = [35, 0], sizes = [16, 128], strides = [1, 1]} : vector<289x128xf32> to vector<16x128xf32>
    %c1_248 = arith.constant 1 : index
    %c0_249 = arith.constant 0 : index
    %c0_250 = arith.constant 0 : index
    %310 = vector.load %arg6[%c1_248, %c0_249, %c0_250] : memref<16x16x128xf32, #tpu.memory_space<vmem>>, vector<1x16x128xf32>
    %311 = vector.shape_cast %310 : vector<1x16x128xf32> to vector<16x128xf32>
    %312 = arith.addf %311, %309 : vector<16x128xf32>
    %c1_251 = arith.constant 1 : index
    %c0_252 = arith.constant 0 : index
    %c0_253 = arith.constant 0 : index
    %313 = vector.load %arg6[%c1_251, %c0_252, %c0_253] : memref<16x16x128xf32, #tpu.memory_space<vmem>>, vector<1x16x128xf32>
    %314 = vector.shape_cast %313 : vector<1x16x128xf32> to vector<16x128xf32>
    %315 = vector.shape_cast %312 : vector<16x128xf32> to vector<1x16x128xf32>
    tpu.vector_store %arg6[%c1_251, %c0_252, %c0_253], %315 {strides = array<i32>} : memref<16x16x128xf32, #tpu.memory_space<vmem>>, vector<1x16x128xf32>,
    %316 = vector.extract_strided_slice %301 {offsets = [52, 0], sizes = [16, 128], strides = [1, 1]} : vector<289x128xf32> to vector<16x128xf32>
    %c2_254 = arith.constant 2 : index
    %c0_255 = arith.constant 0 : index
    %c0_256 = arith.constant 0 : index
    %317 = vector.load %arg6[%c2_254, %c0_255, %c0_256] : memref<16x16x128xf32, #tpu.memory_space<vmem>>, vector<1x16x128xf32>
    %318 = vector.shape_cast %317 : vector<1x16x128xf32> to vector<16x128xf32>
    %319 = arith.addf %318, %316 : vector<16x128xf32>
    %c2_257 = arith.constant 2 : index
    %c0_258 = arith.constant 0 : index
    %c0_259 = arith.constant 0 : index
    %320 = vector.load %arg6[%c2_257, %c0_258, %c0_259] : memref<16x16x128xf32, #tpu.memory_space<vmem>>, vector<1x16x128xf32>
    %321 = vector.shape_cast %320 : vector<1x16x128xf32> to vector<16x128xf32>
    %322 = vector.shape_cast %319 : vector<16x128xf32> to vector<1x16x128xf32>
    tpu.vector_store %arg6[%c2_257, %c0_258, %c0_259], %322 {strides = array<i32>} : memref<16x16x128xf32, #tpu.memory_space<vmem>>, vector<1x16x128xf32>,
    %323 = vector.extract_strided_slice %301 {offsets = [69, 0], sizes = [16, 128], strides = [1, 1]} : vector<289x128xf32> to vector<16x128xf32>
    %c3_260 = arith.constant 3 : index
    %c0_261 = arith.constant 0 : index
    %c0_262 = arith.constant 0 : index
    %324 = vector.load %arg6[%c3_260, %c0_261, %c0_262] : memref<16x16x128xf32, #tpu.memory_space<vmem>>, vector<1x16x128xf32>
    %325 = vector.shape_cast %324 : vector<1x16x128xf32> to vector<16x128xf32>
    %326 = arith.addf %325, %323 : vector<16x128xf32>
    %c3_263 = arith.constant 3 : index
    %c0_264 = arith.constant 0 : index
    %c0_265 = arith.constant 0 : index
    %327 = vector.load %arg6[%c3_263, %c0_264, %c0_265] : memref<16x16x128xf32, #tpu.memory_space<vmem>>, vector<1x16x128xf32>
    %328 = vector.shape_cast %327 : vector<1x16x128xf32> to vector<16x128xf32>
    %329 = vector.shape_cast %326 : vector<16x128xf32> to vector<1x16x128xf32>
    tpu.vector_store %arg6[%c3_263, %c0_264, %c0_265], %329 {strides = array<i32>} : memref<16x16x128xf32, #tpu.memory_space<vmem>>, vector<1x16x128xf32>,
    %330 = vector.extract_strided_slice %301 {offsets = [86, 0], sizes = [16, 128], strides = [1, 1]} : vector<289x128xf32> to vector<16x128xf32>
    %c4_266 = arith.constant 4 : index
    %c0_267 = arith.constant 0 : index
    %c0_268 = arith.constant 0 : index
    %331 = vector.load %arg6[%c4_266, %c0_267, %c0_268] : memref<16x16x128xf32, #tpu.memory_space<vmem>>, vector<1x16x128xf32>
    %332 = vector.shape_cast %331 : vector<1x16x128xf32> to vector<16x128xf32>
    %333 = arith.addf %332, %330 : vector<16x128xf32>
    %c4_269 = arith.constant 4 : index
    %c0_270 = arith.constant 0 : index
    %c0_271 = arith.constant 0 : index
    %334 = vector.load %arg6[%c4_269, %c0_270, %c0_271] : memref<16x16x128xf32, #tpu.memory_space<vmem>>, vector<1x16x128xf32>
    %335 = vector.shape_cast %334 : vector<1x16x128xf32> to vector<16x128xf32>
    %336 = vector.shape_cast %333 : vector<16x128xf32> to vector<1x16x128xf32>
    tpu.vector_store %arg6[%c4_269, %c0_270, %c0_271], %336 {strides = array<i32>} : memref<16x16x128xf32, #tpu.memory_space<vmem>>, vector<1x16x128xf32>,
    %337 = vector.extract_strided_slice %301 {offsets = [103, 0], sizes = [16, 128], strides = [1, 1]} : vector<289x128xf32> to vector<16x128xf32>
    %c5_272 = arith.constant 5 : index
    %c0_273 = arith.constant 0 : index
    %c0_274 = arith.constant 0 : index
    %338 = vector.load %arg6[%c5_272, %c0_273, %c0_274] : memref<16x16x128xf32, #tpu.memory_space<vmem>>, vector<1x16x128xf32>
    %339 = vector.shape_cast %338 : vector<1x16x128xf32> to vector<16x128xf32>
    %340 = arith.addf %339, %337 : vector<16x128xf32>
    %c5_275 = arith.constant 5 : index
    %c0_276 = arith.constant 0 : index
    %c0_277 = arith.constant 0 : index
    %341 = vector.load %arg6[%c5_275, %c0_276, %c0_277] : memref<16x16x128xf32, #tpu.memory_space<vmem>>, vector<1x16x128xf32>
    %342 = vector.shape_cast %341 : vector<1x16x128xf32> to vector<16x128xf32>
    %343 = vector.shape_cast %340 : vector<16x128xf32> to vector<1x16x128xf32>
    tpu.vector_store %arg6[%c5_275, %c0_276, %c0_277], %343 {strides = array<i32>} : memref<16x16x128xf32, #tpu.memory_space<vmem>>, vector<1x16x128xf32>,
    %344 = vector.extract_strided_slice %301 {offsets = [120, 0], sizes = [16, 128], strides = [1, 1]} : vector<289x128xf32> to vector<16x128xf32>
    %c6_278 = arith.constant 6 : index
    %c0_279 = arith.constant 0 : index
    %c0_280 = arith.constant 0 : index
    %345 = vector.load %arg6[%c6_278, %c0_279, %c0_280] : memref<16x16x128xf32, #tpu.memory_space<vmem>>, vector<1x16x128xf32>
    %346 = vector.shape_cast %345 : vector<1x16x128xf32> to vector<16x128xf32>
    %347 = arith.addf %346, %344 : vector<16x128xf32>
    %c6_281 = arith.constant 6 : index
    %c0_282 = arith.constant 0 : index
    %c0_283 = arith.constant 0 : index
    %348 = vector.load %arg6[%c6_281, %c0_282, %c0_283] : memref<16x16x128xf32, #tpu.memory_space<vmem>>, vector<1x16x128xf32>
    %349 = vector.shape_cast %348 : vector<1x16x128xf32> to vector<16x128xf32>
    %350 = vector.shape_cast %347 : vector<16x128xf32> to vector<1x16x128xf32>
    tpu.vector_store %arg6[%c6_281, %c0_282, %c0_283], %350 {strides = array<i32>} : memref<16x16x128xf32, #tpu.memory_space<vmem>>, vector<1x16x128xf32>,
    %351 = vector.extract_strided_slice %301 {offsets = [137, 0], sizes = [16, 128], strides = [1, 1]} : vector<289x128xf32> to vector<16x128xf32>
    %c7_284 = arith.constant 7 : index
    %c0_285 = arith.constant 0 : index
    %c0_286 = arith.constant 0 : index
    %352 = vector.load %arg6[%c7_284, %c0_285, %c0_286] : memref<16x16x128xf32, #tpu.memory_space<vmem>>, vector<1x16x128xf32>
    %353 = vector.shape_cast %352 : vector<1x16x128xf32> to vector<16x128xf32>
    %354 = arith.addf %353, %351 : vector<16x128xf32>
    %c7_287 = arith.constant 7 : index
    %c0_288 = arith.constant 0 : index
    %c0_289 = arith.constant 0 : index
    %355 = vector.load %arg6[%c7_287, %c0_288, %c0_289] : memref<16x16x128xf32, #tpu.memory_space<vmem>>, vector<1x16x128xf32>
    %356 = vector.shape_cast %355 : vector<1x16x128xf32> to vector<16x128xf32>
    %357 = vector.shape_cast %354 : vector<16x128xf32> to vector<1x16x128xf32>
    tpu.vector_store %arg6[%c7_287, %c0_288, %c0_289], %357 {strides = array<i32>} : memref<16x16x128xf32, #tpu.memory_space<vmem>>, vector<1x16x128xf32>,
    %358 = vector.extract_strided_slice %301 {offsets = [154, 0], sizes = [16, 128], strides = [1, 1]} : vector<289x128xf32> to vector<16x128xf32>
    %c8_290 = arith.constant 8 : index
    %c0_291 = arith.constant 0 : index
    %c0_292 = arith.constant 0 : index
    %359 = vector.load %arg6[%c8_290, %c0_291, %c0_292] : memref<16x16x128xf32, #tpu.memory_space<vmem>>, vector<1x16x128xf32>
    %360 = vector.shape_cast %359 : vector<1x16x128xf32> to vector<16x128xf32>
    %361 = arith.addf %360, %358 : vector<16x128xf32>
    %c8_293 = arith.constant 8 : index
    %c0_294 = arith.constant 0 : index
    %c0_295 = arith.constant 0 : index
    %362 = vector.load %arg6[%c8_293, %c0_294, %c0_295] : memref<16x16x128xf32, #tpu.memory_space<vmem>>, vector<1x16x128xf32>
    %363 = vector.shape_cast %362 : vector<1x16x128xf32> to vector<16x128xf32>
    %364 = vector.shape_cast %361 : vector<16x128xf32> to vector<1x16x128xf32>
    tpu.vector_store %arg6[%c8_293, %c0_294, %c0_295], %364 {strides = array<i32>} : memref<16x16x128xf32, #tpu.memory_space<vmem>>, vector<1x16x128xf32>,
    %365 = vector.extract_strided_slice %301 {offsets = [171, 0], sizes = [16, 128], strides = [1, 1]} : vector<289x128xf32> to vector<16x128xf32>
    %c9_296 = arith.constant 9 : index
    %c0_297 = arith.constant 0 : index
    %c0_298 = arith.constant 0 : index
    %366 = vector.load %arg6[%c9_296, %c0_297, %c0_298] : memref<16x16x128xf32, #tpu.memory_space<vmem>>, vector<1x16x128xf32>
    %367 = vector.shape_cast %366 : vector<1x16x128xf32> to vector<16x128xf32>
    %368 = arith.addf %367, %365 : vector<16x128xf32>
    %c9_299 = arith.constant 9 : index
    %c0_300 = arith.constant 0 : index
    %c0_301 = arith.constant 0 : index
    %369 = vector.load %arg6[%c9_299, %c0_300, %c0_301] : memref<16x16x128xf32, #tpu.memory_space<vmem>>, vector<1x16x128xf32>
    %370 = vector.shape_cast %369 : vector<1x16x128xf32> to vector<16x128xf32>
    %371 = vector.shape_cast %368 : vector<16x128xf32> to vector<1x16x128xf32>
    tpu.vector_store %arg6[%c9_299, %c0_300, %c0_301], %371 {strides = array<i32>} : memref<16x16x128xf32, #tpu.memory_space<vmem>>, vector<1x16x128xf32>,
    %372 = vector.extract_strided_slice %301 {offsets = [188, 0], sizes = [16, 128], strides = [1, 1]} : vector<289x128xf32> to vector<16x128xf32>
    %c10_302 = arith.constant 10 : index
    %c0_303 = arith.constant 0 : index
    %c0_304 = arith.constant 0 : index
    %373 = vector.load %arg6[%c10_302, %c0_303, %c0_304] : memref<16x16x128xf32, #tpu.memory_space<vmem>>, vector<1x16x128xf32>
    %374 = vector.shape_cast %373 : vector<1x16x128xf32> to vector<16x128xf32>
    %375 = arith.addf %374, %372 : vector<16x128xf32>
    %c10_305 = arith.constant 10 : index
    %c0_306 = arith.constant 0 : index
    %c0_307 = arith.constant 0 : index
    %376 = vector.load %arg6[%c10_305, %c0_306, %c0_307] : memref<16x16x128xf32, #tpu.memory_space<vmem>>, vector<1x16x128xf32>
    %377 = vector.shape_cast %376 : vector<1x16x128xf32> to vector<16x128xf32>
    %378 = vector.shape_cast %375 : vector<16x128xf32> to vector<1x16x128xf32>
    tpu.vector_store %arg6[%c10_305, %c0_306, %c0_307], %378 {strides = array<i32>} : memref<16x16x128xf32, #tpu.memory_space<vmem>>, vector<1x16x128xf32>,
    %379 = vector.extract_strided_slice %301 {offsets = [205, 0], sizes = [16, 128], strides = [1, 1]} : vector<289x128xf32> to vector<16x128xf32>
    %c11_308 = arith.constant 11 : index
    %c0_309 = arith.constant 0 : index
    %c0_310 = arith.constant 0 : index
    %380 = vector.load %arg6[%c11_308, %c0_309, %c0_310] : memref<16x16x128xf32, #tpu.memory_space<vmem>>, vector<1x16x128xf32>
    %381 = vector.shape_cast %380 : vector<1x16x128xf32> to vector<16x128xf32>
    %382 = arith.addf %381, %379 : vector<16x128xf32>
    %c11_311 = arith.constant 11 : index
    %c0_312 = arith.constant 0 : index
    %c0_313 = arith.constant 0 : index
    %383 = vector.load %arg6[%c11_311, %c0_312, %c0_313] : memref<16x16x128xf32, #tpu.memory_space<vmem>>, vector<1x16x128xf32>
    %384 = vector.shape_cast %383 : vector<1x16x128xf32> to vector<16x128xf32>
    %385 = vector.shape_cast %382 : vector<16x128xf32> to vector<1x16x128xf32>
    tpu.vector_store %arg6[%c11_311, %c0_312, %c0_313], %385 {strides = array<i32>} : memref<16x16x128xf32, #tpu.memory_space<vmem>>, vector<1x16x128xf32>,
    %386 = vector.extract_strided_slice %301 {offsets = [222, 0], sizes = [16, 128], strides = [1, 1]} : vector<289x128xf32> to vector<16x128xf32>
    %c12_314 = arith.constant 12 : index
    %c0_315 = arith.constant 0 : index
    %c0_316 = arith.constant 0 : index
    %387 = vector.load %arg6[%c12_314, %c0_315, %c0_316] : memref<16x16x128xf32, #tpu.memory_space<vmem>>, vector<1x16x128xf32>
    %388 = vector.shape_cast %387 : vector<1x16x128xf32> to vector<16x128xf32>
    %389 = arith.addf %388, %386 : vector<16x128xf32>
    %c12_317 = arith.constant 12 : index
    %c0_318 = arith.constant 0 : index
    %c0_319 = arith.constant 0 : index
    %390 = vector.load %arg6[%c12_317, %c0_318, %c0_319] : memref<16x16x128xf32, #tpu.memory_space<vmem>>, vector<1x16x128xf32>
    %391 = vector.shape_cast %390 : vector<1x16x128xf32> to vector<16x128xf32>
    %392 = vector.shape_cast %389 : vector<16x128xf32> to vector<1x16x128xf32>
    tpu.vector_store %arg6[%c12_317, %c0_318, %c0_319], %392 {strides = array<i32>} : memref<16x16x128xf32, #tpu.memory_space<vmem>>, vector<1x16x128xf32>,
    %393 = vector.extract_strided_slice %301 {offsets = [239, 0], sizes = [16, 128], strides = [1, 1]} : vector<289x128xf32> to vector<16x128xf32>
    %c13_320 = arith.constant 13 : index
    %c0_321 = arith.constant 0 : index
    %c0_322 = arith.constant 0 : index
    %394 = vector.load %arg6[%c13_320, %c0_321, %c0_322] : memref<16x16x128xf32, #tpu.memory_space<vmem>>, vector<1x16x128xf32>
    %395 = vector.shape_cast %394 : vector<1x16x128xf32> to vector<16x128xf32>
    %396 = arith.addf %395, %393 : vector<16x128xf32>
    %c13_323 = arith.constant 13 : index
    %c0_324 = arith.constant 0 : index
    %c0_325 = arith.constant 0 : index
    %397 = vector.load %arg6[%c13_323, %c0_324, %c0_325] : memref<16x16x128xf32, #tpu.memory_space<vmem>>, vector<1x16x128xf32>
    %398 = vector.shape_cast %397 : vector<1x16x128xf32> to vector<16x128xf32>
    %399 = vector.shape_cast %396 : vector<16x128xf32> to vector<1x16x128xf32>
    tpu.vector_store %arg6[%c13_323, %c0_324, %c0_325], %399 {strides = array<i32>} : memref<16x16x128xf32, #tpu.memory_space<vmem>>, vector<1x16x128xf32>,
    %400 = vector.extract_strided_slice %301 {offsets = [256, 0], sizes = [16, 128], strides = [1, 1]} : vector<289x128xf32> to vector<16x128xf32>
    %c14_326 = arith.constant 14 : index
    %c0_327 = arith.constant 0 : index
    %c0_328 = arith.constant 0 : index
    %401 = vector.load %arg6[%c14_326, %c0_327, %c0_328] : memref<16x16x128xf32, #tpu.memory_space<vmem>>, vector<1x16x128xf32>
    %402 = vector.shape_cast %401 : vector<1x16x128xf32> to vector<16x128xf32>
    %403 = arith.addf %402, %400 : vector<16x128xf32>
    %c14_329 = arith.constant 14 : index
    %c0_330 = arith.constant 0 : index
    %c0_331 = arith.constant 0 : index
    %404 = vector.load %arg6[%c14_329, %c0_330, %c0_331] : memref<16x16x128xf32, #tpu.memory_space<vmem>>, vector<1x16x128xf32>
    %405 = vector.shape_cast %404 : vector<1x16x128xf32> to vector<16x128xf32>
    %406 = vector.shape_cast %403 : vector<16x128xf32> to vector<1x16x128xf32>
    tpu.vector_store %arg6[%c14_329, %c0_330, %c0_331], %406 {strides = array<i32>} : memref<16x16x128xf32, #tpu.memory_space<vmem>>, vector<1x16x128xf32>,
    %407 = vector.extract_strided_slice %301 {offsets = [273, 0], sizes = [16, 128], strides = [1, 1]} : vector<289x128xf32> to vector<16x128xf32>
    %c15_332 = arith.constant 15 : index
    %c0_333 = arith.constant 0 : index
    %c0_334 = arith.constant 0 : index
    %408 = vector.load %arg6[%c15_332, %c0_333, %c0_334] : memref<16x16x128xf32, #tpu.memory_space<vmem>>, vector<1x16x128xf32>
    %409 = vector.shape_cast %408 : vector<1x16x128xf32> to vector<16x128xf32>
    %410 = arith.addf %409, %407 : vector<16x128xf32>
    %c15_335 = arith.constant 15 : index
    %c0_336 = arith.constant 0 : index
    %c0_337 = arith.constant 0 : index
    %411 = vector.load %arg6[%c15_335, %c0_336, %c0_337] : memref<16x16x128xf32, #tpu.memory_space<vmem>>, vector<1x16x128xf32>
    %412 = vector.shape_cast %411 : vector<1x16x128xf32> to vector<16x128xf32>
    %413 = vector.shape_cast %410 : vector<16x128xf32> to vector<1x16x128xf32>
    tpu.vector_store %arg6[%c15_335, %c0_336, %c0_337], %413 {strides = array<i32>} : memref<16x16x128xf32, #tpu.memory_space<vmem>>, vector<1x16x128xf32>,
    %c0_338 = arith.constant 0 : index
    %c0_339 = arith.constant 0 : index
    %c0_340 = arith.constant 0 : index
    %414 = vector.load %arg6[%c0_338, %c0_339, %c0_340] : memref<16x16x128xf32, #tpu.memory_space<vmem>>, vector<16x16x128xf32>
    %c0_341 = arith.constant 0 : index
    %c0_342 = arith.constant 0 : index
    %415 = vector.load %arg4[%c0_341, %c0_342] : memref<1x128xf32, #tpu.memory_space<vmem>>, vector<1x128xf32>
    %416 = vector.shape_cast %415 : vector<1x128xf32> to vector<1x1x128xf32>
    %417 = vector.broadcast %416 : vector<1x1x128xf32> to vector<16x16x128xf32>
    %418 = arith.addf %414, %417 : vector<16x16x128xf32>
    %cst_343 = arith.constant 2.000000e-01 : f32
    %419 = vector.broadcast %cst_343 : f32 to vector<16x16x128xf32>
    %420 = arith.mulf %419, %418 : vector<16x16x128xf32>
    %421 = arith.maximumf %418, %420 : vector<16x16x128xf32>
    %422 = arith.truncf %421 : vector<16x16x128xf32> to vector<16x16x128xbf16>
    %c0_344 = arith.constant 0 : index
    %c0_345 = arith.constant 0 : index
    %c0_346 = arith.constant 0 : index
    %c0_347 = arith.constant 0 : index
    %423 = vector.load %arg5[%c0_344, %c0_345, %c0_346, %c0_347] : memref<1x16x16x128xbf16, #tpu.memory_space<vmem>>, vector<1x16x16x128xbf16>
    %424 = vector.shape_cast %423 : vector<1x16x16x128xbf16> to vector<16x16x128xbf16>
    %425 = vector.shape_cast %422 : vector<16x16x128xbf16> to vector<1x16x16x128xbf16>
    tpu.vector_store %arg5[%c0_344, %c0_345, %c0_346, %c0_347], %425 {strides = array<i32>} : memref<1x16x16x128xbf16, #tpu.memory_space<vmem>>, vector<1x16x16x128xbf16>,
    return
  }
  func.func @transform_0(%arg0: i32, %arg1: i32) -> (i32, i32, i32) {
    %c0_i32 = arith.constant 0 : i32
    %c0_i32_0 = arith.constant 0 : i32
    %c0_i32_1 = arith.constant 0 : i32
    return %arg1, %c0_i32, %c0_i32_0 : i32, i32, i32
  }
  func.func @transform_1(%arg0: i32, %arg1: i32) -> (i32, i32, i32) {
    %c0_i32 = arith.constant 0 : i32
    %c0_i32_0 = arith.constant 0 : i32
    %c0_i32_1 = arith.constant 0 : i32
    return %c0_i32, %c0_i32_0, %arg0 : i32, i32, i32
  }
  func.func @transform_2(%arg0: i32, %arg1: i32) -> (i32, i32) {
    %c0_i32 = arith.constant 0 : i32
    %c0_i32_0 = arith.constant 0 : i32
    return %c0_i32, %arg0 : i32, i32
  }
  func.func @transform_3(%arg0: i32, %arg1: i32) -> (i32, i32, i32, i32) {
    %c0_i32 = arith.constant 0 : i32
    %c0_i32_0 = arith.constant 0 : i32
    %c0_i32_1 = arith.constant 0 : i32
    return %arg1, %c0_i32, %c0_i32_0, %arg0 : i32, i32, i32, i32
  }
}

module attributes {stable_mosaic.version = 11 : i64} {
  func.func @_conv_s2d_kernel(%arg0: i32, %arg1: i32, %arg2: memref<1x81x256xbf16, #tpu.memory_space<vmem>>, %arg3: memref<4x256x128xbf16, #tpu.memory_space<vmem>>, %arg4: memref<1x128xf32, #tpu.memory_space<vmem>>, %arg5: memref<1x8x8x128xbf16, #tpu.memory_space<vmem>>, %arg6: memref<8x8x128xf32, #tpu.memory_space<vmem>>) attributes {dimension_semantics = [#tpu.dimension_semantics<parallel>, #tpu.dimension_semantics<parallel>], iteration_bounds = array<i64: 1, 2>, scalar_prefetch = 0 : i64, scratch_operands = 1 : i64, tpu.core_type = #tpu.core_type<tc>, window_params = [{transform_indices = @transform_0, window_bounds = array<i64: 1, 81, 256>}, {transform_indices = @transform_1, window_bounds = array<i64: 4, 256, 128>}, {transform_indices = @transform_2, window_bounds = array<i64: 1, 128>}, {transform_indices = @transform_3, window_bounds = array<i64: 1, 8, 8, 128>}]} {
    %c0 = arith.constant 0 : index
    %c0_0 = arith.constant 0 : index
    %c0_1 = arith.constant 0 : index
    %0 = vector.load %arg2[%c0, %c0_0, %c0_1] : memref<1x81x256xbf16, #tpu.memory_space<vmem>>, vector<1x81x256xbf16>
    %1 = vector.shape_cast %0 : vector<1x81x256xbf16> to vector<81x256xbf16>
    %c0_2 = arith.constant 0 : index
    %c0_3 = arith.constant 0 : index
    %c0_4 = arith.constant 0 : index
    %2 = vector.load %arg3[%c0_2, %c0_3, %c0_4] : memref<4x256x128xbf16, #tpu.memory_space<vmem>>, vector<1x256x128xbf16>
    %3 = vector.shape_cast %2 : vector<1x256x128xbf16> to vector<256x128xbf16>
    %cst = arith.constant dense<0.000000e+00> : vector<81x128xf32>
    %4 = tpu.matmul %1, %3, %cst {dimension_numbers = #tpu.dot_dimension_numbers<[1], [0], [0], [1], [0, 0, 1, 1], [], []>} : vector<81x256xbf16>, vector<256x128xbf16>, vector<81x128xf32> -> vector<81x128xf32>
    %5 = vector.extract_strided_slice %4 {offsets = [0, 0], sizes = [8, 128], strides = [1, 1]} : vector<81x128xf32> to vector<8x128xf32>
    %c0_5 = arith.constant 0 : index
    %c0_6 = arith.constant 0 : index
    %c0_7 = arith.constant 0 : index
    %6 = vector.load %arg6[%c0_5, %c0_6, %c0_7] : memref<8x8x128xf32, #tpu.memory_space<vmem>>, vector<1x8x128xf32>
    %7 = vector.shape_cast %6 : vector<1x8x128xf32> to vector<8x128xf32>
    %8 = vector.shape_cast %5 : vector<8x128xf32> to vector<1x8x128xf32>
    tpu.vector_store %arg6[%c0_5, %c0_6, %c0_7], %8 {strides = array<i32>} : memref<8x8x128xf32, #tpu.memory_space<vmem>>, vector<1x8x128xf32>,
    %9 = vector.extract_strided_slice %4 {offsets = [9, 0], sizes = [8, 128], strides = [1, 1]} : vector<81x128xf32> to vector<8x128xf32>
    %c1 = arith.constant 1 : index
    %c0_8 = arith.constant 0 : index
    %c0_9 = arith.constant 0 : index
    %10 = vector.load %arg6[%c1, %c0_8, %c0_9] : memref<8x8x128xf32, #tpu.memory_space<vmem>>, vector<1x8x128xf32>
    %11 = vector.shape_cast %10 : vector<1x8x128xf32> to vector<8x128xf32>
    %12 = vector.shape_cast %9 : vector<8x128xf32> to vector<1x8x128xf32>
    tpu.vector_store %arg6[%c1, %c0_8, %c0_9], %12 {strides = array<i32>} : memref<8x8x128xf32, #tpu.memory_space<vmem>>, vector<1x8x128xf32>,
    %13 = vector.extract_strided_slice %4 {offsets = [18, 0], sizes = [8, 128], strides = [1, 1]} : vector<81x128xf32> to vector<8x128xf32>
    %c2 = arith.constant 2 : index
    %c0_10 = arith.constant 0 : index
    %c0_11 = arith.constant 0 : index
    %14 = vector.load %arg6[%c2, %c0_10, %c0_11] : memref<8x8x128xf32, #tpu.memory_space<vmem>>, vector<1x8x128xf32>
    %15 = vector.shape_cast %14 : vector<1x8x128xf32> to vector<8x128xf32>
    %16 = vector.shape_cast %13 : vector<8x128xf32> to vector<1x8x128xf32>
    tpu.vector_store %arg6[%c2, %c0_10, %c0_11], %16 {strides = array<i32>} : memref<8x8x128xf32, #tpu.memory_space<vmem>>, vector<1x8x128xf32>,
    %17 = vector.extract_strided_slice %4 {offsets = [27, 0], sizes = [8, 128], strides = [1, 1]} : vector<81x128xf32> to vector<8x128xf32>
    %c3 = arith.constant 3 : index
    %c0_12 = arith.constant 0 : index
    %c0_13 = arith.constant 0 : index
    %18 = vector.load %arg6[%c3, %c0_12, %c0_13] : memref<8x8x128xf32, #tpu.memory_space<vmem>>, vector<1x8x128xf32>
    %19 = vector.shape_cast %18 : vector<1x8x128xf32> to vector<8x128xf32>
    %20 = vector.shape_cast %17 : vector<8x128xf32> to vector<1x8x128xf32>
    tpu.vector_store %arg6[%c3, %c0_12, %c0_13], %20 {strides = array<i32>} : memref<8x8x128xf32, #tpu.memory_space<vmem>>, vector<1x8x128xf32>,
    %21 = vector.extract_strided_slice %4 {offsets = [36, 0], sizes = [8, 128], strides = [1, 1]} : vector<81x128xf32> to vector<8x128xf32>
    %c4 = arith.constant 4 : index
    %c0_14 = arith.constant 0 : index
    %c0_15 = arith.constant 0 : index
    %22 = vector.load %arg6[%c4, %c0_14, %c0_15] : memref<8x8x128xf32, #tpu.memory_space<vmem>>, vector<1x8x128xf32>
    %23 = vector.shape_cast %22 : vector<1x8x128xf32> to vector<8x128xf32>
    %24 = vector.shape_cast %21 : vector<8x128xf32> to vector<1x8x128xf32>
    tpu.vector_store %arg6[%c4, %c0_14, %c0_15], %24 {strides = array<i32>} : memref<8x8x128xf32, #tpu.memory_space<vmem>>, vector<1x8x128xf32>,
    %25 = vector.extract_strided_slice %4 {offsets = [45, 0], sizes = [8, 128], strides = [1, 1]} : vector<81x128xf32> to vector<8x128xf32>
    %c5 = arith.constant 5 : index
    %c0_16 = arith.constant 0 : index
    %c0_17 = arith.constant 0 : index
    %26 = vector.load %arg6[%c5, %c0_16, %c0_17] : memref<8x8x128xf32, #tpu.memory_space<vmem>>, vector<1x8x128xf32>
    %27 = vector.shape_cast %26 : vector<1x8x128xf32> to vector<8x128xf32>
    %28 = vector.shape_cast %25 : vector<8x128xf32> to vector<1x8x128xf32>
    tpu.vector_store %arg6[%c5, %c0_16, %c0_17], %28 {strides = array<i32>} : memref<8x8x128xf32, #tpu.memory_space<vmem>>, vector<1x8x128xf32>,
    %29 = vector.extract_strided_slice %4 {offsets = [54, 0], sizes = [8, 128], strides = [1, 1]} : vector<81x128xf32> to vector<8x128xf32>
    %c6 = arith.constant 6 : index
    %c0_18 = arith.constant 0 : index
    %c0_19 = arith.constant 0 : index
    %30 = vector.load %arg6[%c6, %c0_18, %c0_19] : memref<8x8x128xf32, #tpu.memory_space<vmem>>, vector<1x8x128xf32>
    %31 = vector.shape_cast %30 : vector<1x8x128xf32> to vector<8x128xf32>
    %32 = vector.shape_cast %29 : vector<8x128xf32> to vector<1x8x128xf32>
    tpu.vector_store %arg6[%c6, %c0_18, %c0_19], %32 {strides = array<i32>} : memref<8x8x128xf32, #tpu.memory_space<vmem>>, vector<1x8x128xf32>,
    %33 = vector.extract_strided_slice %4 {offsets = [63, 0], sizes = [8, 128], strides = [1, 1]} : vector<81x128xf32> to vector<8x128xf32>
    %c7 = arith.constant 7 : index
    %c0_20 = arith.constant 0 : index
    %c0_21 = arith.constant 0 : index
    %34 = vector.load %arg6[%c7, %c0_20, %c0_21] : memref<8x8x128xf32, #tpu.memory_space<vmem>>, vector<1x8x128xf32>
    %35 = vector.shape_cast %34 : vector<1x8x128xf32> to vector<8x128xf32>
    %36 = vector.shape_cast %33 : vector<8x128xf32> to vector<1x8x128xf32>
    tpu.vector_store %arg6[%c7, %c0_20, %c0_21], %36 {strides = array<i32>} : memref<8x8x128xf32, #tpu.memory_space<vmem>>, vector<1x8x128xf32>,
    %c1_22 = arith.constant 1 : index
    %c0_23 = arith.constant 0 : index
    %c0_24 = arith.constant 0 : index
    %37 = vector.load %arg3[%c1_22, %c0_23, %c0_24] : memref<4x256x128xbf16, #tpu.memory_space<vmem>>, vector<1x256x128xbf16>
    %38 = vector.shape_cast %37 : vector<1x256x128xbf16> to vector<256x128xbf16>
    %cst_25 = arith.constant dense<0.000000e+00> : vector<81x128xf32>
    %39 = tpu.matmul %1, %38, %cst_25 {dimension_numbers = #tpu.dot_dimension_numbers<[1], [0], [0], [1], [0, 0, 1, 1], [], []>} : vector<81x256xbf16>, vector<256x128xbf16>, vector<81x128xf32> -> vector<81x128xf32>
    %40 = vector.extract_strided_slice %39 {offsets = [1, 0], sizes = [8, 128], strides = [1, 1]} : vector<81x128xf32> to vector<8x128xf32>
    %c0_26 = arith.constant 0 : index
    %c0_27 = arith.constant 0 : index
    %c0_28 = arith.constant 0 : index
    %41 = vector.load %arg6[%c0_26, %c0_27, %c0_28] : memref<8x8x128xf32, #tpu.memory_space<vmem>>, vector<1x8x128xf32>
    %42 = vector.shape_cast %41 : vector<1x8x128xf32> to vector<8x128xf32>
    %43 = arith.addf %42, %40 : vector<8x128xf32>
    %c0_29 = arith.constant 0 : index
    %c0_30 = arith.constant 0 : index
    %c0_31 = arith.constant 0 : index
    %44 = vector.load %arg6[%c0_29, %c0_30, %c0_31] : memref<8x8x128xf32, #tpu.memory_space<vmem>>, vector<1x8x128xf32>
    %45 = vector.shape_cast %44 : vector<1x8x128xf32> to vector<8x128xf32>
    %46 = vector.shape_cast %43 : vector<8x128xf32> to vector<1x8x128xf32>
    tpu.vector_store %arg6[%c0_29, %c0_30, %c0_31], %46 {strides = array<i32>} : memref<8x8x128xf32, #tpu.memory_space<vmem>>, vector<1x8x128xf32>,
    %47 = vector.extract_strided_slice %39 {offsets = [10, 0], sizes = [8, 128], strides = [1, 1]} : vector<81x128xf32> to vector<8x128xf32>
    %c1_32 = arith.constant 1 : index
    %c0_33 = arith.constant 0 : index
    %c0_34 = arith.constant 0 : index
    %48 = vector.load %arg6[%c1_32, %c0_33, %c0_34] : memref<8x8x128xf32, #tpu.memory_space<vmem>>, vector<1x8x128xf32>
    %49 = vector.shape_cast %48 : vector<1x8x128xf32> to vector<8x128xf32>
    %50 = arith.addf %49, %47 : vector<8x128xf32>
    %c1_35 = arith.constant 1 : index
    %c0_36 = arith.constant 0 : index
    %c0_37 = arith.constant 0 : index
    %51 = vector.load %arg6[%c1_35, %c0_36, %c0_37] : memref<8x8x128xf32, #tpu.memory_space<vmem>>, vector<1x8x128xf32>
    %52 = vector.shape_cast %51 : vector<1x8x128xf32> to vector<8x128xf32>
    %53 = vector.shape_cast %50 : vector<8x128xf32> to vector<1x8x128xf32>
    tpu.vector_store %arg6[%c1_35, %c0_36, %c0_37], %53 {strides = array<i32>} : memref<8x8x128xf32, #tpu.memory_space<vmem>>, vector<1x8x128xf32>,
    %54 = vector.extract_strided_slice %39 {offsets = [19, 0], sizes = [8, 128], strides = [1, 1]} : vector<81x128xf32> to vector<8x128xf32>
    %c2_38 = arith.constant 2 : index
    %c0_39 = arith.constant 0 : index
    %c0_40 = arith.constant 0 : index
    %55 = vector.load %arg6[%c2_38, %c0_39, %c0_40] : memref<8x8x128xf32, #tpu.memory_space<vmem>>, vector<1x8x128xf32>
    %56 = vector.shape_cast %55 : vector<1x8x128xf32> to vector<8x128xf32>
    %57 = arith.addf %56, %54 : vector<8x128xf32>
    %c2_41 = arith.constant 2 : index
    %c0_42 = arith.constant 0 : index
    %c0_43 = arith.constant 0 : index
    %58 = vector.load %arg6[%c2_41, %c0_42, %c0_43] : memref<8x8x128xf32, #tpu.memory_space<vmem>>, vector<1x8x128xf32>
    %59 = vector.shape_cast %58 : vector<1x8x128xf32> to vector<8x128xf32>
    %60 = vector.shape_cast %57 : vector<8x128xf32> to vector<1x8x128xf32>
    tpu.vector_store %arg6[%c2_41, %c0_42, %c0_43], %60 {strides = array<i32>} : memref<8x8x128xf32, #tpu.memory_space<vmem>>, vector<1x8x128xf32>,
    %61 = vector.extract_strided_slice %39 {offsets = [28, 0], sizes = [8, 128], strides = [1, 1]} : vector<81x128xf32> to vector<8x128xf32>
    %c3_44 = arith.constant 3 : index
    %c0_45 = arith.constant 0 : index
    %c0_46 = arith.constant 0 : index
    %62 = vector.load %arg6[%c3_44, %c0_45, %c0_46] : memref<8x8x128xf32, #tpu.memory_space<vmem>>, vector<1x8x128xf32>
    %63 = vector.shape_cast %62 : vector<1x8x128xf32> to vector<8x128xf32>
    %64 = arith.addf %63, %61 : vector<8x128xf32>
    %c3_47 = arith.constant 3 : index
    %c0_48 = arith.constant 0 : index
    %c0_49 = arith.constant 0 : index
    %65 = vector.load %arg6[%c3_47, %c0_48, %c0_49] : memref<8x8x128xf32, #tpu.memory_space<vmem>>, vector<1x8x128xf32>
    %66 = vector.shape_cast %65 : vector<1x8x128xf32> to vector<8x128xf32>
    %67 = vector.shape_cast %64 : vector<8x128xf32> to vector<1x8x128xf32>
    tpu.vector_store %arg6[%c3_47, %c0_48, %c0_49], %67 {strides = array<i32>} : memref<8x8x128xf32, #tpu.memory_space<vmem>>, vector<1x8x128xf32>,
    %68 = vector.extract_strided_slice %39 {offsets = [37, 0], sizes = [8, 128], strides = [1, 1]} : vector<81x128xf32> to vector<8x128xf32>
    %c4_50 = arith.constant 4 : index
    %c0_51 = arith.constant 0 : index
    %c0_52 = arith.constant 0 : index
    %69 = vector.load %arg6[%c4_50, %c0_51, %c0_52] : memref<8x8x128xf32, #tpu.memory_space<vmem>>, vector<1x8x128xf32>
    %70 = vector.shape_cast %69 : vector<1x8x128xf32> to vector<8x128xf32>
    %71 = arith.addf %70, %68 : vector<8x128xf32>
    %c4_53 = arith.constant 4 : index
    %c0_54 = arith.constant 0 : index
    %c0_55 = arith.constant 0 : index
    %72 = vector.load %arg6[%c4_53, %c0_54, %c0_55] : memref<8x8x128xf32, #tpu.memory_space<vmem>>, vector<1x8x128xf32>
    %73 = vector.shape_cast %72 : vector<1x8x128xf32> to vector<8x128xf32>
    %74 = vector.shape_cast %71 : vector<8x128xf32> to vector<1x8x128xf32>
    tpu.vector_store %arg6[%c4_53, %c0_54, %c0_55], %74 {strides = array<i32>} : memref<8x8x128xf32, #tpu.memory_space<vmem>>, vector<1x8x128xf32>,
    %75 = vector.extract_strided_slice %39 {offsets = [46, 0], sizes = [8, 128], strides = [1, 1]} : vector<81x128xf32> to vector<8x128xf32>
    %c5_56 = arith.constant 5 : index
    %c0_57 = arith.constant 0 : index
    %c0_58 = arith.constant 0 : index
    %76 = vector.load %arg6[%c5_56, %c0_57, %c0_58] : memref<8x8x128xf32, #tpu.memory_space<vmem>>, vector<1x8x128xf32>
    %77 = vector.shape_cast %76 : vector<1x8x128xf32> to vector<8x128xf32>
    %78 = arith.addf %77, %75 : vector<8x128xf32>
    %c5_59 = arith.constant 5 : index
    %c0_60 = arith.constant 0 : index
    %c0_61 = arith.constant 0 : index
    %79 = vector.load %arg6[%c5_59, %c0_60, %c0_61] : memref<8x8x128xf32, #tpu.memory_space<vmem>>, vector<1x8x128xf32>
    %80 = vector.shape_cast %79 : vector<1x8x128xf32> to vector<8x128xf32>
    %81 = vector.shape_cast %78 : vector<8x128xf32> to vector<1x8x128xf32>
    tpu.vector_store %arg6[%c5_59, %c0_60, %c0_61], %81 {strides = array<i32>} : memref<8x8x128xf32, #tpu.memory_space<vmem>>, vector<1x8x128xf32>,
    %82 = vector.extract_strided_slice %39 {offsets = [55, 0], sizes = [8, 128], strides = [1, 1]} : vector<81x128xf32> to vector<8x128xf32>
    %c6_62 = arith.constant 6 : index
    %c0_63 = arith.constant 0 : index
    %c0_64 = arith.constant 0 : index
    %83 = vector.load %arg6[%c6_62, %c0_63, %c0_64] : memref<8x8x128xf32, #tpu.memory_space<vmem>>, vector<1x8x128xf32>
    %84 = vector.shape_cast %83 : vector<1x8x128xf32> to vector<8x128xf32>
    %85 = arith.addf %84, %82 : vector<8x128xf32>
    %c6_65 = arith.constant 6 : index
    %c0_66 = arith.constant 0 : index
    %c0_67 = arith.constant 0 : index
    %86 = vector.load %arg6[%c6_65, %c0_66, %c0_67] : memref<8x8x128xf32, #tpu.memory_space<vmem>>, vector<1x8x128xf32>
    %87 = vector.shape_cast %86 : vector<1x8x128xf32> to vector<8x128xf32>
    %88 = vector.shape_cast %85 : vector<8x128xf32> to vector<1x8x128xf32>
    tpu.vector_store %arg6[%c6_65, %c0_66, %c0_67], %88 {strides = array<i32>} : memref<8x8x128xf32, #tpu.memory_space<vmem>>, vector<1x8x128xf32>,
    %89 = vector.extract_strided_slice %39 {offsets = [64, 0], sizes = [8, 128], strides = [1, 1]} : vector<81x128xf32> to vector<8x128xf32>
    %c7_68 = arith.constant 7 : index
    %c0_69 = arith.constant 0 : index
    %c0_70 = arith.constant 0 : index
    %90 = vector.load %arg6[%c7_68, %c0_69, %c0_70] : memref<8x8x128xf32, #tpu.memory_space<vmem>>, vector<1x8x128xf32>
    %91 = vector.shape_cast %90 : vector<1x8x128xf32> to vector<8x128xf32>
    %92 = arith.addf %91, %89 : vector<8x128xf32>
    %c7_71 = arith.constant 7 : index
    %c0_72 = arith.constant 0 : index
    %c0_73 = arith.constant 0 : index
    %93 = vector.load %arg6[%c7_71, %c0_72, %c0_73] : memref<8x8x128xf32, #tpu.memory_space<vmem>>, vector<1x8x128xf32>
    %94 = vector.shape_cast %93 : vector<1x8x128xf32> to vector<8x128xf32>
    %95 = vector.shape_cast %92 : vector<8x128xf32> to vector<1x8x128xf32>
    tpu.vector_store %arg6[%c7_71, %c0_72, %c0_73], %95 {strides = array<i32>} : memref<8x8x128xf32, #tpu.memory_space<vmem>>, vector<1x8x128xf32>,
    %c2_74 = arith.constant 2 : index
    %c0_75 = arith.constant 0 : index
    %c0_76 = arith.constant 0 : index
    %96 = vector.load %arg3[%c2_74, %c0_75, %c0_76] : memref<4x256x128xbf16, #tpu.memory_space<vmem>>, vector<1x256x128xbf16>
    %97 = vector.shape_cast %96 : vector<1x256x128xbf16> to vector<256x128xbf16>
    %cst_77 = arith.constant dense<0.000000e+00> : vector<81x128xf32>
    %98 = tpu.matmul %1, %97, %cst_77 {dimension_numbers = #tpu.dot_dimension_numbers<[1], [0], [0], [1], [0, 0, 1, 1], [], []>} : vector<81x256xbf16>, vector<256x128xbf16>, vector<81x128xf32> -> vector<81x128xf32>
    %99 = vector.extract_strided_slice %98 {offsets = [9, 0], sizes = [8, 128], strides = [1, 1]} : vector<81x128xf32> to vector<8x128xf32>
    %c0_78 = arith.constant 0 : index
    %c0_79 = arith.constant 0 : index
    %c0_80 = arith.constant 0 : index
    %100 = vector.load %arg6[%c0_78, %c0_79, %c0_80] : memref<8x8x128xf32, #tpu.memory_space<vmem>>, vector<1x8x128xf32>
    %101 = vector.shape_cast %100 : vector<1x8x128xf32> to vector<8x128xf32>
    %102 = arith.addf %101, %99 : vector<8x128xf32>
    %c0_81 = arith.constant 0 : index
    %c0_82 = arith.constant 0 : index
    %c0_83 = arith.constant 0 : index
    %103 = vector.load %arg6[%c0_81, %c0_82, %c0_83] : memref<8x8x128xf32, #tpu.memory_space<vmem>>, vector<1x8x128xf32>
    %104 = vector.shape_cast %103 : vector<1x8x128xf32> to vector<8x128xf32>
    %105 = vector.shape_cast %102 : vector<8x128xf32> to vector<1x8x128xf32>
    tpu.vector_store %arg6[%c0_81, %c0_82, %c0_83], %105 {strides = array<i32>} : memref<8x8x128xf32, #tpu.memory_space<vmem>>, vector<1x8x128xf32>,
    %106 = vector.extract_strided_slice %98 {offsets = [18, 0], sizes = [8, 128], strides = [1, 1]} : vector<81x128xf32> to vector<8x128xf32>
    %c1_84 = arith.constant 1 : index
    %c0_85 = arith.constant 0 : index
    %c0_86 = arith.constant 0 : index
    %107 = vector.load %arg6[%c1_84, %c0_85, %c0_86] : memref<8x8x128xf32, #tpu.memory_space<vmem>>, vector<1x8x128xf32>
    %108 = vector.shape_cast %107 : vector<1x8x128xf32> to vector<8x128xf32>
    %109 = arith.addf %108, %106 : vector<8x128xf32>
    %c1_87 = arith.constant 1 : index
    %c0_88 = arith.constant 0 : index
    %c0_89 = arith.constant 0 : index
    %110 = vector.load %arg6[%c1_87, %c0_88, %c0_89] : memref<8x8x128xf32, #tpu.memory_space<vmem>>, vector<1x8x128xf32>
    %111 = vector.shape_cast %110 : vector<1x8x128xf32> to vector<8x128xf32>
    %112 = vector.shape_cast %109 : vector<8x128xf32> to vector<1x8x128xf32>
    tpu.vector_store %arg6[%c1_87, %c0_88, %c0_89], %112 {strides = array<i32>} : memref<8x8x128xf32, #tpu.memory_space<vmem>>, vector<1x8x128xf32>,
    %113 = vector.extract_strided_slice %98 {offsets = [27, 0], sizes = [8, 128], strides = [1, 1]} : vector<81x128xf32> to vector<8x128xf32>
    %c2_90 = arith.constant 2 : index
    %c0_91 = arith.constant 0 : index
    %c0_92 = arith.constant 0 : index
    %114 = vector.load %arg6[%c2_90, %c0_91, %c0_92] : memref<8x8x128xf32, #tpu.memory_space<vmem>>, vector<1x8x128xf32>
    %115 = vector.shape_cast %114 : vector<1x8x128xf32> to vector<8x128xf32>
    %116 = arith.addf %115, %113 : vector<8x128xf32>
    %c2_93 = arith.constant 2 : index
    %c0_94 = arith.constant 0 : index
    %c0_95 = arith.constant 0 : index
    %117 = vector.load %arg6[%c2_93, %c0_94, %c0_95] : memref<8x8x128xf32, #tpu.memory_space<vmem>>, vector<1x8x128xf32>
    %118 = vector.shape_cast %117 : vector<1x8x128xf32> to vector<8x128xf32>
    %119 = vector.shape_cast %116 : vector<8x128xf32> to vector<1x8x128xf32>
    tpu.vector_store %arg6[%c2_93, %c0_94, %c0_95], %119 {strides = array<i32>} : memref<8x8x128xf32, #tpu.memory_space<vmem>>, vector<1x8x128xf32>,
    %120 = vector.extract_strided_slice %98 {offsets = [36, 0], sizes = [8, 128], strides = [1, 1]} : vector<81x128xf32> to vector<8x128xf32>
    %c3_96 = arith.constant 3 : index
    %c0_97 = arith.constant 0 : index
    %c0_98 = arith.constant 0 : index
    %121 = vector.load %arg6[%c3_96, %c0_97, %c0_98] : memref<8x8x128xf32, #tpu.memory_space<vmem>>, vector<1x8x128xf32>
    %122 = vector.shape_cast %121 : vector<1x8x128xf32> to vector<8x128xf32>
    %123 = arith.addf %122, %120 : vector<8x128xf32>
    %c3_99 = arith.constant 3 : index
    %c0_100 = arith.constant 0 : index
    %c0_101 = arith.constant 0 : index
    %124 = vector.load %arg6[%c3_99, %c0_100, %c0_101] : memref<8x8x128xf32, #tpu.memory_space<vmem>>, vector<1x8x128xf32>
    %125 = vector.shape_cast %124 : vector<1x8x128xf32> to vector<8x128xf32>
    %126 = vector.shape_cast %123 : vector<8x128xf32> to vector<1x8x128xf32>
    tpu.vector_store %arg6[%c3_99, %c0_100, %c0_101], %126 {strides = array<i32>} : memref<8x8x128xf32, #tpu.memory_space<vmem>>, vector<1x8x128xf32>,
    %127 = vector.extract_strided_slice %98 {offsets = [45, 0], sizes = [8, 128], strides = [1, 1]} : vector<81x128xf32> to vector<8x128xf32>
    %c4_102 = arith.constant 4 : index
    %c0_103 = arith.constant 0 : index
    %c0_104 = arith.constant 0 : index
    %128 = vector.load %arg6[%c4_102, %c0_103, %c0_104] : memref<8x8x128xf32, #tpu.memory_space<vmem>>, vector<1x8x128xf32>
    %129 = vector.shape_cast %128 : vector<1x8x128xf32> to vector<8x128xf32>
    %130 = arith.addf %129, %127 : vector<8x128xf32>
    %c4_105 = arith.constant 4 : index
    %c0_106 = arith.constant 0 : index
    %c0_107 = arith.constant 0 : index
    %131 = vector.load %arg6[%c4_105, %c0_106, %c0_107] : memref<8x8x128xf32, #tpu.memory_space<vmem>>, vector<1x8x128xf32>
    %132 = vector.shape_cast %131 : vector<1x8x128xf32> to vector<8x128xf32>
    %133 = vector.shape_cast %130 : vector<8x128xf32> to vector<1x8x128xf32>
    tpu.vector_store %arg6[%c4_105, %c0_106, %c0_107], %133 {strides = array<i32>} : memref<8x8x128xf32, #tpu.memory_space<vmem>>, vector<1x8x128xf32>,
    %134 = vector.extract_strided_slice %98 {offsets = [54, 0], sizes = [8, 128], strides = [1, 1]} : vector<81x128xf32> to vector<8x128xf32>
    %c5_108 = arith.constant 5 : index
    %c0_109 = arith.constant 0 : index
    %c0_110 = arith.constant 0 : index
    %135 = vector.load %arg6[%c5_108, %c0_109, %c0_110] : memref<8x8x128xf32, #tpu.memory_space<vmem>>, vector<1x8x128xf32>
    %136 = vector.shape_cast %135 : vector<1x8x128xf32> to vector<8x128xf32>
    %137 = arith.addf %136, %134 : vector<8x128xf32>
    %c5_111 = arith.constant 5 : index
    %c0_112 = arith.constant 0 : index
    %c0_113 = arith.constant 0 : index
    %138 = vector.load %arg6[%c5_111, %c0_112, %c0_113] : memref<8x8x128xf32, #tpu.memory_space<vmem>>, vector<1x8x128xf32>
    %139 = vector.shape_cast %138 : vector<1x8x128xf32> to vector<8x128xf32>
    %140 = vector.shape_cast %137 : vector<8x128xf32> to vector<1x8x128xf32>
    tpu.vector_store %arg6[%c5_111, %c0_112, %c0_113], %140 {strides = array<i32>} : memref<8x8x128xf32, #tpu.memory_space<vmem>>, vector<1x8x128xf32>,
    %141 = vector.extract_strided_slice %98 {offsets = [63, 0], sizes = [8, 128], strides = [1, 1]} : vector<81x128xf32> to vector<8x128xf32>
    %c6_114 = arith.constant 6 : index
    %c0_115 = arith.constant 0 : index
    %c0_116 = arith.constant 0 : index
    %142 = vector.load %arg6[%c6_114, %c0_115, %c0_116] : memref<8x8x128xf32, #tpu.memory_space<vmem>>, vector<1x8x128xf32>
    %143 = vector.shape_cast %142 : vector<1x8x128xf32> to vector<8x128xf32>
    %144 = arith.addf %143, %141 : vector<8x128xf32>
    %c6_117 = arith.constant 6 : index
    %c0_118 = arith.constant 0 : index
    %c0_119 = arith.constant 0 : index
    %145 = vector.load %arg6[%c6_117, %c0_118, %c0_119] : memref<8x8x128xf32, #tpu.memory_space<vmem>>, vector<1x8x128xf32>
    %146 = vector.shape_cast %145 : vector<1x8x128xf32> to vector<8x128xf32>
    %147 = vector.shape_cast %144 : vector<8x128xf32> to vector<1x8x128xf32>
    tpu.vector_store %arg6[%c6_117, %c0_118, %c0_119], %147 {strides = array<i32>} : memref<8x8x128xf32, #tpu.memory_space<vmem>>, vector<1x8x128xf32>,
    %148 = vector.extract_strided_slice %98 {offsets = [72, 0], sizes = [8, 128], strides = [1, 1]} : vector<81x128xf32> to vector<8x128xf32>
    %c7_120 = arith.constant 7 : index
    %c0_121 = arith.constant 0 : index
    %c0_122 = arith.constant 0 : index
    %149 = vector.load %arg6[%c7_120, %c0_121, %c0_122] : memref<8x8x128xf32, #tpu.memory_space<vmem>>, vector<1x8x128xf32>
    %150 = vector.shape_cast %149 : vector<1x8x128xf32> to vector<8x128xf32>
    %151 = arith.addf %150, %148 : vector<8x128xf32>
    %c7_123 = arith.constant 7 : index
    %c0_124 = arith.constant 0 : index
    %c0_125 = arith.constant 0 : index
    %152 = vector.load %arg6[%c7_123, %c0_124, %c0_125] : memref<8x8x128xf32, #tpu.memory_space<vmem>>, vector<1x8x128xf32>
    %153 = vector.shape_cast %152 : vector<1x8x128xf32> to vector<8x128xf32>
    %154 = vector.shape_cast %151 : vector<8x128xf32> to vector<1x8x128xf32>
    tpu.vector_store %arg6[%c7_123, %c0_124, %c0_125], %154 {strides = array<i32>} : memref<8x8x128xf32, #tpu.memory_space<vmem>>, vector<1x8x128xf32>,
    %c3_126 = arith.constant 3 : index
    %c0_127 = arith.constant 0 : index
    %c0_128 = arith.constant 0 : index
    %155 = vector.load %arg3[%c3_126, %c0_127, %c0_128] : memref<4x256x128xbf16, #tpu.memory_space<vmem>>, vector<1x256x128xbf16>
    %156 = vector.shape_cast %155 : vector<1x256x128xbf16> to vector<256x128xbf16>
    %cst_129 = arith.constant dense<0.000000e+00> : vector<81x128xf32>
    %157 = tpu.matmul %1, %156, %cst_129 {dimension_numbers = #tpu.dot_dimension_numbers<[1], [0], [0], [1], [0, 0, 1, 1], [], []>} : vector<81x256xbf16>, vector<256x128xbf16>, vector<81x128xf32> -> vector<81x128xf32>
    %158 = vector.extract_strided_slice %157 {offsets = [10, 0], sizes = [8, 128], strides = [1, 1]} : vector<81x128xf32> to vector<8x128xf32>
    %c0_130 = arith.constant 0 : index
    %c0_131 = arith.constant 0 : index
    %c0_132 = arith.constant 0 : index
    %159 = vector.load %arg6[%c0_130, %c0_131, %c0_132] : memref<8x8x128xf32, #tpu.memory_space<vmem>>, vector<1x8x128xf32>
    %160 = vector.shape_cast %159 : vector<1x8x128xf32> to vector<8x128xf32>
    %161 = arith.addf %160, %158 : vector<8x128xf32>
    %c0_133 = arith.constant 0 : index
    %c0_134 = arith.constant 0 : index
    %c0_135 = arith.constant 0 : index
    %162 = vector.load %arg6[%c0_133, %c0_134, %c0_135] : memref<8x8x128xf32, #tpu.memory_space<vmem>>, vector<1x8x128xf32>
    %163 = vector.shape_cast %162 : vector<1x8x128xf32> to vector<8x128xf32>
    %164 = vector.shape_cast %161 : vector<8x128xf32> to vector<1x8x128xf32>
    tpu.vector_store %arg6[%c0_133, %c0_134, %c0_135], %164 {strides = array<i32>} : memref<8x8x128xf32, #tpu.memory_space<vmem>>, vector<1x8x128xf32>,
    %165 = vector.extract_strided_slice %157 {offsets = [19, 0], sizes = [8, 128], strides = [1, 1]} : vector<81x128xf32> to vector<8x128xf32>
    %c1_136 = arith.constant 1 : index
    %c0_137 = arith.constant 0 : index
    %c0_138 = arith.constant 0 : index
    %166 = vector.load %arg6[%c1_136, %c0_137, %c0_138] : memref<8x8x128xf32, #tpu.memory_space<vmem>>, vector<1x8x128xf32>
    %167 = vector.shape_cast %166 : vector<1x8x128xf32> to vector<8x128xf32>
    %168 = arith.addf %167, %165 : vector<8x128xf32>
    %c1_139 = arith.constant 1 : index
    %c0_140 = arith.constant 0 : index
    %c0_141 = arith.constant 0 : index
    %169 = vector.load %arg6[%c1_139, %c0_140, %c0_141] : memref<8x8x128xf32, #tpu.memory_space<vmem>>, vector<1x8x128xf32>
    %170 = vector.shape_cast %169 : vector<1x8x128xf32> to vector<8x128xf32>
    %171 = vector.shape_cast %168 : vector<8x128xf32> to vector<1x8x128xf32>
    tpu.vector_store %arg6[%c1_139, %c0_140, %c0_141], %171 {strides = array<i32>} : memref<8x8x128xf32, #tpu.memory_space<vmem>>, vector<1x8x128xf32>,
    %172 = vector.extract_strided_slice %157 {offsets = [28, 0], sizes = [8, 128], strides = [1, 1]} : vector<81x128xf32> to vector<8x128xf32>
    %c2_142 = arith.constant 2 : index
    %c0_143 = arith.constant 0 : index
    %c0_144 = arith.constant 0 : index
    %173 = vector.load %arg6[%c2_142, %c0_143, %c0_144] : memref<8x8x128xf32, #tpu.memory_space<vmem>>, vector<1x8x128xf32>
    %174 = vector.shape_cast %173 : vector<1x8x128xf32> to vector<8x128xf32>
    %175 = arith.addf %174, %172 : vector<8x128xf32>
    %c2_145 = arith.constant 2 : index
    %c0_146 = arith.constant 0 : index
    %c0_147 = arith.constant 0 : index
    %176 = vector.load %arg6[%c2_145, %c0_146, %c0_147] : memref<8x8x128xf32, #tpu.memory_space<vmem>>, vector<1x8x128xf32>
    %177 = vector.shape_cast %176 : vector<1x8x128xf32> to vector<8x128xf32>
    %178 = vector.shape_cast %175 : vector<8x128xf32> to vector<1x8x128xf32>
    tpu.vector_store %arg6[%c2_145, %c0_146, %c0_147], %178 {strides = array<i32>} : memref<8x8x128xf32, #tpu.memory_space<vmem>>, vector<1x8x128xf32>,
    %179 = vector.extract_strided_slice %157 {offsets = [37, 0], sizes = [8, 128], strides = [1, 1]} : vector<81x128xf32> to vector<8x128xf32>
    %c3_148 = arith.constant 3 : index
    %c0_149 = arith.constant 0 : index
    %c0_150 = arith.constant 0 : index
    %180 = vector.load %arg6[%c3_148, %c0_149, %c0_150] : memref<8x8x128xf32, #tpu.memory_space<vmem>>, vector<1x8x128xf32>
    %181 = vector.shape_cast %180 : vector<1x8x128xf32> to vector<8x128xf32>
    %182 = arith.addf %181, %179 : vector<8x128xf32>
    %c3_151 = arith.constant 3 : index
    %c0_152 = arith.constant 0 : index
    %c0_153 = arith.constant 0 : index
    %183 = vector.load %arg6[%c3_151, %c0_152, %c0_153] : memref<8x8x128xf32, #tpu.memory_space<vmem>>, vector<1x8x128xf32>
    %184 = vector.shape_cast %183 : vector<1x8x128xf32> to vector<8x128xf32>
    %185 = vector.shape_cast %182 : vector<8x128xf32> to vector<1x8x128xf32>
    tpu.vector_store %arg6[%c3_151, %c0_152, %c0_153], %185 {strides = array<i32>} : memref<8x8x128xf32, #tpu.memory_space<vmem>>, vector<1x8x128xf32>,
    %186 = vector.extract_strided_slice %157 {offsets = [46, 0], sizes = [8, 128], strides = [1, 1]} : vector<81x128xf32> to vector<8x128xf32>
    %c4_154 = arith.constant 4 : index
    %c0_155 = arith.constant 0 : index
    %c0_156 = arith.constant 0 : index
    %187 = vector.load %arg6[%c4_154, %c0_155, %c0_156] : memref<8x8x128xf32, #tpu.memory_space<vmem>>, vector<1x8x128xf32>
    %188 = vector.shape_cast %187 : vector<1x8x128xf32> to vector<8x128xf32>
    %189 = arith.addf %188, %186 : vector<8x128xf32>
    %c4_157 = arith.constant 4 : index
    %c0_158 = arith.constant 0 : index
    %c0_159 = arith.constant 0 : index
    %190 = vector.load %arg6[%c4_157, %c0_158, %c0_159] : memref<8x8x128xf32, #tpu.memory_space<vmem>>, vector<1x8x128xf32>
    %191 = vector.shape_cast %190 : vector<1x8x128xf32> to vector<8x128xf32>
    %192 = vector.shape_cast %189 : vector<8x128xf32> to vector<1x8x128xf32>
    tpu.vector_store %arg6[%c4_157, %c0_158, %c0_159], %192 {strides = array<i32>} : memref<8x8x128xf32, #tpu.memory_space<vmem>>, vector<1x8x128xf32>,
    %193 = vector.extract_strided_slice %157 {offsets = [55, 0], sizes = [8, 128], strides = [1, 1]} : vector<81x128xf32> to vector<8x128xf32>
    %c5_160 = arith.constant 5 : index
    %c0_161 = arith.constant 0 : index
    %c0_162 = arith.constant 0 : index
    %194 = vector.load %arg6[%c5_160, %c0_161, %c0_162] : memref<8x8x128xf32, #tpu.memory_space<vmem>>, vector<1x8x128xf32>
    %195 = vector.shape_cast %194 : vector<1x8x128xf32> to vector<8x128xf32>
    %196 = arith.addf %195, %193 : vector<8x128xf32>
    %c5_163 = arith.constant 5 : index
    %c0_164 = arith.constant 0 : index
    %c0_165 = arith.constant 0 : index
    %197 = vector.load %arg6[%c5_163, %c0_164, %c0_165] : memref<8x8x128xf32, #tpu.memory_space<vmem>>, vector<1x8x128xf32>
    %198 = vector.shape_cast %197 : vector<1x8x128xf32> to vector<8x128xf32>
    %199 = vector.shape_cast %196 : vector<8x128xf32> to vector<1x8x128xf32>
    tpu.vector_store %arg6[%c5_163, %c0_164, %c0_165], %199 {strides = array<i32>} : memref<8x8x128xf32, #tpu.memory_space<vmem>>, vector<1x8x128xf32>,
    %200 = vector.extract_strided_slice %157 {offsets = [64, 0], sizes = [8, 128], strides = [1, 1]} : vector<81x128xf32> to vector<8x128xf32>
    %c6_166 = arith.constant 6 : index
    %c0_167 = arith.constant 0 : index
    %c0_168 = arith.constant 0 : index
    %201 = vector.load %arg6[%c6_166, %c0_167, %c0_168] : memref<8x8x128xf32, #tpu.memory_space<vmem>>, vector<1x8x128xf32>
    %202 = vector.shape_cast %201 : vector<1x8x128xf32> to vector<8x128xf32>
    %203 = arith.addf %202, %200 : vector<8x128xf32>
    %c6_169 = arith.constant 6 : index
    %c0_170 = arith.constant 0 : index
    %c0_171 = arith.constant 0 : index
    %204 = vector.load %arg6[%c6_169, %c0_170, %c0_171] : memref<8x8x128xf32, #tpu.memory_space<vmem>>, vector<1x8x128xf32>
    %205 = vector.shape_cast %204 : vector<1x8x128xf32> to vector<8x128xf32>
    %206 = vector.shape_cast %203 : vector<8x128xf32> to vector<1x8x128xf32>
    tpu.vector_store %arg6[%c6_169, %c0_170, %c0_171], %206 {strides = array<i32>} : memref<8x8x128xf32, #tpu.memory_space<vmem>>, vector<1x8x128xf32>,
    %207 = vector.extract_strided_slice %157 {offsets = [73, 0], sizes = [8, 128], strides = [1, 1]} : vector<81x128xf32> to vector<8x128xf32>
    %c7_172 = arith.constant 7 : index
    %c0_173 = arith.constant 0 : index
    %c0_174 = arith.constant 0 : index
    %208 = vector.load %arg6[%c7_172, %c0_173, %c0_174] : memref<8x8x128xf32, #tpu.memory_space<vmem>>, vector<1x8x128xf32>
    %209 = vector.shape_cast %208 : vector<1x8x128xf32> to vector<8x128xf32>
    %210 = arith.addf %209, %207 : vector<8x128xf32>
    %c7_175 = arith.constant 7 : index
    %c0_176 = arith.constant 0 : index
    %c0_177 = arith.constant 0 : index
    %211 = vector.load %arg6[%c7_175, %c0_176, %c0_177] : memref<8x8x128xf32, #tpu.memory_space<vmem>>, vector<1x8x128xf32>
    %212 = vector.shape_cast %211 : vector<1x8x128xf32> to vector<8x128xf32>
    %213 = vector.shape_cast %210 : vector<8x128xf32> to vector<1x8x128xf32>
    tpu.vector_store %arg6[%c7_175, %c0_176, %c0_177], %213 {strides = array<i32>} : memref<8x8x128xf32, #tpu.memory_space<vmem>>, vector<1x8x128xf32>,
    %c0_178 = arith.constant 0 : index
    %c0_179 = arith.constant 0 : index
    %c0_180 = arith.constant 0 : index
    %214 = vector.load %arg6[%c0_178, %c0_179, %c0_180] : memref<8x8x128xf32, #tpu.memory_space<vmem>>, vector<8x8x128xf32>
    %c0_181 = arith.constant 0 : index
    %c0_182 = arith.constant 0 : index
    %215 = vector.load %arg4[%c0_181, %c0_182] : memref<1x128xf32, #tpu.memory_space<vmem>>, vector<1x128xf32>
    %216 = vector.shape_cast %215 : vector<1x128xf32> to vector<1x1x128xf32>
    %217 = vector.broadcast %216 : vector<1x1x128xf32> to vector<8x8x128xf32>
    %218 = arith.addf %214, %217 : vector<8x8x128xf32>
    %cst_183 = arith.constant dense<0.000000e+00> : vector<8x128xf32>
    %219 = vector.multi_reduction <add>, %218, %cst_183 [0] : vector<8x8x128xf32> to vector<8x128xf32>
    %cst_184 = arith.constant dense<0.000000e+00> : vector<128xf32>
    %220 = vector.multi_reduction <add>, %219, %cst_184 [0] : vector<8x128xf32> to vector<128xf32>
    %221 = vector.shape_cast %220 : vector<128xf32> to vector<1x128xf32>
    %cst_185 = arith.constant 1.562500e-02 : f32
    %222 = vector.broadcast %cst_185 : f32 to vector<1x128xf32>
    %223 = arith.mulf %221, %222 : vector<1x128xf32>
    %224 = vector.shape_cast %223 : vector<1x128xf32> to vector<1x1x128xf32>
    %225 = vector.broadcast %224 : vector<1x1x128xf32> to vector<8x8x128xf32>
    %226 = arith.subf %218, %225 : vector<8x8x128xf32>
    %227 = arith.mulf %226, %226 : vector<8x8x128xf32>
    %cst_186 = arith.constant dense<0.000000e+00> : vector<8x128xf32>
    %228 = vector.multi_reduction <add>, %227, %cst_186 [0] : vector<8x8x128xf32> to vector<8x128xf32>
    %cst_187 = arith.constant dense<0.000000e+00> : vector<128xf32>
    %229 = vector.multi_reduction <add>, %228, %cst_187 [0] : vector<8x128xf32> to vector<128xf32>
    %230 = vector.shape_cast %229 : vector<128xf32> to vector<1x128xf32>
    %cst_188 = arith.constant 1.562500e-02 : f32
    %231 = vector.broadcast %cst_188 : f32 to vector<1x128xf32>
    %232 = arith.mulf %230, %231 : vector<1x128xf32>
    %cst_189 = arith.constant 9.99999974E-6 : f32
    %233 = vector.broadcast %cst_189 : f32 to vector<1x128xf32>
    %234 = arith.addf %232, %233 : vector<1x128xf32>
    %235 = math.rsqrt %234 : vector<1x128xf32>
    %236 = vector.shape_cast %235 : vector<1x128xf32> to vector<1x1x128xf32>
    %237 = vector.broadcast %236 : vector<1x1x128xf32> to vector<8x8x128xf32>
    %238 = arith.mulf %226, %237 : vector<8x8x128xf32>
    %cst_190 = arith.constant 2.000000e-01 : f32
    %239 = vector.broadcast %cst_190 : f32 to vector<8x8x128xf32>
    %240 = arith.mulf %239, %238 : vector<8x8x128xf32>
    %241 = arith.maximumf %238, %240 : vector<8x8x128xf32>
    %242 = arith.truncf %241 : vector<8x8x128xf32> to vector<8x8x128xbf16>
    %c0_191 = arith.constant 0 : index
    %c0_192 = arith.constant 0 : index
    %c0_193 = arith.constant 0 : index
    %c0_194 = arith.constant 0 : index
    %243 = vector.load %arg5[%c0_191, %c0_192, %c0_193, %c0_194] : memref<1x8x8x128xbf16, #tpu.memory_space<vmem>>, vector<1x8x8x128xbf16>
    %244 = vector.shape_cast %243 : vector<1x8x8x128xbf16> to vector<8x8x128xbf16>
    %245 = vector.shape_cast %242 : vector<8x8x128xbf16> to vector<1x8x8x128xbf16>
    tpu.vector_store %arg5[%c0_191, %c0_192, %c0_193, %c0_194], %245 {strides = array<i32>} : memref<1x8x8x128xbf16, #tpu.memory_space<vmem>>, vector<1x8x8x128xbf16>,
    return
  }
  func.func @transform_0(%arg0: i32, %arg1: i32) -> (i32, i32, i32) {
    %c0_i32 = arith.constant 0 : i32
    %c0_i32_0 = arith.constant 0 : i32
    %c0_i32_1 = arith.constant 0 : i32
    return %arg1, %c0_i32, %c0_i32_0 : i32, i32, i32
  }
  func.func @transform_1(%arg0: i32, %arg1: i32) -> (i32, i32, i32) {
    %c0_i32 = arith.constant 0 : i32
    %c0_i32_0 = arith.constant 0 : i32
    %c0_i32_1 = arith.constant 0 : i32
    return %c0_i32, %c0_i32_0, %arg0 : i32, i32, i32
  }
  func.func @transform_2(%arg0: i32, %arg1: i32) -> (i32, i32) {
    %c0_i32 = arith.constant 0 : i32
    %c0_i32_0 = arith.constant 0 : i32
    return %c0_i32, %arg0 : i32, i32
  }
  func.func @transform_3(%arg0: i32, %arg1: i32) -> (i32, i32, i32, i32) {
    %c0_i32 = arith.constant 0 : i32
    %c0_i32_0 = arith.constant 0 : i32
    %c0_i32_1 = arith.constant 0 : i32
    return %arg1, %c0_i32, %c0_i32_0, %arg0 : i32, i32, i32, i32
  }
}

module attributes {stable_mosaic.version = 11 : i64} {
  func.func @_conv_s2d_kernel(%arg0: i32, %arg1: i32, %arg2: memref<1x25x512xbf16, #tpu.memory_space<vmem>>, %arg3: memref<4x512x256xbf16, #tpu.memory_space<vmem>>, %arg4: memref<1x256xf32, #tpu.memory_space<vmem>>, %arg5: memref<1x3x3x256xbf16, #tpu.memory_space<vmem>>, %arg6: memref<3x3x256xf32, #tpu.memory_space<vmem>>) attributes {dimension_semantics = [#tpu.dimension_semantics<parallel>, #tpu.dimension_semantics<parallel>], iteration_bounds = array<i64: 1, 2>, scalar_prefetch = 0 : i64, scratch_operands = 1 : i64, tpu.core_type = #tpu.core_type<tc>, window_params = [{transform_indices = @transform_0, window_bounds = array<i64: 1, 25, 512>}, {transform_indices = @transform_1, window_bounds = array<i64: 4, 512, 256>}, {transform_indices = @transform_2, window_bounds = array<i64: 1, 256>}, {transform_indices = @transform_3, window_bounds = array<i64: 1, 3, 3, 256>}]} {
    %c0 = arith.constant 0 : index
    %c0_0 = arith.constant 0 : index
    %c0_1 = arith.constant 0 : index
    %0 = vector.load %arg2[%c0, %c0_0, %c0_1] : memref<1x25x512xbf16, #tpu.memory_space<vmem>>, vector<1x25x512xbf16>
    %1 = vector.shape_cast %0 : vector<1x25x512xbf16> to vector<25x512xbf16>
    %c0_2 = arith.constant 0 : index
    %c0_3 = arith.constant 0 : index
    %c0_4 = arith.constant 0 : index
    %2 = vector.load %arg3[%c0_2, %c0_3, %c0_4] : memref<4x512x256xbf16, #tpu.memory_space<vmem>>, vector<1x512x256xbf16>
    %3 = vector.shape_cast %2 : vector<1x512x256xbf16> to vector<512x256xbf16>
    %cst = arith.constant dense<0.000000e+00> : vector<25x256xf32>
    %4 = tpu.matmul %1, %3, %cst {dimension_numbers = #tpu.dot_dimension_numbers<[1], [0], [0], [1], [0, 0, 1, 1], [], []>} : vector<25x512xbf16>, vector<512x256xbf16>, vector<25x256xf32> -> vector<25x256xf32>
    %5 = vector.extract_strided_slice %4 {offsets = [0, 0], sizes = [3, 256], strides = [1, 1]} : vector<25x256xf32> to vector<3x256xf32>
    %c0_5 = arith.constant 0 : index
    %c0_6 = arith.constant 0 : index
    %c0_7 = arith.constant 0 : index
    %6 = vector.load %arg6[%c0_5, %c0_6, %c0_7] : memref<3x3x256xf32, #tpu.memory_space<vmem>>, vector<1x3x256xf32>
    %7 = vector.shape_cast %6 : vector<1x3x256xf32> to vector<3x256xf32>
    %8 = vector.shape_cast %5 : vector<3x256xf32> to vector<1x3x256xf32>
    tpu.vector_store %arg6[%c0_5, %c0_6, %c0_7], %8 {strides = array<i32>} : memref<3x3x256xf32, #tpu.memory_space<vmem>>, vector<1x3x256xf32>,
    %9 = vector.extract_strided_slice %4 {offsets = [5, 0], sizes = [3, 256], strides = [1, 1]} : vector<25x256xf32> to vector<3x256xf32>
    %c1 = arith.constant 1 : index
    %c0_8 = arith.constant 0 : index
    %c0_9 = arith.constant 0 : index
    %10 = vector.load %arg6[%c1, %c0_8, %c0_9] : memref<3x3x256xf32, #tpu.memory_space<vmem>>, vector<1x3x256xf32>
    %11 = vector.shape_cast %10 : vector<1x3x256xf32> to vector<3x256xf32>
    %12 = vector.shape_cast %9 : vector<3x256xf32> to vector<1x3x256xf32>
    tpu.vector_store %arg6[%c1, %c0_8, %c0_9], %12 {strides = array<i32>} : memref<3x3x256xf32, #tpu.memory_space<vmem>>, vector<1x3x256xf32>,
    %13 = vector.extract_strided_slice %4 {offsets = [10, 0], sizes = [3, 256], strides = [1, 1]} : vector<25x256xf32> to vector<3x256xf32>
    %c2 = arith.constant 2 : index
    %c0_10 = arith.constant 0 : index
    %c0_11 = arith.constant 0 : index
    %14 = vector.load %arg6[%c2, %c0_10, %c0_11] : memref<3x3x256xf32, #tpu.memory_space<vmem>>, vector<1x3x256xf32>
    %15 = vector.shape_cast %14 : vector<1x3x256xf32> to vector<3x256xf32>
    %16 = vector.shape_cast %13 : vector<3x256xf32> to vector<1x3x256xf32>
    tpu.vector_store %arg6[%c2, %c0_10, %c0_11], %16 {strides = array<i32>} : memref<3x3x256xf32, #tpu.memory_space<vmem>>, vector<1x3x256xf32>,
    %c1_12 = arith.constant 1 : index
    %c0_13 = arith.constant 0 : index
    %c0_14 = arith.constant 0 : index
    %17 = vector.load %arg3[%c1_12, %c0_13, %c0_14] : memref<4x512x256xbf16, #tpu.memory_space<vmem>>, vector<1x512x256xbf16>
    %18 = vector.shape_cast %17 : vector<1x512x256xbf16> to vector<512x256xbf16>
    %cst_15 = arith.constant dense<0.000000e+00> : vector<25x256xf32>
    %19 = tpu.matmul %1, %18, %cst_15 {dimension_numbers = #tpu.dot_dimension_numbers<[1], [0], [0], [1], [0, 0, 1, 1], [], []>} : vector<25x512xbf16>, vector<512x256xbf16>, vector<25x256xf32> -> vector<25x256xf32>
    %20 = vector.extract_strided_slice %19 {offsets = [1, 0], sizes = [3, 256], strides = [1, 1]} : vector<25x256xf32> to vector<3x256xf32>
    %c0_16 = arith.constant 0 : index
    %c0_17 = arith.constant 0 : index
    %c0_18 = arith.constant 0 : index
    %21 = vector.load %arg6[%c0_16, %c0_17, %c0_18] : memref<3x3x256xf32, #tpu.memory_space<vmem>>, vector<1x3x256xf32>
    %22 = vector.shape_cast %21 : vector<1x3x256xf32> to vector<3x256xf32>
    %23 = arith.addf %22, %20 : vector<3x256xf32>
    %c0_19 = arith.constant 0 : index
    %c0_20 = arith.constant 0 : index
    %c0_21 = arith.constant 0 : index
    %24 = vector.load %arg6[%c0_19, %c0_20, %c0_21] : memref<3x3x256xf32, #tpu.memory_space<vmem>>, vector<1x3x256xf32>
    %25 = vector.shape_cast %24 : vector<1x3x256xf32> to vector<3x256xf32>
    %26 = vector.shape_cast %23 : vector<3x256xf32> to vector<1x3x256xf32>
    tpu.vector_store %arg6[%c0_19, %c0_20, %c0_21], %26 {strides = array<i32>} : memref<3x3x256xf32, #tpu.memory_space<vmem>>, vector<1x3x256xf32>,
    %27 = vector.extract_strided_slice %19 {offsets = [6, 0], sizes = [3, 256], strides = [1, 1]} : vector<25x256xf32> to vector<3x256xf32>
    %c1_22 = arith.constant 1 : index
    %c0_23 = arith.constant 0 : index
    %c0_24 = arith.constant 0 : index
    %28 = vector.load %arg6[%c1_22, %c0_23, %c0_24] : memref<3x3x256xf32, #tpu.memory_space<vmem>>, vector<1x3x256xf32>
    %29 = vector.shape_cast %28 : vector<1x3x256xf32> to vector<3x256xf32>
    %30 = arith.addf %29, %27 : vector<3x256xf32>
    %c1_25 = arith.constant 1 : index
    %c0_26 = arith.constant 0 : index
    %c0_27 = arith.constant 0 : index
    %31 = vector.load %arg6[%c1_25, %c0_26, %c0_27] : memref<3x3x256xf32, #tpu.memory_space<vmem>>, vector<1x3x256xf32>
    %32 = vector.shape_cast %31 : vector<1x3x256xf32> to vector<3x256xf32>
    %33 = vector.shape_cast %30 : vector<3x256xf32> to vector<1x3x256xf32>
    tpu.vector_store %arg6[%c1_25, %c0_26, %c0_27], %33 {strides = array<i32>} : memref<3x3x256xf32, #tpu.memory_space<vmem>>, vector<1x3x256xf32>,
    %34 = vector.extract_strided_slice %19 {offsets = [11, 0], sizes = [3, 256], strides = [1, 1]} : vector<25x256xf32> to vector<3x256xf32>
    %c2_28 = arith.constant 2 : index
    %c0_29 = arith.constant 0 : index
    %c0_30 = arith.constant 0 : index
    %35 = vector.load %arg6[%c2_28, %c0_29, %c0_30] : memref<3x3x256xf32, #tpu.memory_space<vmem>>, vector<1x3x256xf32>
    %36 = vector.shape_cast %35 : vector<1x3x256xf32> to vector<3x256xf32>
    %37 = arith.addf %36, %34 : vector<3x256xf32>
    %c2_31 = arith.constant 2 : index
    %c0_32 = arith.constant 0 : index
    %c0_33 = arith.constant 0 : index
    %38 = vector.load %arg6[%c2_31, %c0_32, %c0_33] : memref<3x3x256xf32, #tpu.memory_space<vmem>>, vector<1x3x256xf32>
    %39 = vector.shape_cast %38 : vector<1x3x256xf32> to vector<3x256xf32>
    %40 = vector.shape_cast %37 : vector<3x256xf32> to vector<1x3x256xf32>
    tpu.vector_store %arg6[%c2_31, %c0_32, %c0_33], %40 {strides = array<i32>} : memref<3x3x256xf32, #tpu.memory_space<vmem>>, vector<1x3x256xf32>,
    %c2_34 = arith.constant 2 : index
    %c0_35 = arith.constant 0 : index
    %c0_36 = arith.constant 0 : index
    %41 = vector.load %arg3[%c2_34, %c0_35, %c0_36] : memref<4x512x256xbf16, #tpu.memory_space<vmem>>, vector<1x512x256xbf16>
    %42 = vector.shape_cast %41 : vector<1x512x256xbf16> to vector<512x256xbf16>
    %cst_37 = arith.constant dense<0.000000e+00> : vector<25x256xf32>
    %43 = tpu.matmul %1, %42, %cst_37 {dimension_numbers = #tpu.dot_dimension_numbers<[1], [0], [0], [1], [0, 0, 1, 1], [], []>} : vector<25x512xbf16>, vector<512x256xbf16>, vector<25x256xf32> -> vector<25x256xf32>
    %44 = vector.extract_strided_slice %43 {offsets = [5, 0], sizes = [3, 256], strides = [1, 1]} : vector<25x256xf32> to vector<3x256xf32>
    %c0_38 = arith.constant 0 : index
    %c0_39 = arith.constant 0 : index
    %c0_40 = arith.constant 0 : index
    %45 = vector.load %arg6[%c0_38, %c0_39, %c0_40] : memref<3x3x256xf32, #tpu.memory_space<vmem>>, vector<1x3x256xf32>
    %46 = vector.shape_cast %45 : vector<1x3x256xf32> to vector<3x256xf32>
    %47 = arith.addf %46, %44 : vector<3x256xf32>
    %c0_41 = arith.constant 0 : index
    %c0_42 = arith.constant 0 : index
    %c0_43 = arith.constant 0 : index
    %48 = vector.load %arg6[%c0_41, %c0_42, %c0_43] : memref<3x3x256xf32, #tpu.memory_space<vmem>>, vector<1x3x256xf32>
    %49 = vector.shape_cast %48 : vector<1x3x256xf32> to vector<3x256xf32>
    %50 = vector.shape_cast %47 : vector<3x256xf32> to vector<1x3x256xf32>
    tpu.vector_store %arg6[%c0_41, %c0_42, %c0_43], %50 {strides = array<i32>} : memref<3x3x256xf32, #tpu.memory_space<vmem>>, vector<1x3x256xf32>,
    %51 = vector.extract_strided_slice %43 {offsets = [10, 0], sizes = [3, 256], strides = [1, 1]} : vector<25x256xf32> to vector<3x256xf32>
    %c1_44 = arith.constant 1 : index
    %c0_45 = arith.constant 0 : index
    %c0_46 = arith.constant 0 : index
    %52 = vector.load %arg6[%c1_44, %c0_45, %c0_46] : memref<3x3x256xf32, #tpu.memory_space<vmem>>, vector<1x3x256xf32>
    %53 = vector.shape_cast %52 : vector<1x3x256xf32> to vector<3x256xf32>
    %54 = arith.addf %53, %51 : vector<3x256xf32>
    %c1_47 = arith.constant 1 : index
    %c0_48 = arith.constant 0 : index
    %c0_49 = arith.constant 0 : index
    %55 = vector.load %arg6[%c1_47, %c0_48, %c0_49] : memref<3x3x256xf32, #tpu.memory_space<vmem>>, vector<1x3x256xf32>
    %56 = vector.shape_cast %55 : vector<1x3x256xf32> to vector<3x256xf32>
    %57 = vector.shape_cast %54 : vector<3x256xf32> to vector<1x3x256xf32>
    tpu.vector_store %arg6[%c1_47, %c0_48, %c0_49], %57 {strides = array<i32>} : memref<3x3x256xf32, #tpu.memory_space<vmem>>, vector<1x3x256xf32>,
    %58 = vector.extract_strided_slice %43 {offsets = [15, 0], sizes = [3, 256], strides = [1, 1]} : vector<25x256xf32> to vector<3x256xf32>
    %c2_50 = arith.constant 2 : index
    %c0_51 = arith.constant 0 : index
    %c0_52 = arith.constant 0 : index
    %59 = vector.load %arg6[%c2_50, %c0_51, %c0_52] : memref<3x3x256xf32, #tpu.memory_space<vmem>>, vector<1x3x256xf32>
    %60 = vector.shape_cast %59 : vector<1x3x256xf32> to vector<3x256xf32>
    %61 = arith.addf %60, %58 : vector<3x256xf32>
    %c2_53 = arith.constant 2 : index
    %c0_54 = arith.constant 0 : index
    %c0_55 = arith.constant 0 : index
    %62 = vector.load %arg6[%c2_53, %c0_54, %c0_55] : memref<3x3x256xf32, #tpu.memory_space<vmem>>, vector<1x3x256xf32>
    %63 = vector.shape_cast %62 : vector<1x3x256xf32> to vector<3x256xf32>
    %64 = vector.shape_cast %61 : vector<3x256xf32> to vector<1x3x256xf32>
    tpu.vector_store %arg6[%c2_53, %c0_54, %c0_55], %64 {strides = array<i32>} : memref<3x3x256xf32, #tpu.memory_space<vmem>>, vector<1x3x256xf32>,
    %c3 = arith.constant 3 : index
    %c0_56 = arith.constant 0 : index
    %c0_57 = arith.constant 0 : index
    %65 = vector.load %arg3[%c3, %c0_56, %c0_57] : memref<4x512x256xbf16, #tpu.memory_space<vmem>>, vector<1x512x256xbf16>
    %66 = vector.shape_cast %65 : vector<1x512x256xbf16> to vector<512x256xbf16>
    %cst_58 = arith.constant dense<0.000000e+00> : vector<25x256xf32>
    %67 = tpu.matmul %1, %66, %cst_58 {dimension_numbers = #tpu.dot_dimension_numbers<[1], [0], [0], [1], [0, 0, 1, 1], [], []>} : vector<25x512xbf16>, vector<512x256xbf16>, vector<25x256xf32> -> vector<25x256xf32>
    %68 = vector.extract_strided_slice %67 {offsets = [6, 0], sizes = [3, 256], strides = [1, 1]} : vector<25x256xf32> to vector<3x256xf32>
    %c0_59 = arith.constant 0 : index
    %c0_60 = arith.constant 0 : index
    %c0_61 = arith.constant 0 : index
    %69 = vector.load %arg6[%c0_59, %c0_60, %c0_61] : memref<3x3x256xf32, #tpu.memory_space<vmem>>, vector<1x3x256xf32>
    %70 = vector.shape_cast %69 : vector<1x3x256xf32> to vector<3x256xf32>
    %71 = arith.addf %70, %68 : vector<3x256xf32>
    %c0_62 = arith.constant 0 : index
    %c0_63 = arith.constant 0 : index
    %c0_64 = arith.constant 0 : index
    %72 = vector.load %arg6[%c0_62, %c0_63, %c0_64] : memref<3x3x256xf32, #tpu.memory_space<vmem>>, vector<1x3x256xf32>
    %73 = vector.shape_cast %72 : vector<1x3x256xf32> to vector<3x256xf32>
    %74 = vector.shape_cast %71 : vector<3x256xf32> to vector<1x3x256xf32>
    tpu.vector_store %arg6[%c0_62, %c0_63, %c0_64], %74 {strides = array<i32>} : memref<3x3x256xf32, #tpu.memory_space<vmem>>, vector<1x3x256xf32>,
    %75 = vector.extract_strided_slice %67 {offsets = [11, 0], sizes = [3, 256], strides = [1, 1]} : vector<25x256xf32> to vector<3x256xf32>
    %c1_65 = arith.constant 1 : index
    %c0_66 = arith.constant 0 : index
    %c0_67 = arith.constant 0 : index
    %76 = vector.load %arg6[%c1_65, %c0_66, %c0_67] : memref<3x3x256xf32, #tpu.memory_space<vmem>>, vector<1x3x256xf32>
    %77 = vector.shape_cast %76 : vector<1x3x256xf32> to vector<3x256xf32>
    %78 = arith.addf %77, %75 : vector<3x256xf32>
    %c1_68 = arith.constant 1 : index
    %c0_69 = arith.constant 0 : index
    %c0_70 = arith.constant 0 : index
    %79 = vector.load %arg6[%c1_68, %c0_69, %c0_70] : memref<3x3x256xf32, #tpu.memory_space<vmem>>, vector<1x3x256xf32>
    %80 = vector.shape_cast %79 : vector<1x3x256xf32> to vector<3x256xf32>
    %81 = vector.shape_cast %78 : vector<3x256xf32> to vector<1x3x256xf32>
    tpu.vector_store %arg6[%c1_68, %c0_69, %c0_70], %81 {strides = array<i32>} : memref<3x3x256xf32, #tpu.memory_space<vmem>>, vector<1x3x256xf32>,
    %82 = vector.extract_strided_slice %67 {offsets = [16, 0], sizes = [3, 256], strides = [1, 1]} : vector<25x256xf32> to vector<3x256xf32>
    %c2_71 = arith.constant 2 : index
    %c0_72 = arith.constant 0 : index
    %c0_73 = arith.constant 0 : index
    %83 = vector.load %arg6[%c2_71, %c0_72, %c0_73] : memref<3x3x256xf32, #tpu.memory_space<vmem>>, vector<1x3x256xf32>
    %84 = vector.shape_cast %83 : vector<1x3x256xf32> to vector<3x256xf32>
    %85 = arith.addf %84, %82 : vector<3x256xf32>
    %c2_74 = arith.constant 2 : index
    %c0_75 = arith.constant 0 : index
    %c0_76 = arith.constant 0 : index
    %86 = vector.load %arg6[%c2_74, %c0_75, %c0_76] : memref<3x3x256xf32, #tpu.memory_space<vmem>>, vector<1x3x256xf32>
    %87 = vector.shape_cast %86 : vector<1x3x256xf32> to vector<3x256xf32>
    %88 = vector.shape_cast %85 : vector<3x256xf32> to vector<1x3x256xf32>
    tpu.vector_store %arg6[%c2_74, %c0_75, %c0_76], %88 {strides = array<i32>} : memref<3x3x256xf32, #tpu.memory_space<vmem>>, vector<1x3x256xf32>,
    %c0_77 = arith.constant 0 : index
    %c0_78 = arith.constant 0 : index
    %c0_79 = arith.constant 0 : index
    %89 = vector.load %arg6[%c0_77, %c0_78, %c0_79] : memref<3x3x256xf32, #tpu.memory_space<vmem>>, vector<3x3x256xf32>
    %c0_80 = arith.constant 0 : index
    %c0_81 = arith.constant 0 : index
    %90 = vector.load %arg4[%c0_80, %c0_81] : memref<1x256xf32, #tpu.memory_space<vmem>>, vector<1x256xf32>
    %91 = vector.shape_cast %90 : vector<1x256xf32> to vector<1x1x256xf32>
    %92 = vector.broadcast %91 : vector<1x1x256xf32> to vector<3x3x256xf32>
    %93 = arith.addf %89, %92 : vector<3x3x256xf32>
    %cst_82 = arith.constant 2.000000e-01 : f32
    %94 = vector.broadcast %cst_82 : f32 to vector<3x3x256xf32>
    %95 = arith.mulf %94, %93 : vector<3x3x256xf32>
    %96 = arith.maximumf %93, %95 : vector<3x3x256xf32>
    %97 = arith.truncf %96 : vector<3x3x256xf32> to vector<3x3x256xbf16>
    %c0_83 = arith.constant 0 : index
    %c0_84 = arith.constant 0 : index
    %c0_85 = arith.constant 0 : index
    %c0_86 = arith.constant 0 : index
    %98 = vector.load %arg5[%c0_83, %c0_84, %c0_85, %c0_86] : memref<1x3x3x256xbf16, #tpu.memory_space<vmem>>, vector<1x3x3x256xbf16>
    %99 = vector.shape_cast %98 : vector<1x3x3x256xbf16> to vector<3x3x256xbf16>
    %100 = vector.shape_cast %97 : vector<3x3x256xbf16> to vector<1x3x3x256xbf16>
    tpu.vector_store %arg5[%c0_83, %c0_84, %c0_85, %c0_86], %100 {strides = array<i32>} : memref<1x3x3x256xbf16, #tpu.memory_space<vmem>>, vector<1x3x3x256xbf16>,
    return
  }
  func.func @transform_0(%arg0: i32, %arg1: i32) -> (i32, i32, i32) {
    %c0_i32 = arith.constant 0 : i32
    %c0_i32_0 = arith.constant 0 : i32
    %c0_i32_1 = arith.constant 0 : i32
    return %arg1, %c0_i32, %c0_i32_0 : i32, i32, i32
  }
  func.func @transform_1(%arg0: i32, %arg1: i32) -> (i32, i32, i32) {
    %c0_i32 = arith.constant 0 : i32
    %c0_i32_0 = arith.constant 0 : i32
    %c0_i32_1 = arith.constant 0 : i32
    return %c0_i32, %c0_i32_0, %arg0 : i32, i32, i32
  }
  func.func @transform_2(%arg0: i32, %arg1: i32) -> (i32, i32) {
    %c0_i32 = arith.constant 0 : i32
    %c0_i32_0 = arith.constant 0 : i32
    return %c0_i32, %arg0 : i32, i32
  }
  func.func @transform_3(%arg0: i32, %arg1: i32) -> (i32, i32, i32, i32) {
    %c0_i32 = arith.constant 0 : i32
    %c0_i32_0 = arith.constant 0 : i32
    %c0_i32_1 = arith.constant 0 : i32
    return %arg1, %c0_i32, %c0_i32_0, %arg0 : i32, i32, i32, i32
  }
}

module attributes {stable_mosaic.version = 11 : i64} {
  func.func @_head_kernel(%arg0: memref<2x1024xbf16, #tpu.memory_space<vmem>>, %arg1: memref<1024x128xbf16, #tpu.memory_space<vmem>>, %arg2: memref<1x128xf32, #tpu.memory_space<vmem>>, %arg3: memref<5x128x128xbf16, #tpu.memory_space<vmem>>, %arg4: memref<5x1x128xf32, #tpu.memory_space<vmem>>, %arg5: memref<2x128xf32, #tpu.memory_space<vmem>>) attributes {dimension_semantics = [], scalar_prefetch = 0 : i64, scratch_operands = 0 : i64, tpu.core_type = #tpu.core_type<tc>} {
    %c0 = arith.constant 0 : index
    %c0_0 = arith.constant 0 : index
    %0 = vector.load %arg0[%c0, %c0_0] : memref<2x1024xbf16, #tpu.memory_space<vmem>>, vector<2x1024xbf16>
    %c0_1 = arith.constant 0 : index
    %c0_2 = arith.constant 0 : index
    %1 = vector.load %arg1[%c0_1, %c0_2] : memref<1024x128xbf16, #tpu.memory_space<vmem>>, vector<1024x128xbf16>
    %cst = arith.constant dense<0.000000e+00> : vector<2x128xf32>
    %2 = tpu.matmul %0, %1, %cst {dimension_numbers = #tpu.dot_dimension_numbers<[1], [0], [0], [1], [0, 0, 1, 1], [], []>} : vector<2x1024xbf16>, vector<1024x128xbf16>, vector<2x128xf32> -> vector<2x128xf32>
    %c0_3 = arith.constant 0 : index
    %c0_4 = arith.constant 0 : index
    %3 = vector.load %arg2[%c0_3, %c0_4] : memref<1x128xf32, #tpu.memory_space<vmem>>, vector<1x128xf32>
    %4 = vector.broadcast %3 : vector<1x128xf32> to vector<2x128xf32>
    %5 = arith.addf %2, %4 : vector<2x128xf32>
    %cst_5 = arith.constant 0.00999999977 : f32
    %6 = vector.broadcast %cst_5 : f32 to vector<2x128xf32>
    %7 = arith.mulf %6, %5 : vector<2x128xf32>
    %8 = arith.maximumf %5, %7 : vector<2x128xf32>
    %9 = arith.truncf %8 : vector<2x128xf32> to vector<2x128xbf16>
    %c0_6 = arith.constant 0 : index
    %c0_7 = arith.constant 0 : index
    %c0_8 = arith.constant 0 : index
    %10 = vector.load %arg3[%c0_6, %c0_7, %c0_8] : memref<5x128x128xbf16, #tpu.memory_space<vmem>>, vector<1x128x128xbf16>
    %11 = vector.shape_cast %10 : vector<1x128x128xbf16> to vector<128x128xbf16>
    %cst_9 = arith.constant dense<0.000000e+00> : vector<2x128xf32>
    %12 = tpu.matmul %9, %11, %cst_9 {dimension_numbers = #tpu.dot_dimension_numbers<[1], [0], [0], [1], [0, 0, 1, 1], [], []>} : vector<2x128xbf16>, vector<128x128xbf16>, vector<2x128xf32> -> vector<2x128xf32>
    %c0_10 = arith.constant 0 : index
    %c0_11 = arith.constant 0 : index
    %c0_12 = arith.constant 0 : index
    %13 = vector.load %arg4[%c0_10, %c0_11, %c0_12] : memref<5x1x128xf32, #tpu.memory_space<vmem>>, vector<1x1x128xf32>
    %14 = vector.shape_cast %13 : vector<1x1x128xf32> to vector<1x128xf32>
    %15 = vector.broadcast %14 : vector<1x128xf32> to vector<2x128xf32>
    %16 = arith.addf %12, %15 : vector<2x128xf32>
    %cst_13 = arith.constant 0.00999999977 : f32
    %17 = vector.broadcast %cst_13 : f32 to vector<2x128xf32>
    %18 = arith.mulf %17, %16 : vector<2x128xf32>
    %19 = arith.maximumf %16, %18 : vector<2x128xf32>
    %20 = arith.truncf %19 : vector<2x128xf32> to vector<2x128xbf16>
    %c1 = arith.constant 1 : index
    %c0_14 = arith.constant 0 : index
    %c0_15 = arith.constant 0 : index
    %21 = vector.load %arg3[%c1, %c0_14, %c0_15] : memref<5x128x128xbf16, #tpu.memory_space<vmem>>, vector<1x128x128xbf16>
    %22 = vector.shape_cast %21 : vector<1x128x128xbf16> to vector<128x128xbf16>
    %cst_16 = arith.constant dense<0.000000e+00> : vector<2x128xf32>
    %23 = tpu.matmul %20, %22, %cst_16 {dimension_numbers = #tpu.dot_dimension_numbers<[1], [0], [0], [1], [0, 0, 1, 1], [], []>} : vector<2x128xbf16>, vector<128x128xbf16>, vector<2x128xf32> -> vector<2x128xf32>
    %c1_17 = arith.constant 1 : index
    %c0_18 = arith.constant 0 : index
    %c0_19 = arith.constant 0 : index
    %24 = vector.load %arg4[%c1_17, %c0_18, %c0_19] : memref<5x1x128xf32, #tpu.memory_space<vmem>>, vector<1x1x128xf32>
    %25 = vector.shape_cast %24 : vector<1x1x128xf32> to vector<1x128xf32>
    %26 = vector.broadcast %25 : vector<1x128xf32> to vector<2x128xf32>
    %27 = arith.addf %23, %26 : vector<2x128xf32>
    %cst_20 = arith.constant 0.00999999977 : f32
    %28 = vector.broadcast %cst_20 : f32 to vector<2x128xf32>
    %29 = arith.mulf %28, %27 : vector<2x128xf32>
    %30 = arith.maximumf %27, %29 : vector<2x128xf32>
    %31 = arith.truncf %30 : vector<2x128xf32> to vector<2x128xbf16>
    %c2 = arith.constant 2 : index
    %c0_21 = arith.constant 0 : index
    %c0_22 = arith.constant 0 : index
    %32 = vector.load %arg3[%c2, %c0_21, %c0_22] : memref<5x128x128xbf16, #tpu.memory_space<vmem>>, vector<1x128x128xbf16>
    %33 = vector.shape_cast %32 : vector<1x128x128xbf16> to vector<128x128xbf16>
    %cst_23 = arith.constant dense<0.000000e+00> : vector<2x128xf32>
    %34 = tpu.matmul %31, %33, %cst_23 {dimension_numbers = #tpu.dot_dimension_numbers<[1], [0], [0], [1], [0, 0, 1, 1], [], []>} : vector<2x128xbf16>, vector<128x128xbf16>, vector<2x128xf32> -> vector<2x128xf32>
    %c2_24 = arith.constant 2 : index
    %c0_25 = arith.constant 0 : index
    %c0_26 = arith.constant 0 : index
    %35 = vector.load %arg4[%c2_24, %c0_25, %c0_26] : memref<5x1x128xf32, #tpu.memory_space<vmem>>, vector<1x1x128xf32>
    %36 = vector.shape_cast %35 : vector<1x1x128xf32> to vector<1x128xf32>
    %37 = vector.broadcast %36 : vector<1x128xf32> to vector<2x128xf32>
    %38 = arith.addf %34, %37 : vector<2x128xf32>
    %cst_27 = arith.constant 0.00999999977 : f32
    %39 = vector.broadcast %cst_27 : f32 to vector<2x128xf32>
    %40 = arith.mulf %39, %38 : vector<2x128xf32>
    %41 = arith.maximumf %38, %40 : vector<2x128xf32>
    %42 = arith.truncf %41 : vector<2x128xf32> to vector<2x128xbf16>
    %c3 = arith.constant 3 : index
    %c0_28 = arith.constant 0 : index
    %c0_29 = arith.constant 0 : index
    %43 = vector.load %arg3[%c3, %c0_28, %c0_29] : memref<5x128x128xbf16, #tpu.memory_space<vmem>>, vector<1x128x128xbf16>
    %44 = vector.shape_cast %43 : vector<1x128x128xbf16> to vector<128x128xbf16>
    %cst_30 = arith.constant dense<0.000000e+00> : vector<2x128xf32>
    %45 = tpu.matmul %42, %44, %cst_30 {dimension_numbers = #tpu.dot_dimension_numbers<[1], [0], [0], [1], [0, 0, 1, 1], [], []>} : vector<2x128xbf16>, vector<128x128xbf16>, vector<2x128xf32> -> vector<2x128xf32>
    %c3_31 = arith.constant 3 : index
    %c0_32 = arith.constant 0 : index
    %c0_33 = arith.constant 0 : index
    %46 = vector.load %arg4[%c3_31, %c0_32, %c0_33] : memref<5x1x128xf32, #tpu.memory_space<vmem>>, vector<1x1x128xf32>
    %47 = vector.shape_cast %46 : vector<1x1x128xf32> to vector<1x128xf32>
    %48 = vector.broadcast %47 : vector<1x128xf32> to vector<2x128xf32>
    %49 = arith.addf %45, %48 : vector<2x128xf32>
    %cst_34 = arith.constant 0.00999999977 : f32
    %50 = vector.broadcast %cst_34 : f32 to vector<2x128xf32>
    %51 = arith.mulf %50, %49 : vector<2x128xf32>
    %52 = arith.maximumf %49, %51 : vector<2x128xf32>
    %53 = arith.truncf %52 : vector<2x128xf32> to vector<2x128xbf16>
    %c4 = arith.constant 4 : index
    %c0_35 = arith.constant 0 : index
    %c0_36 = arith.constant 0 : index
    %54 = vector.load %arg3[%c4, %c0_35, %c0_36] : memref<5x128x128xbf16, #tpu.memory_space<vmem>>, vector<1x128x128xbf16>
    %55 = vector.shape_cast %54 : vector<1x128x128xbf16> to vector<128x128xbf16>
    %cst_37 = arith.constant dense<0.000000e+00> : vector<2x128xf32>
    %56 = tpu.matmul %53, %55, %cst_37 {dimension_numbers = #tpu.dot_dimension_numbers<[1], [0], [0], [1], [0, 0, 1, 1], [], []>} : vector<2x128xbf16>, vector<128x128xbf16>, vector<2x128xf32> -> vector<2x128xf32>
    %c4_38 = arith.constant 4 : index
    %c0_39 = arith.constant 0 : index
    %c0_40 = arith.constant 0 : index
    %57 = vector.load %arg4[%c4_38, %c0_39, %c0_40] : memref<5x1x128xf32, #tpu.memory_space<vmem>>, vector<1x1x128xf32>
    %58 = vector.shape_cast %57 : vector<1x1x128xf32> to vector<1x128xf32>
    %59 = vector.broadcast %58 : vector<1x128xf32> to vector<2x128xf32>
    %60 = arith.addf %56, %59 : vector<2x128xf32>
    %c0_41 = arith.constant 0 : index
    %c0_42 = arith.constant 0 : index
    %61 = vector.load %arg5[%c0_41, %c0_42] : memref<2x128xf32, #tpu.memory_space<vmem>>, vector<2x128xf32>
    tpu.vector_store %arg5[%c0_41, %c0_42], %60 {strides = array<i32>} : memref<2x128xf32, #tpu.memory_space<vmem>>, vector<2x128xf32>,
    return
  }
}

</mosaic_0001>

<bundles_post_ra>
// kernel: light_coords_estimator_v2.4
= control target key start
LH: loop header
LB: loop body
LE: loop exit
PB: predicated region body
PF: predicated region fallthrough
CT: control target
= control target key end

     0   :  { %s2260_s12 = smov 0   ;;  %s2262_s13 = smov 0   ;;  %s2645_s0 = inlined_call_operand.vmem [shape: bf16[2,289,16], index: 0, kind: input, shape index: {}]   ;;  %s2646_s1 = inlined_call_operand.vmem [shape: bf16[4,16,128], index: 1, kind: input, shape index: {}]   ;;  %s2647_s2 = inlined_call_operand.vmem [shape: f32[1,128], index: 2, kind: input, shape index: {}]   ;;  %s2648_s3 = inlined_call_operand.vmem [shape: bf16[2,16,16,128], index: 3, kind: output, shape index: {}]  }
   0x1   :  { %s2264_s14 = smov 0  }
   0x2 LB: > { %s22_s15 = sadd.s32 1, %s2234_s13  ;;  %p1895_p0 = scmp.ge.s32.totalorder %s2238_s14, 1  ;;  %s2238_s14 = sphi %s2264_s14, %s13_s14   ;;  %s2234_s13 = sphi %s2262_s13, %s2650_s13   ;;  %s2230_s12 = sphi %s2260_s12, %s2649_s12  }
   0x3   : > { %p23_p1 = scmp.ge.s32.totalorder %s22_s15, 2  ;;  %p168_p2 = scmp.lt.s32.totalorder %s2238_s14, 3 }
   0x5   : > { %s2652_s15 = smov (%p23_p1, %s22_s15), 0  ;;  %p169_p3 = pnand %p1895_p0, %p168_p2 }
   0x6   : > { %p202_p4 = scmp.lt.s32.totalorder (!%p169_p3), %s2230_s12, 1 }
   0x7   : > { %172 = sbr.rel (%p169_p3) target bundleno = 452 (0x1c4), region = 32 }
   0xc   : > { %v2090_v0 = vld [vmem:[%s2646_s1] sm:$0xff]  ;;  %v2091_v1 = vld [vmem:[%s2646_s1 + $0x8] sm:$0xff]  ;;  %v2092_v2 = vld [vmem:[%s2646_s1 + $0x10] sm:$0xff]  ;;  %s2654_s12 = smov (!%p202_p4, %s2230_s12), 1  ;;  %vm361_vm0 = vcmask 130048   ;;  %vm694_vm1 = vcmask 1046528  }
   0xd   : > { %v2093_v3 = vld [vmem:[%s2646_s1 + $0x18] sm:$0xff]  ;;  %426 = vmatpush.bf16.msra.mxu0 %v2090_v0  ;;  %596 = vmatpush.bf16.msra.mxu1 %v2091_v1  ;;  %s2189_s24 = smul.u32 148, %s2654_s12  ;;  %vm710_vm2 = vcmask 1045504   ;;  %v2364_v47 = vld [vmem:[%s2647_s2] ss:$0 sm:$0xff]  ;;  %s2071_s30 = sshll.u32 %s2654_s12, 7 }
   0xe   : > { %936 = vmatpush.bf16.msra.mxu2 %v2092_v2  ;;  %1269 = vmatpush.bf16.msra.mxu3 %v2093_v3  ;;  %vm726_vm3 = vcmask 1044480   ;;  %s2385_s6 = scalar_lea.vmem %s2648_s3, %s2071_s30  ;;  %vm742_vm4 = vcmask 1043456   ;;  %vm758_vm5 = vcmask 1042432   ;;  %vm774_vm6 = vcmask 1041408  }
   0xf   : > { %s2296_s27 = scalar_lea.vmem %s2645_s0, %s2189_s24  ;;  %vm790_vm7 = vcmask 1040384  }
  0x10   : > { %v2072_v4 = vld [vmem:[%s2296_s27] sm:$0xff]  ;;  %v2073_v5 = vld [vmem:[%s2296_s27 + $0x8] sm:$0xff]  ;;  %v2074_v6 = vld [vmem:[%s2296_s27 + $0x10] sm:$0xff] }
  0x11   : > { %1975 = vmatmul.msk.bf16.vlgmr.msra.gmra.mxu0 %vm361_vm0, %v2072_v4  ;;  %2000 = vmatmul.msk.bf16.vlgmr.msra.gmra.mxu1 %vm361_vm0, %v2072_v4  ;;  %v2075_v7 = vld [vmem:[%s2296_s27 + $0x18] sm:$0xff]  ;;  %v2076_v8 = vld [vmem:[%s2296_s27 + $0x20] sm:$0xff]  ;;  %v2077_v9 = vld [vmem:[%s2296_s27 + $0x28] sm:$0xff] }
  0x12   : > { %2025 = vmatmul.msk.bf16.vlgmr.msra.gmra.mxu2 %vm361_vm0, %v2072_v4  ;;  %2050 = vmatmul.msk.bf16.vlgmr.msra.gmra.mxu3 %vm361_vm0, %v2072_v4  ;;  %v2078_v10 = vld [vmem:[%s2296_s27 + $0x30] sm:$0xff]  ;;  %v2079_v11 = vld [vmem:[%s2296_s27 + $0x38] sm:$0xff]  ;;  %v2080_v12 = vld [vmem:[%s2296_s27 + $0x40] sm:$0xff] }
  0x13   : > { %v2081_v21 = vld [vmem:[%s2296_s27 + $0x48] sm:$0xff]  ;;  %v2082_v33 = vld [vmem:[%s2296_s27 + $0x50] sm:$0xff]  ;;  %v2083_v4 = vld [vmem:[%s2296_s27 + $0x58] sm:$0xff] }
  0x21   : > { %1976 = vmatmul.msk.bf16.gmra.mxu0 %vm361_vm0, %v2073_v5  ;;  %2001 = vmatmul.msk.bf16.gmra.mxu1 %vm361_vm0, %v2073_v5 }
  0x22   : > { %2026 = vmatmul.msk.bf16.gmra.mxu2 %vm361_vm0, %v2073_v5  ;;  %2051 = vmatmul.msk.bf16.gmra.mxu3 %vm361_vm0, %v2073_v5 }
  0x31   : > { %1977 = vmatmul.msk.bf16.gmra.mxu0 %vm361_vm0, %v2074_v6  ;;  %2002 = vmatmul.msk.bf16.gmra.mxu1 %vm361_vm0, %v2074_v6 }
  0x32   : > { %2027 = vmatmul.msk.bf16.gmra.mxu2 %vm361_vm0, %v2074_v6  ;;  %2052 = vmatmul.msk.bf16.gmra.mxu3 %vm361_vm0, %v2074_v6 }
  0x41   : > { %1978 = vmatmul.msk.bf16.gmra.mxu0 %vm361_vm0, %v2075_v7  ;;  %2003 = vmatmul.msk.bf16.gmra.mxu1 %vm361_vm0, %v2075_v7 }
  0x42   : > { %2028 = vmatmul.msk.bf16.gmra.mxu2 %vm361_vm0, %v2075_v7  ;;  %2053 = vmatmul.msk.bf16.gmra.mxu3 %vm361_vm0, %v2075_v7 }
  0x51   : > { %1979 = vmatmul.msk.bf16.gmra.mxu0 %vm361_vm0, %v2076_v8  ;;  %2004 = vmatmul.msk.bf16.gmra.mxu1 %vm361_vm0, %v2076_v8 }
  0x52   : > { %2029 = vmatmul.msk.bf16.gmra.mxu2 %vm361_vm0, %v2076_v8  ;;  %2054 = vmatmul.msk.bf16.gmra.mxu3 %vm361_vm0, %v2076_v8 }
  0x61   : > { %1980 = vmatmul.msk.bf16.gmra.mxu0 %vm361_vm0, %v2077_v9  ;;  %2005 = vmatmul.msk.bf16.gmra.mxu1 %vm361_vm0, %v2077_v9 }
  0x62   : > { %2030 = vmatmul.msk.bf16.gmra.mxu2 %vm361_vm0, %v2077_v9  ;;  %2055 = vmatmul.msk.bf16.gmra.mxu3 %vm361_vm0, %v2077_v9 }
  0x71   : > { %1981 = vmatmul.msk.bf16.gmra.mxu0 %vm361_vm0, %v2078_v10  ;;  %2006 = vmatmul.msk.bf16.gmra.mxu1 %vm361_vm0, %v2078_v10 }
  0x72   : > { %2031 = vmatmul.msk.bf16.gmra.mxu2 %vm361_vm0, %v2078_v10  ;;  %2056 = vmatmul.msk.bf16.gmra.mxu3 %vm361_vm0, %v2078_v10 }
  0x81   : > { %1982 = vmatmul.msk.bf16.gmra.mxu0 %vm361_vm0, %v2079_v11  ;;  %2007 = vmatmul.msk.bf16.gmra.mxu1 %vm361_vm0, %v2079_v11 }
  0x82   : > { %2032 = vmatmul.msk.bf16.gmra.mxu2 %vm361_vm0, %v2079_v11  ;;  %2057 = vmatmul.msk.bf16.gmra.mxu3 %vm361_vm0, %v2079_v11 }
  0x8e   : > { %v428_v13 = vpop.f32.mrf.mxu0  ;;  %v598_v14 = vpop.f32.mrf.mxu1 }
  0x8f   : > { %v695_v28 = vrot.slane %v598_v14, 1 }
  0x91   : > { %1983 = vmatmul.msk.bf16.gmra.mxu0 %vm361_vm0, %v2080_v12  ;;  %2008 = vmatmul.msk.bf16.gmra.mxu1 %vm361_vm0, %v2080_v12 }
  0x92   : > { %2033 = vmatmul.msk.bf16.gmra.mxu2 %vm361_vm0, %v2080_v12  ;;  %2058 = vmatmul.msk.bf16.gmra.mxu3 %vm361_vm0, %v2080_v12 }
  0x95   : > { %v938_v15 = vpop.f32.mrf.mxu2  ;;  %v1271_v16 = vpop.f32.mrf.mxu3 }
  0x96   : > { %v430_v17 = vpop.f32.mrf.mxu0  ;;  %v600_v18 = vpop.f32.mrf.mxu1 }
  0x97   : > { %v696_v29 = vrot.slane %v600_v18, 1 }
  0x99   : > { %v697_v30 = vsel %vm694_vm1, %v695_v28, %v696_v29 }
  0x9a   : > { %v702_v39 = vadd.f32 %v697_v30, %v428_v13 }
  0x9d   : > { %v939_v19 = vpop.f32.mrf.mxu2  ;;  %v1272_v20 = vpop.f32.mrf.mxu3 }
  0x9e   : > { %v433_v22 = vpop.f32.mrf.mxu0  ;;  %v603_v23 = vpop.f32.mrf.mxu1 }
  0x9f   : > { %522 = vst [vmem:[#allocation2 + $0xf] sm:$0xfe] %v433_v22  ;;  %v698_v40 = vrot.slane %v603_v23, 1  ;;  %v711_v55 = vrot.slane %v603_v23, 2 }
  0xa1   : > { %1984 = vmatmul.msk.bf16.gmra.mxu0 %vm361_vm0, %v2081_v21  ;;  %2009 = vmatmul.msk.bf16.gmra.mxu1 %vm361_vm0, %v2081_v21  ;;  %v699_v46 = vsel %vm694_vm1, %v696_v29, %v698_v40 }
  0xa2   : > { %2034 = vmatmul.msk.bf16.gmra.mxu2 %vm361_vm0, %v2081_v21  ;;  %2059 = vmatmul.msk.bf16.gmra.mxu3 %vm361_vm0, %v2081_v21  ;;  %v703_v54 = vadd.f32 %v699_v46, %v430_v17 }
  0xa5   : > { %v941_v24 = vpop.f32.mrf.mxu2  ;;  %v1274_v25 = vpop.f32.mrf.mxu3 }
  0xa6   : > { %v435_v26 = vpop.f32.mrf.mxu0  ;;  %v2348_v27 = vpop.f32.mrf.mxu1  ;;  %v1034_v34 = vrot.slane %v941_v24, 1  ;;  %v1368_v41 = vrot.slane %v1274_v25, 2 }
  0xa7   : > { %523 = vst [vmem:[#allocation2 + $0x17] sm:$0xff] %v435_v26  ;;  %v712_v56 = vrot.slane %v2348_v27, 2 }
  0xa9   : > { %v713_v63 = vsel %vm710_vm2, %v711_v55, %v712_v56 }
  0xad   : > { %v943_v31 = vpop.f32.mrf.mxu2  ;;  %v1276_v32 = vpop.f32.mrf.mxu3 }
  0xae   : > { %v1035_v35 = vrot.slane %v943_v31, 1  ;;  %v1369_v36 = vrot.slane %v1276_v32, 2  ;;  %v438_v37 = vpop.f32.mrf.mxu0  ;;  %v2352_v38 = vpop.f32.mrf.mxu1  ;;  %v706_v62 = vld [vmem:[#allocation2 + $0x10] sm:$0xff] }
  0xaf   : > { %524 = vst [vmem:[#allocation2 + $0x1f] sm:$0x1] %v438_v37  ;;  %v718_v10 = vadd.f32 %v713_v63, %v706_v62  ;;  %v714_v17 = vrot.slane %v2352_v38, 2  ;;  %v727_v30 = vrot.slane %v2352_v38, 3  ;;  %v2084_v38 = vld [vmem:[%s2296_s27 + $0x60] sm:$0xff] }
  0xb0   : > { %v1036_v42 = vsel %vm694_vm1, %v1034_v34, %v1035_v35  ;;  %526 = vst [vmem:[#allocation2 + $0x1e] sm:$0xfc] %v438_v37  ;;  %v1370_v44 = vsel %vm710_vm2, %v1368_v41, %v1369_v36 }
  0xb1   : > { %v1041_v43 = vadd.f32 %v1036_v42, %v702_v39  ;;  %1985 = vmatmul.msk.bf16.gmra.mxu0 %vm361_vm0, %v2082_v33  ;;  %2010 = vmatmul.msk.bf16.gmra.mxu1 %vm361_vm0, %v2082_v33  ;;  %v715_v24 = vsel %vm710_vm2, %v712_v56, %v714_v17 }
  0xb2   : > { %2035 = vmatmul.msk.bf16.gmra.mxu2 %vm361_vm0, %v2082_v33  ;;  %2060 = vmatmul.msk.bf16.gmra.mxu3 %vm361_vm0, %v2082_v33 }
  0xb3   : > { %v1375_v45 = vadd.f32 %v1370_v44, %v1041_v43 }
  0xb5   : > { %v946_v48 = vpop.f32.mrf.mxu2  ;;  %v1279_v49 = vpop.f32.mrf.mxu3  ;;  %v1624_v58 = vadd.f32 %v2364_v47, %v1375_v45 }
  0xb6   : > { %v1037_v50 = vrot.slane %v946_v48, 1  ;;  %v1371_v51 = vrot.slane %v1279_v49, 2  ;;  %v440_v52 = vpop.f32.mrf.mxu0  ;;  %v2366_v53 = vpop.f32.mrf.mxu1  ;;  %v1049_v5 = vrot.slane %v946_v48, 2  ;;  %v1383_v12 = vrot.slane %v1279_v49, 3  ;;  %v707_v21 = vld [vmem:[#allocation2 + $0x18] sm:$0xff] }
  0xb7   : > { %527 = vst [vmem:[#allocation2 + $0x26] sm:$0xff] %v440_v52  ;;  %v1656_v0 = vmul.f32 0.2, %v1624_v58  ;;  %v719_v29 = vadd.f32 %v715_v24, %v707_v21  ;;  %v728_v31 = vrot.slane %v2366_v53, 3 }
  0xb8   : > { %v1038_v57 = vsel %vm694_vm1, %v1035_v35, %v1037_v50  ;;  %v1372_v60 = vsel %vm710_vm2, %v1369_v36, %v1371_v51 }
  0xb9   : > { %v1042_v59 = vadd.f32 %v1038_v57, %v703_v54  ;;  %v1688_v14 = vmax.f32 %v1624_v58, %v1656_v0  ;;  %v729_v39 = vsel %vm726_vm3, %v727_v30, %v728_v31 }
  0xbb   : > { %v1376_v61 = vadd.f32 %v1372_v60, %v1042_v59 }
  0xbd   : > { %v1625_v1 = vadd.f32 %v2364_v47, %v1376_v61  ;;  %v948_v2 = vpop.f32.mrf.mxu2  ;;  %v1281_v3 = vpop.f32.mrf.mxu3 }
  0xbe   : > { %v1050_v6 = vrot.slane %v948_v2, 2  ;;  %v1384_v7 = vrot.slane %v1281_v3, 3  ;;  %v443_v8 = vpop.f32.mrf.mxu0  ;;  %v2375_v9 = vpop.f32.mrf.mxu1  ;;  %v722_v37 = vld [vmem:[#allocation2 + $0x20] sm:$0xff] }
  0xbf   : > { %v1657_v11 = vmul.f32 0.2, %v1625_v1  ;;  %528 = vst [vmem:[#allocation2 + $0x2e] sm:$0x3] %v443_v8  ;;  %v734_v50 = vadd.f32 %v729_v39, %v722_v37  ;;  %v730_v57 = vrot.slane %v2375_v9, 3 }
  0xc0   : > { %v1051_v13 = vsel %vm710_vm2, %v1049_v5, %v1050_v6  ;;  %530 = vst [vmem:[#allocation2 + $0x2d] sm:$0xf8] %v443_v8  ;;  %v1385_v18 = vsel %vm726_vm3, %v1383_v12, %v1384_v7 }
  0xc1   : > { %v1689_v15 = vmax.f32 %v1625_v1, %v1657_v11  ;;  %v1056_v16 = vadd.f32 %v1051_v13, %v718_v10  ;;  %1986 = vmatmul.msk.bf16.gmra.mxu0 %vm361_vm0, %v2083_v4  ;;  %2011 = vmatmul.msk.bf16.gmra.mxu1 %vm361_vm0, %v2083_v4  ;;  %v731_v0 = vsel %vm726_vm3, %v728_v31, %v730_v57 }
  0xc2   : > { %2036 = vmatmul.msk.bf16.gmra.mxu2 %vm361_vm0, %v2083_v4  ;;  %2061 = vmatmul.msk.bf16.gmra.mxu3 %vm361_vm0, %v2083_v4 }
  0xc3   : > { %v2097_v19 = vpack.c.bf16 %v1689_v15, %v1688_v14  ;;  %v1390_v20 = vadd.f32 %v1385_v18, %v1056_v16 }
  0xc5   : > { %2098 = vst [vmem:[%s2385_s6] sm:$0xff] %v2097_v19   ;;  %v951_v22 = vpop.f32.mrf.mxu2  ;;  %v1284_v23 = vpop.f32.mrf.mxu3  ;;  %v1626_v33 = vadd.f32 %v2364_v47, %v1390_v20 }
  0xc6   : > { %1392 = vst [vmem:[#allocation2 + $0x10] sm:$0xff] %v1390_v20  ;;  %v1052_v25 = vrot.slane %v951_v22, 2  ;;  %v1386_v26 = vrot.slane %v1284_v23, 3  ;;  %v445_v27 = vpop.f32.mrf.mxu0  ;;  %v2392_v28 = vpop.f32.mrf.mxu1  ;;  %v1064_v44 = vrot.slane %v951_v22, 3  ;;  %v1398_v52 = vrot.slane %v1284_v23, 4  ;;  %v723_v61 = vld [vmem:[#allocation2 + $0x28] sm:$0xff] }
  0xc7   : > { %531 = vst [vmem:[#allocation2 + $0x35] sm:$0xff] %v445_v27  ;;  %v1658_v40 = vmul.f32 0.2, %v1626_v33  ;;  %v735_v5 = vadd.f32 %v731_v0, %v723_v61 }
  0xc8   : > { %v1053_v32 = vsel %vm710_vm2, %v1050_v6, %v1052_v25  ;;  %v1387_v35 = vsel %vm726_vm3, %v1384_v7, %v1386_v26  ;;  %v743_v6 = vrot.slane %v2375_v9, 4  ;;  %v744_v7 = vrot.slane %v2392_v28, 4  ;;  %v2085_v9 = vld [vmem:[%s2296_s27 + $0x68] sm:$0xff] }
  0xc9   : > { %v1057_v34 = vadd.f32 %v1053_v32, %v719_v29  ;;  %v1690_v54 = vmax.f32 %v1626_v33, %v1658_v40 }
  0xca   : > { %v745_v15 = vsel %vm742_vm4, %v743_v6, %v744_v7 }
  0xcb   : > { %v1391_v36 = vadd.f32 %v1387_v35, %v1057_v34 }
  0xcd   : > { %1393 = vst [vmem:[#allocation2 + $0x18] sm:$0xff] %v1391_v36  ;;  %v1627_v41 = vadd.f32 %v2364_v47, %v1391_v36  ;;  %v953_v42 = vpop.f32.mrf.mxu2  ;;  %v1286_v43 = vpop.f32.mrf.mxu3 }
  0xce   : > { %v1065_v45 = vrot.slane %v953_v42, 3  ;;  %v1399_v46 = vrot.slane %v1286_v43, 4  ;;  %v448_v48 = vpop.f32.mrf.mxu0  ;;  %v2402_v49 = vpop.f32.mrf.mxu1  ;;  %v738_v14 = vld [vmem:[#allocation2 + $0x30] sm:$0xff] }
  0xcf   : > { %v1659_v51 = vmul.f32 0.2, %v1627_v41  ;;  %532 = vst [vmem:[#allocation2 + $0x3d] sm:$0x7] %v448_v48  ;;  %v750_v25 = vadd.f32 %v745_v15, %v738_v14  ;;  %v746_v32 = vrot.slane %v2402_v49, 4 }
  0xd0   : > { %v1066_v53 = vsel %vm726_vm3, %v1064_v44, %v1065_v45  ;;  %534 = vst [vmem:[#allocation2 + $0x3c] sm:$0xf0] %v448_v48  ;;  %v1400_v58 = vsel %vm742_vm4, %v1398_v52, %v1399_v46 }
  0xd1   : > { %v1691_v55 = vmax.f32 %v1627_v41, %v1659_v51  ;;  %v1071_v56 = vadd.f32 %v1066_v53, %v734_v50  ;;  %1987 = vmatmul.msk.bf16.gmra.mxu0 %vm361_vm0, %v2084_v38  ;;  %2012 = vmatmul.msk.bf16.gmra.mxu1 %vm361_vm0, %v2084_v38  ;;  %v747_v40 = vsel %vm742_vm4, %v744_v7, %v746_v32 }
  0xd2   : > { %2037 = vmatmul.msk.bf16.gmra.mxu2 %vm361_vm0, %v2084_v38  ;;  %2062 = vmatmul.msk.bf16.gmra.mxu3 %vm361_vm0, %v2084_v38 }
  0xd3   : > { %v2102_v59 = vpack.c.bf16 %v1691_v55, %v1690_v54  ;;  %v1405_v60 = vadd.f32 %v1400_v58, %v1071_v56 }
  0xd5   : > { %2174 = vst [vmem:[%s2385_s6 + $0x8] sm:$0xff] %v2102_v59   ;;  %v956_v62 = vpop.f32.mrf.mxu2  ;;  %v1289_v63 = vpop.f32.mrf.mxu3  ;;  %v1628_v10 = vadd.f32 %v2364_v47, %v1405_v60 }
  0xd6   : > { %1407 = vst [vmem:[#allocation2 + $0x20] sm:$0xff] %v1405_v60  ;;  %v1067_v1 = vrot.slane %v956_v62, 3  ;;  %v1401_v2 = vrot.slane %v1289_v63, 4  ;;  %v450_v3 = vpop.f32.mrf.mxu0  ;;  %v2413_v4 = vpop.f32.mrf.mxu1  ;;  %v1079_v20 = vrot.slane %v956_v62, 4  ;;  %v1413_v27 = vrot.slane %v1289_v63, 5  ;;  %v739_v36 = vld [vmem:[#allocation2 + $0x38] sm:$0xff] }
  0xd7   : > { %535 = vst [vmem:[#allocation2 + $0x44] sm:$0xff] %v450_v3  ;;  %v1660_v16 = vmul.f32 0.2, %v1628_v10  ;;  %v751_v44 = vadd.f32 %v747_v40, %v739_v36 }
  0xd8   : > { %v1068_v8 = vsel %vm726_vm3, %v1065_v45, %v1067_v1  ;;  %v1402_v12 = vsel %vm742_vm4, %v1399_v46, %v1401_v2  ;;  %v759_v45 = vrot.slane %v2402_v49, 5  ;;  %v760_v46 = vrot.slane %v2413_v4, 5  ;;  %v2086_v49 = vld [vmem:[%s2296_s27 + $0x70] sm:$0xff] }
  0xd9   : > { %v1072_v11 = vadd.f32 %v1068_v8, %v735_v5  ;;  %v1692_v29 = vmax.f32 %v1628_v10, %v1660_v16 }
  0xda   : > { %v761_v55 = vsel %vm758_vm5, %v759_v45, %v760_v46 }
  0xdb   : > { %v1406_v13 = vadd.f32 %v1402_v12, %v1072_v11 }
  0xdd   : > { %1408 = vst [vmem:[#allocation2 + $0x28] sm:$0xff] %v1406_v13  ;;  %v1629_v17 = vadd.f32 %v2364_v47, %v1406_v13  ;;  %v958_v18 = vpop.f32.mrf.mxu2  ;;  %v1291_v19 = vpop.f32.mrf.mxu3 }
  0xde   : > { %v1080_v21 = vrot.slane %v958_v18, 4  ;;  %v1414_v22 = vrot.slane %v1291_v19, 5  ;;  %v453_v23 = vpop.f32.mrf.mxu0  ;;  %v2423_v24 = vpop.f32.mrf.mxu1  ;;  %v754_v54 = vld [vmem:[#allocation2 + $0x40] sm:$0xff] }
  0xdf   : > { %v1661_v26 = vmul.f32 0.2, %v1629_v17  ;;  %536 = vst [vmem:[#allocation2 + $0x4c] sm:$0xf] %v453_v23  ;;  %v766_v1 = vadd.f32 %v761_v55, %v754_v54  ;;  %v762_v8 = vrot.slane %v2423_v24, 5 }
  0xe0   : > { %v1081_v28 = vsel %vm742_vm4, %v1079_v20, %v1080_v21  ;;  %538 = vst [vmem:[#allocation2 + $0x4b] sm:$0xe0] %v453_v23  ;;  %v1415_v33 = vsel %vm758_vm5, %v1413_v27, %v1414_v22 }
  0xe1   : > { %v1693_v30 = vmax.f32 %v1629_v17, %v1661_v26  ;;  %v1086_v31 = vadd.f32 %v1081_v28, %v750_v25  ;;  %1988 = vmatmul.msk.bf16.gmra.mxu0 %vm361_vm0, %v2085_v9  ;;  %2013 = vmatmul.msk.bf16.gmra.mxu1 %vm361_vm0, %v2085_v9  ;;  %v763_v16 = vsel %vm758_vm5, %v760_v46, %v762_v8 }
  0xe2   : > { %2038 = vmatmul.msk.bf16.gmra.mxu2 %vm361_vm0, %v2085_v9  ;;  %2063 = vmatmul.msk.bf16.gmra.mxu3 %vm361_vm0, %v2085_v9 }
  0xe3   : > { %v2107_v34 = vpack.c.bf16 %v1693_v30, %v1692_v29  ;;  %v1420_v35 = vadd.f32 %v1415_v33, %v1086_v31 }
  0xe5   : > { %2175 = vst [vmem:[%s2385_s6 + $0x10] sm:$0xff] %v2107_v34   ;;  %v961_v37 = vpop.f32.mrf.mxu2  ;;  %v1294_v39 = vpop.f32.mrf.mxu3  ;;  %v1630_v50 = vadd.f32 %v2364_v47, %v1420_v35 }
  0xe6   : > { %1422 = vst [vmem:[#allocation2 + $0x30] sm:$0xff] %v1420_v35  ;;  %v1082_v41 = vrot.slane %v961_v37, 4  ;;  %v1416_v42 = vrot.slane %v1294_v39, 5  ;;  %v455_v43 = vpop.f32.mrf.mxu0  ;;  %v2434_v38 = vpop.f32.mrf.mxu1  ;;  %v1094_v60 = vrot.slane %v961_v37, 5  ;;  %v1428_v3 = vrot.slane %v1294_v39, 6  ;;  %v755_v13 = vld [vmem:[#allocation2 + $0x48] sm:$0xff] }
  0xe7   : > { %539 = vst [vmem:[#allocation2 + $0x53] sm:$0xff] %v455_v43  ;;  %v1662_v56 = vmul.f32 0.2, %v1630_v50  ;;  %v767_v20 = vadd.f32 %v763_v16, %v755_v13 }
  0xe8   : > { %v1083_v48 = vsel %vm742_vm4, %v1080_v21, %v1082_v41  ;;  %v1417_v52 = vsel %vm758_vm5, %v1414_v22, %v1416_v42  ;;  %v775_v21 = vrot.slane %v2423_v24, 6  ;;  %v776_v22 = vrot.slane %v2434_v38, 6  ;;  %v2087_v24 = vld [vmem:[%s2296_s27 + $0x78] sm:$0xff] }
  0xe9   : > { %v1087_v51 = vadd.f32 %v1083_v48, %v751_v44  ;;  %v1694_v5 = vmax.f32 %v1630_v50, %v1662_v56 }
  0xea   : > { %v777_v30 = vsel %vm774_vm6, %v775_v21, %v776_v22 }
  0xeb   : > { %v1421_v53 = vadd.f32 %v1417_v52, %v1087_v51 }
  0xed   : > { %1423 = vst [vmem:[#allocation2 + $0x38] sm:$0xff] %v1421_v53  ;;  %v1631_v57 = vadd.f32 %v2364_v47, %v1421_v53  ;;  %v963_v58 = vpop.f32.mrf.mxu2  ;;  %v1296_v59 = vpop.f32.mrf.mxu3 }
  0xee   : > { %v1095_v61 = vrot.slane %v963_v58, 5  ;;  %v1429_v62 = vrot.slane %v1296_v59, 6  ;;  %v458_v63 = vpop.f32.mrf.mxu0  ;;  %v2444_v0 = vpop.f32.mrf.mxu1  ;;  %v770_v29 = vld [vmem:[#allocation2 + $0x50] sm:$0xff] }
  0xef   : > { %v1663_v2 = vmul.f32 0.2, %v1631_v57  ;;  %540 = vst [vmem:[#allocation2 + $0x5b] sm:$0x1f] %v458_v63  ;;  %v782_v41 = vadd.f32 %v777_v30, %v770_v29  ;;  %v778_v48 = vrot.slane %v2444_v0, 6 }
  0xf0   : > { %v1096_v4 = vsel %vm758_vm5, %v1094_v60, %v1095_v61  ;;  %542 = vst [vmem:[#allocation2 + $0x5a] sm:$0xc0] %v458_v63  ;;  %v1430_v10 = vsel %vm774_vm6, %v1428_v3, %v1429_v62 }
  0xf1   : > { %v1695_v6 = vmax.f32 %v1631_v57, %v1663_v2  ;;  %v1101_v7 = vadd.f32 %v1096_v4, %v766_v1  ;;  %1989 = vmatmul.msk.bf16.gmra.mxu0 %vm361_vm0, %v2086_v49  ;;  %2014 = vmatmul.msk.bf16.gmra.mxu1 %vm361_vm0, %v2086_v49  ;;  %v779_v56 = vsel %vm774_vm6, %v776_v22, %v778_v48 }
  0xf2   : > { %2039 = vmatmul.msk.bf16.gmra.mxu2 %vm361_vm0, %v2086_v49  ;;  %2064 = vmatmul.msk.bf16.gmra.mxu3 %vm361_vm0, %v2086_v49 }
  0xf3   : > { %v2112_v11 = vpack.c.bf16 %v1695_v6, %v1694_v5  ;;  %v1435_v12 = vadd.f32 %v1430_v10, %v1101_v7 }
  0xf5   : > { %2176 = vst [vmem:[%s2385_s6 + $0x18] sm:$0xff] %v2112_v11   ;;  %v966_v14 = vpop.f32.mrf.mxu2  ;;  %v1299_v15 = vpop.f32.mrf.mxu3  ;;  %v1632_v25 = vadd.f32 %v2364_v47, %v1435_v12 }
  0xf6   : > { %1437 = vst [vmem:[#allocation2 + $0x40] sm:$0xff] %v1435_v12  ;;  %v1097_v17 = vrot.slane %v966_v14, 5  ;;  %v1431_v18 = vrot.slane %v1299_v15, 6  ;;  %v460_v19 = vpop.f32.mrf.mxu0  ;;  %v2455_v9 = vpop.f32.mrf.mxu1  ;;  %v1109_v35 = vrot.slane %v966_v14, 6  ;;  %v1443_v43 = vrot.slane %v1299_v15, 7  ;;  %v771_v53 = vld [vmem:[#allocation2 + $0x58] sm:$0xff] }
  0xf7   : > { %543 = vst [vmem:[#allocation2 + $0x62] sm:$0xff] %v460_v19  ;;  %v1664_v31 = vmul.f32 0.2, %v1632_v25  ;;  %v783_v60 = vadd.f32 %v779_v56, %v771_v53 }
  0xf8   : > { %v1098_v23 = vsel %vm758_vm5, %v1095_v61, %v1097_v17  ;;  %v1432_v27 = vsel %vm774_vm6, %v1429_v62, %v1431_v18  ;;  %v791_v61 = vrot.slane %v2444_v0, 7  ;;  %v792_v62 = vrot.slane %v2455_v9, 7  ;;  %v2088_v0 = vld [vmem:[%s2296_s27 + $0x80] sm:$0xff] }
  0xf9   : > { %v1102_v26 = vadd.f32 %v1098_v23, %v767_v20  ;;  %v1696_v44 = vmax.f32 %v1632_v25, %v1664_v31 }
  0xfa   : > { %v793_v6 = vsel %vm790_vm7, %v791_v61, %v792_v62 }
  0xfb   : > { %v1436_v28 = vadd.f32 %v1432_v27, %v1102_v26 }
  0xfd   : > { %1438 = vst [vmem:[#allocation2 + $0x48] sm:$0xff] %v1436_v28  ;;  %v1633_v32 = vadd.f32 %v2364_v47, %v1436_v28  ;;  %v968_v33 = vpop.f32.mrf.mxu2  ;;  %v1301_v34 = vpop.f32.mrf.mxu3 }
  0xfe   : > { %v1110_v36 = vrot.slane %v968_v33, 6  ;;  %v1444_v37 = vrot.slane %v1301_v34, 7  ;;  %v463_v39 = vpop.f32.mrf.mxu0  ;;  %v2465_v40 = vpop.f32.mrf.mxu1  ;;  %v786_v5 = vld [vmem:[#allocation2 + $0x60] sm:$0xff] }
  0xff   : > { %v1665_v42 = vmul.f32 0.2, %v1633_v32  ;;  %544 = vst [vmem:[#allocation2 + $0x6a] sm:$0x3f] %v463_v39  ;;  %v798_v16 = vadd.f32 %v793_v6, %v786_v5  ;;  %v794_v21 = vrot.slane %v2465_v40, 7 }
 0x100   : > { %v1111_v38 = vsel %vm774_vm6, %v1109_v35, %v1110_v36  ;;  %546 = vst [vmem:[#allocation2 + $0x69] sm:$0x80] %v463_v39  ;;  %v1445_v50 = vsel %vm790_vm7, %v1443_v43, %v1444_v37  ;;  %v2089_v43 = vld [vmem:[%s2296_s27 + $0x88] sm:$0xff] }
 0x101   : > { %v1697_v45 = vmax.f32 %v1633_v32, %v1665_v42  ;;  %v1116_v46 = vadd.f32 %v1111_v38, %v782_v41  ;;  %1990 = vmatmul.msk.bf16.gmra.mxu0 %vm361_vm0, %v2087_v24  ;;  %2015 = vmatmul.msk.bf16.gmra.mxu1 %vm361_vm0, %v2087_v24  ;;  %v795_v28 = vsel %vm790_vm7, %v792_v62, %v794_v21 }
 0x102   : > { %2040 = vmatmul.msk.bf16.gmra.mxu2 %vm361_vm0, %v2087_v24  ;;  %2065 = vmatmul.msk.bf16.gmra.mxu3 %vm361_vm0, %v2087_v24 }
 0x103   : > { %v2117_v51 = vpack.c.bf16 %v1697_v45, %v1696_v44  ;;  %v1450_v52 = vadd.f32 %v1445_v50, %v1116_v46 }
 0x105   : > { %2177 = vst [vmem:[%s2385_s6 + $0x20] sm:$0xff] %v2117_v51   ;;  %v971_v54 = vpop.f32.mrf.mxu2  ;;  %v1304_v55 = vpop.f32.mrf.mxu3  ;;  %v1634_v1 = vadd.f32 %v2364_v47, %v1450_v52 }
 0x106   : > { %1452 = vst [vmem:[#allocation2 + $0x50] sm:$0xff] %v1450_v52  ;;  %v1112_v57 = vrot.slane %v971_v54, 6  ;;  %v1446_v58 = vrot.slane %v1304_v55, 7  ;;  %v465_v59 = vpop.f32.mrf.mxu0  ;;  %v2476_v49 = vpop.f32.mrf.mxu1  ;;  %v1124_v12 = vrot.slane %v971_v54, 7  ;;  %v787_v25 = vld [vmem:[#allocation2 + $0x68] sm:$0xff] }
 0x107   : > { %547 = vst [vmem:[#allocation2 + $0x71] sm:$0xff] %v465_v59  ;;  %v1666_v7 = vmul.f32 0.2, %v1634_v1  ;;  %v799_v32 = vadd.f32 %v795_v28, %v787_v25 }
 0x108   : > { %v1113_v63 = vsel %vm774_vm6, %v1110_v36, %v1112_v57  ;;  %v1447_v3 = vsel %vm790_vm7, %v1444_v37, %v1446_v58  ;;  %v259_v58 = vld [vmem:[%s2296_s27 + $0x90] sm:$0x1] }
 0x109   : > { %v1117_v2 = vadd.f32 %v1113_v63, %v783_v60  ;;  %v1698_v19 = vmax.f32 %v1634_v1, %v1666_v7  ;;  %v335_v62 = vunpack.c.l.b16 %v259_v58 }
 0x10b   : > { %v1451_v4 = vadd.f32 %v1447_v3, %v1117_v2  ;;  %v354_v5 = vpack.c.b16 %v335_v62, %v335_v62 }
 0x10d   : > { %1453 = vst [vmem:[#allocation2 + $0x58] sm:$0xff] %v1451_v4  ;;  %v1635_v8 = vadd.f32 %v2364_v47, %v1451_v4  ;;  %v973_v10 = vpop.f32.mrf.mxu2  ;;  %v1306_v11 = vpop.f32.mrf.mxu3 }
 0x10e   : > { %v1125_v13 = vrot.slane %v973_v10, 7  ;;  %v468_v14 = vpop.f32.mrf.mxu0  ;;  %v638_v15 = vpop.f32.mrf.mxu1  ;;  %v802_v46 = vld [vmem:[#allocation2 + $0x70] sm:$0xff] }
 0x10f   : > { %v1667_v17 = vmul.f32 0.2, %v1635_v8  ;;  %548 = vst [vmem:[#allocation2 + $0x79] sm:$0x7f] %v468_v14  ;;  %v804_v50 = vadd.f32 %v802_v46, %v2476_v49 }
 0x110   : > { %v1126_v18 = vsel %vm790_vm7, %v1124_v12, %v1125_v13 }
 0x111   : > { %v1699_v9 = vmax.f32 %v1635_v8, %v1667_v17  ;;  %v1131_v20 = vadd.f32 %v1126_v18, %v798_v16  ;;  %1991 = vmatmul.msk.bf16.gmra.mxu0 %vm361_vm0, %v2088_v0  ;;  %2016 = vmatmul.msk.bf16.gmra.mxu1 %vm361_vm0, %v2088_v0 }
 0x112   : > { %2041 = vmatmul.msk.bf16.gmra.mxu2 %vm361_vm0, %v2088_v0  ;;  %2066 = vmatmul.msk.bf16.gmra.mxu3 %vm361_vm0, %v2088_v0 }
 0x113   : > { %v2122_v22 = vpack.c.bf16 %v1699_v9, %v1698_v19  ;;  %v1456_v23 = vadd.f32 %v1306_v11, %v1131_v20 }
 0x115   : > { %2178 = vst [vmem:[%s2385_s6 + $0x28] sm:$0xff] %v2122_v22   ;;  %v976_v26 = vpop.f32.mrf.mxu2  ;;  %v1309_v27 = vpop.f32.mrf.mxu3  ;;  %v1636_v34 = vadd.f32 %v2364_v47, %v1456_v23 }
 0x116   : > { %1458 = vst [vmem:[#allocation2 + $0x60] sm:$0xff] %v1456_v23  ;;  %v1127_v29 = vrot.slane %v976_v26, 7  ;;  %v2494_v30 = vpop.f32.mrf.mxu0  ;;  %v640_v31 = vpop.f32.mrf.mxu1  ;;  %v803_v61 = vld [vmem:[#allocation2 + $0x78] sm:$0xff] }
 0x117   : > { %v1668_v36 = vmul.f32 0.2, %v1636_v34  ;;  %v805_v63 = vadd.f32 %v803_v61, %v638_v15  ;;  %v813_v0 = vrot.slane %v640_v31, 1 }
 0x118   : > { %v1128_v33 = vsel %vm790_vm7, %v1125_v13, %v1127_v29 }
 0x119   : > { %v1132_v24 = vadd.f32 %v1128_v33, %v799_v32  ;;  %v1700_v44 = vmax.f32 %v1636_v34, %v1668_v36 }
 0x11b   : > { %v1457_v35 = vadd.f32 %v1309_v27, %v1132_v24 }
 0x11d   : > { %1459 = vst [vmem:[#allocation2 + $0x68] sm:$0xff] %v1457_v35  ;;  %v1637_v37 = vadd.f32 %v2364_v47, %v1457_v35  ;;  %v978_v39 = vpop.f32.mrf.mxu2  ;;  %v1311_v40 = vpop.f32.mrf.mxu3 }
 0x11e   : > { %v2499_v41 = vpop.f32.mrf.mxu0  ;;  %v2501_v42 = vpop.f32.mrf.mxu1  ;;  %v1465_v53 = vrot.slane %v1311_v40, 1  ;;  %v1137_v57 = vadd.f32 %v978_v39, %v804_v50 }
 0x11f   : > { %v1669_v38 = vmul.f32 0.2, %v1637_v37  ;;  %v814_v8 = vrot.slane %v2501_v42, 1 }
 0x121   : > { %v1701_v45 = vmax.f32 %v1637_v37, %v1669_v38  ;;  %1992 = vmatmul.msk.bf16.gmra.mxu0 %vm361_vm0, %v2089_v43  ;;  %2017 = vmatmul.msk.bf16.gmra.mxu1 %vm361_vm0, %v2089_v43  ;;  %v815_v14 = vsel %vm694_vm1, %v813_v0, %v814_v8 }
 0x122   : > { %2042 = vmatmul.msk.bf16.gmra.mxu2 %vm361_vm0, %v2089_v43  ;;  %2067 = vmatmul.msk.bf16.gmra.mxu3 %vm361_vm0, %v2089_v43  ;;  %v820_v22 = vadd.f32 %v815_v14, %v2494_v30 }
 0x123   : > { %v2127_v48 = vpack.c.bf16 %v1701_v45, %v1700_v44 }
 0x125   : > { %2179 = vst [vmem:[%s2385_s6 + $0x30] sm:$0xff] %v2127_v48   ;;  %v981_v51 = vpop.f32.mrf.mxu2  ;;  %v1314_v52 = vpop.f32.mrf.mxu3 }
 0x126   : > { %v1466_v54 = vrot.slane %v1314_v52, 1  ;;  %v475_v55 = vpop.f32.mrf.mxu0  ;;  %v2510_v56 = vpop.f32.mrf.mxu1  ;;  %v1138_v6 = vadd.f32 %v981_v51, %v805_v63 }
 0x127   : > { %553 = vst [vmem:[#allocation2 + $0x8f] sm:$0xfe] %v475_v55  ;;  %v816_v26 = vrot.slane %v2510_v56, 1  ;;  %v828_v48 = vrot.slane %v2510_v56, 2 }
 0x128   : > { %v1467_v59 = vsel %vm694_vm1, %v1465_v53, %v1466_v54 }
 0x129   : > { %v1472_v60 = vadd.f32 %v1467_v59, %v1137_v57  ;;  %v817_v34 = vsel %vm694_vm1, %v814_v8, %v816_v26 }
 0x12a   : > { %v821_v40 = vadd.f32 %v817_v34, %v2499_v41 }
 0x12b   : > { %1474 = vst [vmem:[#allocation2 + $0x70] sm:$0xff] %v1472_v60  ;;  %v1638_v7 = vadd.f32 %v2364_v47, %v1472_v60 }
 0x12d   : > { %v983_v1 = vpop.f32.mrf.mxu2  ;;  %v1316_v49 = vpop.f32.mrf.mxu3  ;;  %v1670_v12 = vmul.f32 0.2, %v1638_v7 }
 0x12e   : > { %v1468_v2 = vrot.slane %v1316_v49, 1  ;;  %v478_v3 = vpop.f32.mrf.mxu0  ;;  %v2514_v4 = vpop.f32.mrf.mxu1  ;;  %v1146_v18 = vrot.slane %v983_v1, 1  ;;  %v1480_v27 = vrot.slane %v1316_v49, 2 }
 0x12f   : > { %554 = vst [vmem:[#allocation2 + $0x97] sm:$0xff] %v478_v3  ;;  %v1702_v23 = vmax.f32 %v1638_v7, %v1670_v12  ;;  %v829_v44 = vrot.slane %v2514_v4, 2 }
 0x130   : > { %v1469_v10 = vsel %vm694_vm1, %v1466_v54, %v1468_v2 }
 0x131   : > { %v1473_v11 = vadd.f32 %v1469_v10, %v1138_v6  ;;  %1993 = vmatmul.msk.bf16.gmra.mxu0 %vm361_vm0, %v354_v5  ;;  %2018 = vmatmul.msk.bf16.gmra.mxu1 %vm361_vm0, %v354_v5  ;;  %v830_v41 = vsel %vm710_vm2, %v828_v48, %v829_v44 }
 0x132   : > { %2068 = vmatmul.msk.bf16.gmra.mxu3 %vm361_vm0, %v354_v5  ;;  %2043 = vmatmul.msk.bf16.gmra.mxu2 %vm361_vm0, %v354_v5 }
 0x133   : > { %1475 = vst [vmem:[#allocation2 + $0x78] sm:$0xff] %v1473_v11  ;;  %v1639_v13 = vadd.f32 %v2364_v47, %v1473_v11 }
 0x135   : > { %v1671_v15 = vmul.f32 0.2, %v1639_v13  ;;  %v986_v16 = vpop.f32.mrf.mxu2  ;;  %v1319_v17 = vpop.f32.mrf.mxu3 }
 0x136   : > { %v1147_v19 = vrot.slane %v986_v16, 1  ;;  %v1481_v9 = vrot.slane %v1319_v17, 2  ;;  %v480_v20 = vpop.f32.mrf.mxu0  ;;  %v2525_v21 = vpop.f32.mrf.mxu1  ;;  %v824_v50 = vld [vmem:[#allocation2 + $0x90] sm:$0xff] }
 0x137   : > { %v1703_v25 = vmax.f32 %v1639_v13, %v1671_v15  ;;  %555 = vst [vmem:[#allocation2 + $0x9f] sm:$0x1] %v480_v20  ;;  %v835_v61 = vadd.f32 %v830_v41, %v824_v50  ;;  %v831_v56 = vrot.slane %v2525_v21, 2 }
 0x138   : > { %v1148_v28 = vsel %vm694_vm1, %v1146_v18, %v1147_v19  ;;  %557 = vst [vmem:[#allocation2 + $0x9e] sm:$0xfc] %v480_v20  ;;  %v1482_v32 = vsel %vm710_vm2, %v1480_v27, %v1481_v9 }
 0x139   : > { %v2132_v29 = vpack.c.bf16 %v1703_v25, %v1702_v23  ;;  %v1153_v31 = vadd.f32 %v1148_v28, %v820_v22  ;;  %v832_v8 = vsel %vm710_vm2, %v829_v44, %v831_v56  ;;  %v843_v22 = vrot.slane %v2525_v21, 3 }
 0x13b   : > { %2180 = vst [vmem:[%s2385_s6 + $0x38] sm:$0xff] %v2132_v29   ;;  %v1487_v33 = vadd.f32 %v1482_v32, %v1153_v31 }
 0x13d   : > { %v988_v24 = vpop.f32.mrf.mxu2  ;;  %v1321_v35 = vpop.f32.mrf.mxu3  ;;  %v1640_v43 = vadd.f32 %v2364_v47, %v1487_v33 }
 0x13e   : > { %v1149_v30 = vrot.slane %v988_v24, 1  ;;  %v1483_v36 = vrot.slane %v1321_v35, 2  ;;  %v483_v37 = vpop.f32.mrf.mxu0  ;;  %v2533_v39 = vpop.f32.mrf.mxu1  ;;  %v1161_v55 = vrot.slane %v988_v24, 2  ;;  %v1495_v63 = vrot.slane %v1321_v35, 3  ;;  %v825_v7 = vld [vmem:[#allocation2 + $0x98] sm:$0xff] }
 0x13f   : > { %558 = vst [vmem:[#allocation2 + $0xa6] sm:$0xff] %v483_v37  ;;  %v1672_v51 = vmul.f32 0.2, %v1640_v43  ;;  %v836_v15 = vadd.f32 %v832_v8, %v825_v7 }
 0x140   : > { %v1150_v42 = vsel %vm694_vm1, %v1147_v19, %v1149_v30  ;;  %v1484_v45 = vsel %vm710_vm2, %v1481_v9, %v1483_v36  ;;  %v844_v19 = vrot.slane %v2533_v39, 3 }
 0x141   : > { %v1154_v38 = vadd.f32 %v1150_v42, %v821_v40  ;;  %v1704_v49 = vmax.f32 %v1640_v43, %v1672_v51 }
 0x142   : > { %v845_v29 = vsel %vm726_vm3, %v843_v22, %v844_v19 }
 0x143   : > { %v1488_v46 = vadd.f32 %v1484_v45, %v1154_v38 }
 0x145   : > { %v1641_v52 = vadd.f32 %v2364_v47, %v1488_v46  ;;  %v991_v53 = vpop.f32.mrf.mxu2  ;;  %v1324_v54 = vpop.f32.mrf.mxu3 }
 0x146   : > { %v1162_v57 = vrot.slane %v991_v53, 2  ;;  %v1496_v58 = vrot.slane %v1324_v54, 3  ;;  %v485_v59 = vpop.f32.mrf.mxu0  ;;  %v2543_v60 = vpop.f32.mrf.mxu1  ;;  %v839_v23 = vld [vmem:[#allocation2 + $0xa0] sm:$0xff] }
 0x147   : > { %v1673_v62 = vmul.f32 0.2, %v1641_v52  ;;  %559 = vst [vmem:[#allocation2 + $0xae] sm:$0x3] %v485_v59  ;;  %v850_v35 = vadd.f32 %v845_v29, %v839_v23  ;;  %v846_v21 = vrot.slane %v2543_v60, 3  ;;  %v858_v56 = vrot.slane %v2543_v60, 4 }
 0x148   : > { %v1163_v1 = vsel %vm710_vm2, %v1161_v55, %v1162_v57  ;;  %561 = vst [vmem:[#allocation2 + $0xad] sm:$0xf8] %v485_v59  ;;  %v1497_v4 = vsel %vm726_vm3, %v1495_v63, %v1496_v58 }
 0x149   : > { %v1705_v2 = vmax.f32 %v1641_v52, %v1673_v62  ;;  %v1168_v3 = vadd.f32 %v1163_v1, %v835_v61  ;;  %v847_v46 = vsel %vm726_vm3, %v844_v19, %v846_v21 }
 0x14b   : > { %v2137_v5 = vpack.c.bf16 %v1705_v2, %v1704_v49  ;;  %v1502_v6 = vadd.f32 %v1497_v4, %v1168_v3 }
 0x14d   : > { %2181 = vst [vmem:[%s2385_s6 + $0x40] sm:$0xff] %v2137_v5   ;;  %v993_v10 = vpop.f32.mrf.mxu2  ;;  %v1326_v11 = vpop.f32.mrf.mxu3  ;;  %v1642_v17 = vadd.f32 %v2364_v47, %v1502_v6 }
 0x14e   : > { %1504 = vst [vmem:[#allocation2 + $0x90] sm:$0xff] %v1502_v6  ;;  %v1164_v0 = vrot.slane %v993_v10, 2  ;;  %v1498_v12 = vrot.slane %v1326_v11, 3  ;;  %v488_v13 = vpop.f32.mrf.mxu0  ;;  %v2550_v14 = vpop.f32.mrf.mxu1  ;;  %v1176_v31 = vrot.slane %v993_v10, 3  ;;  %v1510_v36 = vrot.slane %v1326_v11, 4  ;;  %v840_v45 = vld [vmem:[#allocation2 + $0xa8] sm:$0xff] }
 0x14f   : > { %562 = vst [vmem:[#allocation2 + $0xb5] sm:$0xff] %v488_v13  ;;  %v1674_v25 = vmul.f32 0.2, %v1642_v17  ;;  %v851_v41 = vadd.f32 %v847_v46, %v840_v45  ;;  %v859_v59 = vrot.slane %v2550_v14, 4 }
 0x150   : > { %v1165_v16 = vsel %vm710_vm2, %v1162_v57, %v1164_v0  ;;  %v1499_v9 = vsel %vm726_vm3, %v1496_v58, %v1498_v12 }
 0x151   : > { %v1169_v18 = vadd.f32 %v1165_v16, %v836_v15  ;;  %v1706_v39 = vmax.f32 %v1642_v17, %v1674_v25  ;;  %v860_v4 = vsel %vm742_vm4, %v858_v56, %v859_v59 }
 0x153   : > { %v1503_v20 = vadd.f32 %v1499_v9, %v1169_v18 }
 0x155   : > { %1505 = vst [vmem:[#allocation2 + $0x98] sm:$0xff] %v1503_v20  ;;  %v1643_v26 = vadd.f32 %v2364_v47, %v1503_v20  ;;  %v996_v27 = vpop.f32.mrf.mxu2  ;;  %v1329_v28 = vpop.f32.mrf.mxu3 }
 0x156   : > { %v1177_v32 = vrot.slane %v996_v27, 3  ;;  %v1511_v33 = vrot.slane %v1329_v28, 4  ;;  %v490_v34 = vpop.f32.mrf.mxu0  ;;  %v2559_v24 = vpop.f32.mrf.mxu1  ;;  %v854_v63 = vld [vmem:[#allocation2 + $0xb0] sm:$0xff] }
 0x157   : > { %v1675_v30 = vmul.f32 0.2, %v1643_v26  ;;  %563 = vst [vmem:[#allocation2 + $0xbd] sm:$0x7] %v490_v34  ;;  %v865_v11 = vadd.f32 %v860_v4, %v854_v63  ;;  %v861_v60 = vrot.slane %v2559_v24, 4  ;;  %v873_v21 = vrot.slane %v2559_v24, 5 }
 0x158   : > { %v1178_v37 = vsel %vm726_vm3, %v1176_v31, %v1177_v32  ;;  %565 = vst [vmem:[#allocation2 + $0xbc] sm:$0xf0] %v490_v34  ;;  %v1512_v43 = vsel %vm742_vm4, %v1510_v36, %v1511_v33  ;;  %v2588_v31 = vld [vmem:[%s2647_s2] ss:$0 sm:$0xff] }
 0x159   : > { %v1707_v40 = vmax.f32 %v1643_v26, %v1675_v30  ;;  %v1183_v42 = vadd.f32 %v1178_v37, %v850_v35  ;;  %v862_v9 = vsel %vm742_vm4, %v859_v59, %v861_v60 }
 0x15b   : > { %v2142_v38 = vpack.c.bf16 %v1707_v40, %v1706_v39  ;;  %v1517_v44 = vadd.f32 %v1512_v43, %v1183_v42 }
 0x15d   : > { %2182 = vst [vmem:[%s2385_s6 + $0x48] sm:$0xff] %v2142_v38   ;;  %v998_v48 = vpop.f32.mrf.mxu2  ;;  %v1331_v50 = vpop.f32.mrf.mxu3  ;;  %v1644_v57 = vadd.f32 %v2364_v47, %v1517_v44 }
 0x15e   : > { %1519 = vst [vmem:[#allocation2 + $0xa0] sm:$0xff] %v1517_v44  ;;  %v1179_v51 = vrot.slane %v998_v48, 3  ;;  %v1513_v52 = vrot.slane %v1331_v50, 4  ;;  %v493_v53 = vpop.f32.mrf.mxu0  ;;  %v2566_v54 = vpop.f32.mrf.mxu1  ;;  %v1191_v5 = vrot.slane %v998_v48, 4  ;;  %v1525_v12 = vrot.slane %v1331_v50, 5  ;;  %v855_v19 = vld [vmem:[#allocation2 + $0xb8] sm:$0xff] }
 0x15f   : > { %566 = vst [vmem:[#allocation2 + $0xc4] sm:$0xff] %v493_v53  ;;  %v1676_v1 = vmul.f32 0.2, %v1644_v57  ;;  %v866_v28 = vadd.f32 %v862_v9, %v855_v19  ;;  %v874_v34 = vrot.slane %v2566_v54, 5 }
 0x160   : > { %v1180_v55 = vsel %vm726_vm3, %v1177_v32, %v1179_v51  ;;  %v1514_v61 = vsel %vm742_vm4, %v1511_v33, %v1513_v52 }
 0x161   : > { %v1184_v58 = vadd.f32 %v1180_v55, %v851_v41  ;;  %v875_v43 = vsel %vm758_vm5, %v873_v21, %v874_v34 }
 0x163   : > { %v1518_v62 = vadd.f32 %v1514_v61, %v1184_v58 }
 0x165   : > { %1520 = vst [vmem:[#allocation2 + $0xa8] sm:$0xff] %v1518_v62  ;;  %v1645_v49 = vadd.f32 %v2364_v47, %v1518_v62  ;;  %v1001_v2 = vpop.f32.mrf.mxu2  ;;  %v1334_v3 = vpop.f32.mrf.mxu3  ;;  %v1708_v47 = vmax.f32 %v1644_v57, %v1676_v1 }
 0x166   : > { %v1192_v6 = vrot.slane %v1001_v2, 4  ;;  %v1526_v7 = vrot.slane %v1334_v3, 5  ;;  %v495_v8 = vpop.f32.mrf.mxu0  ;;  %v2575_v10 = vpop.f32.mrf.mxu1  ;;  %v869_v36 = vld [vmem:[#allocation2 + $0xc0] sm:$0xff] }
 0x167   : > { %v1677_v0 = vmul.f32 0.2, %v1645_v49  ;;  %567 = vst [vmem:[#allocation2 + $0xcc] sm:$0xf] %v495_v8  ;;  %v880_v50 = vadd.f32 %v875_v43, %v869_v36  ;;  %v876_v24 = vrot.slane %v2575_v10, 5  ;;  %v888_v60 = vrot.slane %v2575_v10, 6 }
 0x168   : > { %v1193_v13 = vsel %vm742_vm4, %v1191_v5, %v1192_v6  ;;  %569 = vst [vmem:[#allocation2 + $0xcb] sm:$0xe0] %v495_v8  ;;  %v1527_v16 = vsel %vm758_vm5, %v1525_v12, %v1526_v7 }
 0x169   : > { %v1709_v14 = vmax.f32 %v1645_v49, %v1677_v0  ;;  %v1198_v15 = vadd.f32 %v1193_v13, %v865_v11  ;;  %v877_v62 = vsel %vm758_vm5, %v874_v34, %v876_v24 }
 0x16b   : > { %v2147_v17 = vpack.c.bf16 %v1709_v14, %v1708_v47  ;;  %v1532_v18 = vadd.f32 %v1527_v16, %v1198_v15 }
 0x16d   : > { %2183 = vst [vmem:[%s2385_s6 + $0x50] sm:$0xff] %v2147_v17   ;;  %v1003_v20 = vpop.f32.mrf.mxu2  ;;  %v1336_v22 = vpop.f32.mrf.mxu3  ;;  %v1646_v32 = vadd.f32 %v2588_v31, %v1532_v18 }
 0x16e   : > { %1534 = vst [vmem:[#allocation2 + $0xb0] sm:$0xff] %v1532_v18  ;;  %v1194_v23 = vrot.slane %v1003_v20, 4  ;;  %v1528_v25 = vrot.slane %v1336_v22, 5  ;;  %v498_v26 = vpop.f32.mrf.mxu0  ;;  %v2582_v27 = vpop.f32.mrf.mxu1  ;;  %v1206_v38 = vrot.slane %v1003_v20, 5  ;;  %v1540_v52 = vrot.slane %v1336_v22, 6  ;;  %v870_v61 = vld [vmem:[#allocation2 + $0xc8] sm:$0xff] }
 0x16f   : > { %570 = vst [vmem:[#allocation2 + $0xd3] sm:$0xff] %v498_v26  ;;  %v1678_v37 = vmul.f32 0.2, %v1646_v32  ;;  %v881_v4 = vadd.f32 %v877_v62, %v870_v61  ;;  %v889_v8 = vrot.slane %v2582_v27, 6 }
 0x170   : > { %v1195_v29 = vsel %vm742_vm4, %v1192_v6, %v1194_v23  ;;  %v1529_v35 = vsel %vm758_vm5, %v1526_v7, %v1528_v25 }
 0x171   : > { %v1199_v33 = vadd.f32 %v1195_v29, %v866_v28  ;;  %v1710_v54 = vmax.f32 %v1646_v32, %v1678_v37  ;;  %v890_v16 = vsel %vm774_vm6, %v888_v60, %v889_v8 }
 0x173   : > { %v1533_v30 = vadd.f32 %v1529_v35, %v1199_v33 }
 0x175   : > { %1535 = vst [vmem:[#allocation2 + $0xb8] sm:$0xff] %v1533_v30  ;;  %v1647_v39 = vadd.f32 %v2588_v31, %v1533_v30  ;;  %v1006_v40 = vpop.f32.mrf.mxu2  ;;  %v1339_v42 = vpop.f32.mrf.mxu3 }
 0x176   : > { %v1207_v44 = vrot.slane %v1006_v40, 5  ;;  %v1541_v45 = vrot.slane %v1339_v42, 6  ;;  %v500_v46 = vpop.f32.mrf.mxu0  ;;  %v2596_v48 = vpop.f32.mrf.mxu1  ;;  %v884_v12 = vld [vmem:[#allocation2 + $0xd0] sm:$0xff] }
 0x177   : > { %v1679_v51 = vmul.f32 0.2, %v1647_v39  ;;  %571 = vst [vmem:[#allocation2 + $0xdb] sm:$0x1f] %v500_v46  ;;  %v895_v22 = vadd.f32 %v890_v16, %v884_v12  ;;  %v891_v10 = vrot.slane %v2596_v48, 6  ;;  %v903_v24 = vrot.slane %v2596_v48, 7 }
 0x178   : > { %v1208_v53 = vsel %vm758_vm5, %v1206_v38, %v1207_v44  ;;  %573 = vst [vmem:[#allocation2 + $0xda] sm:$0xc0] %v500_v46  ;;  %v1542_v57 = vsel %vm774_vm6, %v1540_v52, %v1541_v45 }
 0x179   : > { %v1711_v41 = vmax.f32 %v1647_v39, %v1679_v51  ;;  %v1213_v55 = vadd.f32 %v1208_v53, %v880_v50  ;;  %v892_v30 = vsel %vm774_vm6, %v889_v8, %v891_v10 }
 0x17b   : > { %v2152_v58 = vpack.c.bf16 %v1711_v41, %v1710_v54  ;;  %v1547_v59 = vadd.f32 %v1542_v57, %v1213_v55 }
 0x17d   : > { %2184 = vst [vmem:[%s2385_s6 + $0x58] sm:$0xff] %v2152_v58   ;;  %v1008_v56 = vpop.f32.mrf.mxu2  ;;  %v1341_v63 = vpop.f32.mrf.mxu3  ;;  %v1648_v6 = vadd.f32 %v2588_v31, %v1547_v59 }
 0x17e   : > { %1549 = vst [vmem:[#allocation2 + $0xc0] sm:$0xff] %v1547_v59  ;;  %v1209_v1 = vrot.slane %v1008_v56, 5  ;;  %v1543_v49 = vrot.slane %v1341_v63, 6  ;;  %v503_v2 = vpop.f32.mrf.mxu0  ;;  %v2603_v3 = vpop.f32.mrf.mxu1  ;;  %v1221_v17 = vrot.slane %v1008_v56, 6  ;;  %v1555_v25 = vrot.slane %v1341_v63, 7  ;;  %v885_v35 = vld [vmem:[#allocation2 + $0xd8] sm:$0xff] }
 0x17f   : > { %574 = vst [vmem:[#allocation2 + $0xe2] sm:$0xff] %v503_v2  ;;  %v1680_v13 = vmul.f32 0.2, %v1648_v6  ;;  %v896_v43 = vadd.f32 %v892_v30, %v885_v35  ;;  %v904_v46 = vrot.slane %v2603_v3, 7 }
 0x180   : > { %v1210_v5 = vsel %vm758_vm5, %v1207_v44, %v1209_v1  ;;  %v1544_v11 = vsel %vm774_vm6, %v1541_v45, %v1543_v49 }
 0x181   : > { %v1214_v7 = vadd.f32 %v1210_v5, %v881_v4  ;;  %v1712_v27 = vmax.f32 %v1648_v6, %v1680_v13  ;;  %v905_v57 = vsel %vm790_vm7, %v903_v24, %v904_v46 }
 0x183   : > { %v1548_v0 = vadd.f32 %v1544_v11, %v1214_v7 }
 0x185   : > { %1550 = vst [vmem:[#allocation2 + $0xc8] sm:$0xff] %v1548_v0  ;;  %v1649_v47 = vadd.f32 %v2588_v31, %v1548_v0  ;;  %v1011_v14 = vpop.f32.mrf.mxu2  ;;  %v1344_v15 = vpop.f32.mrf.mxu3 }
 0x186   : > { %v1222_v18 = vrot.slane %v1011_v14, 6  ;;  %v1556_v19 = vrot.slane %v1344_v15, 7  ;;  %v505_v9 = vpop.f32.mrf.mxu0  ;;  %v675_v20 = vpop.f32.mrf.mxu1  ;;  %v899_v52 = vld [vmem:[#allocation2 + $0xe0] sm:$0xff] }
 0x187   : > { %v1681_v23 = vmul.f32 0.2, %v1649_v47  ;;  %575 = vst [vmem:[#allocation2 + $0xea] sm:$0x3f] %v505_v9  ;;  %v910_v56 = vadd.f32 %v905_v57, %v899_v52  ;;  %v906_v1 = vrot.slane %v675_v20, 7 }
 0x188   : > { %v1223_v26 = vsel %vm774_vm6, %v1221_v17, %v1222_v18  ;;  %577 = vst [vmem:[#allocation2 + $0xe9] sm:$0x80] %v505_v9  ;;  %v1557_v32 = vsel %vm790_vm7, %v1555_v25, %v1556_v19 }
 0x189   : > { %v1713_v28 = vmax.f32 %v1649_v47, %v1681_v23  ;;  %v1228_v29 = vadd.f32 %v1223_v26, %v895_v22  ;;  %v907_v7 = vsel %vm790_vm7, %v904_v46, %v906_v1 }
 0x18b   : > { %v2157_v33 = vpack.c.bf16 %v1713_v28, %v1712_v27  ;;  %v1562_v34 = vadd.f32 %v1557_v32, %v1228_v29 }
 0x18d   : > { %2185 = vst [vmem:[%s2385_s6 + $0x60] sm:$0xff] %v2157_v33   ;;  %v1013_v21 = vpop.f32.mrf.mxu2  ;;  %v1346_v36 = vpop.f32.mrf.mxu3  ;;  %v1650_v44 = vadd.f32 %v2588_v31, %v1562_v34 }
 0x18e   : > { %1564 = vst [vmem:[#allocation2 + $0xd0] sm:$0xff] %v1562_v34  ;;  %v1224_v37 = vrot.slane %v1013_v21, 6  ;;  %v1558_v39 = vrot.slane %v1346_v36, 7  ;;  %v508_v40 = vpop.f32.mrf.mxu0  ;;  %v678_v42 = vpop.f32.mrf.mxu1  ;;  %v1236_v58 = vrot.slane %v1013_v21, 7  ;;  %v900_v6 = vld [vmem:[#allocation2 + $0xe8] sm:$0xff] }
 0x18f   : > { %578 = vst [vmem:[#allocation2 + $0xf1] sm:$0xff] %v508_v40  ;;  %v1682_v53 = vmul.f32 0.2, %v1650_v44  ;;  %v911_v13 = vadd.f32 %v907_v7, %v900_v6 }
 0x190   : > { %v1225_v38 = vsel %vm774_vm6, %v1222_v18, %v1224_v37  ;;  %v1559_v50 = vsel %vm790_vm7, %v1556_v19, %v1558_v39 }
 0x191   : > { %v1229_v45 = vadd.f32 %v1225_v38, %v896_v43  ;;  %v1714_v49 = vmax.f32 %v1650_v44, %v1682_v53 }
 0x193   : > { %v1563_v51 = vadd.f32 %v1559_v50, %v1229_v45 }
 0x195   : > { %1565 = vst [vmem:[#allocation2 + $0xd8] sm:$0xff] %v1563_v51  ;;  %v1651_v54 = vadd.f32 %v2588_v31, %v1563_v51  ;;  %v1016_v41 = vpop.f32.mrf.mxu2  ;;  %v1349_v55 = vpop.f32.mrf.mxu3 }
 0x196   : > { %v1237_v59 = vrot.slane %v1016_v41, 7  ;;  %v510_v61 = vpop.f32.mrf.mxu0  ;;  %v680_v62 = vpop.f32.mrf.mxu1  ;;  %v914_v26 = vld [vmem:[#allocation2 + $0xf0] sm:$0xff] }
 0x197   : > { %v1683_v63 = vmul.f32 0.2, %v1651_v54  ;;  %579 = vst [vmem:[#allocation2 + $0xf9] sm:$0x7f] %v510_v61  ;;  %v916_v28 = vadd.f32 %v914_v26, %v678_v42 }
 0x198   : > { %v1238_v48 = vsel %vm790_vm7, %v1236_v58, %v1237_v59 }
 0x199   : > { %v1715_v2 = vmax.f32 %v1651_v54, %v1683_v63  ;;  %v1243_v3 = vadd.f32 %v1238_v48, %v910_v56 }
 0x19b   : > { %v2162_v4 = vpack.c.bf16 %v1715_v2, %v1714_v49  ;;  %v1568_v5 = vadd.f32 %v1349_v55, %v1243_v3 }
 0x19d   : > { %2186 = vst [vmem:[%s2385_s6 + $0x68] sm:$0xff] %v2162_v4   ;;  %v1018_v8 = vpop.f32.mrf.mxu2  ;;  %v1351_v11 = vpop.f32.mrf.mxu3  ;;  %v1652_v14 = vadd.f32 %v2588_v31, %v1568_v5 }
 0x19e   : > { %1570 = vst [vmem:[#allocation2 + $0xe0] sm:$0xff] %v1568_v5  ;;  %v1239_v0 = vrot.slane %v1018_v8, 7  ;;  %v513_v60 = vpop.f32.mrf.mxu0  ;;  %v683_v12 = vpop.f32.mrf.mxu1  ;;  %v915_v39 = vld [vmem:[#allocation2 + $0xf8] sm:$0xff] }
 0x19f   : > { %v1684_v17 = vmul.f32 0.2, %v1652_v14  ;;  %v917_v40 = vadd.f32 %v915_v39, %v680_v62 }
 0x1a0   : > { %v1240_v47 = vsel %vm790_vm7, %v1237_v59, %v1239_v0 }
 0x1a1   : > { %v1244_v15 = vadd.f32 %v1240_v47, %v911_v13  ;;  %v1716_v10 = vmax.f32 %v1652_v14, %v1684_v17 }
 0x1a3   : > { %v1569_v16 = vadd.f32 %v1351_v11, %v1244_v15 }
 0x1a5   : > { %1571 = vst [vmem:[#allocation2 + $0xe8] sm:$0xff] %v1569_v16  ;;  %v1653_v18 = vadd.f32 %v2588_v31, %v1569_v16  ;;  %v1021_v19 = vpop.f32.mrf.mxu2  ;;  %v1354_v9 = vpop.f32.mrf.mxu3 }
 0x1a6   : > { %v514_v20 = vpop.f32.mrf.mxu0  ;;  %v684_v22 = vpop.f32.mrf.mxu1  ;;  %v1577_v33 = vrot.slane %v1354_v9, 1  ;;  %v1249_v21 = vadd.f32 %v1021_v19, %v916_v28 }
 0x1a7   : > { %v1685_v23 = vmul.f32 0.2, %v1653_v18 }
 0x1a9   : > { %v1717_v25 = vmax.f32 %v1653_v18, %v1685_v23 }
 0x1ab   : > { %v2167_v27 = vpack.c.bf16 %v1717_v25, %v1716_v10 }
 0x1ad   : > { %2187 = vst [vmem:[%s2385_s6 + $0x70] sm:$0xff] %v2167_v27   ;;  %v1023_v29 = vpop.f32.mrf.mxu2  ;;  %v1356_v32 = vpop.f32.mrf.mxu3 }
 0x1ae   : > { %v1578_v34 = vrot.slane %v1356_v32, 1  ;;  %v516_v35 = vpop.f32.mrf.mxu0  ;;  %v686_v30 = vpop.f32.mrf.mxu1  ;;  %v1250_v46 = vadd.f32 %v1023_v29, %v917_v40 }
 0x1b0   : > { %v1579_v36 = vsel %vm694_vm1, %v1577_v33, %v1578_v34 }
 0x1b1   : > { %v1584_v37 = vadd.f32 %v1579_v36, %v1249_v21 }
 0x1b3   : > { %1586 = vst [vmem:[#allocation2 + $0xf0] sm:$0xff] %v1584_v37  ;;  %v1654_v50 = vadd.f32 %v2588_v31, %v1584_v37 }
 0x1b5   : > { %v1359_v43 = vpop.f32.mrf.mxu3  ;;  %v1026_v38 = vpop.f32.mrf.mxu2  ;;  %v1686_v52 = vmul.f32 0.2, %v1654_v50 }
 0x1b6   : > { %v1580_v44 = vrot.slane %v1359_v43, 1  ;;  %v517_v45 = vpop.f32.mrf.mxu0  ;;  %v687_v42 = vpop.f32.mrf.mxu1 }
 0x1b7   : > { %v1718_v57 = vmax.f32 %v1654_v50, %v1686_v52 }
 0x1b8   : > { %v1581_v51 = vsel %vm694_vm1, %v1578_v34, %v1580_v44 }
 0x1b9   : > { %v1585_v24 = vadd.f32 %v1581_v51, %v1250_v46 }
 0x1bb   : > { %1587 = vst [vmem:[#allocation2 + $0xf8] sm:$0xff] %v1585_v24  ;;  %v1655_v53 = vadd.f32 %v2588_v31, %v1585_v24 }
 0x1bd   : > { %v1687_v54 = vmul.f32 0.2, %v1655_v53  ;;  %v1361_v41 = vpop.f32.mrf.mxu3  ;;  %v1027_v55 = vpop.f32.mrf.mxu2 }
 0x1bf   : > { %v1719_v58 = vmax.f32 %v1655_v53, %v1687_v54 }
 0x1c1   : > { %v2172_v59 = vpack.c.bf16 %v1719_v58, %v1718_v57 }
 0x1c3   : > { %2188 = vst [vmem:[%s2385_s6 + $0x78] sm:$0xff] %v2172_v59  }
 0x1c4 PF: > { %s13_s14 = sadd.s32 1, %s2238_s14   ;;  %s2649_s12 = smov %s2234_s13 }
 0x1c5   : > { %p10_p5 = scmp.ge.s32.totalorder %s13_s14, 4   ;;  %s2650_s13 = smov %s2652_s15 }
 0x1c7   :  { %12 = sbr.rel (!%p10_p5) target bundleno = 2 (0x2), region = 86 }

// kernel: light_coords_estimator_v2.5
= control target key start
LH: loop header
LB: loop body
LE: loop exit
PB: predicated region body
PF: predicated region fallthrough
CT: control target
= control target key end

     0   :  { %s2099_s12 = smov 0   ;;  %s2101_s13 = smov 0   ;;  %s2505_s0 = inlined_call_operand.vmem [shape: bf16[2,81,256], index: 0, kind: input, shape index: {}]   ;;  %s2506_s1 = inlined_call_operand.vmem [shape: bf16[4,256,128], index: 1, kind: input, shape index: {}]   ;;  %s2507_s2 = inlined_call_operand.vmem [shape: f32[1,128], index: 2, kind: input, shape index: {}]   ;;  %s2508_s3 = inlined_call_operand.vmem [shape: bf16[2,8,8,128], index: 3, kind: output, shape index: {}]  }
   0x1   :  { %s2103_s14 = smov 0  }
   0x2 LB: > { %s22_s15 = sadd.s32 1, %s2073_s13  ;;  %p1531_p0 = scmp.ge.s32.totalorder %s2077_s14, 1  ;;  %s2077_s14 = sphi %s2103_s14, %s13_s14   ;;  %s2073_s13 = sphi %s2101_s13, %s2510_s13   ;;  %s2069_s12 = sphi %s2099_s12, %s2509_s12  }
   0x3   : > { %p23_p1 = scmp.ge.s32.totalorder %s22_s15, 2  ;;  %p168_p2 = scmp.lt.s32.totalorder %s2077_s14, 3 }
   0x5   : > { %s2512_s15 = smov (%p23_p1, %s22_s15), 0  ;;  %p169_p3 = pnand %p1531_p0, %p168_p2 }
   0x6   : > { %p202_p4 = scmp.lt.s32.totalorder (!%p169_p3), %s2069_s12, 1 }
   0x7   : > { %172 = sbr.rel (%p169_p3) target bundleno = 444 (0x1bc), region = 32 }
   0xc   : > { %v1947_v0 = vld [vmem:[%s2506_s1 + $0x38] sm:$0xff]  ;;  %v1946_v4 = vld [vmem:[%s2506_s1 + $0x30] sm:$0xff]  ;;  %v1945_v8 = vld [vmem:[%s2506_s1 + $0x28] sm:$0xff]  ;;  %s2514_s12 = smov (!%p202_p4, %s2069_s12), 1  ;;  %vm716_vm0 = vcmask 1046528   ;;  %vm725_vm1 = vcmask 1045504  }
   0xd   : > { %v1955_v1 = vld [vmem:[%s2506_s1 + $0x78] sm:$0xff]  ;;  %418 = vmatpush.bf16.msra.mxu0 %v1947_v0  ;;  %v1954_v5 = vld [vmem:[%s2506_s1 + $0x70] sm:$0xff]  ;;  %v1953_v9 = vld [vmem:[%s2506_s1 + $0x68] sm:$0xff]  ;;  %s2027_s10 = smul.u32 88, %s2514_s12  ;;  %vm734_vm2 = vcmask 1044480   ;;  %vm743_vm3 = vcmask 1043456  }
   0xe   : > { %v1963_v2 = vld [vmem:[%s2506_s1 + $0xb8] sm:$0xff]  ;;  %454 = vmatpush.bf16.msra.mxu1 %v1955_v1  ;;  %v1962_v6 = vld [vmem:[%s2506_s1 + $0xb0] sm:$0xff]  ;;  %v1961_v10 = vld [vmem:[%s2506_s1 + $0xa8] sm:$0xff]  ;;  %vm752_vm4 = vcmask 1042432   ;;  %vm761_vm5 = vcmask 1041408   ;;  %vm770_vm6 = vcmask 1040384  }
   0xf   : > { %v1971_v3 = vld [vmem:[%s2506_s1 + $0xf8] sm:$0xff]  ;;  %641 = vmatpush.bf16.msra.mxu2 %v1963_v2  ;;  %v1970_v7 = vld [vmem:[%s2506_s1 + $0xf0] sm:$0xff]  ;;  %v1969_v11 = vld [vmem:[%s2506_s1 + $0xe8] sm:$0xff]  ;;  %s2205_s25 = scalar_lea.vmem %s2505_s0, %s2027_s10  ;;  %s1929_s10 = sshll.u32 %s2514_s12, 5 }
  0x10   : > { %677 = vmatpush.bf16.msra.mxu3 %v1971_v3  ;;  %v1944_v12 = vld [vmem:[%s2506_s1 + $0x20] sm:$0xff]  ;;  %v1943_v16 = vld [vmem:[%s2506_s1 + $0x18] sm:$0xff]  ;;  %v1942_v20 = vld [vmem:[%s2506_s1 + $0x10] sm:$0xff]  ;;  %s221_s17 = scalar_lea.vmem %s2508_s3, %s1929_s10 }
  0x11   : > { %419 = vmatpush.bf16.msra.mxu0 %v1946_v4  ;;  %v1952_v13 = vld [vmem:[%s2506_s1 + $0x60] sm:$0xff]  ;;  %v1951_v17 = vld [vmem:[%s2506_s1 + $0x58] sm:$0xff]  ;;  %v1950_v21 = vld [vmem:[%s2506_s1 + $0x50] sm:$0xff] }
  0x12   : > { %455 = vmatpush.bf16.msra.mxu1 %v1954_v5  ;;  %v1960_v14 = vld [vmem:[%s2506_s1 + $0xa0] sm:$0xff]  ;;  %v1959_v18 = vld [vmem:[%s2506_s1 + $0x98] sm:$0xff]  ;;  %v1958_v22 = vld [vmem:[%s2506_s1 + $0x90] sm:$0xff] }
  0x13   : > { %642 = vmatpush.bf16.msra.mxu2 %v1962_v6  ;;  %v1968_v15 = vld [vmem:[%s2506_s1 + $0xe0] sm:$0xff]  ;;  %v1967_v19 = vld [vmem:[%s2506_s1 + $0xd8] sm:$0xff]  ;;  %v1966_v23 = vld [vmem:[%s2506_s1 + $0xd0] sm:$0xff] }
  0x14   : > { %678 = vmatpush.bf16.msra.mxu3 %v1970_v7  ;;  %v1941_v24 = vld [vmem:[%s2506_s1 + $0x8] sm:$0xff]  ;;  %v1940_v28 = vld [vmem:[%s2506_s1] sm:$0xff]  ;;  %v1995_v36 = vld [vmem:[%s2506_s1 + $0x1b8] sm:$0xff] }
  0x15   : > { %420 = vmatpush.bf16.msra.mxu0 %v1945_v8  ;;  %v1949_v25 = vld [vmem:[%s2506_s1 + $0x48] sm:$0xff]  ;;  %v1948_v29 = vld [vmem:[%s2506_s1 + $0x40] sm:$0xff]  ;;  %v2003_v37 = vld [vmem:[%s2506_s1 + $0x1f8] sm:$0xff] }
  0x16   : > { %456 = vmatpush.bf16.msra.mxu1 %v1953_v9  ;;  %v1957_v26 = vld [vmem:[%s2506_s1 + $0x88] sm:$0xff]  ;;  %v1537_v30 = vld [vmem:[%s2205_s25] sm:$0xf]  ;;  %v1930_v32 = vld [vmem:[%s2205_s25 + $0x4] sm:$0xf] }
  0x17   : > { %643 = vmatpush.bf16.msra.mxu2 %v1961_v10  ;;  %v1965_v27 = vld [vmem:[%s2506_s1 + $0xc8] sm:$0xff]  ;;  %v1956_v34 = vld [vmem:[%s2506_s1 + $0x80] sm:$0xff]  ;;  %v1979_v40 = vld [vmem:[%s2506_s1 + $0x138] sm:$0xff] }
  0x18   : > { %679 = vmatpush.bf16.msra.mxu3 %v1969_v11  ;;  %v1931_v31 = vld [vmem:[%s2205_s25 + $0x4] sm:$0xf0]  ;;  %v1539_v33 = vld [vmem:[%s2205_s25 + $0x8] sm:$0xf0]  ;;  %v1964_v35 = vld [vmem:[%s2506_s1 + $0xc0] sm:$0xff] }
  0x19   : > { %421 = vmatpush.bf16.msra.mxu0 %v1944_v12  ;;  %v2235_v38 = vor.u32 %v1931_v31, %v1537_v30  ;;  %v2237_v39 = vor.u32 %v1930_v32, %v1539_v33  ;;  %v1987_v41 = vld [vmem:[%s2506_s1 + $0x178] sm:$0xff]  ;;  %v1994_v42 = vld [vmem:[%s2506_s1 + $0x1b0] sm:$0xff]  ;;  %v1993_v46 = vld [vmem:[%s2506_s1 + $0x1a8] sm:$0xff] }
  0x1a   : > { %457 = vmatpush.bf16.msra.mxu1 %v1952_v13  ;;  %v2002_v43 = vld [vmem:[%s2506_s1 + $0x1f0] sm:$0xff]  ;;  %v2001_v47 = vld [vmem:[%s2506_s1 + $0x1e8] sm:$0xff]  ;;  %v1992_v50 = vld [vmem:[%s2506_s1 + $0x1a0] sm:$0xff] }
  0x1b   : > { %644 = vmatpush.bf16.msra.mxu2 %v1960_v14  ;;  %v1978_v44 = vld [vmem:[%s2506_s1 + $0x130] sm:$0xff]  ;;  %v1977_v48 = vld [vmem:[%s2506_s1 + $0x128] sm:$0xff]  ;;  %v2000_v51 = vld [vmem:[%s2506_s1 + $0x1e0] sm:$0xff] }
  0x1c   : > { %680 = vmatpush.bf16.msra.mxu3 %v1968_v15  ;;  %v1986_v45 = vld [vmem:[%s2506_s1 + $0x170] sm:$0xff]  ;;  %v1985_v49 = vld [vmem:[%s2506_s1 + $0x168] sm:$0xff]  ;;  %v1933_v53 = vld [vmem:[%s2205_s25 + $0x14] sm:$0xf0] }
  0x1d   : > { %422 = vmatpush.bf16.msra.mxu0 %v1943_v16  ;;  %v1545_v52 = vld [vmem:[%s2205_s25 + $0x10] sm:$0xf]  ;;  %v1932_v54 = vld [vmem:[%s2205_s25 + $0x14] sm:$0xf]  ;;  %v1547_v55 = vld [vmem:[%s2205_s25 + $0x18] sm:$0xf0] }
  0x1e   : > { %458 = vmatpush.bf16.msra.mxu1 %v1951_v17  ;;  %v1976_v56 = vld [vmem:[%s2506_s1 + $0x120] sm:$0xff]  ;;  %v2289_v58 = vor.u32 %v1933_v53, %v1545_v52  ;;  %v2291_v59 = vor.u32 %v1932_v54, %v1547_v55  ;;  %v1991_v60 = vld [vmem:[%s2506_s1 + $0x198] sm:$0xff]  ;;  %v1990_v0 = vld [vmem:[%s2506_s1 + $0x190] sm:$0xff] }
  0x1f   : > { %645 = vmatpush.bf16.msra.mxu2 %v1959_v18  ;;  %v1984_v57 = vld [vmem:[%s2506_s1 + $0x160] sm:$0xff]  ;;  %v1999_v61 = vld [vmem:[%s2506_s1 + $0x1d8] sm:$0xff]  ;;  %v1998_v1 = vld [vmem:[%s2506_s1 + $0x1d0] sm:$0xff] }
  0x20   : > { %681 = vmatpush.bf16.msra.mxu3 %v1967_v19  ;;  %v1975_v62 = vld [vmem:[%s2506_s1 + $0x118] sm:$0xff]  ;;  %v1553_v2 = vld [vmem:[%s2205_s25 + $0x20] sm:$0xf]  ;;  %v1935_v3 = vld [vmem:[%s2205_s25 + $0x24] sm:$0xf0] }
  0x21   : > { %423 = vmatpush.bf16.msra.mxu0 %v1942_v20  ;;  %v1983_v63 = vld [vmem:[%s2506_s1 + $0x158] sm:$0xff]  ;;  %v1934_v4 = vld [vmem:[%s2205_s25 + $0x24] sm:$0xf]  ;;  %v1555_v5 = vld [vmem:[%s2205_s25 + $0x28] sm:$0xf0]  ;;  %v2319_v6 = vor.u32 %v1935_v3, %v1553_v2 }
  0x22   : > { %459 = vmatpush.bf16.msra.mxu1 %v1950_v21  ;;  %v2321_v7 = vor.u32 %v1934_v4, %v1555_v5  ;;  %v1974_v8 = vld [vmem:[%s2506_s1 + $0x110] sm:$0xff]  ;;  %v1989_v10 = vld [vmem:[%s2506_s1 + $0x188] sm:$0xff]  ;;  %v1937_v15 = vld [vmem:[%s2205_s25 + $0x34] sm:$0xf0] }
  0x23   : > { %646 = vmatpush.bf16.msra.mxu2 %v1958_v22  ;;  %v1982_v9 = vld [vmem:[%s2506_s1 + $0x150] sm:$0xff]  ;;  %v1997_v11 = vld [vmem:[%s2506_s1 + $0x1c8] sm:$0xff]  ;;  %v1563_v17 = vld [vmem:[%s2205_s25 + $0x38] sm:$0xf0] }
  0x24   : > { %682 = vmatpush.bf16.msra.mxu3 %v1966_v23  ;;  %v1973_v12 = vld [vmem:[%s2506_s1 + $0x108] sm:$0xff]  ;;  %v1561_v14 = vld [vmem:[%s2205_s25 + $0x30] sm:$0xf]  ;;  %v1936_v16 = vld [vmem:[%s2205_s25 + $0x34] sm:$0xf] }
  0x25   : > { %424 = vmatpush.bf16.msra.mxu0 %v1941_v24  ;;  %v1981_v13 = vld [vmem:[%s2506_s1 + $0x148] sm:$0xff]  ;;  %v2349_v18 = vor.u32 %v1937_v15, %v1561_v14  ;;  %v2351_v19 = vor.u32 %v1936_v16, %v1563_v17  ;;  %v1988_v20 = vld [vmem:[%s2506_s1 + $0x180] sm:$0xff]  ;;  %v232_v30 = vld [vmem:[%s2205_s25 + $0x50] sm:$0x11] }
  0x26   : > { %460 = vmatpush.bf16.msra.mxu1 %v1949_v25  ;;  %v1996_v21 = vld [vmem:[%s2506_s1 + $0x1c0] sm:$0xff]  ;;  %v1939_v25 = vld [vmem:[%s2205_s25 + $0x44] sm:$0xf0]  ;;  %v296_v31 = vunpack.c.l.b16 %v232_v30  ;;  %v297_v32 = vunpack.c.h.b16 %v232_v30 }
  0x27   : > { %647 = vmatpush.bf16.msra.mxu2 %v1957_v26  ;;  %v1972_v22 = vld [vmem:[%s2506_s1 + $0x100] sm:$0xff] }
  0x28   : > { %683 = vmatpush.bf16.msra.mxu3 %v1965_v27  ;;  %v1980_v23 = vld [vmem:[%s2506_s1 + $0x140] sm:$0xff]  ;;  %v1571_v27 = vld [vmem:[%s2205_s25 + $0x48] sm:$0xf0]  ;;  %v2382_v33 = vpack.c.b16 %v296_v31, %v296_v31 }
  0x29   : > { %425 = vmatpush.bf16.msra.mxu0 %v1940_v28  ;;  %v1569_v24 = vld [vmem:[%s2205_s25 + $0x40] sm:$0xf]  ;;  %v1938_v26 = vld [vmem:[%s2205_s25 + $0x44] sm:$0xf] }
  0x2a   : > { %461 = vmatpush.bf16.msra.mxu1 %v1948_v29  ;;  %v2373_v28 = vor.u32 %v1939_v25, %v1569_v24  ;;  %v2375_v29 = vor.u32 %v1938_v26, %v1571_v27 }
  0x2b   : > { %648 = vmatpush.bf16.msra.mxu2 %v1956_v34  ;;  %v2384_v34 = vpack.c.b16 %v297_v32, %v297_v32 }
  0x2c   : > { %684 = vmatpush.bf16.msra.mxu3 %v1964_v35  ;;  %426 = vmatmul.bf16.vlgmr.msra.gmra.mxu0 %v2235_v38 }
  0x2d   : > { %462 = vmatmul.bf16.vlgmr.msra.gmra.mxu1 %v2237_v39  ;;  %909 = vmatpush.bf16.msrb.mxu0 %v1979_v40 }
  0x2e   : > { %649 = vmatmul.bf16.vlgmr.msra.gmra.mxu2 %v2235_v38  ;;  %945 = vmatpush.bf16.msrb.mxu1 %v1987_v41 }
  0x2f   : > { %1170 = vmatpush.bf16.msrb.mxu2 %v1995_v36  ;;  %685 = vmatmul.bf16.vlgmr.msra.gmra.mxu3 %v2237_v39 }
  0x30   : > { %1207 = vmatpush.bf16.msrb.mxu3 %v2003_v37 }
  0x31   : > { %910 = vmatpush.bf16.msrb.mxu0 %v1978_v44 }
  0x32   : > { %946 = vmatpush.bf16.msrb.mxu1 %v1986_v45 }
  0x33   : > { %1171 = vmatpush.bf16.msrb.mxu2 %v1994_v42 }
  0x34   : > { %1208 = vmatpush.bf16.msrb.mxu3 %v2002_v43 }
  0x35   : > { %911 = vmatpush.bf16.msrb.mxu0 %v1977_v48 }
  0x36   : > { %947 = vmatpush.bf16.msrb.mxu1 %v1985_v49 }
  0x37   : > { %1172 = vmatpush.bf16.msrb.mxu2 %v1993_v46 }
  0x38   : > { %1209 = vmatpush.bf16.msrb.mxu3 %v2001_v47 }
  0x39   : > { %912 = vmatpush.bf16.msrb.mxu0 %v1976_v56 }
  0x3a   : > { %948 = vmatpush.bf16.msrb.mxu1 %v1984_v57 }
  0x3b   : > { %1173 = vmatpush.bf16.msrb.mxu2 %v1992_v50 }
  0x3c   : > { %1210 = vmatpush.bf16.msrb.mxu3 %v2000_v51  ;;  %431 = vmatmul.bf16.gmra.mxu0 %v2289_v58 }
  0x3d   : > { %467 = vmatmul.bf16.gmra.mxu1 %v2291_v59  ;;  %913 = vmatpush.bf16.msrb.mxu0 %v1975_v62 }
  0x3e   : > { %654 = vmatmul.bf16.gmra.mxu2 %v2289_v58  ;;  %949 = vmatpush.bf16.msrb.mxu1 %v1983_v63 }
  0x3f   : > { %690 = vmatmul.bf16.gmra.mxu3 %v2291_v59  ;;  %1174 = vmatpush.bf16.msrb.mxu2 %v1991_v60 }
  0x40   : > { %1211 = vmatpush.bf16.msrb.mxu3 %v1999_v61 }
  0x41   : > { %914 = vmatpush.bf16.msrb.mxu0 %v1974_v8 }
  0x42   : > { %950 = vmatpush.bf16.msrb.mxu1 %v1982_v9 }
  0x43   : > { %1175 = vmatpush.bf16.msrb.mxu2 %v1990_v0 }
  0x44   : > { %1212 = vmatpush.bf16.msrb.mxu3 %v1998_v1 }
  0x45   : > { %915 = vmatpush.bf16.msrb.mxu0 %v1973_v12 }
  0x46   : > { %951 = vmatpush.bf16.msrb.mxu1 %v1981_v13 }
  0x47   : > { %1176 = vmatpush.bf16.msrb.mxu2 %v1989_v10 }
  0x48   : > { %1213 = vmatpush.bf16.msrb.mxu3 %v1997_v11 }
  0x49   : > { %916 = vmatpush.bf16.msrb.mxu0 %v1972_v22 }
  0x4a   : > { %952 = vmatpush.bf16.msrb.mxu1 %v1980_v23 }
  0x4b   : > { %1177 = vmatpush.bf16.msrb.mxu2 %v1988_v20 }
  0x4c   : > { %436 = vmatmul.bf16.gmra.mxu0 %v2319_v6  ;;  %1214 = vmatpush.bf16.msrb.mxu3 %v1996_v21 }
  0x4d   : > { %472 = vmatmul.bf16.gmra.mxu1 %v2321_v7 }
  0x4e   : > { %659 = vmatmul.bf16.gmra.mxu2 %v2319_v6 }
  0x4f   : > { %695 = vmatmul.bf16.gmra.mxu3 %v2321_v7 }
  0x5c   : > { %441 = vmatmul.bf16.gmra.mxu0 %v2349_v18 }
  0x5d   : > { %477 = vmatmul.bf16.gmra.mxu1 %v2351_v19 }
  0x5e   : > { %664 = vmatmul.bf16.gmra.mxu2 %v2349_v18 }
  0x5f   : > { %700 = vmatmul.bf16.gmra.mxu3 %v2351_v19 }
  0x6c   : > { %446 = vmatmul.bf16.gmra.mxu0 %v2373_v28 }
  0x6d   : > { %482 = vmatmul.bf16.gmra.mxu1 %v2375_v29 }
  0x6e   : > { %669 = vmatmul.bf16.gmra.mxu2 %v2373_v28 }
  0x6f   : > { %705 = vmatmul.bf16.gmra.mxu3 %v2375_v29 }
  0x7c   : > { %450 = vmatmul.bf16.gmra.mxu0 %v2382_v33 }
  0x7d   : > { %486 = vmatmul.bf16.gmra.mxu1 %v2384_v34 }
  0x7e   : > { %673 = vmatmul.bf16.gmra.mxu2 %v2382_v33 }
  0x7f   : > { %709 = vmatmul.bf16.gmra.mxu3 %v2384_v34 }
  0x8c   : > { %917 = vmatmul.bf16.vlgmr.msrb.gmra.mxu0 %v2235_v38 }
  0x8d   : > { %953 = vmatmul.bf16.vlgmr.msrb.gmra.mxu1 %v2237_v39 }
  0x8e   : > { %1178 = vmatmul.bf16.vlgmr.msrb.gmra.mxu2 %v2235_v38 }
  0x8f   : > { %1215 = vmatmul.bf16.vlgmr.msrb.gmra.mxu3 %v2237_v39 }
  0x9c   : > { %921 = vmatmul.bf16.gmra.mxu0 %v2289_v58 }
  0x9d   : > { %957 = vmatmul.bf16.gmra.mxu1 %v2291_v59 }
  0x9e   : > { %1182 = vmatmul.bf16.gmra.mxu2 %v2289_v58 }
  0x9f   : > { %1219 = vmatmul.bf16.gmra.mxu3 %v2291_v59 }
  0xa9   : > { %v427_v35 = vpop.f32.mrf.mxu0 }
  0xaa   : > { %v463_v36 = vpop.f32.mrf.mxu1 }
  0xab   : > { %v464_v37 = vadd.f32 %v463_v36, %v427_v35 }
  0xac   : > { %926 = vmatmul.bf16.gmra.mxu0 %v2319_v6 }
  0xad   : > { %962 = vmatmul.bf16.gmra.mxu1 %v2321_v7 }
  0xae   : > { %1187 = vmatmul.bf16.gmra.mxu2 %v2319_v6 }
  0xaf   : > { %1224 = vmatmul.bf16.gmra.mxu3 %v2321_v7 }
  0xb1   : > { %v650_v38 = vpop.f32.mrf.mxu2  ;;  %v429_v41 = vpop.f32.mrf.mxu0 }
  0xb2   : > { %v686_v39 = vpop.f32.mrf.mxu3  ;;  %v465_v42 = vpop.f32.mrf.mxu1 }
  0xb3   : > { %v687_v40 = vadd.f32 %v686_v39, %v650_v38  ;;  %v466_v43 = vadd.f32 %v465_v42, %v429_v41 }
  0xb5   : > { %492 = vst [vmem:[#allocation2 + $0x7] sm:$0xfe] %v466_v43  ;;  %v717_v50 = vrot.slane %v687_v40, 1 }
  0xb9   : > { %v652_v44 = vpop.f32.mrf.mxu2  ;;  %v432_v47 = vpop.f32.mrf.mxu0 }
  0xba   : > { %v688_v45 = vpop.f32.mrf.mxu3  ;;  %v468_v48 = vpop.f32.mrf.mxu1 }
  0xbb   : > { %v689_v46 = vadd.f32 %v688_v45, %v652_v44  ;;  %v469_v49 = vadd.f32 %v468_v48, %v432_v47 }
  0xbc   : > { %931 = vmatmul.bf16.gmra.mxu0 %v2349_v18 }
  0xbd   : > { %v718_v51 = vrot.slane %v689_v46, 1  ;;  %493 = vst [vmem:[#allocation2 + $0xf] sm:$0x1] %v469_v49  ;;  %967 = vmatmul.bf16.gmra.mxu1 %v2351_v19  ;;  %v726_v60 = vrot.slane %v689_v46, 2 }
  0xbe   : > { %495 = vst [vmem:[#allocation2 + $0xe] sm:$0xfc] %v469_v49  ;;  %1192 = vmatmul.bf16.gmra.mxu2 %v2349_v18 }
  0xbf   : > { %v719_v52 = vsel %vm716_vm0, %v717_v50, %v718_v51  ;;  %1229 = vmatmul.bf16.gmra.mxu3 %v2351_v19 }
  0xc0   : > { %v2407_v53 = vadd.f32 %v719_v52, %v464_v37 }
  0xc1   : > { %v655_v54 = vpop.f32.mrf.mxu2  ;;  %v434_v57 = vpop.f32.mrf.mxu0 }
  0xc2   : > { %v691_v55 = vpop.f32.mrf.mxu3  ;;  %v470_v58 = vpop.f32.mrf.mxu1 }
  0xc3   : > { %v692_v56 = vadd.f32 %v691_v55, %v655_v54  ;;  %v471_v59 = vadd.f32 %v470_v58, %v434_v57 }
  0xc5   : > { %v727_v61 = vrot.slane %v692_v56, 2  ;;  %496 = vst [vmem:[#allocation2 + $0x16] sm:$0x3] %v471_v59  ;;  %v735_v5 = vrot.slane %v692_v56, 3 }
  0xc6   : > { %498 = vst [vmem:[#allocation2 + $0x15] sm:$0xf8] %v471_v59 }
  0xc7   : > { %v2410_v62 = vsel %vm725_vm1, %v726_v60, %v727_v61 }
  0xc9   : > { %v657_v63 = vpop.f32.mrf.mxu2  ;;  %v437_v2 = vpop.f32.mrf.mxu0 }
  0xca   : > { %v693_v0 = vpop.f32.mrf.mxu3  ;;  %v473_v3 = vpop.f32.mrf.mxu1 }
  0xcb   : > { %v694_v1 = vadd.f32 %v693_v0, %v657_v63  ;;  %v474_v4 = vadd.f32 %v473_v3, %v437_v2 }
  0xcc   : > { %936 = vmatmul.bf16.gmra.mxu0 %v2373_v28 }
  0xcd   : > { %v736_v6 = vrot.slane %v694_v1, 3  ;;  %499 = vst [vmem:[#allocation2 + $0x1d] sm:$0x7] %v474_v4  ;;  %972 = vmatmul.bf16.gmra.mxu1 %v2375_v29  ;;  %v744_v14 = vrot.slane %v694_v1, 4 }
  0xce   : > { %501 = vst [vmem:[#allocation2 + $0x1c] sm:$0xf0] %v474_v4  ;;  %1197 = vmatmul.bf16.gmra.mxu2 %v2373_v28 }
  0xcf   : > { %v2415_v7 = vsel %vm734_vm2, %v735_v5, %v736_v6  ;;  %1234 = vmatmul.bf16.gmra.mxu3 %v2375_v29 }
  0xd1   : > { %v660_v8 = vpop.f32.mrf.mxu2  ;;  %v439_v11 = vpop.f32.mrf.mxu0 }
  0xd2   : > { %v696_v9 = vpop.f32.mrf.mxu3  ;;  %v475_v12 = vpop.f32.mrf.mxu1 }
  0xd3   : > { %v697_v10 = vadd.f32 %v696_v9, %v660_v8  ;;  %v476_v13 = vadd.f32 %v475_v12, %v439_v11 }
  0xd5   : > { %v745_v15 = vrot.slane %v697_v10, 4  ;;  %502 = vst [vmem:[#allocation2 + $0x24] sm:$0xf] %v476_v13  ;;  %v753_v23 = vrot.slane %v697_v10, 5 }
  0xd6   : > { %504 = vst [vmem:[#allocation2 + $0x23] sm:$0xe0] %v476_v13 }
  0xd7   : > { %v2420_v16 = vsel %vm743_vm3, %v744_v14, %v745_v15 }
  0xd9   : > { %v662_v17 = vpop.f32.mrf.mxu2  ;;  %v442_v20 = vpop.f32.mrf.mxu0 }
  0xda   : > { %v698_v18 = vpop.f32.mrf.mxu3  ;;  %v478_v21 = vpop.f32.mrf.mxu1 }
  0xdb   : > { %v699_v19 = vadd.f32 %v698_v18, %v662_v17  ;;  %v479_v22 = vadd.f32 %v478_v21, %v442_v20 }
  0xdc   : > { %941 = vmatmul.bf16.gmra.mxu0 %v2382_v33 }
  0xdd   : > { %v754_v24 = vrot.slane %v699_v19, 5  ;;  %505 = vst [vmem:[#allocation2 + $0x2b] sm:$0x1f] %v479_v22  ;;  %977 = vmatmul.bf16.gmra.mxu1 %v2384_v34  ;;  %v762_v32 = vrot.slane %v699_v19, 6 }
  0xde   : > { %507 = vst [vmem:[#allocation2 + $0x2a] sm:$0xc0] %v479_v22  ;;  %1202 = vmatmul.bf16.gmra.mxu2 %v2382_v33 }
  0xdf   : > { %v2425_v25 = vsel %vm752_vm4, %v753_v23, %v754_v24  ;;  %1239 = vmatmul.bf16.gmra.mxu3 %v2384_v34 }
  0xe1   : > { %v665_v26 = vpop.f32.mrf.mxu2  ;;  %v444_v29 = vpop.f32.mrf.mxu0 }
  0xe2   : > { %v701_v27 = vpop.f32.mrf.mxu3  ;;  %v480_v30 = vpop.f32.mrf.mxu1 }
  0xe3   : > { %v702_v28 = vadd.f32 %v701_v27, %v665_v26  ;;  %v481_v31 = vadd.f32 %v480_v30, %v444_v29  ;;  %v723_v29 = vld [vmem:[#allocation2 + $0x8] sm:$0xff] }
  0xe5   : > { %v763_v35 = vrot.slane %v702_v28, 6  ;;  %508 = vst [vmem:[#allocation2 + $0x32] sm:$0x3f] %v481_v31  ;;  %v771_v41 = vrot.slane %v702_v28, 7 }
  0xe6   : > { %510 = vst [vmem:[#allocation2 + $0x31] sm:$0x80] %v481_v31 }
  0xe7   : > { %v2430_v36 = vsel %vm761_vm5, %v762_v32, %v763_v35 }
  0xe9   : > { %v667_v37 = vpop.f32.mrf.mxu2  ;;  %v447_v33 = vpop.f32.mrf.mxu0 }
  0xea   : > { %v703_v38 = vpop.f32.mrf.mxu3  ;;  %v483_v40 = vpop.f32.mrf.mxu1 }
  0xeb   : > { %v704_v39 = vadd.f32 %v703_v38, %v667_v37  ;;  %v484_v34 = vadd.f32 %v483_v40, %v447_v33 }
  0xed   : > { %v772_v42 = vrot.slane %v704_v39, 7  ;;  %511 = vst [vmem:[#allocation2 + $0x39] sm:$0x7f] %v484_v34  ;;  %v730_v39 = vadd.f32 %v2410_v62, %v723_v29 }
  0xef   : > { %v2433_v43 = vsel %vm770_vm6, %v771_v41, %v772_v42 }
  0xf1   : > { %v670_v44 = vpop.f32.mrf.mxu2  ;;  %v449_v47 = vpop.f32.mrf.mxu0 }
  0xf2   : > { %v706_v45 = vpop.f32.mrf.mxu3  ;;  %v485_v48 = vpop.f32.mrf.mxu1 }
  0xf3   : > { %v2435_v46 = vadd.f32 %v706_v45, %v670_v44  ;;  %v732_v48 = vld [vmem:[#allocation2 + $0x10] sm:$0xff] }
  0xf9   : > { %v672_v49 = vpop.f32.mrf.mxu2  ;;  %v451_v51 = vpop.f32.mrf.mxu0 }
  0xfa   : > { %v708_v50 = vpop.f32.mrf.mxu3  ;;  %v487_v52 = vpop.f32.mrf.mxu1 }
 0x101   : > { %v674_v54 = vpop.f32.mrf.mxu2  ;;  %v452_v56 = vpop.f32.mrf.mxu0 }
 0x102   : > { %v710_v55 = vpop.f32.mrf.mxu3  ;;  %v488_v57 = vpop.f32.mrf.mxu1 }
 0x103   : > { %v739_v57 = vadd.f32 %v2415_v7, %v732_v48 }
 0x109   : > { %v675_v58 = vpop.f32.mrf.mxu2  ;;  %v918_v60 = vpop.f32.mrf.mxu0 }
 0x10a   : > { %v711_v59 = vpop.f32.mrf.mxu3  ;;  %v954_v61 = vpop.f32.mrf.mxu1 }
 0x111   : > { %v1179_v63 = vpop.f32.mrf.mxu2  ;;  %v919_v1 = vpop.f32.mrf.mxu0 }
 0x112   : > { %v1216_v0 = vpop.f32.mrf.mxu3  ;;  %v955_v2 = vpop.f32.mrf.mxu1 }
 0x113   : > { %v956_v5 = vadd.f32 %v955_v2, %v919_v1 }
 0x115   : > { %v984_v10 = vrot.slane %v956_v5, 1 }
 0x119   : > { %v1180_v3 = vpop.f32.mrf.mxu2  ;;  %v922_v6 = vpop.f32.mrf.mxu0 }
 0x11a   : > { %v1217_v4 = vpop.f32.mrf.mxu3  ;;  %v958_v8 = vpop.f32.mrf.mxu1 }
 0x11b   : > { %v959_v9 = vadd.f32 %v958_v8, %v922_v6  ;;  %v1218_v12 = vadd.f32 %v1217_v4, %v1180_v3  ;;  %v741_v4 = vld [vmem:[#allocation2 + $0x18] sm:$0xff] }
 0x11d   : > { %v985_v11 = vrot.slane %v959_v9, 1  ;;  %v1247_v21 = vrot.slane %v1218_v12, 2  ;;  %v992_v24 = vrot.slane %v959_v9, 2  ;;  %v748_v12 = vadd.f32 %v2420_v16, %v741_v4 }
 0x11f   : > { %v986_v15 = vsel %vm716_vm0, %v984_v10, %v985_v11 }
 0x120   : > { %v988_v23 = vadd.f32 %v986_v15, %v2407_v53  ;;  %v2445_v53 = vld [vmem:[%s2507_s2] ss:$0 sm:$0xff] }
 0x121   : > { %v1183_v13 = vpop.f32.mrf.mxu2  ;;  %v924_v18 = vpop.f32.mrf.mxu0 }
 0x122   : > { %v1220_v14 = vpop.f32.mrf.mxu3  ;;  %v960_v19 = vpop.f32.mrf.mxu1 }
 0x123   : > { %v1221_v17 = vadd.f32 %v1220_v14, %v1183_v13  ;;  %v961_v20 = vadd.f32 %v960_v19, %v924_v18 }
 0x125   : > { %v1248_v22 = vrot.slane %v1221_v17, 2  ;;  %v993_v27 = vrot.slane %v961_v20, 2  ;;  %v1255_v40 = vrot.slane %v1221_v17, 3  ;;  %v1000_v42 = vrot.slane %v961_v20, 3 }
 0x127   : > { %v1249_v26 = vsel %vm725_vm1, %v1247_v21, %v1248_v22  ;;  %v994_v32 = vsel %vm725_vm1, %v992_v24, %v993_v27 }
 0x128   : > { %v1251_v28 = vadd.f32 %v1249_v26, %v988_v23  ;;  %v996_v41 = vadd.f32 %v994_v32, %v730_v39  ;;  %v750_v23 = vld [vmem:[#allocation2 + $0x20] sm:$0xff] }
 0x129   : > { %v1185_v30 = vpop.f32.mrf.mxu2  ;;  %v927_v37 = vpop.f32.mrf.mxu0 }
 0x12a   : > { %v1222_v31 = vpop.f32.mrf.mxu3  ;;  %v963_v38 = vpop.f32.mrf.mxu1  ;;  %v2449_v49 = vadd.f32 %v2445_v53, %v1251_v28 }
 0x12b   : > { %v1223_v35 = vadd.f32 %v1222_v31, %v1185_v30  ;;  %v964_v33 = vadd.f32 %v963_v38, %v927_v37  ;;  %v757_v31 = vadd.f32 %v2425_v25, %v750_v23 }
 0x12d   : > { %v1256_v34 = vrot.slane %v1223_v35, 3  ;;  %v1001_v45 = vrot.slane %v964_v33, 3  ;;  %v1263_v60 = vrot.slane %v1223_v35, 4  ;;  %v1008_v0 = vrot.slane %v964_v33, 4 }
 0x12f   : > { %v1257_v44 = vsel %vm734_vm2, %v1255_v40, %v1256_v34  ;;  %v1002_v52 = vsel %vm734_vm2, %v1000_v42, %v1001_v45  ;;  %v759_v42 = vld [vmem:[#allocation2 + $0x28] sm:$0xff] }
 0x130   : > { %v1259_v47 = vadd.f32 %v1257_v44, %v996_v41  ;;  %v1004_v63 = vadd.f32 %v1002_v52, %v739_v57  ;;  %v766_v52 = vadd.f32 %v2430_v36, %v759_v42 }
 0x131   : > { %v1188_v50 = vpop.f32.mrf.mxu2  ;;  %v929_v55 = vpop.f32.mrf.mxu0 }
 0x132   : > { %1260 = vst [vmem:[#allocation2 + $0x8] sm:$0xff] %v1259_v47  ;;  %v2452_v62 = vadd.f32 %v2445_v53, %v1259_v47  ;;  %v1225_v51 = vpop.f32.mrf.mxu3  ;;  %v965_v56 = vpop.f32.mrf.mxu1 }
 0x133   : > { %v1226_v54 = vadd.f32 %v1225_v51, %v1188_v50  ;;  %v966_v59 = vadd.f32 %v965_v56, %v929_v55 }
 0x134   : > { %v1325_v58 = vadd.f32 %v2452_v62, %v2449_v49 }
 0x135   : > { %v1264_v61 = vrot.slane %v1226_v54, 4  ;;  %v1009_v2 = vrot.slane %v966_v59, 4  ;;  %v1271_v15 = vrot.slane %v1226_v54, 5  ;;  %v1016_v19 = vrot.slane %v966_v59, 5  ;;  %v768_v54 = vld [vmem:[#allocation2 + $0x30] sm:$0xff] }
 0x137   : > { %v1265_v1 = vsel %vm743_vm3, %v1263_v60, %v1264_v61  ;;  %v1010_v7 = vsel %vm743_vm3, %v1008_v0, %v1009_v2 }
 0x138   : > { %v1267_v3 = vadd.f32 %v1265_v1, %v1004_v63  ;;  %v1012_v18 = vadd.f32 %v1010_v7, %v748_v12  ;;  %v775_v63 = vadd.f32 %v2433_v43, %v768_v54 }
 0x139   : > { %v1190_v6 = vpop.f32.mrf.mxu2  ;;  %v932_v10 = vpop.f32.mrf.mxu0 }
 0x13a   : > { %1268 = vst [vmem:[#allocation2 + $0x10] sm:$0xff] %v1267_v3  ;;  %v2460_v5 = vadd.f32 %v2445_v53, %v1267_v3  ;;  %v1227_v8 = vpop.f32.mrf.mxu3  ;;  %v968_v11 = vpop.f32.mrf.mxu1 }
 0x13b   : > { %v1228_v9 = vadd.f32 %v1227_v8, %v1190_v6  ;;  %v969_v14 = vadd.f32 %v968_v11, %v932_v10 }
 0x13c   : > { %v1326_v13 = vadd.f32 %v1325_v58, %v2460_v5 }
 0x13d   : > { %v1272_v17 = vrot.slane %v1228_v9, 5  ;;  %v1017_v21 = vrot.slane %v969_v14, 5  ;;  %v1279_v37 = vrot.slane %v1228_v9, 6  ;;  %v1024_v33 = vrot.slane %v969_v14, 6 }
 0x13f   : > { %v1273_v20 = vsel %vm752_vm4, %v1271_v15, %v1272_v17  ;;  %v1018_v16 = vsel %vm752_vm4, %v1016_v19, %v1017_v21 }
 0x140   : > { %v1275_v22 = vadd.f32 %v1273_v20, %v1012_v18  ;;  %v1020_v39 = vadd.f32 %v1018_v16, %v757_v31  ;;  %v777_v18 = vld [vmem:[#allocation2 + $0x38] sm:$0xff] }
 0x141   : > { %v1193_v26 = vpop.f32.mrf.mxu2  ;;  %v934_v29 = vpop.f32.mrf.mxu0  ;;  %v778_v16 = vadd.f32 %v777_v18, %v2435_v46 }
 0x142   : > { %1276 = vst [vmem:[#allocation2 + $0x18] sm:$0xff] %v1275_v22  ;;  %v2467_v24 = vadd.f32 %v2445_v53, %v1275_v22  ;;  %v1230_v27 = vpop.f32.mrf.mxu3  ;;  %v970_v30 = vpop.f32.mrf.mxu1 }
 0x143   : > { %v1231_v28 = vadd.f32 %v1230_v27, %v1193_v26  ;;  %v971_v35 = vadd.f32 %v970_v30, %v934_v29 }
 0x144   : > { %v1327_v32 = vadd.f32 %v1326_v13, %v2467_v24 }
 0x145   : > { %v1280_v38 = vrot.slane %v1231_v28, 6  ;;  %v1025_v34 = vrot.slane %v971_v35, 6  ;;  %v1032_v55 = vrot.slane %v971_v35, 7  ;;  %v1287_v58 = vrot.slane %v1231_v28, 7 }
 0x147   : > { %v1281_v40 = vsel %vm761_vm5, %v1279_v37, %v1280_v38  ;;  %v1026_v25 = vsel %vm761_vm5, %v1024_v33, %v1025_v34 }
 0x148   : > { %v1283_v41 = vadd.f32 %v1281_v40, %v1020_v39  ;;  %v1028_v60 = vadd.f32 %v1026_v25, %v766_v52 }
 0x149   : > { %v1195_v45 = vpop.f32.mrf.mxu2  ;;  %v937_v50 = vpop.f32.mrf.mxu0 }
 0x14a   : > { %1284 = vst [vmem:[#allocation2 + $0x20] sm:$0xff] %v1283_v41  ;;  %v2474_v44 = vadd.f32 %v2445_v53, %v1283_v41  ;;  %v1232_v47 = vpop.f32.mrf.mxu3  ;;  %v973_v51 = vpop.f32.mrf.mxu1 }
 0x14b   : > { %v1233_v48 = vadd.f32 %v1232_v47, %v1195_v45  ;;  %v974_v56 = vadd.f32 %v973_v51, %v937_v50 }
 0x14c   : > { %v1328_v57 = vadd.f32 %v1327_v32, %v2474_v44 }
 0x14d   : > { %v1288_v59 = vrot.slane %v1233_v48, 7  ;;  %v1033_v61 = vrot.slane %v974_v56, 7 }
 0x14f   : > { %v1289_v0 = vsel %vm770_vm6, %v1287_v58, %v1288_v59  ;;  %v1034_v2 = vsel %vm770_vm6, %v1032_v55, %v1033_v61 }
 0x150   : > { %v1291_v1 = vadd.f32 %v1289_v0, %v1028_v60  ;;  %v1036_v3 = vadd.f32 %v1034_v2, %v775_v63 }
 0x151   : > { %v1198_v4 = vpop.f32.mrf.mxu2  ;;  %v939_v7 = vpop.f32.mrf.mxu0 }
 0x152   : > { %1292 = vst [vmem:[#allocation2 + $0x28] sm:$0xff] %v1291_v1  ;;  %v1322_v36 = vadd.f32 %v2445_v53, %v1291_v1  ;;  %v1235_v6 = vpop.f32.mrf.mxu3  ;;  %v975_v9 = vpop.f32.mrf.mxu1 }
 0x153   : > { %v1236_v8 = vadd.f32 %v1235_v6, %v1198_v4  ;;  %v976_v20 = vadd.f32 %v975_v9, %v939_v7 }
 0x154   : > { %v1329_v10 = vadd.f32 %v1328_v57, %v1322_v36 }
 0x155   : > { %v1294_v11 = vadd.f32 %v1236_v8, %v1036_v3  ;;  %v1039_v30 = vadd.f32 %v976_v20, %v778_v16 }
 0x157   : > { %1295 = vst [vmem:[#allocation2 + $0x30] sm:$0xff] %v1294_v11  ;;  %v1323_v12 = vadd.f32 %v2445_v53, %v1294_v11 }
 0x159   : > { %v1330_v43 = vadd.f32 %v1329_v10, %v1323_v12  ;;  %v1200_v13 = vpop.f32.mrf.mxu2  ;;  %v942_v15 = vpop.f32.mrf.mxu0 }
 0x15a   : > { %v1237_v14 = vpop.f32.mrf.mxu3  ;;  %v978_v17 = vpop.f32.mrf.mxu1 }
 0x15b   : > { %v1238_v19 = vadd.f32 %v1237_v14, %v1200_v13 }
 0x15d   : > { %v1299_v28 = vrot.slane %v1238_v19, 1 }
 0x161   : > { %v1203_v21 = vpop.f32.mrf.mxu2  ;;  %v943_v26 = vpop.f32.mrf.mxu0 }
 0x162   : > { %v1240_v22 = vpop.f32.mrf.mxu3  ;;  %v979_v27 = vpop.f32.mrf.mxu1 }
 0x163   : > { %v1241_v23 = vadd.f32 %v1240_v22, %v1203_v21 }
 0x165   : > { %v1300_v29 = vrot.slane %v1241_v23, 1 }
 0x167   : > { %v1301_v31 = vsel %vm716_vm0, %v1299_v28, %v1300_v29 }
 0x168   : > { %v1303_v32 = vadd.f32 %v1301_v31, %v1039_v30 }
 0x169   : > { %v1205_v37 = vpop.f32.mrf.mxu2 }
 0x16a   : > { %1304 = vst [vmem:[#allocation2 + $0x38] sm:$0xff] %v1303_v32  ;;  %v1324_v35 = vadd.f32 %v2445_v53, %v1303_v32  ;;  %v1242_v38 = vpop.f32.mrf.mxu3 }
 0x16c   : > { %v1331_v39 = vadd.f32 %v1330_v43, %v1324_v35 }
 0x16e   : > { %v1332_v33 = vrot.slane %v1331_v39, 4 }
 0x170   : > { %v1333_v40 = vadd.f32 %v1332_v33, %v1331_v39 }
 0x172   : > { %v1334_v34 = vrot.slane %v1333_v40, 2 }
 0x174   : > { %v1335_v41 = vadd.f32 %v1334_v34, %v1333_v40 }
 0x176   : > { %v1336_v42 = vrot.slane %v1335_v41, 1 }
 0x178   : > { %v1337_v45 = vadd.f32 %v1336_v42, %v1335_v41 }
 0x17a   : > { %v1338_v47 = vmul.f32 0.015625, %v1337_v45 }
 0x17c   : > { %v1339_v46 = vsub.f32 %v2449_v49, %v1338_v47  ;;  %v1340_v25 = vsub.f32 %v2452_v62, %v1338_v47  ;;  %v1341_v48 = vsub.f32 %v2460_v5, %v1338_v47  ;;  %v1342_v50 = vsub.f32 %v2467_v24, %v1338_v47 }
 0x17d   : > { %v1343_v53 = vsub.f32 %v2474_v44, %v1338_v47  ;;  %v1344_v51 = vsub.f32 %v1322_v36, %v1338_v47  ;;  %v1345_v52 = vsub.f32 %v1323_v12, %v1338_v47  ;;  %v1346_v54 = vsub.f32 %v1324_v35, %v1338_v47 }
 0x17e   : > { %v1347_v55 = vmul.f32 %v1339_v46, %v1339_v46  ;;  %v1348_v56 = vmul.f32 %v1340_v25, %v1340_v25  ;;  %v1349_v57 = vmul.f32 %v1341_v48, %v1341_v48  ;;  %v1350_v59 = vmul.f32 %v1342_v50, %v1342_v50 }
 0x17f   : > { %v1351_v61 = vmul.f32 %v1343_v53, %v1343_v53  ;;  %v1352_v49 = vmul.f32 %v1344_v51, %v1344_v51  ;;  %v1353_v62 = vmul.f32 %v1345_v52, %v1345_v52  ;;  %v1354_v5 = vmul.f32 %v1346_v54, %v1346_v54 }
 0x180   : > { %v1355_v58 = vadd.f32 %v1348_v56, %v1347_v55 }
 0x182   : > { %v1356_v60 = vadd.f32 %v1355_v58, %v1349_v57 }
 0x184   : > { %v1357_v63 = vadd.f32 %v1356_v60, %v1350_v59 }
 0x186   : > { %v1358_v0 = vadd.f32 %v1357_v63, %v1351_v61 }
 0x188   : > { %v1359_v1 = vadd.f32 %v1358_v0, %v1352_v49 }
 0x18a   : > { %v1360_v2 = vadd.f32 %v1359_v1, %v1353_v62 }
 0x18c   : > { %v1361_v24 = vadd.f32 %v1360_v2, %v1354_v5 }
 0x18e   : > { %v1362_v3 = vrot.slane %v1361_v24, 4 }
 0x190   : > { %v1363_v44 = vadd.f32 %v1362_v3, %v1361_v24 }
 0x192   : > { %v1364_v36 = vrot.slane %v1363_v44, 2 }
 0x194   : > { %v1365_v4 = vadd.f32 %v1364_v36, %v1363_v44 }
 0x196   : > { %v1366_v6 = vrot.slane %v1365_v4, 1 }
 0x198   : > { %v1367_v8 = vadd.f32 %v1366_v6, %v1365_v4 }
 0x19a   : > { %v1368_v7 = vmul.f32 0.015625, %v1367_v8 }
 0x19c   : > { %v1369_v9 = vadd.f32 1e-05, %v1368_v7 }
 0x19e   : > { %2053 = vrsqrt.f32 %v1369_v9  ;;  %vm1376_vm8 = vweird.f32 %v1369_v9 }
 0x1a4   : > { %v2054_v10 = vpop.eup %2053 }
 0x1a5   : > { %v1371_v11 = vmul.f32 %v2054_v10, %v1369_v9  ;;  %vm1377_vm7 = vweird.f32 %v2054_v10 }
 0x1a6   : > { %vm1378_vm9 = vmor %vm1376_vm8, %vm1377_vm7 }
 0x1a7   : > { %v1372_v12 = vmul.f32 %v2054_v10, %v1371_v11 }
 0x1a9   : > { %v1373_v43 = vmul.f32 0.5, %v1372_v12 }
 0x1ab   : > { %v1374_v13 = vsub.f32 1.5, %v1373_v43 }
 0x1ad   : > { %v1375_v14 = vmul.f32 %v2054_v10, %v1374_v13 }
 0x1af   : > { %v1379_v15 = vsel %vm1378_vm9, %v2054_v10, %v1375_v14 }
 0x1b0   : > { %v1380_v17 = vmul.f32 %v1379_v15, %v1339_v46  ;;  %v1381_v18 = vmul.f32 %v1379_v15, %v1340_v25  ;;  %v1382_v19 = vmul.f32 %v1379_v15, %v1341_v48  ;;  %v1383_v20 = vmul.f32 %v1379_v15, %v1342_v50 }
 0x1b1   : > { %v1384_v21 = vmul.f32 %v1379_v15, %v1343_v53  ;;  %v1385_v22 = vmul.f32 %v1379_v15, %v1344_v51  ;;  %v1386_v23 = vmul.f32 %v1379_v15, %v1345_v52  ;;  %v1387_v26 = vmul.f32 %v1379_v15, %v1346_v54 }
 0x1b2   : > { %v1388_v27 = vmul.f32 0.2, %v1380_v17  ;;  %v1389_v16 = vmul.f32 0.2, %v1381_v18  ;;  %v1390_v28 = vmul.f32 0.2, %v1382_v19 }
 0x1b3   : > { %v1391_v29 = vmul.f32 0.2, %v1383_v20  ;;  %v1392_v30 = vmul.f32 0.2, %v1384_v21  ;;  %v1393_v31 = vmul.f32 0.2, %v1385_v22 }
 0x1b4   : > { %v1394_v32 = vmul.f32 0.2, %v1386_v23  ;;  %v1395_v35 = vmul.f32 0.2, %v1387_v26  ;;  %v1396_v37 = vmax.f32 %v1380_v17, %v1388_v27  ;;  %v1397_v38 = vmax.f32 %v1381_v18, %v1389_v16 }
 0x1b5   : > { %v1398_v39 = vmax.f32 %v1382_v19, %v1390_v28  ;;  %v1399_v33 = vmax.f32 %v1383_v20, %v1391_v29  ;;  %v1400_v40 = vmax.f32 %v1384_v21, %v1392_v30  ;;  %v1401_v34 = vmax.f32 %v1385_v22, %v1393_v31 }
 0x1b6   : > { %v1402_v41 = vmax.f32 %v1386_v23, %v1394_v32  ;;  %v1403_v42 = vmax.f32 %v1387_v26, %v1395_v35  ;;  %v2007_v45 = vpack.c.bf16 %v1397_v38, %v1396_v37 }
 0x1b7   : > { %v2012_v47 = vpack.c.bf16 %v1399_v33, %v1398_v39  ;;  %v2017_v46 = vpack.c.bf16 %v1401_v34, %v1400_v40 }
 0x1b8   : > { %2008 = vst [vmem:[%s221_s17] sm:$0xff] %v2007_v45   ;;  %v2022_v25 = vpack.c.bf16 %v1403_v42, %v1402_v41 }
 0x1b9   : > { %2024 = vst [vmem:[%s221_s17 + $0x8] sm:$0xff] %v2012_v47  }
 0x1ba   : > { %2025 = vst [vmem:[%s221_s17 + $0x10] sm:$0xff] %v2017_v46  }
 0x1bb   : > { %2026 = vst [vmem:[%s221_s17 + $0x18] sm:$0xff] %v2022_v25  }
 0x1bc PF: > { %s13_s14 = sadd.s32 1, %s2077_s14   ;;  %s2509_s12 = smov %s2073_s13 }
 0x1bd   : > { %p10_p5 = scmp.ge.s32.totalorder %s13_s14, 4   ;;  %s2510_s13 = smov %s2512_s15 }
 0x1bf   :  { %12 = sbr.rel (!%p10_p5) target bundleno = 2 (0x2), region = 78 }

// kernel: light_coords_estimator_v2.6
= control target key start
LH: loop header
LB: loop body
LE: loop exit
PB: predicated region body
PF: predicated region fallthrough
CT: control target
= control target key end

     0   :  { %s4333_s12 = smov 0   ;;  %s4335_s13 = smov 0   ;;  %s6086_s0 = inlined_call_operand.vmem [shape: bf16[2,25,512], index: 0, kind: input, shape index: {}]   ;;  %s6087_s1 = inlined_call_operand.vmem [shape: bf16[4,512,256], index: 1, kind: input, shape index: {}]   ;;  %s6088_s2 = inlined_call_operand.vmem [shape: f32[1,256], index: 2, kind: input, shape index: {}]   ;;  %s6089_s3 = inlined_call_operand.vmem [shape: bf16[2,3,3,256], index: 3, kind: output, shape index: {}]  }
   0x1   :  { %s4337_s14 = smov 0  }
   0x2 LB: > { %s22_s15 = sadd.s32 1, %s4307_s13  ;;  %p2731_p0 = scmp.ge.s32.totalorder %s4311_s14, 1  ;;  %s4311_s14 = sphi %s4337_s14, %s13_s14   ;;  %s4307_s13 = sphi %s4335_s13, %s6097_s13   ;;  %s4303_s12 = sphi %s4333_s12, %s6096_s12  }
   0x3   : > { %p23_p1 = scmp.ge.s32.totalorder %s22_s15, 2  ;;  %p172_p2 = scmp.lt.s32.totalorder %s4311_s14, 3 }
   0x5   : > { %s6099_s15 = smov (%p23_p1, %s22_s15), 0  ;;  %p173_p3 = pnand %p2731_p0, %p172_p2 }
   0x6   : > { %p209_p4 = scmp.lt.s32.totalorder (!%p173_p3), %s4303_s12, 1 }
   0x7   : > { %176 = sbr.rel (%p173_p3) target bundleno = 459 (0x1cb), region = 32 }
   0xc   : > { %v2825_v0 = vld [vmem:[%s6087_s1 + $0x70] sm:$0xf]  ;;  %v4023_v1 = vld [vmem:[%s6087_s1 + $0x74] sm:$0xf0]  ;;  %v2817_v11 = vld [vmem:[%s6087_s1 + $0x60] sm:$0xf] }
   0xd   : > { %v2889_v2 = vld [vmem:[%s6087_s1 + $0xf0] sm:$0xf]  ;;  %v2826_v3 = vor.u32 %v4023_v1, %v2825_v0  ;;  %v4039_v4 = vld [vmem:[%s6087_s1 + $0xf4] sm:$0xf0]  ;;  %v4021_v13 = vld [vmem:[%s6087_s1 + $0x64] sm:$0xf0] }
   0xe   : > { %v2953_v5 = vld [vmem:[%s6087_s1 + $0x170] sm:$0xf]  ;;  %v4055_v6 = vld [vmem:[%s6087_s1 + $0x174] sm:$0xf0]  ;;  %v2890_v7 = vor.u32 %v4039_v4, %v2889_v2  ;;  %v2881_v14 = vld [vmem:[%s6087_s1 + $0xe0] sm:$0xf]  ;;  %v2818_v16 = vor.u32 %v4021_v13, %v2817_v11 }
   0xf   : > { %v2954_v8 = vor.u32 %v4055_v6, %v2953_v5  ;;  %v3017_v9 = vld [vmem:[%s6087_s1 + $0x1f0] sm:$0xf]  ;;  %v4071_v10 = vld [vmem:[%s6087_s1 + $0x1f4] sm:$0xf0]  ;;  %667 = vmatpush.bf16.msra.mxu0 %v2826_v3  ;;  %v4037_v15 = vld [vmem:[%s6087_s1 + $0xe4] sm:$0xf0] }
  0x10   : > { %v3018_v12 = vor.u32 %v4071_v10, %v3017_v9  ;;  %684 = vmatpush.bf16.msra.mxu1 %v2890_v7  ;;  %v2882_v17 = vor.u32 %v4037_v15, %v2881_v14  ;;  %v2945_v18 = vld [vmem:[%s6087_s1 + $0x160] sm:$0xf]  ;;  %v4053_v19 = vld [vmem:[%s6087_s1 + $0x164] sm:$0xf0]  ;;  %v2809_v23 = vld [vmem:[%s6087_s1 + $0x50] sm:$0xf] }
  0x11   : > { %701 = vmatpush.bf16.msra.mxu2 %v2954_v8  ;;  %v3009_v20 = vld [vmem:[%s6087_s1 + $0x1e0] sm:$0xf]  ;;  %v2946_v21 = vor.u32 %v4053_v19, %v2945_v18  ;;  %v4069_v22 = vld [vmem:[%s6087_s1 + $0x1e4] sm:$0xf0]  ;;  %v4019_v24 = vld [vmem:[%s6087_s1 + $0x54] sm:$0xf0] }
  0x12   : > { %718 = vmatpush.bf16.msra.mxu3 %v3018_v12  ;;  %v3010_v25 = vor.u32 %v4069_v22, %v3009_v20  ;;  %v2873_v26 = vld [vmem:[%s6087_s1 + $0xd0] sm:$0xf]  ;;  %v4035_v27 = vld [vmem:[%s6087_s1 + $0xd4] sm:$0xf0]  ;;  %v2810_v29 = vor.u32 %v4019_v24, %v2809_v23  ;;  %v2801_v35 = vld [vmem:[%s6087_s1 + $0x40] sm:$0xf] }
  0x13   : > { %v2937_v28 = vld [vmem:[%s6087_s1 + $0x150] sm:$0xf]  ;;  %668 = vmatpush.bf16.msra.mxu0 %v2818_v16  ;;  %v4051_v30 = vld [vmem:[%s6087_s1 + $0x154] sm:$0xf0]  ;;  %v2874_v33 = vor.u32 %v4035_v27, %v2873_v26  ;;  %v4017_v36 = vld [vmem:[%s6087_s1 + $0x44] sm:$0xf0] }
  0x14   : > { %v3001_v31 = vld [vmem:[%s6087_s1 + $0x1d0] sm:$0xf]  ;;  %v4067_v32 = vld [vmem:[%s6087_s1 + $0x1d4] sm:$0xf0]  ;;  %685 = vmatpush.bf16.msra.mxu1 %v2882_v17  ;;  %v2938_v34 = vor.u32 %v4051_v30, %v2937_v28  ;;  %v2865_v37 = vld [vmem:[%s6087_s1 + $0xc0] sm:$0xf]  ;;  %v2802_v44 = vor.u32 %v4017_v36, %v2801_v35 }
  0x15   : > { %702 = vmatpush.bf16.msra.mxu2 %v2946_v21  ;;  %v3002_v38 = vor.u32 %v4067_v32, %v3001_v31  ;;  %v4033_v39 = vld [vmem:[%s6087_s1 + $0xc4] sm:$0xf0]  ;;  %v2929_v40 = vld [vmem:[%s6087_s1 + $0x140] sm:$0xf]  ;;  %v2793_v47 = vld [vmem:[%s6087_s1 + $0x30] sm:$0xf] }
  0x16   : > { %719 = vmatpush.bf16.msra.mxu3 %v3010_v25  ;;  %v4049_v41 = vld [vmem:[%s6087_s1 + $0x144] sm:$0xf0]  ;;  %v2993_v42 = vld [vmem:[%s6087_s1 + $0x1c0] sm:$0xf]  ;;  %v2866_v45 = vor.u32 %v4033_v39, %v2865_v37  ;;  %v4015_v48 = vld [vmem:[%s6087_s1 + $0x34] sm:$0xf0] }
  0x17   : > { %v4065_v43 = vld [vmem:[%s6087_s1 + $0x1c4] sm:$0xf0]  ;;  %669 = vmatpush.bf16.msra.mxu0 %v2810_v29  ;;  %v2930_v46 = vor.u32 %v4049_v41, %v2929_v40  ;;  %v2857_v49 = vld [vmem:[%s6087_s1 + $0xb0] sm:$0xf]  ;;  %v4031_v51 = vld [vmem:[%s6087_s1 + $0xb4] sm:$0xf0]  ;;  %v2794_v56 = vor.u32 %v4015_v48, %v2793_v47 }
  0x18   : > { %686 = vmatpush.bf16.msra.mxu1 %v2874_v33  ;;  %v2994_v50 = vor.u32 %v4065_v43, %v2993_v42  ;;  %v2921_v52 = vld [vmem:[%s6087_s1 + $0x130] sm:$0xf]  ;;  %v4047_v53 = vld [vmem:[%s6087_s1 + $0x134] sm:$0xf0]  ;;  %v2858_v57 = vor.u32 %v4031_v51, %v2857_v49  ;;  %v2785_v59 = vld [vmem:[%s6087_s1 + $0x20] sm:$0xf] }
  0x19   : > { %703 = vmatpush.bf16.msra.mxu2 %v2938_v34  ;;  %v2985_v54 = vld [vmem:[%s6087_s1 + $0x1b0] sm:$0xf]  ;;  %v4063_v55 = vld [vmem:[%s6087_s1 + $0x1b4] sm:$0xf0]  ;;  %v2922_v58 = vor.u32 %v4047_v53, %v2921_v52  ;;  %v4013_v60 = vld [vmem:[%s6087_s1 + $0x24] sm:$0xf0] }
  0x1a   : > { %720 = vmatpush.bf16.msra.mxu3 %v3002_v38  ;;  %v2849_v61 = vld [vmem:[%s6087_s1 + $0xa0] sm:$0xf]  ;;  %v2986_v62 = vor.u32 %v4063_v55, %v2985_v54  ;;  %v4029_v63 = vld [vmem:[%s6087_s1 + $0xa4] sm:$0xf0]  ;;  %v2786_v4 = vor.u32 %v4013_v60, %v2785_v59  ;;  %v2777_v5 = vld [vmem:[%s6087_s1 + $0x10] sm:$0xf] }
  0x1b   : > { %670 = vmatpush.bf16.msra.mxu0 %v2802_v44  ;;  %v2913_v0 = vld [vmem:[%s6087_s1 + $0x120] sm:$0xf]  ;;  %v4045_v1 = vld [vmem:[%s6087_s1 + $0x124] sm:$0xf0]  ;;  %v4011_v6 = vld [vmem:[%s6087_s1 + $0x14] sm:$0xf0]  ;;  %v2850_v7 = vor.u32 %v4029_v63, %v2849_v61 }
  0x1c   : > { %687 = vmatpush.bf16.msra.mxu1 %v2866_v45  ;;  %v2977_v2 = vld [vmem:[%s6087_s1 + $0x1a0] sm:$0xf]  ;;  %v4061_v3 = vld [vmem:[%s6087_s1 + $0x1a4] sm:$0xf0]  ;;  %v2914_v8 = vor.u32 %v4045_v1, %v2913_v0  ;;  %v2841_v9 = vld [vmem:[%s6087_s1 + $0x90] sm:$0xf]  ;;  %v2778_v18 = vor.u32 %v4011_v6, %v2777_v5 }
  0x1d   : > { %704 = vmatpush.bf16.msra.mxu2 %v2930_v46  ;;  %v4027_v10 = vld [vmem:[%s6087_s1 + $0x94] sm:$0xf0]  ;;  %v2905_v11 = vld [vmem:[%s6087_s1 + $0x110] sm:$0xf]  ;;  %v2978_v12 = vor.u32 %v4061_v3, %v2977_v2  ;;  %v2769_v16 = vld [vmem:[%s6087_s1] sm:$0xf] }
  0x1e   : > { %721 = vmatpush.bf16.msra.mxu3 %v2994_v50  ;;  %v4043_v13 = vld [vmem:[%s6087_s1 + $0x114] sm:$0xf0]  ;;  %v2969_v14 = vld [vmem:[%s6087_s1 + $0x190] sm:$0xf]  ;;  %v4009_v17 = vld [vmem:[%s6087_s1 + $0x4] sm:$0xf0]  ;;  %v2842_v21 = vor.u32 %v4027_v10, %v2841_v9 }
  0x1f   : > { %671 = vmatpush.bf16.msra.mxu0 %v2794_v56  ;;  %v4059_v15 = vld [vmem:[%s6087_s1 + $0x194] sm:$0xf0]  ;;  %v2833_v19 = vld [vmem:[%s6087_s1 + $0x80] sm:$0xf]  ;;  %v4025_v20 = vld [vmem:[%s6087_s1 + $0x84] sm:$0xf0]  ;;  %v2906_v22 = vor.u32 %v4043_v13, %v2905_v11  ;;  %v2770_v32 = vor.u32 %v4009_v17, %v2769_v16 }
  0x20   : > { %688 = vmatpush.bf16.msra.mxu1 %v2858_v57  ;;  %s6101_s12 = smov (!%p209_p4, %s4303_s12), 1  ;;  %v2897_v23 = vld [vmem:[%s6087_s1 + $0x100] sm:$0xf]  ;;  %v4041_v24 = vld [vmem:[%s6087_s1 + $0x104] sm:$0xf0]  ;;  %v2970_v26 = vor.u32 %v4059_v15, %v2969_v14  ;;  %v2834_v38 = vor.u32 %v4025_v20, %v2833_v19  ;;  %vm806_vm0 = vcmask 1043456  }
  0x21   : > { %705 = vmatpush.bf16.msra.mxu2 %v2922_v58  ;;  %v2961_v25 = vld [vmem:[%s6087_s1 + $0x180] sm:$0xf]  ;;  %v4057_v27 = vld [vmem:[%s6087_s1 + $0x184] sm:$0xf0]  ;;  %s3999_s29 = sshll.u32 %s6101_s12, 6  ;;  %v2898_v39 = vor.u32 %v4041_v24, %v2897_v23  ;;  %vm825_vm1 = vcmask 1041408  }
  0x22   : > { %722 = vmatpush.bf16.msra.mxu3 %v2986_v62  ;;  %v4054_v28 = vld [vmem:[%s6087_s1 + $0x174] sm:$0xf]  ;;  %s4556_s7 = scalar_lea.vmem %s6086_s0, %s3999_s29  ;;  %v2955_v29 = vld [vmem:[%s6087_s1 + $0x178] sm:$0xf0]  ;;  %v2962_v43 = vor.u32 %v4057_v27, %v2961_v25  ;;  %v4052_v51 = vld [vmem:[%s6087_s1 + $0x164] sm:$0xf] }
  0x23   : > { %672 = vmatpush.bf16.msra.mxu0 %v2786_v4  ;;  %v4038_v30 = vld [vmem:[%s6087_s1 + $0xf4] sm:$0xf]  ;;  %v2891_v31 = vld [vmem:[%s6087_s1 + $0xf8] sm:$0xf0]  ;;  %v2737_v33 = vld [vmem:[%s4556_s7] sm:$0xf]  ;;  %v2958_v46 = vor.u32 %v4054_v28, %v2955_v29 }
  0x24   : > { %689 = vmatpush.bf16.msra.mxu1 %v2850_v7  ;;  %v4002_v34 = vld [vmem:[%s4556_s7 + $0xc] sm:$0xf0]  ;;  %v4000_v35 = vld [vmem:[%s4556_s7 + $0x4] sm:$0xf]  ;;  %v4022_v36 = vld [vmem:[%s6087_s1 + $0x74] sm:$0xf]  ;;  %v2894_v49 = vor.u32 %v4038_v30, %v2891_v31 }
  0x25   : > { %706 = vmatpush.bf16.msra.mxu2 %v2914_v8  ;;  %v2827_v37 = vld [vmem:[%s6087_s1 + $0x78] sm:$0xf0]  ;;  %v2739_v40 = vld [vmem:[%s4556_s7 + $0x10] sm:$0xf0]  ;;  %v2745_v41 = vld [vmem:[%s4556_s7 + $0x8] sm:$0xf]  ;;  %v4584_v48 = vor.u32 %v4002_v34, %v2737_v33 }
  0x26   : > { %723 = vmatpush.bf16.msra.mxu3 %v2978_v12  ;;  %v4003_v42 = vld [vmem:[%s4556_s7 + $0x14] sm:$0xf0]  ;;  %v4001_v44 = vld [vmem:[%s4556_s7 + $0xc] sm:$0xf]  ;;  %v2747_v45 = vld [vmem:[%s4556_s7 + $0x18] sm:$0xf0]  ;;  %v4595_v53 = vor.u32 %v4000_v35, %v2739_v40  ;;  %v2830_v58 = vor.u32 %v4022_v36, %v2827_v37 }
  0x27   : > { %673 = vmatpush.bf16.msra.mxu0 %v2778_v18  ;;  %v4070_v47 = vld [vmem:[%s6087_s1 + $0x1f4] sm:$0xf]  ;;  %v3019_v50 = vld [vmem:[%s6087_s1 + $0x1f8] sm:$0xf0]  ;;  %v2947_v52 = vld [vmem:[%s6087_s1 + $0x168] sm:$0xf0]  ;;  %v4597_v54 = vor.u32 %v4003_v42, %v2745_v41  ;;  %v4605_v57 = vor.u32 %v4001_v44, %v2747_v45 }
  0x28   : > { %690 = vmatpush.bf16.msra.mxu1 %v2842_v21  ;;  %v4036_v55 = vld [vmem:[%s6087_s1 + $0xe4] sm:$0xf]  ;;  %v2883_v56 = vld [vmem:[%s6087_s1 + $0xe8] sm:$0xf0]  ;;  %v3022_v59 = vor.u32 %v4070_v47, %v3019_v50  ;;  %v2950_v60 = vor.u32 %v4052_v51, %v2947_v52  ;;  %v4050_v2 = vld [vmem:[%s6087_s1 + $0x154] sm:$0xf] }
  0x29   : > { %707 = vmatpush.bf16.msra.mxu2 %v2906_v22  ;;  %v4020_v61 = vld [vmem:[%s6087_s1 + $0x64] sm:$0xf]  ;;  %v2819_v62 = vld [vmem:[%s6087_s1 + $0x68] sm:$0xf0]  ;;  %v2886_v0 = vor.u32 %v4036_v55, %v2883_v56  ;;  %v2939_v3 = vld [vmem:[%s6087_s1 + $0x158] sm:$0xf0] }
  0x2a   : > { %724 = vmatpush.bf16.msra.mxu3 %v2970_v26  ;;  %v4068_v63 = vld [vmem:[%s6087_s1 + $0x1e4] sm:$0xf]  ;;  %v3011_v1 = vld [vmem:[%s6087_s1 + $0x1e8] sm:$0xf0]  ;;  %v4034_v4 = vld [vmem:[%s6087_s1 + $0xd4] sm:$0xf]  ;;  %v2822_v6 = vor.u32 %v4020_v61, %v2819_v62  ;;  %v2942_v8 = vor.u32 %v4050_v2, %v2939_v3 }
  0x2b   : > { %674 = vmatpush.bf16.msra.mxu0 %v2770_v32  ;;  %v2875_v5 = vld [vmem:[%s6087_s1 + $0xd8] sm:$0xf0]  ;;  %v3014_v7 = vor.u32 %v4068_v63, %v3011_v1  ;;  %v4018_v9 = vld [vmem:[%s6087_s1 + $0x54] sm:$0xf]  ;;  %v4048_v14 = vld [vmem:[%s6087_s1 + $0x144] sm:$0xf] }
  0x2c   : > { %691 = vmatpush.bf16.msra.mxu1 %v2834_v38  ;;  %v2811_v10 = vld [vmem:[%s6087_s1 + $0x58] sm:$0xf0]  ;;  %v4066_v11 = vld [vmem:[%s6087_s1 + $0x1d4] sm:$0xf]  ;;  %v2878_v12 = vor.u32 %v4034_v4, %v2875_v5  ;;  %v2931_v15 = vld [vmem:[%s6087_s1 + $0x148] sm:$0xf0] }
  0x2d   : > { %708 = vmatpush.bf16.msra.mxu2 %v2898_v39  ;;  %v3003_v13 = vld [vmem:[%s6087_s1 + $0x1d8] sm:$0xf0]  ;;  %v4032_v16 = vld [vmem:[%s6087_s1 + $0xc4] sm:$0xf]  ;;  %v2867_v17 = vld [vmem:[%s6087_s1 + $0xc8] sm:$0xf0]  ;;  %v2814_v18 = vor.u32 %v4018_v9, %v2811_v10  ;;  %v2934_v23 = vor.u32 %v4048_v14, %v2931_v15 }
  0x2e   : > { %725 = vmatpush.bf16.msra.mxu3 %v2962_v43  ;;  %675 = vmatmul.bf16.vlgmr.msra.gmra.mxu0 %v4584_v48  ;;  %v4016_v19 = vld [vmem:[%s6087_s1 + $0x44] sm:$0xf]  ;;  %v2803_v20 = vld [vmem:[%s6087_s1 + $0x48] sm:$0xf0]  ;;  %v3006_v22 = vor.u32 %v4066_v11, %v3003_v13  ;;  %v2753_v25 = vld [vmem:[%s4556_s7 + $0x20] sm:$0xf]  ;;  %v2870_v27 = vor.u32 %v4032_v16, %v2867_v17 }
  0x2f   : > { %692 = vmatmul.bf16.vlgmr.msra.gmra.mxu1 %v4595_v53  ;;  %735 = vmatpush.bf16.msrb.mxu0 %v2830_v58  ;;  %v4064_v21 = vld [vmem:[%s6087_s1 + $0x1c4] sm:$0xf]  ;;  %v2995_v24 = vld [vmem:[%s6087_s1 + $0x1c8] sm:$0xf0]  ;;  %v4006_v26 = vld [vmem:[%s4556_s7 + $0x2c] sm:$0x10]  ;;  %v2806_v35 = vor.u32 %v4016_v19, %v2803_v20 }
  0x30   : > { %752 = vmatpush.bf16.msrb.mxu1 %v2894_v49  ;;  %709 = vmatmul.bf16.vlgmr.msra.gmra.mxu2 %v4597_v54  ;;  %v4004_v28 = vld [vmem:[%s4556_s7 + $0x24] sm:$0xf]  ;;  %v2755_v29 = vld [vmem:[%s4556_s7 + $0x30] sm:$0x10]  ;;  %v2923_v31 = vld [vmem:[%s6087_s1 + $0x138] sm:$0xf0]  ;;  %v2998_v39 = vor.u32 %v4064_v21, %v2995_v24  ;;  %v4700_v44 = vor.u32 %v4006_v26, %v2753_v25 }
  0x31   : > { %769 = vmatpush.bf16.msrb.mxu2 %v2958_v46  ;;  %726 = vmatmul.bf16.vlgmr.msra.gmra.mxu3 %v4605_v57  ;;  %v4046_v30 = vld [vmem:[%s6087_s1 + $0x134] sm:$0xf]  ;;  %v2761_v32 = vld [vmem:[%s4556_s7 + $0x28] sm:$0xf]  ;;  %v2859_v34 = vld [vmem:[%s6087_s1 + $0xb8] sm:$0xf0]  ;;  %v4711_v50 = vor.u32 %v4004_v28, %v2755_v29 }
  0x32   : > { %786 = vmatpush.bf16.msrb.mxu3 %v3022_v59  ;;  %v4030_v33 = vld [vmem:[%s6087_s1 + $0xb4] sm:$0xf]  ;;  %v4007_v36 = vld [vmem:[%s4556_s7 + $0x34] sm:$0x10]  ;;  %v4005_v37 = vld [vmem:[%s4556_s7 + $0x2c] sm:$0xf]  ;;  %v2926_v40 = vor.u32 %v4046_v30, %v2923_v31 }
  0x33   : > { %736 = vmatpush.bf16.msrb.mxu0 %v2822_v6  ;;  %v2763_v38 = vld [vmem:[%s4556_s7 + $0x38] sm:$0x10]  ;;  %v4014_v41 = vld [vmem:[%s6087_s1 + $0x34] sm:$0xf]  ;;  %v2862_v45 = vor.u32 %v4030_v33, %v2859_v34  ;;  %v4044_v47 = vld [vmem:[%s6087_s1 + $0x124] sm:$0xf]  ;;  %v4713_v51 = vor.u32 %v4007_v36, %v2761_v32 }
  0x34   : > { %753 = vmatpush.bf16.msrb.mxu1 %v2886_v0  ;;  %v2795_v42 = vld [vmem:[%s6087_s1 + $0x38] sm:$0xf0]  ;;  %v4062_v43 = vld [vmem:[%s6087_s1 + $0x1b4] sm:$0xf]  ;;  %v2915_v49 = vld [vmem:[%s6087_s1 + $0x128] sm:$0xf0]  ;;  %v4721_v56 = vor.u32 %v4005_v37, %v2763_v38 }
  0x35   : > { %770 = vmatpush.bf16.msrb.mxu2 %v2950_v60  ;;  %v2987_v46 = vld [vmem:[%s6087_s1 + $0x1b8] sm:$0xf0]  ;;  %v4028_v52 = vld [vmem:[%s6087_s1 + $0xa4] sm:$0xf]  ;;  %v2851_v55 = vld [vmem:[%s6087_s1 + $0xa8] sm:$0xf0]  ;;  %v2798_v58 = vor.u32 %v4014_v41, %v2795_v42  ;;  %v2918_v60 = vor.u32 %v4044_v47, %v2915_v49 }
  0x36   : > { %787 = vmatpush.bf16.msrb.mxu3 %v3014_v7  ;;  %v2990_v59 = vor.u32 %v4062_v43, %v2987_v46  ;;  %v4012_v61 = vld [vmem:[%s6087_s1 + $0x24] sm:$0xf]  ;;  %v2787_v62 = vld [vmem:[%s6087_s1 + $0x28] sm:$0xf0]  ;;  %v2854_v0 = vor.u32 %v4028_v52, %v2851_v55  ;;  %v4042_v2 = vld [vmem:[%s6087_s1 + $0x114] sm:$0xf] }
  0x37   : > { %737 = vmatpush.bf16.msrb.mxu0 %v2814_v18  ;;  %v4060_v63 = vld [vmem:[%s6087_s1 + $0x1a4] sm:$0xf]  ;;  %v2979_v1 = vld [vmem:[%s6087_s1 + $0x1a8] sm:$0xf0]  ;;  %v2907_v3 = vld [vmem:[%s6087_s1 + $0x118] sm:$0xf0]  ;;  %v2790_v6 = vor.u32 %v4012_v61, %v2787_v62 }
  0x38   : > { %754 = vmatpush.bf16.msrb.mxu1 %v2878_v12  ;;  %v4026_v4 = vld [vmem:[%s6087_s1 + $0x94] sm:$0xf]  ;;  %v2843_v5 = vld [vmem:[%s6087_s1 + $0x98] sm:$0xf0]  ;;  %v2910_v9 = vor.u32 %v4042_v2, %v2907_v3  ;;  %v4040_v14 = vld [vmem:[%s6087_s1 + $0x104] sm:$0xf] }
  0x39   : > { %771 = vmatpush.bf16.msrb.mxu2 %v2942_v8  ;;  %v4010_v7 = vld [vmem:[%s6087_s1 + $0x14] sm:$0xf]  ;;  %v2982_v8 = vor.u32 %v4060_v63, %v2979_v1  ;;  %v2779_v10 = vld [vmem:[%s6087_s1 + $0x18] sm:$0xf0]  ;;  %v2846_v13 = vor.u32 %v4026_v4, %v2843_v5  ;;  %v2899_v15 = vld [vmem:[%s6087_s1 + $0x108] sm:$0xf0] }
  0x3a   : > { %788 = vmatpush.bf16.msrb.mxu3 %v3006_v22  ;;  %v4058_v11 = vld [vmem:[%s6087_s1 + $0x194] sm:$0xf]  ;;  %v2971_v12 = vld [vmem:[%s6087_s1 + $0x198] sm:$0xf0]  ;;  %v4024_v16 = vld [vmem:[%s6087_s1 + $0x84] sm:$0xf]  ;;  %v2782_v20 = vor.u32 %v4010_v7, %v2779_v10  ;;  %v2902_v25 = vor.u32 %v4040_v14, %v2899_v15 }
  0x3b   : > { %738 = vmatpush.bf16.msrb.mxu0 %v2806_v35  ;;  %v2835_v17 = vld [vmem:[%s6087_s1 + $0x88] sm:$0xf0]  ;;  %v3276_v18 = vld [vmem:[%s6087_s1 + $0x370] sm:$0xf]  ;;  %v4119_v19 = vld [vmem:[%s6087_s1 + $0x374] sm:$0xf0]  ;;  %v2974_v24 = vor.u32 %v4058_v11, %v2971_v12 }
  0x3c   : > { %755 = vmatpush.bf16.msrb.mxu1 %v2870_v27  ;;  %v4008_v21 = vld [vmem:[%s6087_s1 + $0x4] sm:$0xf]  ;;  %v3212_v22 = vld [vmem:[%s6087_s1 + $0x2f0] sm:$0xf]  ;;  %v2771_v26 = vld [vmem:[%s6087_s1 + $0x8] sm:$0xf0]  ;;  %v2838_v29 = vor.u32 %v4024_v16, %v2835_v17  ;;  %v3277_v30 = vor.u32 %v4119_v19, %v3276_v18 }
  0x3d   : > { %772 = vmatpush.bf16.msrb.mxu2 %v2934_v23  ;;  %v4103_v23 = vld [vmem:[%s6087_s1 + $0x2f4] sm:$0xf0]  ;;  %v4056_v27 = vld [vmem:[%s6087_s1 + $0x184] sm:$0xf]  ;;  %v2963_v28 = vld [vmem:[%s6087_s1 + $0x188] sm:$0xf0]  ;;  %v2774_v38 = vor.u32 %v4008_v21, %v2771_v26 }
  0x3e   : > { %789 = vmatpush.bf16.msrb.mxu3 %v2998_v39  ;;  %680 = vmatmul.bf16.gmra.mxu0 %v4700_v44  ;;  %v3148_v31 = vld [vmem:[%s6087_s1 + $0x270] sm:$0xf]  ;;  %v4087_v32 = vld [vmem:[%s6087_s1 + $0x274] sm:$0xf0]  ;;  %v3213_v34 = vor.u32 %v4103_v23, %v3212_v22  ;;  %v3268_v36 = vld [vmem:[%s6087_s1 + $0x360] sm:$0xf]  ;;  %v2966_v39 = vor.u32 %v4056_v27, %v2963_v28 }
  0x3f   : > { %697 = vmatmul.bf16.gmra.mxu1 %v4711_v50  ;;  %739 = vmatpush.bf16.msrb.mxu0 %v2798_v58  ;;  %v3340_v33 = vld [vmem:[%s6087_s1 + $0x3f0] sm:$0xf]  ;;  %v4135_v35 = vld [vmem:[%s6087_s1 + $0x3f4] sm:$0xf0]  ;;  %v4117_v37 = vld [vmem:[%s6087_s1 + $0x364] sm:$0xf0] }
  0x40   : > { %756 = vmatpush.bf16.msrb.mxu1 %v2862_v45  ;;  %714 = vmatmul.bf16.gmra.mxu2 %v4713_v51  ;;  %v3140_v41 = vld [vmem:[%s6087_s1 + $0x260] sm:$0xf]  ;;  %v4085_v42 = vld [vmem:[%s6087_s1 + $0x264] sm:$0xf0]  ;;  %v3341_v43 = vor.u32 %v4135_v35, %v3340_v33  ;;  %v3269_v45 = vor.u32 %v4117_v37, %v3268_v36  ;;  %v3260_v55 = vld [vmem:[%s6087_s1 + $0x350] sm:$0xf] }
  0x41   : > { %773 = vmatpush.bf16.msrb.mxu2 %v2926_v40  ;;  %731 = vmatmul.bf16.gmra.mxu3 %v4721_v56  ;;  %v3149_v40 = vor.u32 %v4087_v32, %v3148_v31  ;;  %v3204_v46 = vld [vmem:[%s6087_s1 + $0x2e0] sm:$0xf]  ;;  %v4101_v47 = vld [vmem:[%s6087_s1 + $0x2e4] sm:$0xf0]  ;;  %v4115_v58 = vld [vmem:[%s6087_s1 + $0x354] sm:$0xf0] }
  0x42   : > { %790 = vmatpush.bf16.msrb.mxu3 %v2990_v59  ;;  %v3332_v49 = vld [vmem:[%s6087_s1 + $0x3e0] sm:$0xf]  ;;  %v4133_v52 = vld [vmem:[%s6087_s1 + $0x3e4] sm:$0xf0]  ;;  %v3141_v59 = vor.u32 %v4085_v42, %v3140_v41  ;;  %v3132_v61 = vld [vmem:[%s6087_s1 + $0x250] sm:$0xf] }
  0x43   : > { %740 = vmatpush.bf16.msrb.mxu0 %v2790_v6  ;;  %v4083_v62 = vld [vmem:[%s6087_s1 + $0x254] sm:$0xf0]  ;;  %v3333_v63 = vor.u32 %v4133_v52, %v3332_v49  ;;  %v3196_v1 = vld [vmem:[%s6087_s1 + $0x2d0] sm:$0xf]  ;;  %v3252_v5 = vld [vmem:[%s6087_s1 + $0x340] sm:$0xf] }
  0x44   : > { %757 = vmatpush.bf16.msrb.mxu1 %v2854_v0  ;;  %v3261_v0 = vor.u32 %v4115_v58, %v3260_v55  ;;  %v4099_v2 = vld [vmem:[%s6087_s1 + $0x2d4] sm:$0xf0]  ;;  %v3324_v3 = vld [vmem:[%s6087_s1 + $0x3d0] sm:$0xf]  ;;  %v4113_v6 = vld [vmem:[%s6087_s1 + $0x344] sm:$0xf0]  ;;  %v3133_v7 = vor.u32 %v4083_v62, %v3132_v61 }
  0x45   : > { %774 = vmatpush.bf16.msrb.mxu2 %v2918_v60  ;;  %v3205_v60 = vor.u32 %v4101_v47, %v3204_v46  ;;  %v4131_v4 = vld [vmem:[%s6087_s1 + $0x3d4] sm:$0xf0]  ;;  %v4081_v10 = vld [vmem:[%s6087_s1 + $0x244] sm:$0xf0]  ;;  %v3253_v12 = vor.u32 %v4113_v6, %v3252_v5  ;;  %v3316_v15 = vld [vmem:[%s6087_s1 + $0x3c0] sm:$0xf] }
  0x46   : > { %791 = vmatpush.bf16.msrb.mxu3 %v2982_v8  ;;  %v3197_v8 = vor.u32 %v4099_v2, %v3196_v1  ;;  %v3325_v11 = vor.u32 %v4131_v4, %v3324_v3  ;;  %v4097_v14 = vld [vmem:[%s6087_s1 + $0x2c4] sm:$0xf0]  ;;  %v3244_v17 = vld [vmem:[%s6087_s1 + $0x330] sm:$0xf]  ;;  %v4111_v18 = vld [vmem:[%s6087_s1 + $0x334] sm:$0xf0] }
  0x47   : > { %741 = vmatpush.bf16.msrb.mxu0 %v2782_v20  ;;  %v4129_v16 = vld [vmem:[%s6087_s1 + $0x3c4] sm:$0xf0]  ;;  %v3116_v21 = vld [vmem:[%s6087_s1 + $0x230] sm:$0xf]  ;;  %v4079_v22 = vld [vmem:[%s6087_s1 + $0x234] sm:$0xf0] }
  0x48   : > { %758 = vmatpush.bf16.msrb.mxu1 %v2846_v13  ;;  %v3188_v13 = vld [vmem:[%s6087_s1 + $0x2c0] sm:$0xf]  ;;  %v3317_v23 = vor.u32 %v4129_v16, %v3316_v15  ;;  %v4095_v26 = vld [vmem:[%s6087_s1 + $0x2b4] sm:$0xf0]  ;;  %v3308_v27 = vld [vmem:[%s6087_s1 + $0x3b0] sm:$0xf]  ;;  %v3117_v31 = vor.u32 %v4079_v22, %v3116_v21 }
  0x49   : > { %775 = vmatpush.bf16.msrb.mxu2 %v2910_v9  ;;  %v3124_v9 = vld [vmem:[%s6087_s1 + $0x240] sm:$0xf]  ;;  %v3189_v20 = vor.u32 %v4097_v14, %v3188_v13  ;;  %v4127_v28 = vld [vmem:[%s6087_s1 + $0x3b4] sm:$0xf0]  ;;  %v3228_v41 = vld [vmem:[%s6087_s1 + $0x310] sm:$0xf] }
  0x4a   : > { %792 = vmatpush.bf16.msrb.mxu3 %v2974_v24  ;;  %v3125_v19 = vor.u32 %v4081_v10, %v3124_v9  ;;  %v3245_v24 = vor.u32 %v4111_v18, %v3244_v17  ;;  %v3108_v33 = vld [vmem:[%s6087_s1 + $0x220] sm:$0xf]  ;;  %v3309_v35 = vor.u32 %v4127_v28, %v3308_v27  ;;  %v4107_v42 = vld [vmem:[%s6087_s1 + $0x314] sm:$0xf0]  ;;  %v3100_v46 = vld [vmem:[%s6087_s1 + $0x210] sm:$0xf] }
  0x4b   : > { %742 = vmatpush.bf16.msrb.mxu0 %v2774_v38  ;;  %v3172_v37 = vld [vmem:[%s6087_s1 + $0x2a0] sm:$0xf]  ;;  %v4093_v38 = vld [vmem:[%s6087_s1 + $0x2a4] sm:$0xf0]  ;;  %v4075_v47 = vld [vmem:[%s6087_s1 + $0x214] sm:$0xf0]  ;;  %v3229_v52 = vor.u32 %v4107_v42, %v3228_v41 }
  0x4c   : > { %759 = vmatpush.bf16.msrb.mxu1 %v2838_v29  ;;  %v3236_v29 = vld [vmem:[%s6087_s1 + $0x320] sm:$0xf]  ;;  %v3164_v55 = vld [vmem:[%s6087_s1 + $0x290] sm:$0xf]  ;;  %v4091_v58 = vld [vmem:[%s6087_s1 + $0x294] sm:$0xf0]  ;;  %v3101_v1 = vor.u32 %v4075_v47, %v3100_v46 }
  0x4d   : > { %776 = vmatpush.bf16.msrb.mxu2 %v2902_v25  ;;  %v3180_v25 = vld [vmem:[%s6087_s1 + $0x2b0] sm:$0xf]  ;;  %v3220_v61 = vld [vmem:[%s6087_s1 + $0x300] sm:$0xf]  ;;  %v4105_v62 = vld [vmem:[%s6087_s1 + $0x304] sm:$0xf0]  ;;  %v3165_v2 = vor.u32 %v4091_v58, %v3164_v55 }
  0x4e   : > { %793 = vmatpush.bf16.msrb.mxu3 %v2966_v39  ;;  %743 = vmatmul.bf16.vlgmr.msrb.gmra.mxu0 %v4584_v48  ;;  %v3181_v32 = vor.u32 %v4095_v26, %v3180_v25  ;;  %v3300_v39 = vld [vmem:[%s6087_s1 + $0x3a0] sm:$0xf]  ;;  %v4073_v4 = vld [vmem:[%s6087_s1 + $0x204] sm:$0xf0]  ;;  %v3150_v13 = vld [vmem:[%s6087_s1 + $0x278] sm:$0xf0] }
  0x4f   : > { %1220 = vmatpush.bf16.msra.mxu0 %v3149_v40  ;;  %760 = vmatmul.bf16.vlgmr.msrb.gmra.mxu1 %v4595_v53  ;;  %v4125_v40 = vld [vmem:[%s6087_s1 + $0x3a4] sm:$0xf0]  ;;  %v3092_v3 = vld [vmem:[%s6087_s1 + $0x200] sm:$0xf]  ;;  %v4102_v14 = vld [vmem:[%s6087_s1 + $0x2f4] sm:$0xf] }
  0x50   : > { %1237 = vmatpush.bf16.msra.mxu1 %v3213_v34  ;;  %777 = vmatmul.bf16.vlgmr.msrb.gmra.mxu2 %v4597_v54  ;;  %v4077_v34 = vld [vmem:[%s6087_s1 + $0x224] sm:$0xf0]  ;;  %v3301_v49 = vor.u32 %v4125_v40, %v3300_v39  ;;  %v3156_v5 = vld [vmem:[%s6087_s1 + $0x280] sm:$0xf]  ;;  %v3214_v15 = vld [vmem:[%s6087_s1 + $0x2f8] sm:$0xf0]  ;;  %v3093_v18 = vor.u32 %v4073_v4, %v3092_v3 }
  0x51   : > { %1254 = vmatpush.bf16.msra.mxu2 %v3277_v30  ;;  %794 = vmatmul.bf16.vlgmr.msrb.gmra.mxu3 %v4605_v57  ;;  %v4109_v30 = vld [vmem:[%s6087_s1 + $0x324] sm:$0xf0]  ;;  %v3284_v9 = vld [vmem:[%s6087_s1 + $0x380] sm:$0xf]  ;;  %v4134_v16 = vld [vmem:[%s6087_s1 + $0x3f4] sm:$0xf] }
  0x52   : > { %1271 = vmatpush.bf16.msra.mxu3 %v3341_v43  ;;  %v3237_v36 = vor.u32 %v4109_v30, %v3236_v29  ;;  %v3109_v43 = vor.u32 %v4077_v34, %v3108_v33  ;;  %v4121_v10 = vld [vmem:[%s6087_s1 + $0x384] sm:$0xf0]  ;;  %v3342_v17 = vld [vmem:[%s6087_s1 + $0x3f8] sm:$0xf0]  ;;  %v3270_v21 = vld [vmem:[%s6087_s1 + $0x368] sm:$0xf0] }
  0x53   : > { %1221 = vmatpush.bf16.msra.mxu0 %v3141_v59  ;;  %v3292_v59 = vld [vmem:[%s6087_s1 + $0x390] sm:$0xf]  ;;  %v3285_v22 = vor.u32 %v4121_v10, %v3284_v9  ;;  %v3345_v25 = vor.u32 %v4134_v16, %v3342_v17  ;;  %v4084_v26 = vld [vmem:[%s6087_s1 + $0x264] sm:$0xf]  ;;  %v3142_v27 = vld [vmem:[%s6087_s1 + $0x268] sm:$0xf0] }
  0x54   : > { %1238 = vmatpush.bf16.msra.mxu1 %v3205_v60  ;;  %v4123_v60 = vld [vmem:[%s6087_s1 + $0x394] sm:$0xf0]  ;;  %v4100_v29 = vld [vmem:[%s6087_s1 + $0x2e4] sm:$0xf]  ;;  %v3206_v30 = vld [vmem:[%s6087_s1 + $0x2e8] sm:$0xf0] }
  0x55   : > { %1255 = vmatpush.bf16.msra.mxu2 %v3269_v45  ;;  %v3173_v45 = vor.u32 %v4093_v38, %v3172_v37  ;;  %v3293_v6 = vor.u32 %v4123_v60, %v3292_v59  ;;  %v3334_v33 = vld [vmem:[%s6087_s1 + $0x3e8] sm:$0xf0]  ;;  %v4114_v34 = vld [vmem:[%s6087_s1 + $0x354] sm:$0xf]  ;;  %v3134_v37 = vld [vmem:[%s6087_s1 + $0x258] sm:$0xf0]  ;;  %v3209_v38 = vor.u32 %v4100_v29, %v3206_v30 }
  0x56   : > { %1272 = vmatpush.bf16.msra.mxu3 %v3333_v63  ;;  %v4118_v63 = vld [vmem:[%s6087_s1 + $0x374] sm:$0xf]  ;;  %v3198_v41 = vld [vmem:[%s6087_s1 + $0x2d8] sm:$0xf0]  ;;  %v4112_v47 = vld [vmem:[%s6087_s1 + $0x344] sm:$0xf] }
  0x57   : > { %1222 = vmatpush.bf16.msra.mxu0 %v3133_v7  ;;  %v3221_v7 = vor.u32 %v4105_v62, %v3220_v61  ;;  %v4098_v40 = vld [vmem:[%s6087_s1 + $0x2d4] sm:$0xf]  ;;  %v3326_v46 = vld [vmem:[%s6087_s1 + $0x3d8] sm:$0xf0]  ;;  %v3126_v55 = vld [vmem:[%s6087_s1 + $0x248] sm:$0xf0] }
  0x58   : > { %1239 = vmatpush.bf16.msra.mxu1 %v3197_v8  ;;  %v4089_v8 = vld [vmem:[%s6087_s1 + $0x284] sm:$0xf0]  ;;  %v3201_v58 = vor.u32 %v4098_v40, %v3198_v41  ;;  %v4096_v60 = vld [vmem:[%s6087_s1 + $0x2c4] sm:$0xf]  ;;  %v3190_v61 = vld [vmem:[%s6087_s1 + $0x2c8] sm:$0xf0] }
  0x59   : > { %1256 = vmatpush.bf16.msra.mxu2 %v3261_v0  ;;  %v3278_v0 = vld [vmem:[%s6087_s1 + $0x378] sm:$0xf0]  ;;  %v4078_v4 = vld [vmem:[%s6087_s1 + $0x234] sm:$0xf]  ;;  %v4076_v16 = vld [vmem:[%s6087_s1 + $0x224] sm:$0xf] }
  0x5a   : > { %1273 = vmatpush.bf16.msra.mxu3 %v3325_v11  ;;  %v3281_v11 = vor.u32 %v4118_v63, %v3278_v0  ;;  %v4128_v0 = vld [vmem:[%s6087_s1 + $0x3c4] sm:$0xf]  ;;  %v3246_v3 = vld [vmem:[%s6087_s1 + $0x338] sm:$0xf0]  ;;  %v3110_v17 = vld [vmem:[%s6087_s1 + $0x228] sm:$0xf0] }
  0x5b   : > { %1223 = vmatpush.bf16.msra.mxu0 %v3125_v19  ;;  %v3157_v19 = vor.u32 %v4089_v8, %v3156_v5  ;;  %v3118_v5 = vld [vmem:[%s6087_s1 + $0x238] sm:$0xf0]  ;;  %v4094_v8 = vld [vmem:[%s6087_s1 + $0x2b4] sm:$0xf]  ;;  %v4072_v40 = vld [vmem:[%s6087_s1 + $0x204] sm:$0xf] }
  0x5c   : > { %1240 = vmatpush.bf16.msra.mxu1 %v3189_v20  ;;  %v4116_v20 = vld [vmem:[%s6087_s1 + $0x364] sm:$0xf]  ;;  %v3182_v9 = vld [vmem:[%s6087_s1 + $0x2b8] sm:$0xf0]  ;;  %v3094_v41 = vld [vmem:[%s6087_s1 + $0x208] sm:$0xf0] }
  0x5d   : > { %1257 = vmatpush.bf16.msra.mxu2 %v3253_v12  ;;  %v4086_v12 = vld [vmem:[%s6087_s1 + $0x274] sm:$0xf]  ;;  %v3273_v28 = vor.u32 %v4116_v20, %v3270_v21  ;;  %v4092_v20 = vld [vmem:[%s6087_s1 + $0x2a4] sm:$0xf]  ;;  %v3174_v21 = vld [vmem:[%s6087_s1 + $0x2a8] sm:$0xf0] }
  0x5e   : > { %1274 = vmatpush.bf16.msra.mxu3 %v3317_v23  ;;  %748 = vmatmul.bf16.gmra.mxu0 %v4700_v44  ;;  %v3153_v23 = vor.u32 %v4086_v12, %v3150_v13  ;;  %v4126_v12 = vld [vmem:[%s6087_s1 + $0x3b4] sm:$0xf]  ;;  %v3310_v13 = vld [vmem:[%s6087_s1 + $0x3b8] sm:$0xf0]  ;;  %v3177_v30 = vor.u32 %v4092_v20, %v3174_v21  ;;  %vm826_vm2 = vcmask 1045508   ;;  %vm1389_vm4 = vcmask 1040384  }
  0x5f   : > { %1224 = vmatpush.bf16.msra.mxu0 %v3117_v31  ;;  %765 = vmatmul.bf16.gmra.mxu1 %v4711_v50  ;;  %v3145_v31 = vor.u32 %v4084_v26, %v3142_v27  ;;  %v4106_v26 = vld [vmem:[%s6087_s1 + $0x314] sm:$0xf]  ;;  %v3230_v27 = vld [vmem:[%s6087_s1 + $0x318] sm:$0xf0]  ;;  %vm5832_vm3 = vmor %vm825_vm1, %vm826_vm2  ;;  %vm1390_vm5 = vcmask 1044484   ;;  %s4264_s10 = smul.u32 12, %s6101_s12 }
  0x60   : > { %1241 = vmatpush.bf16.msra.mxu1 %v3181_v32  ;;  %782 = vmatmul.bf16.gmra.mxu2 %v4713_v51  ;;  %v4132_v32 = vld [vmem:[%s6087_s1 + $0x3e4] sm:$0xf]  ;;  %v3102_v29 = vld [vmem:[%s6087_s1 + $0x218] sm:$0xf0]  ;;  %vm6034_vm6 = vmor %vm1389_vm4, %vm1390_vm5  ;;  %vm2602_vm7 = vsmask.f32 1280 }
  0x61   : > { %1258 = vmatpush.bf16.msra.mxu2 %v3245_v24  ;;  %799 = vmatmul.bf16.gmra.mxu3 %v4721_v56  ;;  %v3217_v24 = vor.u32 %v4102_v14, %v3214_v15  ;;  %v3337_v39 = vor.u32 %v4132_v32, %v3334_v33  ;;  %v4108_v14 = vld [vmem:[%s6087_s1 + $0x324] sm:$0xf]  ;;  %v3238_v15 = vld [vmem:[%s6087_s1 + $0x328] sm:$0xf0]  ;;  %v4090_v32 = vld [vmem:[%s6087_s1 + $0x294] sm:$0xf]  ;;  %s233_s17 = scalar_lea.vmem %s6089_s3, %s4264_s10 }
  0x62   : > { %1275 = vmatpush.bf16.msra.mxu3 %v3309_v35  ;;  %v3262_v35 = vld [vmem:[%s6087_s1 + $0x358] sm:$0xf0]  ;;  %vm2604_vm8 = vcmask 1043458   ;;  %vm2605_vm9 = vsmask.f32 3328  ;;  %vm2603_vm10 = vmand %vm825_vm1, %vm2602_vm7 }
  0x63   : > { %1225 = vmatpush.bf16.msra.mxu0 %v3109_v43  ;;  %v3265_v42 = vor.u32 %v4114_v34, %v3262_v35  ;;  %v3166_v33 = vld [vmem:[%s6087_s1 + $0x298] sm:$0xf0]  ;;  %v4122_v34 = vld [vmem:[%s6087_s1 + $0x394] sm:$0xf]  ;;  %v3233_v35 = vor.u32 %v4106_v26, %v3230_v27  ;;  %v3648_v26 = vld [vmem:[%s6087_s1 + $0x5d0] sm:$0xf] }
  0x64   : > { %1242 = vmatpush.bf16.msra.mxu1 %v3173_v45  ;;  %v4130_v45 = vld [vmem:[%s6087_s1 + $0x3d4] sm:$0xf]  ;;  %v4195_v27 = vld [vmem:[%s6087_s1 + $0x5d4] sm:$0xf0]  ;;  %vm2606_vm11 = vmand %vm2604_vm8, %vm2605_vm9 }
  0x65   : > { %1259 = vmatpush.bf16.msra.mxu2 %v3237_v36  ;;  %v4082_v36 = vld [vmem:[%s6087_s1 + $0x254] sm:$0xf]  ;;  %v3329_v59 = vor.u32 %v4130_v45, %v3326_v46  ;;  %v3472_v45 = vld [vmem:[%s6087_s1 + $0x470] sm:$0xf]  ;;  %v4151_v46 = vld [vmem:[%s6087_s1 + $0x474] sm:$0xf0] }
  0x66   : > { %1276 = vmatpush.bf16.msra.mxu3 %v3301_v49  ;;  %v3137_v43 = vor.u32 %v4082_v36, %v3134_v37  ;;  %v3254_v49 = vld [vmem:[%s6087_s1 + $0x348] sm:$0xf0]  ;;  %v3294_v37 = vld [vmem:[%s6087_s1 + $0x398] sm:$0xf0]  ;;  %vm6064_vm12 = vmor %vm2606_vm11, %vm2603_vm10 }
  0x67   : > { %1226 = vmatpush.bf16.msra.mxu0 %v3101_v1  ;;  %v3257_v62 = vor.u32 %v4112_v47, %v3254_v49  ;;  %v3318_v1 = vld [vmem:[%s6087_s1 + $0x3c8] sm:$0xf0]  ;;  %v3169_v47 = vor.u32 %v4090_v32, %v3166_v33  ;;  %v3297_v49 = vor.u32 %v4122_v34, %v3294_v37  ;;  %v3649_v33 = vor.u32 %v4195_v27, %v3648_v26  ;;  %v3448_v34 = vld [vmem:[%s6087_s1 + $0x440] sm:$0xf]  ;;  %v4161_v37 = vld [vmem:[%s6087_s1 + $0x4c4] sm:$0xf0] }
  0x68   : > { %1243 = vmatpush.bf16.msra.mxu1 %v3165_v2  ;;  %v4110_v2 = vld [vmem:[%s6087_s1 + $0x334] sm:$0xf] }
  0x69   : > { %1260 = vmatpush.bf16.msra.mxu2 %v3229_v52  ;;  %v4080_v52 = vld [vmem:[%s6087_s1 + $0x244] sm:$0xf]  ;;  %v3249_v10 = vor.u32 %v4110_v2, %v3246_v3  ;;  %v3664_v2 = vld [vmem:[%s6087_s1 + $0x5f0] sm:$0xf]  ;;  %v4199_v3 = vld [vmem:[%s6087_s1 + $0x5f4] sm:$0xf0] }
  0x6a   : > { %1277 = vmatpush.bf16.msra.mxu3 %v3293_v6  ;;  %v3129_v63 = vor.u32 %v4080_v52, %v3126_v55  ;;  %v3193_v6 = vor.u32 %v4096_v60, %v3190_v61  ;;  %v4088_v52 = vld [vmem:[%s6087_s1 + $0x284] sm:$0xf]  ;;  %v3158_v55 = vld [vmem:[%s6087_s1 + $0x288] sm:$0xf0]  ;;  %v3097_v60 = vor.u32 %v4072_v40, %v3094_v41 }
  0x6b   : > { %1227 = vmatpush.bf16.msra.mxu0 %v3093_v18  ;;  %v3185_v18 = vor.u32 %v4094_v8, %v3182_v9  ;;  %v3286_v61 = vld [vmem:[%s6087_s1 + $0x388] sm:$0xf0]  ;;  %v3161_v8 = vor.u32 %v4088_v52, %v3158_v55  ;;  %v3504_v52 = vld [vmem:[%s6087_s1 + $0x4b0] sm:$0xf]  ;;  %v4159_v55 = vld [vmem:[%s6087_s1 + $0x4b4] sm:$0xf0] }
  0x6c   : > { %1244 = vmatpush.bf16.msra.mxu1 %v3157_v19  ;;  %v3313_v19 = vor.u32 %v4126_v12, %v3310_v13  ;;  %v3528_v12 = vld [vmem:[%s6087_s1 + $0x4e0] sm:$0xf] }
  0x6d   : > { %1261 = vmatpush.bf16.msra.mxu2 %v3221_v7  ;;  %v3321_v7 = vor.u32 %v4128_v0, %v3318_v1  ;;  %v3473_v1 = vor.u32 %v4151_v46, %v3472_v45 }
  0x6e   : > { %1278 = vmatpush.bf16.msra.mxu3 %v3285_v22  ;;  %1228 = vmatmul.bf16.vlgmr.msra.gmra.mxu0 %v4584_v48  ;;  %v3241_v22 = vor.u32 %v4108_v14, %v3238_v15  ;;  %v4165_v15 = vld [vmem:[%s6087_s1 + $0x4e4] sm:$0xf0] }
  0x6f   : > { %1288 = vmatpush.bf16.msrb.mxu0 %v3153_v23  ;;  %1245 = vmatmul.bf16.vlgmr.msra.gmra.mxu1 %v4595_v53  ;;  %v3113_v23 = vor.u32 %v4076_v16, %v3110_v17  ;;  %v3656_v16 = vld [vmem:[%s6087_s1 + $0x5e0] sm:$0xf]  ;;  %v4197_v17 = vld [vmem:[%s6087_s1 + $0x5e4] sm:$0xf0]  ;;  %v3529_v20 = vor.u32 %v4165_v15, %v3528_v12  ;;  %v4139_v15 = vld [vmem:[%s6087_s1 + $0x414] sm:$0xf0] }
  0x70   : > { %1305 = vmatpush.bf16.msrb.mxu1 %v3217_v24  ;;  %1262 = vmatmul.bf16.vlgmr.msra.gmra.mxu2 %v4597_v54  ;;  %v4124_v24 = vld [vmem:[%s6087_s1 + $0x3a4] sm:$0xf]  ;;  %v3657_v21 = vor.u32 %v4197_v17, %v3656_v16  ;;  %v3488_v16 = vld [vmem:[%s6087_s1 + $0x490] sm:$0xf]  ;;  %v4155_v17 = vld [vmem:[%s6087_s1 + $0x494] sm:$0xf0] }
  0x71   : > { %1322 = vmatpush.bf16.msrb.mxu2 %v3281_v11  ;;  %1279 = vmatmul.bf16.vlgmr.msra.gmra.mxu3 %v4605_v57  ;;  %v3121_v11 = vor.u32 %v4078_v4, %v3118_v5  ;;  %v3592_v4 = vld [vmem:[%s6087_s1 + $0x560] sm:$0xf]  ;;  %v4181_v5 = vld [vmem:[%s6087_s1 + $0x564] sm:$0xf0]  ;;  %v3489_v26 = vor.u32 %v4155_v17, %v3488_v16  ;;  %v4176_v16 = vld [vmem:[%s6087_s1 + $0x544] sm:$0xf] }
  0x72   : > { %1339 = vmatpush.bf16.msrb.mxu3 %v3345_v25  ;;  %v3302_v25 = vld [vmem:[%s6087_s1 + $0x3a8] sm:$0xf0]  ;;  %v3593_v13 = vor.u32 %v4181_v5, %v3592_v4  ;;  %v3496_v4 = vld [vmem:[%s6087_s1 + $0x4a0] sm:$0xf]  ;;  %v4157_v5 = vld [vmem:[%s6087_s1 + $0x4a4] sm:$0xf0] }
  0x73   : > { %1289 = vmatpush.bf16.msrb.mxu0 %v3145_v31  ;;  %v3305_v31 = vor.u32 %v4124_v24, %v3302_v25  ;;  %v3520_v24 = vld [vmem:[%s6087_s1 + $0x4d0] sm:$0xf]  ;;  %v4163_v25 = vld [vmem:[%s6087_s1 + $0x4d4] sm:$0xf0]  ;;  %v3497_v12 = vor.u32 %v4157_v5, %v3496_v4  ;;  %v4178_v4 = vld [vmem:[%s6087_s1 + $0x554] sm:$0xf] }
  0x74   : > { %1306 = vmatpush.bf16.msrb.mxu1 %v3209_v38  ;;  %v4104_v38 = vld [vmem:[%s6087_s1 + $0x304] sm:$0xf]  ;;  %v3521_v32 = vor.u32 %v4163_v25, %v3520_v24  ;;  %v3416_v24 = vld [vmem:[%s6087_s1 + $0x400] sm:$0xf]  ;;  %v4137_v25 = vld [vmem:[%s6087_s1 + $0x404] sm:$0xf0] }
  0x75   : > { %1323 = vmatpush.bf16.msrb.mxu2 %v3273_v28  ;;  %v4074_v28 = vld [vmem:[%s6087_s1 + $0x214] sm:$0xf]  ;;  %v3586_v5 = vld [vmem:[%s6087_s1 + $0x558] sm:$0xf0]  ;;  %v3578_v17 = vld [vmem:[%s6087_s1 + $0x548] sm:$0xf0] }
  0x76   : > { %1340 = vmatpush.bf16.msrb.mxu3 %v3337_v39  ;;  %v3105_v36 = vor.u32 %v4074_v28, %v3102_v29  ;;  %v3222_v39 = vld [vmem:[%s6087_s1 + $0x308] sm:$0xf0] }
  0x77   : > { %1290 = vmatpush.bf16.msrb.mxu0 %v3137_v43  ;;  %v4183_v43 = vld [vmem:[%s6087_s1 + $0x574] sm:$0xf0] }
  0x78   : > { %1307 = vmatpush.bf16.msrb.mxu1 %v3201_v58  ;;  %v4120_v58 = vld [vmem:[%s6087_s1 + $0x384] sm:$0xf] }
  0x79   : > { %1324 = vmatpush.bf16.msrb.mxu2 %v3265_v42  ;;  %v3600_v42 = vld [vmem:[%s6087_s1 + $0x570] sm:$0xf]  ;;  %v3289_v9 = vor.u32 %v4120_v58, %v3286_v61 }
  0x7a   : > { %1341 = vmatpush.bf16.msrb.mxu3 %v3329_v59  ;;  %v3225_v59 = vor.u32 %v4104_v38, %v3222_v39  ;;  %v3601_v0 = vor.u32 %v4183_v43, %v3600_v42  ;;  %v3640_v38 = vld [vmem:[%s6087_s1 + $0x5c0] sm:$0xf]  ;;  %v4193_v39 = vld [vmem:[%s6087_s1 + $0x5c4] sm:$0xf0]  ;;  %v3568_v42 = vld [vmem:[%s6087_s1 + $0x530] sm:$0xf] }
  0x7b   : > { %1291 = vmatpush.bf16.msrb.mxu0 %v3129_v63  ;;  %v4167_v63 = vld [vmem:[%s6087_s1 + $0x4f4] sm:$0xf0]  ;;  %v3641_v46 = vor.u32 %v4193_v39, %v3640_v38  ;;  %v3632_v58 = vld [vmem:[%s6087_s1 + $0x5b0] sm:$0xf]  ;;  %v3417_v38 = vor.u32 %v4137_v25, %v3416_v24  ;;  %v3538_v39 = vld [vmem:[%s6087_s1 + $0x4f8] sm:$0xf0] }
  0x7c   : > { %1308 = vmatpush.bf16.msrb.mxu1 %v3193_v6  ;;  %v3464_v6 = vld [vmem:[%s6087_s1 + $0x460] sm:$0xf]  ;;  %v4175_v43 = vld [vmem:[%s6087_s1 + $0x534] sm:$0xf0]  ;;  %v3514_v24 = vld [vmem:[%s6087_s1 + $0x4c8] sm:$0xf0] }
  0x7d   : > { %1325 = vmatpush.bf16.msrb.mxu2 %v3257_v62  ;;  %v3536_v62 = vld [vmem:[%s6087_s1 + $0x4f0] sm:$0xf]  ;;  %v4192_v25 = vld [vmem:[%s6087_s1 + $0x5c4] sm:$0xf] }
  0x7e   : > { %1342 = vmatpush.bf16.msrb.mxu3 %v3321_v7  ;;  %1233 = vmatmul.bf16.gmra.mxu0 %v4700_v44  ;;  %v4149_v7 = vld [vmem:[%s6087_s1 + $0x464] sm:$0xf0] }
  0x7f   : > { %1292 = vmatpush.bf16.msrb.mxu0 %v3121_v11  ;;  %1250 = vmatmul.bf16.gmra.mxu1 %v4711_v50  ;;  %v3665_v11 = vor.u32 %v4199_v3, %v3664_v2  ;;  %v3465_v14 = vor.u32 %v4149_v7, %v3464_v6  ;;  %v3432_v2 = vld [vmem:[%s6087_s1 + $0x420] sm:$0xf]  ;;  %v4141_v3 = vld [vmem:[%s6087_s1 + $0x424] sm:$0xf0] }
  0x80   : > { %1309 = vmatpush.bf16.msrb.mxu1 %v3185_v18  ;;  %1267 = vmatmul.bf16.gmra.mxu2 %v4713_v51  ;;  %v3584_v18 = vld [vmem:[%s6087_s1 + $0x550] sm:$0xf]  ;;  %v3624_v6 = vld [vmem:[%s6087_s1 + $0x5a0] sm:$0xf]  ;;  %v4189_v7 = vld [vmem:[%s6087_s1 + $0x5a4] sm:$0xf0] }
  0x81   : > { %1326 = vmatpush.bf16.msrb.mxu2 %v3249_v10  ;;  %1284 = vmatmul.bf16.gmra.mxu3 %v4721_v56  ;;  %v3537_v10 = vor.u32 %v4167_v63, %v3536_v62  ;;  %v3560_v62 = vld [vmem:[%s6087_s1 + $0x520] sm:$0xf]  ;;  %v4173_v63 = vld [vmem:[%s6087_s1 + $0x524] sm:$0xf0] }
  0x82   : > { %1343 = vmatpush.bf16.msrb.mxu3 %v3313_v19  ;;  %v4179_v19 = vld [vmem:[%s6087_s1 + $0x554] sm:$0xf0] }
  0x83   : > { %1293 = vmatpush.bf16.msrb.mxu0 %v3113_v23  ;;  %v4147_v23 = vld [vmem:[%s6087_s1 + $0x454] sm:$0xf0]  ;;  %v3585_v28 = vor.u32 %v4179_v19, %v3584_v18  ;;  %v3616_v18 = vld [vmem:[%s6087_s1 + $0x590] sm:$0xf] }
  0x84   : > { %1310 = vmatpush.bf16.msrb.mxu1 %v3177_v30  ;;  %v3576_v30 = vld [vmem:[%s6087_s1 + $0x540] sm:$0xf]  ;;  %v4187_v19 = vld [vmem:[%s6087_s1 + $0x594] sm:$0xf0] }
  0x85   : > { %1327 = vmatpush.bf16.msrb.mxu2 %v3241_v22  ;;  %v3456_v22 = vld [vmem:[%s6087_s1 + $0x450] sm:$0xf]  ;;  %v3617_v27 = vor.u32 %v4187_v19, %v3616_v18 }
  0x86   : > { %1344 = vmatpush.bf16.msrb.mxu3 %v3305_v31  ;;  %v3457_v29 = vor.u32 %v4147_v23, %v3456_v22  ;;  %v4177_v31 = vld [vmem:[%s6087_s1 + $0x544] sm:$0xf0] }
  0x87   : > { %1294 = vmatpush.bf16.msrb.mxu0 %v3105_v36  ;;  %v3512_v36 = vld [vmem:[%s6087_s1 + $0x4c0] sm:$0xf]  ;;  %v3577_v40 = vor.u32 %v4177_v31, %v3576_v30  ;;  %v4169_v23 = vld [vmem:[%s6087_s1 + $0x504] sm:$0xf0] }
  0x88   : > { %1311 = vmatpush.bf16.msrb.mxu1 %v3169_v47  ;;  %v3513_v45 = vor.u32 %v4161_v37, %v3512_v36  ;;  %v3440_v47 = vld [vmem:[%s6087_s1 + $0x430] sm:$0xf]  ;;  %v3608_v30 = vld [vmem:[%s6087_s1 + $0x580] sm:$0xf]  ;;  %v4185_v31 = vld [vmem:[%s6087_s1 + $0x584] sm:$0xf0] }
  0x89   : > { %1328 = vmatpush.bf16.msrb.mxu2 %v3233_v35  ;;  %v4145_v35 = vld [vmem:[%s6087_s1 + $0x444] sm:$0xf0]  ;;  %v4166_v36 = vld [vmem:[%s6087_s1 + $0x4f4] sm:$0xf] }
  0x8a   : > { %1345 = vmatpush.bf16.msrb.mxu3 %v3297_v49  ;;  %v3449_v41 = vor.u32 %v4145_v35, %v3448_v34  ;;  %v4143_v49 = vld [vmem:[%s6087_s1 + $0x434] sm:$0xf0]  ;;  %v4150_v34 = vld [vmem:[%s6087_s1 + $0x474] sm:$0xf]  ;;  %v3474_v35 = vld [vmem:[%s6087_s1 + $0x478] sm:$0xf0] }
  0x8b   : > { %1295 = vmatpush.bf16.msrb.mxu0 %v3097_v60  ;;  %v3569_v60 = vor.u32 %v4175_v43, %v3568_v42  ;;  %v3441_v61 = vor.u32 %v4143_v49, %v3440_v47  ;;  %v3609_v43 = vor.u32 %v4185_v31, %v3608_v30  ;;  %v4180_v47 = vld [vmem:[%s6087_s1 + $0x564] sm:$0xf]  ;;  %v3594_v49 = vld [vmem:[%s6087_s1 + $0x568] sm:$0xf0]  ;;  %v3570_v30 = vld [vmem:[%s6087_s1 + $0x538] sm:$0xf0] }
  0x8c   : > { %1312 = vmatpush.bf16.msrb.mxu1 %v3161_v8  ;;  %v3561_v8 = vor.u32 %v4173_v63, %v3560_v62  ;;  %v4196_v62 = vld [vmem:[%s6087_s1 + $0x5e4] sm:$0xf]  ;;  %v3658_v63 = vld [vmem:[%s6087_s1 + $0x5e8] sm:$0xf0] }
  0x8d   : > { %1329 = vmatpush.bf16.msrb.mxu2 %v3225_v59  ;;  %v4191_v59 = vld [vmem:[%s6087_s1 + $0x5b4] sm:$0xf0] }
  0x8e   : > { %1346 = vmatpush.bf16.msrb.mxu3 %v3289_v9  ;;  %1296 = vmatmul.bf16.vlgmr.msrb.gmra.mxu0 %v4584_v48  ;;  %v3433_v9 = vor.u32 %v4141_v3, %v3432_v2  ;;  %v3661_v3 = vor.u32 %v4196_v62, %v3658_v63  ;;  %v3498_v62 = vld [vmem:[%s6087_s1 + $0x4a8] sm:$0xf0]  ;;  %v4188_v63 = vld [vmem:[%s6087_s1 + $0x5a4] sm:$0xf] }
  0x8f   : > { %1784 = vmatpush.bf16.msra.mxu0 %v3473_v1  ;;  %1313 = vmatmul.bf16.vlgmr.msrb.gmra.mxu1 %v4595_v53  ;;  %v3633_v1 = vor.u32 %v4191_v59, %v3632_v58  ;;  %v4148_v58 = vld [vmem:[%s6087_s1 + $0x464] sm:$0xf]  ;;  %v3466_v59 = vld [vmem:[%s6087_s1 + $0x468] sm:$0xf0] }
  0x90   : > { %1802 = vmatpush.bf16.msra.mxu1 %v3537_v10  ;;  %1330 = vmatmul.bf16.vlgmr.msrb.gmra.mxu2 %v4597_v54  ;;  %v3552_v10 = vld [vmem:[%s6087_s1 + $0x510] sm:$0xf] }
  0x91   : > { %1820 = vmatpush.bf16.msra.mxu2 %v3601_v0  ;;  %1347 = vmatmul.bf16.vlgmr.msrb.gmra.mxu3 %v4605_v57  ;;  %v3505_v0 = vor.u32 %v4159_v55, %v3504_v52  ;;  %v3541_v52 = vor.u32 %v4166_v36, %v3538_v39  ;;  %v4158_v36 = vld [vmem:[%s6087_s1 + $0x4b4] sm:$0xf] }
  0x92   : > { %1838 = vmatpush.bf16.msra.mxu3 %v3665_v11  ;;  %v4171_v11 = vld [vmem:[%s6087_s1 + $0x514] sm:$0xf0] }
  0x93   : > { %1785 = vmatpush.bf16.msra.mxu0 %v3465_v14  ;;  %v3424_v14 = vld [vmem:[%s6087_s1 + $0x410] sm:$0xf] }
  0x94   : > { %1803 = vmatpush.bf16.msra.mxu1 %v3529_v20  ;;  %v3544_v20 = vld [vmem:[%s6087_s1 + $0x500] sm:$0xf]  ;;  %v3425_v22 = vor.u32 %v4139_v15, %v3424_v14  ;;  %v3589_v14 = vor.u32 %v4178_v4, %v3586_v5  ;;  %v3554_v4 = vld [vmem:[%s6087_s1 + $0x518] sm:$0xf0] }
  0x95   : > { %1821 = vmatpush.bf16.msra.mxu2 %v3593_v13  ;;  %v3625_v13 = vor.u32 %v4189_v7, %v3624_v6  ;;  %v3545_v37 = vor.u32 %v4169_v23, %v3544_v20  ;;  %v4146_v6 = vld [vmem:[%s6087_s1 + $0x454] sm:$0xf]  ;;  %v3458_v7 = vld [vmem:[%s6087_s1 + $0x458] sm:$0xf0]  ;;  %v4144_v20 = vld [vmem:[%s6087_s1 + $0x444] sm:$0xf] }
  0x96   : > { %1839 = vmatpush.bf16.msra.mxu3 %v3657_v21  ;;  %v3553_v21 = vor.u32 %v4171_v11, %v3552_v10  ;;  %v3522_v10 = vld [vmem:[%s6087_s1 + $0x4d8] sm:$0xf0]  ;;  %v4194_v11 = vld [vmem:[%s6087_s1 + $0x5d4] sm:$0xf]  ;;  %v3461_v15 = vor.u32 %v4146_v6, %v3458_v7 }
  0x97   : > { %1786 = vmatpush.bf16.msra.mxu0 %v3457_v29  ;;  %v4153_v29 = vld [vmem:[%s6087_s1 + $0x484] sm:$0xf0] }
  0x98   : > { %1804 = vmatpush.bf16.msra.mxu1 %v3521_v32  ;;  %v4182_v32 = vld [vmem:[%s6087_s1 + $0x574] sm:$0xf] }
  0x99   : > { %1822 = vmatpush.bf16.msra.mxu2 %v3585_v28  ;;  %v3480_v28 = vld [vmem:[%s6087_s1 + $0x480] sm:$0xf] }
  0x9a   : > { %1840 = vmatpush.bf16.msra.mxu3 %v3649_v33  ;;  %v3602_v33 = vld [vmem:[%s6087_s1 + $0x578] sm:$0xf0]  ;;  %v3481_v42 = vor.u32 %v4153_v29, %v3480_v28  ;;  %v4174_v29 = vld [vmem:[%s6087_s1 + $0x534] sm:$0xf] }
  0x9b   : > { %1787 = vmatpush.bf16.msra.mxu0 %v3449_v41  ;;  %v3666_v41 = vld [vmem:[%s6087_s1 + $0x5f8] sm:$0xf0] }
  0x9c   : > { %1805 = vmatpush.bf16.msra.mxu1 %v3513_v45  ;;  %v3605_v45 = vor.u32 %v4182_v32, %v3602_v33 }
  0x9d   : > { %1823 = vmatpush.bf16.msra.mxu2 %v3577_v40  ;;  %v4198_v40 = vld [vmem:[%s6087_s1 + $0x5f4] sm:$0xf] }
  0x9e   : > { %1841 = vmatpush.bf16.msra.mxu3 %v3641_v46  ;;  %1301 = vmatmul.bf16.gmra.mxu0 %v4700_v44  ;;  %v3477_v46 = vor.u32 %v4150_v34, %v3474_v35  ;;  %v3669_v55 = vor.u32 %v4198_v40, %v3666_v41  ;;  %v4142_v34 = vld [vmem:[%s6087_s1 + $0x434] sm:$0xf]  ;;  %v3442_v35 = vld [vmem:[%s6087_s1 + $0x438] sm:$0xf0] }
  0x9f   : > { %1788 = vmatpush.bf16.msra.mxu0 %v3441_v61  ;;  %1318 = vmatmul.bf16.gmra.mxu1 %v4711_v50  ;;  %v3530_v61 = vld [vmem:[%s6087_s1 + $0x4e8] sm:$0xf0]  ;;  %v3506_v40 = vld [vmem:[%s6087_s1 + $0x4b8] sm:$0xf0]  ;;  %v4190_v41 = vld [vmem:[%s6087_s1 + $0x5b4] sm:$0xf] }
  0xa0   : > { %1806 = vmatpush.bf16.msra.mxu1 %v3505_v0  ;;  %1335 = vmatmul.bf16.gmra.mxu2 %v4713_v51  ;;  %v3597_v0 = vor.u32 %v4180_v47, %v3594_v49  ;;  %v3573_v47 = vor.u32 %v4174_v29, %v3570_v30  ;;  %v3445_v49 = vor.u32 %v4142_v34, %v3442_v35  ;;  %v3924_v29 = vld [vmem:[%s6087_s1 + $0x770] sm:$0xf]  ;;  %v4247_v30 = vld [vmem:[%s6087_s1 + $0x774] sm:$0xf0] }
  0xa1   : > { %1824 = vmatpush.bf16.msra.mxu2 %v3569_v60  ;;  %1352 = vmatmul.bf16.gmra.mxu3 %v4721_v56  ;;  %v4164_v60 = vld [vmem:[%s6087_s1 + $0x4e4] sm:$0xf] }
  0xa2   : > { %1842 = vmatpush.bf16.msra.mxu3 %v3633_v1  ;;  %v3469_v1 = vor.u32 %v4148_v58, %v3466_v59  ;;  %v3533_v2 = vor.u32 %v4164_v60, %v3530_v61  ;;  %v3434_v58 = vld [vmem:[%s6087_s1 + $0x428] sm:$0xf0]  ;;  %v3509_v59 = vor.u32 %v4158_v36, %v3506_v40  ;;  %v4156_v61 = vld [vmem:[%s6087_s1 + $0x4a4] sm:$0xf]  ;;  %v4231_v36 = vld [vmem:[%s6087_s1 + $0x6f4] sm:$0xf0] }
  0xa3   : > { %1789 = vmatpush.bf16.msra.mxu0 %v3433_v9  ;;  %v3501_v6 = vor.u32 %v4156_v61, %v3498_v62  ;;  %v3788_v62 = vld [vmem:[%s6087_s1 + $0x660] sm:$0xf] }
  0xa4   : > { %1807 = vmatpush.bf16.msra.mxu1 %v3497_v12  ;;  %v3650_v12 = vld [vmem:[%s6087_s1 + $0x5d8] sm:$0xf0] }
  0xa5   : > { %1825 = vmatpush.bf16.msra.mxu2 %v3561_v8  ;;  %v4162_v8 = vld [vmem:[%s6087_s1 + $0x4d4] sm:$0xf]  ;;  %v3653_v19 = vor.u32 %v4194_v11, %v3650_v12 }
  0xa6   : > { %1843 = vmatpush.bf16.msra.mxu3 %v3625_v13  ;;  %v3525_v18 = vor.u32 %v4162_v8, %v3522_v10  ;;  %v4138_v8 = vld [vmem:[%s6087_s1 + $0x414] sm:$0xf] }
  0xa7   : > { %1790 = vmatpush.bf16.msra.mxu0 %v3425_v22  ;;  %v4160_v22 = vld [vmem:[%s6087_s1 + $0x4c4] sm:$0xf]  ;;  %v4154_v10 = vld [vmem:[%s6087_s1 + $0x494] sm:$0xf] }
  0xa8   : > { %1808 = vmatpush.bf16.msra.mxu1 %v3489_v26  ;;  %v3642_v26 = vld [vmem:[%s6087_s1 + $0x5c8] sm:$0xf0]  ;;  %v3517_v32 = vor.u32 %v4160_v22, %v3514_v24 }
  0xa9   : > { %1826 = vmatpush.bf16.msra.mxu2 %v3553_v21  ;;  %v3450_v21 = vld [vmem:[%s6087_s1 + $0x448] sm:$0xf0]  ;;  %v3645_v33 = vor.u32 %v4192_v25, %v3642_v26  ;;  %v4152_v25 = vld [vmem:[%s6087_s1 + $0x484] sm:$0xf] }
  0xaa   : > { %1844 = vmatpush.bf16.msra.mxu3 %v3617_v27  ;;  %v3581_v27 = vor.u32 %v4176_v16, %v3578_v17  ;;  %v3453_v28 = vor.u32 %v4144_v20, %v3450_v21  ;;  %v4168_v17 = vld [vmem:[%s6087_s1 + $0x504] sm:$0xf]  ;;  %v3546_v20 = vld [vmem:[%s6087_s1 + $0x508] sm:$0xf0] }
  0xab   : > { %1791 = vmatpush.bf16.msra.mxu0 %v3417_v38  ;;  %v676_v9 = vpop.f32.mrf.mxu0  ;;  %v4136_v21 = vld [vmem:[%s6087_s1 + $0x404] sm:$0xf]  ;;  %v3418_v22 = vld [vmem:[%s6087_s1 + $0x408] sm:$0xf0]  ;;  %v3549_v34 = vor.u32 %v4168_v17, %v3546_v20  ;;  %v4227_v17 = vld [vmem:[%s6087_s1 + $0x6d4] sm:$0xf0] }
  0xac   : > { %1809 = vmatpush.bf16.msra.mxu1 %v3481_v42  ;;  %v693_v13 = vpop.f32.mrf.mxu1  ;;  %v3634_v42 = vld [vmem:[%s6087_s1 + $0x5b8] sm:$0xf0]  ;;  %v3482_v26 = vld [vmem:[%s6087_s1 + $0x488] sm:$0xf0]  ;;  %v3421_v35 = vor.u32 %v4136_v21, %v3418_v22 }
  0xad   : > { %1827 = vmatpush.bf16.msra.mxu2 %v3545_v37  ;;  %v694_v23 = vadd.f32 %v693_v13, %v676_v9  ;;  %v3637_v60 = vor.u32 %v4190_v41, %v3634_v42  ;;  %v3426_v9 = vld [vmem:[%s6087_s1 + $0x418] sm:$0xf0]  ;;  %v3485_v41 = vor.u32 %v4152_v25, %v3482_v26  ;;  %v4241_v25 = vld [vmem:[%s6087_s1 + $0x744] sm:$0xf0] }
  0xae   : > { %1845 = vmatpush.bf16.msra.mxu3 %v3609_v43  ;;  %1792 = vmatmul.bf16.vlgmr.msra.gmra.mxu0 %v4584_v48  ;;  %v3490_v13 = vld [vmem:[%s6087_s1 + $0x498] sm:$0xf0] }
  0xaf   : > { %1856 = vmatpush.bf16.msrb.mxu0 %v3477_v46  ;;  %1810 = vmatmul.bf16.vlgmr.msra.gmra.mxu1 %v4595_v53 }
  0xb0   : > { %1874 = vmatpush.bf16.msrb.mxu1 %v3541_v52  ;;  %1828 = vmatmul.bf16.vlgmr.msra.gmra.mxu2 %v4597_v54  ;;  %v3562_v52 = vld [vmem:[%s6087_s1 + $0x528] sm:$0xf0] }
  0xb1   : > { %1892 = vmatpush.bf16.msrb.mxu2 %v3605_v45  ;;  %1846 = vmatmul.bf16.vlgmr.msra.gmra.mxu3 %v4605_v57  ;;  %v4172_v45 = vld [vmem:[%s6087_s1 + $0x524] sm:$0xf] }
  0xb2   : > { %1910 = vmatpush.bf16.msrb.mxu3 %v3669_v55  ;;  %v4140_v55 = vld [vmem:[%s6087_s1 + $0x424] sm:$0xf] }
  0xb3   : > { %1857 = vmatpush.bf16.msrb.mxu0 %v3469_v1  ;;  %v710_v31 = vpop.f32.mrf.mxu2  ;;  %v5502_v39 = vpop.f32.mrf.mxu0  ;;  %v3565_v1 = vor.u32 %v4172_v45, %v3562_v52 }
  0xb4   : > { %1875 = vmatpush.bf16.msrb.mxu1 %v3533_v2  ;;  %v711_v37 = vadd.f32 %v710_v31, %v694_v23  ;;  %v727_v38 = vpop.f32.mrf.mxu3  ;;  %v5513_v43 = vpop.f32.mrf.mxu1  ;;  %v3437_v2 = vor.u32 %v4140_v55, %v3434_v58  ;;  %v3493_v23 = vor.u32 %v4154_v10, %v3490_v13  ;;  %v3796_v31 = vld [vmem:[%s6087_s1 + $0x670] sm:$0xf]  ;;  %v3916_v55 = vld [vmem:[%s6087_s1 + $0x760] sm:$0xf]  ;;  %v4245_v58 = vld [vmem:[%s6087_s1 + $0x764] sm:$0xf0] }
  0xb5   : > { %1893 = vmatpush.bf16.msrb.mxu2 %v3597_v0  ;;  %v3626_v0 = vld [vmem:[%s6087_s1 + $0x5a8] sm:$0xf0]  ;;  %v4243_v10 = vld [vmem:[%s6087_s1 + $0x754] sm:$0xf0]  ;;  %v3780_v13 = vld [vmem:[%s6087_s1 + $0x650] sm:$0xf] }
  0xb6   : > { %1911 = vmatpush.bf16.msrb.mxu3 %v3661_v3  ;;  %v5518_v46 = vadd.f32 %v727_v38, %v711_v37  ;;  %v4170_v3 = vld [vmem:[%s6087_s1 + $0x514] sm:$0xf]  ;;  %v3629_v7 = vor.u32 %v4188_v63, %v3626_v0  ;;  %v3988_v37 = vld [vmem:[%s6087_s1 + $0x7f0] sm:$0xf]  ;;  %v4263_v38 = vld [vmem:[%s6087_s1 + $0x7f4] sm:$0xf0] }
  0xb7   : > { %1858 = vmatpush.bf16.msrb.mxu0 %v3461_v15  ;;  %v3618_v15 = vld [vmem:[%s6087_s1 + $0x598] sm:$0xf0]  ;;  %v3989_v61 = vor.u32 %v4263_v38, %v3988_v37  ;;  %v4213_v63 = vld [vmem:[%s6087_s1 + $0x664] sm:$0xf0]  ;;  %v3852_v0 = vld [vmem:[%s6087_s1 + $0x6e0] sm:$0xf] }
  0xb8   : > { %1876 = vmatpush.bf16.msrb.mxu1 %v3525_v18  ;;  %810 = vst.sshfl [vmem:[#allocation1] sm:$0xff pattern:$0x75316420] %v5518_v46  ;;  %v3557_v18 = vor.u32 %v4170_v3, %v3554_v4  ;;  %v4261_v3 = vld [vmem:[%s6087_s1 + $0x7e4] sm:$0xf0]  ;;  %v3917_v4 = vor.u32 %v4245_v58, %v3916_v55 }
  0xb9   : > { %1894 = vmatpush.bf16.msrb.mxu2 %v3589_v14  ;;  %v4186_v14 = vld [vmem:[%s6087_s1 + $0x594] sm:$0xf]  ;;  %v3892_v37 = vld [vmem:[%s6087_s1 + $0x730] sm:$0xf]  ;;  %v4239_v38 = vld [vmem:[%s6087_s1 + $0x734] sm:$0xf0] }
  0xba   : > { %1912 = vmatpush.bf16.msrb.mxu3 %v3653_v19  ;;  %v3429_v19 = vor.u32 %v4138_v8, %v3426_v9  ;;  %v3621_v24 = vor.u32 %v4186_v14, %v3618_v15  ;;  %v3908_v9 = vld [vmem:[%s6087_s1 + $0x750] sm:$0xf]  ;;  %v4211_v14 = vld [vmem:[%s6087_s1 + $0x654] sm:$0xf0] }
  0xbb   : > { %1859 = vmatpush.bf16.msrb.mxu0 %v3453_v28  ;;  %v5548_v5 = vpop.f32.mrf.mxu2  ;;  %v681_v12 = vpop.f32.mrf.mxu0  ;;  %v3610_v28 = vld [vmem:[%s6087_s1 + $0x588] sm:$0xf0]  ;;  %v3844_v15 = vld [vmem:[%s6087_s1 + $0x6d0] sm:$0xf]  ;;  %v3909_v22 = vor.u32 %v4243_v10, %v3908_v9  ;;  %v4223_v55 = vld [vmem:[%s6087_s1 + $0x6b4] sm:$0xf0] }
  0xbc   : > { %1877 = vmatpush.bf16.msrb.mxu1 %v3517_v32  ;;  %v5559_v11 = vpop.f32.mrf.mxu3  ;;  %v698_v16 = vpop.f32.mrf.mxu1  ;;  %v4215_v32 = vld [vmem:[%s6087_s1 + $0x674] sm:$0xf0]  ;;  %v3845_v26 = vor.u32 %v4227_v17, %v3844_v15  ;;  %v3956_v58 = vld [vmem:[%s6087_s1 + $0x7b0] sm:$0xf]  ;;  %v3820_v9 = vld [vmem:[%s6087_s1 + $0x6a0] sm:$0xf] }
  0xbd   : > { %1895 = vmatpush.bf16.msrb.mxu2 %v3581_v27  ;;  %v4184_v27 = vld [vmem:[%s6087_s1 + $0x584] sm:$0xf]  ;;  %v3797_v52 = vor.u32 %v4215_v32, %v3796_v31  ;;  %v4225_v31 = vld [vmem:[%s6087_s1 + $0x6c4] sm:$0xf0]  ;;  %v3964_v32 = vld [vmem:[%s6087_s1 + $0x7c0] sm:$0xf] }
  0xbe   : > { %1913 = vmatpush.bf16.msrb.mxu3 %v3645_v33  ;;  %1797 = vmatmul.bf16.gmra.mxu0 %v4700_v44  ;;  %v3860_v33 = vld [vmem:[%s6087_s1 + $0x6f0] sm:$0xf]  ;;  %v3613_v42 = vor.u32 %v4184_v27, %v3610_v28  ;;  %v3772_v28 = vld [vmem:[%s6087_s1 + $0x640] sm:$0xf]  ;;  %v4221_v10 = vld [vmem:[%s6087_s1 + $0x6a4] sm:$0xf0] }
  0xbf   : > { %1860 = vmatpush.bf16.msrb.mxu0 %v3445_v49  ;;  %1815 = vmatmul.bf16.gmra.mxu1 %v4711_v50  ;;  %v3925_v49 = vor.u32 %v4247_v30, %v3924_v29  ;;  %v4209_v29 = vld [vmem:[%s6087_s1 + $0x644] sm:$0xf0]  ;;  %v3836_v30 = vld [vmem:[%s6087_s1 + $0x6c0] sm:$0xf] }
  0xc0   : > { %1878 = vmatpush.bf16.msrb.mxu1 %v3509_v59  ;;  %1833 = vmatmul.bf16.gmra.mxu2 %v4713_v51 }
  0xc1   : > { %1896 = vmatpush.bf16.msrb.mxu2 %v3573_v47  ;;  %1851 = vmatmul.bf16.gmra.mxu3 %v4721_v56 }
  0xc2   : > { %1914 = vmatpush.bf16.msrb.mxu3 %v3637_v60  ;;  %v3861_v60 = vor.u32 %v4231_v36, %v3860_v33  ;;  %v4257_v33 = vld [vmem:[%s6087_s1 + $0x7c4] sm:$0xf0]  ;;  %v3773_v36 = vor.u32 %v4209_v29, %v3772_v28  ;;  %v4251_v28 = vld [vmem:[%s6087_s1 + $0x794] sm:$0xf0] }
  0xc3   : > { %1861 = vmatpush.bf16.msrb.mxu0 %v3437_v2  ;;  %v715_v40 = vpop.f32.mrf.mxu2  ;;  %v682_v47 = vpop.f32.mrf.mxu0  ;;  %v3980_v2 = vld [vmem:[%s6087_s1 + $0x7e0] sm:$0xf] }
  0xc4   : > { %1879 = vmatpush.bf16.msrb.mxu1 %v3501_v6  ;;  %v732_v45 = vpop.f32.mrf.mxu3  ;;  %v699_v59 = vpop.f32.mrf.mxu1  ;;  %v3789_v6 = vor.u32 %v4213_v63, %v3788_v62  ;;  %v3981_v8 = vor.u32 %v4261_v3, %v3980_v2  ;;  %v3837_v40 = vor.u32 %v4225_v31, %v3836_v30  ;;  %v3828_v47 = vld [vmem:[%s6087_s1 + $0x6b0] sm:$0xf]  ;;  %v3893_v63 = vor.u32 %v4239_v38, %v3892_v37  ;;  %v4237_v2 = vld [vmem:[%s6087_s1 + $0x724] sm:$0xf0]  ;;  %v3756_v3 = vld [vmem:[%s6087_s1 + $0x620] sm:$0xf] }
  0xc5   : > { %1897 = vmatpush.bf16.msrb.mxu2 %v3565_v1  ;;  %v4229_v1 = vld [vmem:[%s6087_s1 + $0x6e4] sm:$0xf0]  ;;  %v4207_v45 = vld [vmem:[%s6087_s1 + $0x634] sm:$0xf0]  ;;  %v3804_v38 = vld [vmem:[%s6087_s1 + $0x680] sm:$0xf] }
  0xc6   : > { %1915 = vmatpush.bf16.msrb.mxu3 %v3629_v7  ;;  %v3853_v7 = vor.u32 %v4229_v1, %v3852_v0  ;;  %v4255_v59 = vld [vmem:[%s6087_s1 + $0x7b4] sm:$0xf0]  ;;  %v3884_v1 = vld [vmem:[%s6087_s1 + $0x720] sm:$0xf] }
  0xc7   : > { %1862 = vmatpush.bf16.msrb.mxu0 %v3429_v19  ;;  %v4259_v19 = vld [vmem:[%s6087_s1 + $0x7d4] sm:$0xf0] }
  0xc8   : > { %1880 = vmatpush.bf16.msrb.mxu1 %v3493_v23  ;;  %v3781_v23 = vor.u32 %v4211_v14, %v3780_v13  ;;  %v4253_v13 = vld [vmem:[%s6087_s1 + $0x7a4] sm:$0xf0]  ;;  %v696_v14 = vadd.f32 %v5513_v43, %v5502_v39  ;;  %v3748_v39 = vld [vmem:[%s6087_s1 + $0x610] sm:$0xf] }
  0xc9   : > { %1898 = vmatpush.bf16.msrb.mxu2 %v3557_v18  ;;  %v3972_v18 = vld [vmem:[%s6087_s1 + $0x7d0] sm:$0xf] }
  0xca   : > { %1916 = vmatpush.bf16.msrb.mxu3 %v3621_v24  ;;  %v3900_v24 = vld [vmem:[%s6087_s1 + $0x740] sm:$0xf]  ;;  %v3973_v27 = vor.u32 %v4259_v19, %v3972_v18  ;;  %v3821_v18 = vor.u32 %v4221_v10, %v3820_v9  ;;  %v3876_v19 = vld [vmem:[%s6087_s1 + $0x710] sm:$0xf]  ;;  %v713_v29 = vadd.f32 %v5548_v5, %v696_v14  ;;  %v4201_v5 = vld [vmem:[%s6087_s1 + $0x604] sm:$0xf0] }
  0xcb   : > { %1863 = vmatpush.bf16.msrb.mxu0 %v3421_v35  ;;  %v716_v12 = vpop.f32.mrf.mxu2  ;;  %v744_v20 = vpop.f32.mrf.mxu0  ;;  %v3901_v35 = vor.u32 %v4241_v25, %v3900_v24  ;;  %v3812_v24 = vld [vmem:[%s6087_s1 + $0x690] sm:$0xf]  ;;  %v4219_v25 = vld [vmem:[%s6087_s1 + $0x694] sm:$0xf0]  ;;  %v4244_v10 = vld [vmem:[%s6087_s1 + $0x764] sm:$0xf] }
  0xcc   : > { %1881 = vmatpush.bf16.msrb.mxu1 %v3485_v41  ;;  %v733_v16 = vpop.f32.mrf.mxu3  ;;  %v761_v21 = vpop.f32.mrf.mxu1  ;;  %v3965_v41 = vor.u32 %v4257_v33, %v3964_v32  ;;  %v3948_v12 = vld [vmem:[%s6087_s1 + $0x7a0] sm:$0xf] }
  0xcd   : > { %1899 = vmatpush.bf16.msrb.mxu2 %v3549_v34  ;;  %v762_v34 = vadd.f32 %v761_v21, %v744_v20  ;;  %v3885_v16 = vor.u32 %v4237_v2, %v3884_v1  ;;  %v4235_v20 = vld [vmem:[%s6087_s1 + $0x714] sm:$0xf0]  ;;  %v3868_v33 = vld [vmem:[%s6087_s1 + $0x700] sm:$0xf] }
  0xce   : > { %1917 = vmatpush.bf16.msrb.mxu3 %v3613_v42  ;;  %1864 = vmatmul.bf16.vlgmr.msrb.gmra.mxu0 %v4584_v48  ;;  %v3764_v42 = vld [vmem:[%s6087_s1 + $0x630] sm:$0xf] }
  0xcf   : > { %2357 = vmatpush.bf16.msra.mxu0 %v3797_v52  ;;  %1882 = vmatmul.bf16.vlgmr.msrb.gmra.mxu1 %v4595_v53  ;;  %v3765_v0 = vor.u32 %v4207_v45, %v3764_v42  ;;  %v3813_v42 = vor.u32 %v4219_v25, %v3812_v24 }
  0xd0   : > { %2375 = vmatpush.bf16.msra.mxu1 %v3861_v60  ;;  %1900 = vmatmul.bf16.vlgmr.msrb.gmra.mxu2 %v4597_v54 }
  0xd1   : > { %2393 = vmatpush.bf16.msra.mxu2 %v3925_v49  ;;  %1918 = vmatmul.bf16.vlgmr.msrb.gmra.mxu3 %v4605_v57 }
  0xd2   : > { %2411 = vmatpush.bf16.msra.mxu3 %v3989_v61 }
  0xd3   : > { %2358 = vmatpush.bf16.msra.mxu0 %v3789_v6  ;;  %v778_v49 = vpop.f32.mrf.mxu2  ;;  %v746_v61 = vpop.f32.mrf.mxu0  ;;  %v3829_v6 = vor.u32 %v4223_v55, %v3828_v47  ;;  %v3932_v47 = vld [vmem:[%s6087_s1 + $0x780] sm:$0xf]  ;;  %v3926_v55 = vld [vmem:[%s6087_s1 + $0x778] sm:$0xf0] }
  0xd4   : > { %2376 = vmatpush.bf16.msra.mxu1 %v3853_v7  ;;  %v795_v52 = vpop.f32.mrf.mxu3  ;;  %v779_v60 = vadd.f32 %v778_v49, %v762_v34  ;;  %v763_v62 = vpop.f32.mrf.mxu1  ;;  %v3957_v7 = vor.u32 %v4255_v59, %v3956_v58  ;;  %v4233_v34 = vld [vmem:[%s6087_s1 + $0x704] sm:$0xf0]  ;;  %v4214_v58 = vld [vmem:[%s6087_s1 + $0x674] sm:$0xf]  ;;  %v3798_v59 = vld [vmem:[%s6087_s1 + $0x678] sm:$0xf0] }
  0xd5   : > { %2394 = vmatpush.bf16.msra.mxu2 %v3917_v4  ;;  %v764_v21 = vadd.f32 %v763_v62, %v746_v61  ;;  %v4249_v49 = vld [vmem:[%s6087_s1 + $0x784] sm:$0xf0]  ;;  %v4230_v62 = vld [vmem:[%s6087_s1 + $0x6f4] sm:$0xf] }
  0xd6   : > { %2412 = vmatpush.bf16.msra.mxu3 %v3981_v8  ;;  %v796_v4 = vadd.f32 %v795_v52, %v779_v60  ;;  %v4205_v8 = vld [vmem:[%s6087_s1 + $0x624] sm:$0xf0]  ;;  %v4246_v52 = vld [vmem:[%s6087_s1 + $0x774] sm:$0xf]  ;;  %v730_v60 = vadd.f32 %v5559_v11, %v713_v29  ;;  %v3933_v9 = vor.u32 %v4249_v49, %v3932_v47 }
  0xd7   : > { %2359 = vmatpush.bf16.msra.mxu0 %v3781_v23  ;;  %v3757_v17 = vor.u32 %v4205_v8, %v3756_v3  ;;  %v4203_v23 = vld [vmem:[%s6087_s1 + $0x614] sm:$0xf0]  ;;  %v4262_v11 = vld [vmem:[%s6087_s1 + $0x7f4] sm:$0xf]  ;;  %v3990_v3 = vld [vmem:[%s6087_s1 + $0x7f8] sm:$0xf0] }
  0xd8   : > { %2377 = vmatpush.bf16.msra.mxu1 %v3845_v26  ;;  %v805_v15 = vrot.slane %v796_v4, 4  ;;  %811 = vst.sshfl [vmem:[#allocation1 + $0x8] sm:$0xff pattern:$0x75316420] %v796_v4  ;;  %v3749_v37 = vor.u32 %v4203_v23, %v3748_v39  ;;  %v4228_v23 = vld [vmem:[%s6087_s1 + $0x6e4] sm:$0xf] }
  0xd9   : > { %2395 = vmatpush.bf16.msra.mxu2 %v3909_v22  ;;  %v3949_v22 = vor.u32 %v4253_v13, %v3948_v12 }
  0xda   : > { %2413 = vmatpush.bf16.msra.mxu3 %v3973_v27  ;;  %v807_v43 = vsel %vm806_vm0, %v5518_v46, %v805_v15  ;;  %v3940_v46 = vld [vmem:[%s6087_s1 + $0x790] sm:$0xf] }
  0xdb   : > { %2360 = vmatpush.bf16.msra.mxu0 %v3773_v36  ;;  %809 = vst [vmem:[#allocation2 + $0x10] sm:$0x77] %v807_v43  ;;  %v780_v26 = vpop.f32.mrf.mxu2  ;;  %v749_v31 = vpop.f32.mrf.mxu0  ;;  %v3877_v36 = vor.u32 %v4235_v20, %v3876_v19  ;;  %v3941_v45 = vor.u32 %v4251_v28, %v3940_v46  ;;  %v4212_v19 = vld [vmem:[%s6087_s1 + $0x664] sm:$0xf]  ;;  %v3982_v46 = vld [vmem:[%s6087_s1 + $0x7e8] sm:$0xf0] }
  0xdc   : > { %2378 = vmatpush.bf16.msra.mxu1 %v3837_v40  ;;  %v797_v27 = vpop.f32.mrf.mxu3  ;;  %v781_v30 = vadd.f32 %v780_v26, %v764_v21  ;;  %v766_v32 = vpop.f32.mrf.mxu1  ;;  %v4217_v40 = vld [vmem:[%s6087_s1 + $0x684] sm:$0xf0]  ;;  %v3993_v21 = vor.u32 %v4262_v11, %v3990_v3  ;;  %v3854_v26 = vld [vmem:[%s6087_s1 + $0x6e8] sm:$0xf0] }
  0xdd   : > { %2396 = vmatpush.bf16.msra.mxu2 %v3901_v35  ;;  %v3740_v35 = vld [vmem:[%s6087_s1 + $0x600] sm:$0xf]  ;;  %v3805_v2 = vor.u32 %v4217_v40, %v3804_v38  ;;  %v4242_v32 = vld [vmem:[%s6087_s1 + $0x754] sm:$0xf]  ;;  %v3846_v38 = vld [vmem:[%s6087_s1 + $0x6d8] sm:$0xf0] }
  0xde   : > { %2414 = vmatpush.bf16.msra.mxu3 %v3965_v41  ;;  %v798_v41 = vadd.f32 %v797_v27, %v781_v30  ;;  %1869 = vmatmul.bf16.gmra.mxu0 %v4700_v44  ;;  %v3741_v1 = vor.u32 %v4201_v5, %v3740_v35  ;;  %v4260_v27 = vld [vmem:[%s6087_s1 + $0x7e4] sm:$0xf]  ;;  %v3857_v30 = vor.u32 %v4228_v23, %v3854_v26  ;;  %v3782_v35 = vld [vmem:[%s6087_s1 + $0x658] sm:$0xf0]  ;;  %v4258_v40 = vld [vmem:[%s6087_s1 + $0x7d4] sm:$0xf] }
  0xdf   : > { %2361 = vmatpush.bf16.msra.mxu0 %v3765_v0  ;;  %1887 = vmatmul.bf16.gmra.mxu1 %v4711_v50  ;;  %v3869_v0 = vor.u32 %v4233_v34, %v3868_v33  ;;  %v813_v4 = vld [vmem:[#allocation1 + $0x1] ss:$2 sm:$0xff]  ;;  %v3985_v31 = vor.u32 %v4260_v27, %v3982_v46  ;;  %v3910_v33 = vld [vmem:[%s6087_s1 + $0x758] sm:$0xf0]  ;;  %v4210_v34 = vld [vmem:[%s6087_s1 + $0x654] sm:$0xf] }
  0xe0   : > { %2379 = vmatpush.bf16.msra.mxu1 %v3829_v6  ;;  %v821_v61 = vrot.slane %v798_v41, 4  ;;  %1905 = vmatmul.bf16.gmra.mxu2 %v4713_v51  ;;  %v3023_v24 = vrot.slane %v813_v4, 9  ;;  %v3974_v41 = vld [vmem:[%s6087_s1 + $0x7d8] sm:$0xf0]  ;;  %v3913_v47 = vor.u32 %v4242_v32, %v3910_v33  ;;  %v3785_v49 = vor.u32 %v4210_v34, %v3782_v35  ;;  %v4238_v4 = vld [vmem:[%s6087_s1 + $0x734] sm:$0xf] }
  0xe1   : > { %2397 = vmatpush.bf16.msra.mxu2 %v3893_v63  ;;  %1923 = vmatmul.bf16.gmra.mxu3 %v4721_v56  ;;  %v3862_v63 = vld [vmem:[%s6087_s1 + $0x6f8] sm:$0xf0]  ;;  %v3886_v23 = vld [vmem:[%s6087_s1 + $0x728] sm:$0xf0]  ;;  %v4204_v27 = vld [vmem:[%s6087_s1 + $0x624] sm:$0xf] }
  0xe2   : > { %2415 = vmatpush.bf16.msra.mxu3 %v3957_v7  ;;  %v822_v6 = vsel %vm806_vm0, %v730_v60, %v821_v61  ;;  %v823_v7 = vsel %vm806_vm0, %v821_v61, %v730_v60  ;;  %v3865_v43 = vor.u32 %v4230_v62, %v3862_v63  ;;  %818 = vst [vmem:[#allocation2] sm:$0x77] %v3023_v24  ;;  %v4208_v60 = vld [vmem:[%s6087_s1 + $0x644] sm:$0xf]  ;;  %v3774_v61 = vld [vmem:[%s6087_s1 + $0x648] sm:$0xf0] }
  0xe3   : > { %2362 = vmatpush.bf16.msra.mxu0 %v3757_v17  ;;  %v3024_v12 = vrot.slane %v822_v6, 10  ;;  %v3025_v13 = vrot.slane %v823_v7, 10  ;;  %v783_v14 = vpop.f32.mrf.mxu2  ;;  %v3801_v17 = vor.u32 %v4214_v58, %v3798_v59  ;;  %v750_v20 = vpop.f32.mrf.mxu0  ;;  %v3977_v59 = vor.u32 %v4258_v40, %v3974_v41  ;;  %v4224_v62 = vld [vmem:[%s6087_s1 + $0x6c4] sm:$0xf]  ;;  %v3838_v63 = vld [vmem:[%s6087_s1 + $0x6c8] sm:$0xf0] }
  0xe4   : > { %2380 = vmatpush.bf16.msra.mxu1 %v3821_v18  ;;  %v800_v15 = vpop.f32.mrf.mxu3  ;;  %v3918_v18 = vld [vmem:[%s6087_s1 + $0x768] sm:$0xf0]  ;;  %v767_v39 = vpop.f32.mrf.mxu1  ;;  %v3777_v3 = vor.u32 %v4208_v60, %v3774_v61  ;;  %v3894_v6 = vld [vmem:[%s6087_s1 + $0x738] sm:$0xf0]  ;;  %v3841_v7 = vor.u32 %v4224_v62, %v3838_v63  ;;  %v4234_v34 = vld [vmem:[%s6087_s1 + $0x714] sm:$0xf] }
  0xe5   : > { %2398 = vmatpush.bf16.msra.mxu2 %v3885_v16  ;;  %v3929_v16 = vor.u32 %v4246_v52, %v3926_v55  ;;  %v831_v25 = vsel %vm5832_vm3, %v3024_v12, %v3025_v13  ;;  %v3921_v28 = vor.u32 %v4244_v10, %v3918_v18  ;;  %v4240_v52 = vld [vmem:[%s6087_s1 + $0x744] sm:$0xf]  ;;  %v3902_v55 = vld [vmem:[%s6087_s1 + $0x748] sm:$0xf0]  ;;  %v4206_v10 = vld [vmem:[%s6087_s1 + $0x634] sm:$0xf] }
  0xe6   : > { %2416 = vmatpush.bf16.msra.mxu3 %v3949_v22  ;;  %v3790_v22 = vld [vmem:[%s6087_s1 + $0x668] sm:$0xf0]  ;;  %834 = vst [vmem:[#allocation2 + $0x8] sm:$0x77] %v831_v25  ;;  %v3905_v11 = vor.u32 %v4240_v52, %v3902_v55  ;;  %v3766_v12 = vld [vmem:[%s6087_s1 + $0x638] sm:$0xf0] }
  0xe7   : > { %2363 = vmatpush.bf16.msra.mxu0 %v3749_v37  ;;  %v3793_v29 = vor.u32 %v4212_v19, %v3790_v22  ;;  %v4222_v13 = vld [vmem:[%s6087_s1 + $0x6b4] sm:$0xf]  ;;  %v3958_v18 = vld [vmem:[%s6087_s1 + $0x7b8] sm:$0xf0]  ;;  %v4236_v22 = vld [vmem:[%s6087_s1 + $0x724] sm:$0xf] }
  0xe8   : > { %2381 = vmatpush.bf16.msra.mxu1 %v3813_v42  ;;  %v3758_v46 = vld [vmem:[%s6087_s1 + $0x628] sm:$0xf0]  ;;  %v3889_v32 = vor.u32 %v4236_v22, %v3886_v23  ;;  %v3878_v35 = vld [vmem:[%s6087_s1 + $0x718] sm:$0xf0]  ;;  %v4218_v41 = vld [vmem:[%s6087_s1 + $0x694] sm:$0xf] }
  0xe9   : > { %2399 = vmatpush.bf16.msra.mxu2 %v3877_v36  ;;  %v4226_v36 = vld [vmem:[%s6087_s1 + $0x6d4] sm:$0xf]  ;;  %v3761_v33 = vor.u32 %v4204_v27, %v3758_v46  ;;  %v3750_v40 = vld [vmem:[%s6087_s1 + $0x618] sm:$0xf0]  ;;  %v3881_v60 = vor.u32 %v4234_v34, %v3878_v35  ;;  %v4232_v62 = vld [vmem:[%s6087_s1 + $0x704] sm:$0xf] }
  0xea   : > { %2417 = vmatpush.bf16.msra.mxu3 %v3941_v45  ;;  %v3849_v58 = vor.u32 %v4226_v36, %v3846_v38  ;;  %v4202_v38 = vld [vmem:[%s6087_s1 + $0x614] sm:$0xf]  ;;  %v3942_v52 = vld [vmem:[%s6087_s1 + $0x798] sm:$0xf0]  ;;  %v3870_v63 = vld [vmem:[%s6087_s1 + $0x708] sm:$0xf0] }
  0xeb   : > { %2364 = vmatpush.bf16.msra.mxu0 %v3741_v1  ;;  %v784_v37 = vpop.f32.mrf.mxu2  ;;  %v1229_v42 = vpop.f32.mrf.mxu0  ;;  %v3966_v1 = vld [vmem:[%s6087_s1 + $0x7c8] sm:$0xf0]  ;;  %v3753_v61 = vor.u32 %v4202_v38, %v3750_v40 }
  0xec   : > { %2382 = vmatpush.bf16.msra.mxu1 %v3805_v2  ;;  %v801_v5 = vpop.f32.mrf.mxu3  ;;  %v1246_v45 = vpop.f32.mrf.mxu1 }
  0xed   : > { %2400 = vmatpush.bf16.msra.mxu2 %v3869_v0  ;;  %v4256_v0 = vld [vmem:[%s6087_s1 + $0x7c4] sm:$0xf]  ;;  %v1247_v2 = vadd.f32 %v1246_v45, %v1229_v42 }
  0xee   : > { %2418 = vmatpush.bf16.msra.mxu3 %v3933_v9  ;;  %2365 = vmatmul.bf16.vlgmr.msra.gmra.mxu0 %v4584_v48  ;;  %v3969_v9 = vor.u32 %v4256_v0, %v3966_v1 }
  0xef   : > { %2429 = vmatpush.bf16.msrb.mxu0 %v3801_v17  ;;  %2383 = vmatmul.bf16.vlgmr.msra.gmra.mxu1 %v4595_v53  ;;  %v4254_v17 = vld [vmem:[%s6087_s1 + $0x7b4] sm:$0xf] }
  0xf0   : > { %2447 = vmatpush.bf16.msrb.mxu1 %v3865_v43  ;;  %2401 = vmatmul.bf16.vlgmr.msra.gmra.mxu2 %v4597_v54  ;;  %v3897_v43 = vor.u32 %v4238_v4, %v3894_v6  ;;  %v3961_v26 = vor.u32 %v4254_v17, %v3958_v18  ;;  %v4216_v4 = vld [vmem:[%s6087_s1 + $0x684] sm:$0xf]  ;;  %v3806_v6 = vld [vmem:[%s6087_s1 + $0x688] sm:$0xf0] }
  0xf1   : > { %2465 = vmatpush.bf16.msrb.mxu2 %v3929_v16  ;;  %2419 = vmatmul.bf16.vlgmr.msra.gmra.mxu3 %v4605_v57  ;;  %v3830_v16 = vld [vmem:[%s6087_s1 + $0x6b8] sm:$0xf0] }
  0xf2   : > { %2483 = vmatpush.bf16.msrb.mxu3 %v3993_v21  ;;  %v3769_v21 = vor.u32 %v4206_v10, %v3766_v12  ;;  %v3833_v25 = vor.u32 %v4222_v13, %v3830_v16  ;;  %v3873_v10 = vor.u32 %v4232_v62, %v3870_v63  ;;  %v3809_v13 = vor.u32 %v4216_v4, %v3806_v6 }
  0xf3   : > { %2430 = vmatpush.bf16.msrb.mxu0 %v3793_v29  ;;  %v1263_v14 = vpop.f32.mrf.mxu2  ;;  %v1231_v20 = vpop.f32.mrf.mxu0  ;;  %v3822_v29 = vld [vmem:[%s6087_s1 + $0x6a8] sm:$0xf0] }
  0xf4   : > { %2448 = vmatpush.bf16.msrb.mxu1 %v3857_v30  ;;  %v1280_v15 = vpop.f32.mrf.mxu3  ;;  %v1264_v19 = vadd.f32 %v1263_v14, %v1247_v2  ;;  %v1248_v39 = vpop.f32.mrf.mxu1  ;;  %v4252_v30 = vld [vmem:[%s6087_s1 + $0x7a4] sm:$0xf] }
  0xf5   : > { %2466 = vmatpush.bf16.msrb.mxu2 %v3921_v28  ;;  %v4220_v28 = vld [vmem:[%s6087_s1 + $0x6a4] sm:$0xf]  ;;  %v1249_v36 = vadd.f32 %v1248_v39, %v1231_v20 }
  0xf6   : > { %2484 = vmatpush.bf16.msrb.mxu3 %v3985_v31  ;;  %v5944_v24 = vadd.f32 %v1280_v15, %v1264_v19  ;;  %v3950_v31 = vld [vmem:[%s6087_s1 + $0x7a8] sm:$0xf0]  ;;  %v3825_v37 = vor.u32 %v4220_v28, %v3822_v29 }
  0xf7   : > { %2431 = vmatpush.bf16.msrb.mxu0 %v3785_v49  ;;  %v3953_v5 = vor.u32 %v4252_v30, %v3950_v31  ;;  %v4250_v49 = vld [vmem:[%s6087_s1 + $0x794] sm:$0xf] }
  0xf8   : > { %2449 = vmatpush.bf16.msrb.mxu1 %v3849_v58  ;;  %1369 = vst.sshfl [vmem:[#allocation1] sm:$0xff pattern:$0x75316420] %v5944_v24  ;;  %v3945_v2 = vor.u32 %v4250_v49, %v3942_v52 }
  0xf9   : > { %2467 = vmatpush.bf16.msrb.mxu2 %v3913_v47  ;;  %v3814_v47 = vld [vmem:[%s6087_s1 + $0x698] sm:$0xf0] }
  0xfa   : > { %2485 = vmatpush.bf16.msrb.mxu3 %v3977_v59  ;;  %v3817_v1 = vor.u32 %v4218_v41, %v3814_v47 }
  0xfb   : > { %2432 = vmatpush.bf16.msrb.mxu0 %v3777_v3  ;;  %v1265_v42 = vpop.f32.mrf.mxu2  ;;  %v1234_v58 = vpop.f32.mrf.mxu0  ;;  %v3742_v3 = vld [vmem:[%s6087_s1 + $0x608] sm:$0xf0] }
  0xfc   : > { %2450 = vmatpush.bf16.msrb.mxu1 %v3841_v7  ;;  %v1282_v45 = vpop.f32.mrf.mxu3  ;;  %v1266_v55 = vadd.f32 %v1265_v42, %v1249_v36  ;;  %v1251_v59 = vpop.f32.mrf.mxu1  ;;  %v4248_v7 = vld [vmem:[%s6087_s1 + $0x784] sm:$0xf] }
  0xfd   : > { %2468 = vmatpush.bf16.msrb.mxu2 %v3905_v11  ;;  %v4200_v11 = vld [vmem:[%s6087_s1 + $0x604] sm:$0xf]  ;;  %v1366_v59 = vld [vmem:[#allocation2] sm:$0x77] }
  0xfe   : > { %2486 = vmatpush.bf16.msrb.mxu3 %v3969_v9  ;;  %v5995_v0 = vadd.f32 %v1282_v45, %v1266_v55  ;;  %2370 = vmatmul.bf16.gmra.mxu0 %v4700_v44  ;;  %v3934_v9 = vld [vmem:[%s6087_s1 + $0x788] sm:$0xf0]  ;;  %v3745_v12 = vor.u32 %v4200_v11, %v3742_v3  ;;  %v1384_v45 = vld [vmem:[#allocation2 + $0x8] sm:$0x77] }
  0xff   : > { %2433 = vmatpush.bf16.msrb.mxu0 %v3769_v21  ;;  %2388 = vmatmul.bf16.gmra.mxu1 %v4711_v50  ;;  %v3937_v14 = vor.u32 %v4248_v7, %v3934_v9 }
 0x100   : > { %2451 = vmatpush.bf16.msrb.mxu1 %v3833_v25  ;;  %1371 = vst.sshfl [vmem:[#allocation1 + $0x10] sm:$0xff pattern:$0x75316420] %v5995_v0  ;;  %2406 = vmatmul.bf16.gmra.mxu2 %v4713_v51 }
 0x101   : > { %2469 = vmatpush.bf16.msrb.mxu2 %v3897_v43  ;;  %2424 = vmatmul.bf16.gmra.mxu3 %v4721_v56 }
 0x102   : > { %2487 = vmatpush.bf16.msrb.mxu3 %v3961_v26 }
 0x103   : > { %2434 = vmatpush.bf16.msrb.mxu0 %v3761_v33  ;;  %v1268_v15 = vpop.f32.mrf.mxu2  ;;  %v1235_v17 = vpop.f32.mrf.mxu0 }
 0x104   : > { %2452 = vmatpush.bf16.msrb.mxu1 %v3825_v37  ;;  %v1285_v16 = vpop.f32.mrf.mxu3  ;;  %v1252_v18 = vpop.f32.mrf.mxu1 }
 0x105   : > { %2470 = vmatpush.bf16.msrb.mxu2 %v3889_v32  ;;  %v1356_v32 = vld [vmem:[#allocation2 + $0x10] sm:$0x77] }
 0x106   : > { %2488 = vmatpush.bf16.msrb.mxu3 %v3953_v5 }
 0x107   : > { %2435 = vmatpush.bf16.msrb.mxu0 %v3753_v61 }
 0x108   : > { %2453 = vmatpush.bf16.msrb.mxu1 %v3817_v1 }
 0x109   : > { %2471 = vmatpush.bf16.msrb.mxu2 %v3881_v60 }
 0x10a   : > { %2489 = vmatpush.bf16.msrb.mxu3 %v3945_v2 }
 0x10b   : > { %2436 = vmatpush.bf16.msrb.mxu0 %v3745_v12  ;;  %v1269_v19 = vpop.f32.mrf.mxu2  ;;  %v1297_v39 = vpop.f32.mrf.mxu0 }
 0x10c   : > { %2454 = vmatpush.bf16.msrb.mxu1 %v3809_v13  ;;  %v1286_v20 = vpop.f32.mrf.mxu3  ;;  %v1314_v43 = vpop.f32.mrf.mxu1 }
 0x10d   : > { %2472 = vmatpush.bf16.msrb.mxu2 %v3873_v10  ;;  %v1315_v21 = vadd.f32 %v1314_v43, %v1297_v39 }
 0x10e   : > { %2490 = vmatpush.bf16.msrb.mxu3 %v3937_v14  ;;  %2437 = vmatmul.bf16.vlgmr.msrb.gmra.mxu0 %v4584_v48 }
 0x10f   : > { %2455 = vmatmul.bf16.vlgmr.msrb.gmra.mxu1 %v4595_v53 }
 0x110   : > { %2473 = vmatmul.bf16.vlgmr.msrb.gmra.mxu2 %v4597_v54 }
 0x111   : > { %2491 = vmatmul.bf16.vlgmr.msrb.gmra.mxu3 %v4605_v57 }
 0x113   : > { %v1331_v22 = vpop.f32.mrf.mxu2  ;;  %v1299_v26 = vpop.f32.mrf.mxu0 }
 0x114   : > { %v1348_v23 = vpop.f32.mrf.mxu3  ;;  %v1332_v25 = vadd.f32 %v1331_v22, %v1315_v21  ;;  %v1316_v27 = vpop.f32.mrf.mxu1 }
 0x115   : > { %v1317_v30 = vadd.f32 %v1316_v27, %v1299_v26 }
 0x116   : > { %v1349_v46 = vadd.f32 %v1348_v23, %v1332_v25 }
 0x118   : > { %v1359_v28 = vrot.slane %v1349_v46, 4  ;;  %1370 = vst.sshfl [vmem:[#allocation1 + $0x8] sm:$0xff pattern:$0x75316420] %v1349_v46 }
 0x11a   : > { %v1360_v29 = vsel %vm806_vm0, %v5944_v24, %v1359_v28 }
 0x11b   : > { %v3346_v48 = vrot.slane %v1360_v29, 9  ;;  %v1333_v31 = vpop.f32.mrf.mxu2  ;;  %v1302_v54 = vpop.f32.mrf.mxu0 }
 0x11c   : > { %v1350_v53 = vpop.f32.mrf.mxu3  ;;  %v1334_v33 = vadd.f32 %v1333_v31, %v1317_v30  ;;  %v1319_v34 = vpop.f32.mrf.mxu1 }
 0x11d   : > { %v1364_v57 = vadd.f32 %v3346_v48, %v1356_v32 }
 0x11e   : > { %v1351_v35 = vadd.f32 %v1350_v53, %v1334_v33  ;;  %2442 = vmatmul.bf16.gmra.mxu0 %v4700_v44 }
 0x11f   : > { %1365 = vst [vmem:[#allocation2 + $0x10] sm:$0x77] %v1364_v57  ;;  %2460 = vmatmul.bf16.gmra.mxu1 %v4711_v50 }
 0x120   : > { %1372 = vst.sshfl [vmem:[#allocation1 + $0x18] sm:$0xff pattern:$0x75316420] %v1351_v35  ;;  %v1385_v36 = vrot.slane %v1351_v35, 4  ;;  %2478 = vmatmul.bf16.gmra.mxu2 %v4713_v51 }
 0x121   : > { %2496 = vmatmul.bf16.gmra.mxu3 %v4721_v56  ;;  %v1374_v56 = vld [vmem:[#allocation1 + $0x1] ss:$2 sm:$0xff] }
 0x122   : > { %v1386_v24 = vsel %vm806_vm0, %v5995_v0, %v1385_v36  ;;  %v1387_v37 = vsel %vm806_vm0, %v1385_v36, %v5995_v0  ;;  %v3347_v52 = vrot.slane %v1374_v56, 10 }
 0x123   : > { %v3348_v38 = vrot.slane %v1386_v24, 11  ;;  %v3349_v44 = vrot.slane %v1387_v37, 11  ;;  %v1336_v40 = vpop.f32.mrf.mxu2  ;;  %v1303_v41 = vpop.f32.mrf.mxu0 }
 0x124   : > { %v1353_v50 = vpop.f32.mrf.mxu3  ;;  %v1320_v42 = vpop.f32.mrf.mxu1 }
 0x125   : > { %v1395_v51 = vsel %vm6034_vm6, %v3348_v38, %v3349_v44 }
 0x126   : > { %v1397_v47 = vadd.f32 %v1395_v51, %v1384_v45  ;;  %v1928_v44 = vld [vmem:[#allocation2 + $0x10] sm:$0x77] }
 0x127   : > { %v1376_v49 = vld [vmem:[#allocation1 + $0x10] ss:$2 sm:$0xff] }
 0x128   : > { %1398 = vst [vmem:[#allocation2 + $0x8] sm:$0x77] %v1397_v47  ;;  %v1379_v55 = vrot.slane %v1376_v49, 6 }
 0x12a   : > { %v1380_v58 = vsel %vm5832_vm3, %v3347_v52, %v1379_v55 }
 0x12b   : > { %v1337_v60 = vpop.f32.mrf.mxu2  ;;  %v1382_v62 = vadd.f32 %v1380_v58, %v1366_v59  ;;  %v1793_v63 = vpop.f32.mrf.mxu0 }
 0x12c   : > { %v1354_v61 = vpop.f32.mrf.mxu3  ;;  %v1811_v0 = vpop.f32.mrf.mxu1 }
 0x12d   : > { %1383 = vst [vmem:[#allocation2] sm:$0x77] %v1382_v62  ;;  %v1812_v1 = vadd.f32 %v1811_v0, %v1793_v63 }
 0x133   : > { %v1829_v2 = vpop.f32.mrf.mxu2  ;;  %v1795_v4 = vpop.f32.mrf.mxu0 }
 0x134   : > { %v1847_v11 = vpop.f32.mrf.mxu3  ;;  %v1830_v3 = vadd.f32 %v1829_v2, %v1812_v1  ;;  %v1813_v6 = vpop.f32.mrf.mxu1  ;;  %v1940_v55 = vld [vmem:[#allocation2] sm:$0x77] }
 0x135   : > { %v1814_v30 = vadd.f32 %v1813_v6, %v1795_v4 }
 0x136   : > { %v1848_v7 = vadd.f32 %v1847_v11, %v1830_v3 }
 0x138   : > { %1931 = vst.sshfl [vmem:[#allocation1] sm:$0xff pattern:$0x75316420] %v1848_v7 }
 0x13b   : > { %v1831_v9 = vpop.f32.mrf.mxu2  ;;  %v1798_v12 = vpop.f32.mrf.mxu0 }
 0x13c   : > { %v1849_v10 = vpop.f32.mrf.mxu3  ;;  %v1816_v13 = vpop.f32.mrf.mxu1  ;;  %v1832_v48 = vadd.f32 %v1831_v9, %v1814_v30 }
 0x13d   : > { %v1817_v14 = vadd.f32 %v1816_v13, %v1798_v12 }
 0x13e   : > { %v1850_v57 = vadd.f32 %v1849_v10, %v1832_v48  ;;  %v1954_v10 = vld [vmem:[#allocation2 + $0x8] sm:$0x77] }
 0x143   : > { %v1834_v15 = vpop.f32.mrf.mxu2  ;;  %v1800_v18 = vpop.f32.mrf.mxu0 }
 0x144   : > { %v1852_v16 = vpop.f32.mrf.mxu3  ;;  %v1835_v17 = vadd.f32 %v1834_v15, %v1817_v14  ;;  %v1818_v19 = vpop.f32.mrf.mxu1 }
 0x146   : > { %v1853_v20 = vadd.f32 %v1852_v16, %v1835_v17 }
 0x148   : > { %1959 = vst.sshfl [vmem:[#allocation1 + $0x10] sm:$0xff pattern:$0x75316420] %v1853_v20 }
 0x14b   : > { %v1836_v39 = vpop.f32.mrf.mxu2  ;;  %v1865_v21 = vpop.f32.mrf.mxu0 }
 0x14c   : > { %v1854_v43 = vpop.f32.mrf.mxu3  ;;  %v1883_v22 = vpop.f32.mrf.mxu1 }
 0x14d   : > { %v1884_v23 = vadd.f32 %v1883_v22, %v1865_v21 }
 0x153   : > { %v1901_v25 = vpop.f32.mrf.mxu2  ;;  %v1867_v46 = vpop.f32.mrf.mxu0 }
 0x154   : > { %v1919_v26 = vpop.f32.mrf.mxu3  ;;  %v1902_v27 = vadd.f32 %v1901_v25, %v1884_v23  ;;  %v1885_v28 = vpop.f32.mrf.mxu1 }
 0x155   : > { %v1886_v31 = vadd.f32 %v1885_v28, %v1867_v46 }
 0x156   : > { %v1920_v29 = vadd.f32 %v1919_v26, %v1902_v27 }
 0x158   : > { %1932 = vst.sshfl [vmem:[#allocation1 + $0x8] sm:$0xff pattern:$0x75316420] %v1920_v29 }
 0x15b   : > { %v1903_v53 = vpop.f32.mrf.mxu2  ;;  %v1870_v54 = vpop.f32.mrf.mxu0 }
 0x15c   : > { %v1921_v32 = vpop.f32.mrf.mxu3  ;;  %v1904_v33 = vadd.f32 %v1903_v53, %v1886_v31  ;;  %v1888_v34 = vpop.f32.mrf.mxu1 }
 0x15d   : > { %v1889_v38 = vadd.f32 %v1888_v34, %v1870_v54 }
 0x15e   : > { %v1922_v35 = vadd.f32 %v1921_v32, %v1904_v33 }
 0x15f   : > { %v1934_v36 = vld [vmem:[#allocation1 + $0x1] ss:$2 sm:$0xff] }
 0x160   : > { %v3670_v24 = vrot.slane %v1934_v36, 9  ;;  %v1943_v37 = vrot.slane %v1922_v35, 4  ;;  %1957 = vst.sshfl [vmem:[#allocation1] sm:$0xff pattern:$0x75316420] %v1850_v57 }
 0x161   : > { %1958 = vst.sshfl [vmem:[#allocation1 + $0x8] sm:$0xff pattern:$0x75316420] %v1922_v35 }
 0x162   : > { %v1938_v40 = vadd.f32 %v3670_v24, %v1928_v44  ;;  %v1944_v50 = vsel %vm806_vm0, %v1850_v57, %v1943_v37  ;;  %v1945_v41 = vsel %vm806_vm0, %v1943_v37, %v1850_v57 }
 0x163   : > { %v3671_v42 = vrot.slane %v1944_v50, 10  ;;  %v3672_v45 = vrot.slane %v1945_v41, 10  ;;  %v1906_v51 = vpop.f32.mrf.mxu2  ;;  %v1872_v49 = vpop.f32.mrf.mxu0 }
 0x164   : > { %v1924_v56 = vpop.f32.mrf.mxu3  ;;  %1939 = vst [vmem:[#allocation2 + $0x10] sm:$0x77] %v1938_v40  ;;  %v1907_v47 = vadd.f32 %v1906_v51, %v1889_v38  ;;  %v1890_v52 = vpop.f32.mrf.mxu1 }
 0x165   : > { %v1950_v58 = vsel %vm5832_vm3, %v3671_v42, %v3672_v45  ;;  %v2544_v45 = vld [vmem:[%s6088_s2] sm:$0x3] }
 0x166   : > { %v1952_v59 = vadd.f32 %v1950_v58, %v1940_v55  ;;  %v1925_v60 = vadd.f32 %v1924_v56, %v1907_v47 }
 0x168   : > { %1953 = vst [vmem:[#allocation2] sm:$0x77] %v1952_v59  ;;  %v1962_v1 = vld [vmem:[#allocation1 + $0x1] ss:$2 sm:$0xff] }
 0x169   : > { %1960 = vst.sshfl [vmem:[#allocation1 + $0x18] sm:$0xff pattern:$0x75316420] %v1925_v60  ;;  %v3673_v3 = vrot.slane %v1962_v1, 11 }
 0x16b   : > { %v1908_v61 = vpop.f32.mrf.mxu2  ;;  %v2366_v63 = vpop.f32.mrf.mxu0 }
 0x16c   : > { %v1926_v62 = vpop.f32.mrf.mxu3  ;;  %v2384_v0 = vpop.f32.mrf.mxu1 }
 0x16d   : > { %v2385_v2 = vadd.f32 %v2384_v0, %v2366_v63  ;;  %v2547_v63 = vperm.slane %v2544_v45, 1 }
 0x16f   : > { %v2521_v61 = vld [vmem:[#allocation2] sm:$0x77] }
 0x170   : > { %v1964_v11 = vld [vmem:[#allocation1 + $0x10] ss:$2 sm:$0xff] }
 0x171   : > { %v1967_v4 = vrot.slane %v1964_v11, 7 }
 0x173   : > { %v2402_v6 = vpop.f32.mrf.mxu2  ;;  %v1968_v9 = vsel %vm6034_vm6, %v3673_v3, %v1967_v4  ;;  %v2368_v13 = vpop.f32.mrf.mxu0 }
 0x174   : > { %v2420_v7 = vpop.f32.mrf.mxu3  ;;  %v2403_v12 = vadd.f32 %v2402_v6, %v2385_v2  ;;  %v2386_v14 = vpop.f32.mrf.mxu1  ;;  %v1970_v15 = vadd.f32 %v1968_v9, %v1954_v10  ;;  %v2548_v9 = vrot.slane %v2547_v63, 4  ;;  %v2501_v10 = vld [vmem:[#allocation2 + $0x10] sm:$0x77] }
 0x175   : > { %v2387_v17 = vadd.f32 %v2386_v14, %v2368_v13 }
 0x176   : > { %v2421_v16 = vadd.f32 %v2420_v7, %v2403_v12  ;;  %1971 = vst [vmem:[#allocation2 + $0x8] sm:$0x77] %v1970_v15  ;;  %v2546_v7 = vperm.slane %v2544_v45, 0 }
 0x178   : > { %2506 = vst.sshfl [vmem:[#allocation1] sm:$0xff pattern:$0x75316420] %v2421_v16 }
 0x17b   : > { %v2404_v18 = vpop.f32.mrf.mxu2  ;;  %v2371_v39 = vpop.f32.mrf.mxu0 }
 0x17c   : > { %v2422_v19 = vpop.f32.mrf.mxu3  ;;  %v2405_v20 = vadd.f32 %v2404_v18, %v2387_v17  ;;  %v2389_v43 = vpop.f32.mrf.mxu1  ;;  %v2549_v18 = vsel %vm806_vm0, %v2546_v7, %v2548_v9 }
 0x17d   : > { %v2390_v44 = vadd.f32 %v2389_v43, %v2371_v39  ;;  %v2533_v13 = vld [vmem:[#allocation2 + $0x8] sm:$0x77] }
 0x17e   : > { %v2423_v21 = vadd.f32 %v2422_v19, %v2405_v20 }
 0x180   : > { %2508 = vst.sshfl [vmem:[#allocation1 + $0x10] sm:$0xff pattern:$0x75316420] %v2423_v21 }
 0x183   : > { %v2407_v22 = vpop.f32.mrf.mxu2  ;;  %v2373_v25 = vpop.f32.mrf.mxu0 }
 0x184   : > { %v2425_v23 = vpop.f32.mrf.mxu3  ;;  %v2391_v26 = vpop.f32.mrf.mxu1  ;;  %v2408_v52 = vadd.f32 %v2407_v22, %v2390_v44  ;;  %v2614_v44 = vld [vmem:[%s233_s17 + $0x8] sm:$0xf] }
 0x186   : > { %v2426_v11 = vadd.f32 %v2425_v23, %v2408_v52 }
 0x18b   : > { %v2409_v27 = vpop.f32.mrf.mxu2  ;;  %v2438_v28 = vpop.f32.mrf.mxu0 }
 0x18c   : > { %v2427_v46 = vpop.f32.mrf.mxu3  ;;  %v2456_v29 = vpop.f32.mrf.mxu1 }
 0x18d   : > { %v2457_v30 = vadd.f32 %v2456_v29, %v2438_v28 }
 0x193   : > { %v2474_v48 = vpop.f32.mrf.mxu2  ;;  %v2440_v32 = vpop.f32.mrf.mxu0 }
 0x194   : > { %v2492_v31 = vpop.f32.mrf.mxu3  ;;  %v2475_v53 = vadd.f32 %v2474_v48, %v2457_v30  ;;  %v2458_v33 = vpop.f32.mrf.mxu1 }
 0x195   : > { %v2459_v34 = vadd.f32 %v2458_v33, %v2440_v32 }
 0x196   : > { %v2493_v54 = vadd.f32 %v2492_v31, %v2475_v53  ;;  %v2611_v53 = vld [vmem:[%s233_s17 + $0x4] sm:$0xf] }
 0x198   : > { %2507 = vst.sshfl [vmem:[#allocation1 + $0x8] sm:$0xff pattern:$0x75316420] %v2493_v54 }
 0x19b   : > { %v2476_v57 = vpop.f32.mrf.mxu2  ;;  %v2443_v24 = vpop.f32.mrf.mxu0 }
 0x19c   : > { %v2494_v35 = vpop.f32.mrf.mxu3  ;;  %v2477_v36 = vadd.f32 %v2476_v57, %v2459_v34  ;;  %v2461_v37 = vpop.f32.mrf.mxu1 }
 0x19d   : > { %v2462_v50 = vadd.f32 %v2461_v37, %v2443_v24 }
 0x19e   : > { %v2495_v38 = vadd.f32 %v2494_v35, %v2477_v36 }
 0x19f   : > { %v2511_v60 = vld [vmem:[#allocation1 + $0x1] ss:$2 sm:$0xff] }
 0x1a0   : > { %2509 = vst.sshfl [vmem:[#allocation1 + $0x18] sm:$0xff pattern:$0x75316420] %v2495_v38  ;;  %v2522_v40 = vrot.slane %v2495_v38, 4  ;;  %v3994_v3 = vrot.slane %v2511_v60, 10 }
 0x1a1   : > { %v2608_v38 = vld [vmem:[%s233_s17] sm:$0xf] }
 0x1a2   : > { %v2523_v41 = vsel %vm806_vm0, %v2423_v21, %v2522_v40  ;;  %v2524_v42 = vsel %vm806_vm0, %v2522_v40, %v2423_v21 }
 0x1a3   : > { %v3995_v51 = vrot.slane %v2523_v41, 11  ;;  %v3996_v56 = vrot.slane %v2524_v42, 11  ;;  %v2479_v47 = vpop.f32.mrf.mxu2  ;;  %v2445_v58 = vpop.f32.mrf.mxu0 }
 0x1a4   : > { %v2497_v49 = vpop.f32.mrf.mxu3  ;;  %v2480_v55 = vadd.f32 %v2479_v47, %v2462_v50  ;;  %v2463_v59 = vpop.f32.mrf.mxu1 }
 0x1a5   : > { %v2529_v62 = vsel %vm6034_vm6, %v3995_v51, %v3996_v56 }
 0x1a6   : > { %v2531_v0 = vadd.f32 %v2529_v62, %v2521_v61  ;;  %v2498_v1 = vadd.f32 %v2497_v49, %v2480_v55 }
 0x1a7   : > { %v2513_v2 = vld [vmem:[#allocation1 + $0x10] ss:$2 sm:$0xff] }
 0x1a8   : > { %v2516_v4 = vrot.slane %v2513_v2, 6  ;;  %2532 = vst [vmem:[#allocation2] sm:$0x77] %v2531_v0  ;;  %v2536_v6 = vrot.slane %v2498_v1, 4 }
 0x1aa   : > { %v2517_v12 = vsel %vm5832_vm3, %v3994_v3, %v2516_v4  ;;  %v2537_v14 = vsel %vm806_vm0, %v2426_v11, %v2536_v6 }
 0x1ab   : > { %v2519_v5 = vadd.f32 %v2517_v12, %v2501_v10  ;;  %v2539_v15 = vadd.f32 %v2537_v14, %v2533_v13  ;;  %v2481_v16 = vpop.f32.mrf.mxu2 }
 0x1ac   : > { %v2499_v17 = vpop.f32.mrf.mxu3 }
 0x1ad   : > { %2520 = vst [vmem:[#allocation2 + $0x10] sm:$0x77] %v2519_v5 }
 0x1ae   : > { %2540 = vst [vmem:[#allocation2 + $0x8] sm:$0x77] %v2539_v15 }
 0x1af   : > { %v2542_v19 = vld [vmem:[#allocation2] sm:$0x77] }
 0x1b0   : > { %v2552_v20 = vadd.f32 %v2549_v18, %v2542_v19 }
 0x1b2   : > { %v2555_v39 = vmul.f32 0.2, %v2552_v20 }
 0x1b4   : > { %v2541_v43 = vld [vmem:[#allocation2 + $0x10] sm:$0x77]  ;;  %v2558_v21 = vmax.f32 %v2552_v20, %v2555_v39 }
 0x1b5   : > { %v2551_v22 = vadd.f32 %v2549_v18, %v2541_v43  ;;  %v2543_v8 = vld [vmem:[#allocation2 + $0x8] sm:$0x77] }
 0x1b6   : > { %2567 = vst [vmem:[#allocation1 + $0x10] ss:$2 sm:$0xff] %v2558_v21  ;;  %v2553_v23 = vadd.f32 %v2549_v18, %v2543_v8 }
 0x1b7   : > { %v2554_v25 = vmul.f32 0.2, %v2551_v22 }
 0x1b8   : > { %v2556_v26 = vmul.f32 0.2, %v2553_v23 }
 0x1b9   : > { %v2557_v27 = vmax.f32 %v2551_v22, %v2554_v25 }
 0x1ba   : > { %v2559_v46 = vmax.f32 %v2553_v23, %v2556_v26 }
 0x1bb   : > { %2563 = vst [vmem:[#allocation1] ss:$2 sm:$0xff] %v2557_v27 }
 0x1bc   : > { %2571 = vst [vmem:[#allocation1 + $0x20] ss:$2 sm:$0xff] %v2559_v46 }
 0x1bd   : > { %v2568_v28 = vld.sshfl [vmem:[#allocation1 + $0x10] sm:$0xff pattern:$0x75316420]  ;;  %v2569_v29 = vld.sshfl [vmem:[#allocation1 + $0x18] sm:$0xff pattern:$0x75316420] }
 0x1be   : > { %v2581_v30 = vpack.c.bf16 %v2569_v29, %v2568_v28 }
 0x1c0   : > { %v2587_v31 = vrot.slane %v2581_v30, 2 }
 0x1c2   : > { %v2564_v32 = vld.sshfl [vmem:[#allocation1] sm:$0xff pattern:$0x75316420]  ;;  %v2565_v33 = vld.sshfl [vmem:[#allocation1 + $0x8] sm:$0xff pattern:$0x75316420]  ;;  %v2594_v54 = vsel %vm825_vm1, %v2581_v30, %v2587_v31 }
 0x1c3   : > { %v2580_v34 = vpack.c.bf16 %v2565_v33, %v2564_v32  ;;  %v2612_v57 = vsel %vm6064_vm12, %v2594_v54, %v2611_v53  ;;  %v2572_v35 = vld.sshfl [vmem:[#allocation1 + $0x20] sm:$0xff pattern:$0x75316420]  ;;  %v2573_v36 = vld.sshfl [vmem:[#allocation1 + $0x28] sm:$0xff pattern:$0x75316420] }
 0x1c4   : > { %2613 = vst [vmem:[%s233_s17 + $0x4] sm:$0xf] %v2612_v57  ;;  %v2582_v24 = vpack.c.bf16 %v2573_v36, %v2572_v35 }
 0x1c5   : > { %v2586_v37 = vrot.slane %v2580_v34, 2 }
 0x1c6   : > { %v2588_v40 = vrot.slane %v2582_v24, 2 }
 0x1c7   : > { %v2591_v50 = vsel %vm825_vm1, %v2580_v34, %v2586_v37 }
 0x1c8   : > { %v2609_v41 = vsel %vm6064_vm12, %v2591_v50, %v2608_v38  ;;  %v2597_v42 = vsel %vm825_vm1, %v2582_v24, %v2588_v40 }
 0x1c9   : > { %2610 = vst [vmem:[%s233_s17] sm:$0xf] %v2609_v41  ;;  %v2615_v45 = vsel %vm6064_vm12, %v2597_v42, %v2614_v44 }
 0x1ca   : > { %2616 = vst [vmem:[%s233_s17 + $0x8] sm:$0xf] %v2615_v45 }
 0x1cb PF: > { %s13_s14 = sadd.s32 1, %s4311_s14   ;;  %s6096_s12 = smov %s4307_s13 }
 0x1cc   : > { %p10_p5 = scmp.ge.s32.totalorder %s13_s14, 4   ;;  %s6097_s13 = smov %s6099_s15 }
 0x1ce   :  { %12 = sbr.rel (!%p10_p5) target bundleno = 2 (0x2), region = 83 }

// kernel: light_coords_estimator_v2.7
= control target key start
LH: loop header
LB: loop body
LE: loop exit
PB: predicated region body
PF: predicated region fallthrough
CT: control target
= control target key end

     0   :  { %s2093_s0 = inlined_call_operand.vmem [shape: bf16[2,1024], index: 0, kind: input, shape index: {}]   ;;  %s2094_s1 = inlined_call_operand.vmem [shape: bf16[1024,128], index: 1, kind: input, shape index: {}]   ;;  %s2095_s2 = inlined_call_operand.vmem [shape: f32[1,128], index: 2, kind: input, shape index: {}]   ;;  %s2096_s3 = inlined_call_operand.vmem [shape: bf16[5,128,128], index: 3, kind: input, shape index: {}]   ;;  %s2097_s4 = inlined_call_operand.vmem [shape: f32[5,1,128], index: 4, kind: input, shape index: {}]   ;;  %s2098_s5 = inlined_call_operand.hbm [shape: f32[2,128], index: 5, kind: output, shape index: {}]  }
   0x1   :  { %v1596_v0 = vld [vmem:[%s2094_s1 + $0x38] sm:$0xff]  ;;  %v1595_v4 = vld [vmem:[%s2094_s1 + $0x30] sm:$0xff]  ;;  %v1594_v8 = vld [vmem:[%s2094_s1 + $0x28] sm:$0xff] }
   0x2   :  { %v1604_v1 = vld [vmem:[%s2094_s1 + $0x78] sm:$0xff]  ;;  %556 = vmatpush.bf16.msra.mxu0 %v1596_v0  ;;  %v1603_v5 = vld [vmem:[%s2094_s1 + $0x70] sm:$0xff]  ;;  %v1602_v9 = vld [vmem:[%s2094_s1 + $0x68] sm:$0xff] }
   0x3   :  { %v1612_v2 = vld [vmem:[%s2094_s1 + $0xb8] sm:$0xff]  ;;  %569 = vmatpush.bf16.msra.mxu1 %v1604_v1  ;;  %v1611_v6 = vld [vmem:[%s2094_s1 + $0xb0] sm:$0xff]  ;;  %v1610_v10 = vld [vmem:[%s2094_s1 + $0xa8] sm:$0xff] }
   0x4   :  { %v1620_v3 = vld [vmem:[%s2094_s1 + $0xf8] sm:$0xff]  ;;  %582 = vmatpush.bf16.msra.mxu2 %v1612_v2  ;;  %v1619_v7 = vld [vmem:[%s2094_s1 + $0xf0] sm:$0xff]  ;;  %v1618_v11 = vld [vmem:[%s2094_s1 + $0xe8] sm:$0xff] }
   0x5   :  { %595 = vmatpush.bf16.msra.mxu3 %v1620_v3  ;;  %v1593_v12 = vld [vmem:[%s2094_s1 + $0x20] sm:$0xff]  ;;  %v1592_v17 = vld [vmem:[%s2094_s1 + $0x18] sm:$0xff]  ;;  %v1591_v21 = vld [vmem:[%s2094_s1 + $0x10] sm:$0xff] }
   0x6   :  { %557 = vmatpush.bf16.msra.mxu0 %v1595_v4  ;;  %v1601_v13 = vld [vmem:[%s2094_s1 + $0x60] sm:$0xff]  ;;  %v1600_v18 = vld [vmem:[%s2094_s1 + $0x58] sm:$0xff]  ;;  %v1599_v22 = vld [vmem:[%s2094_s1 + $0x50] sm:$0xff] }
   0x7   :  { %570 = vmatpush.bf16.msra.mxu1 %v1603_v5  ;;  %v1609_v14 = vld [vmem:[%s2094_s1 + $0xa0] sm:$0xff]  ;;  %v1608_v19 = vld [vmem:[%s2094_s1 + $0x98] sm:$0xff]  ;;  %v1607_v23 = vld [vmem:[%s2094_s1 + $0x90] sm:$0xff] }
   0x8   :  { %583 = vmatpush.bf16.msra.mxu2 %v1611_v6  ;;  %v1617_v15 = vld [vmem:[%s2094_s1 + $0xe0] sm:$0xff]  ;;  %v1616_v20 = vld [vmem:[%s2094_s1 + $0xd8] sm:$0xff]  ;;  %v1615_v24 = vld [vmem:[%s2094_s1 + $0xd0] sm:$0xff] }
   0x9   :  { %596 = vmatpush.bf16.msra.mxu3 %v1619_v7  ;;  %v21_v16 = vld [vmem:[%s2093_s0] sm:$0xff]  ;;  %v1590_v25 = vld [vmem:[%s2094_s1 + $0x8] sm:$0xff] }
   0xa   :  { %558 = vmatpush.bf16.msra.mxu0 %v1594_v8  ;;  %155 = vst [vmem:[#allocation1] ss:$9 sm:$0xff] %v21_v16  ;;  %v1598_v26 = vld [vmem:[%s2094_s1 + $0x48] sm:$0xff] }
   0xb   :  { %571 = vmatpush.bf16.msra.mxu1 %v1602_v9 }
   0xc   :  { %584 = vmatpush.bf16.msra.mxu2 %v1610_v10 }
   0xd   :  { %597 = vmatpush.bf16.msra.mxu3 %v1618_v11 }
   0xe   :  { %559 = vmatpush.bf16.msra.mxu0 %v1593_v12 }
   0xf   :  { %572 = vmatpush.bf16.msra.mxu1 %v1601_v13 }
  0x10   :  { %585 = vmatpush.bf16.msra.mxu2 %v1609_v14 }
  0x11   :  { %598 = vmatpush.bf16.msra.mxu3 %v1617_v15 }
  0x12   :  { %560 = vmatpush.bf16.msra.mxu0 %v1592_v17 }
  0x13   :  { %573 = vmatpush.bf16.msra.mxu1 %v1600_v18 }
  0x14   :  { %586 = vmatpush.bf16.msra.mxu2 %v1608_v19 }
  0x15   :  { %599 = vmatpush.bf16.msra.mxu3 %v1616_v20 }
  0x16   :  { %561 = vmatpush.bf16.msra.mxu0 %v1591_v21 }
  0x17   :  { %574 = vmatpush.bf16.msra.mxu1 %v1599_v22 }
  0x18   :  { %10 = vsyncpa [#allocation3], 0  ;;  %587 = vmatpush.bf16.msra.mxu2 %v1607_v23  ;;  %v1606_v27 = vld [vmem:[%s2094_s1 + $0x88] sm:$0xff]  ;;  %v1589_v29 = vld [vmem:[%s2094_s1] sm:$0xff]  ;;  %s1726_s26 = smov [#allocation2]   ;;  %s1096_s29 = sshll.u32 %s2098_s5, 4  ;;  %s1097_s29 = int_to_ptr.hbm [resolvable:$true] %s1096_s29 }
  0x19   :  { %600 = vmatpush.bf16.msra.mxu3 %v1615_v24  ;;  %v1614_v28 = vld [vmem:[%s2094_s1 + $0xc8] sm:$0xff]  ;;  %v1597_v30 = vld [vmem:[%s2094_s1 + $0x40] sm:$0xff]  ;;  %v1628_v33 = vld [vmem:[%s2094_s1 + $0x138] sm:$0xff]  ;;  %s1094_s27 = sshll.u32 %s1726_s26, 4  ;;  %s1095_s27 = int_to_ptr.vmem [resolvable:$true] %s1094_s27 }
  0x1a   :  { %562 = vmatpush.bf16.msra.mxu0 %v1590_v25  ;;  %v1605_v31 = vld [vmem:[%s2094_s1 + $0x80] sm:$0xff]  ;;  %v1636_v34 = vld [vmem:[%s2094_s1 + $0x178] sm:$0xff]  ;;  %v1627_v37 = vld [vmem:[%s2094_s1 + $0x130] sm:$0xff] }
  0x1b   :  { %575 = vmatpush.bf16.msra.mxu1 %v1598_v26  ;;  %v1613_v32 = vld [vmem:[%s2094_s1 + $0xc0] sm:$0xff]  ;;  %v1644_v35 = vld [vmem:[%s2094_s1 + $0x1b8] sm:$0xff]  ;;  %v1635_v40 = vld [vmem:[%s2094_s1 + $0x170] sm:$0xff] }
  0x1c   :  { %588 = vmatpush.bf16.msra.mxu2 %v1606_v27  ;;  %v1652_v36 = vld [vmem:[%s2094_s1 + $0x1f8] sm:$0xff]  ;;  %v156_v39 = vld [vmem:[#allocation1] sm:$0xff]  ;;  %v157_v42 = vld [vmem:[#allocation1 + $0x9] sm:$0xff] }
  0x1d   :  { %601 = vmatpush.bf16.msra.mxu3 %v1614_v28  ;;  %v158_v38 = vld [vmem:[#allocation1 + $0x12] sm:$0xff]  ;;  %v159_v41 = vld [vmem:[#allocation1 + $0x1b] sm:$0xff]  ;;  %v1626_v45 = vld [vmem:[%s2094_s1 + $0x128] sm:$0xff] }
  0x1e   :  { %563 = vmatpush.bf16.msra.mxu0 %v1589_v29  ;;  %v1643_v43 = vld [vmem:[%s2094_s1 + $0x1b0] sm:$0xff]  ;;  %v1634_v46 = vld [vmem:[%s2094_s1 + $0x168] sm:$0xff]  ;;  %v1625_v49 = vld [vmem:[%s2094_s1 + $0x120] sm:$0xff] }
  0x1f   :  { %576 = vmatpush.bf16.msra.mxu1 %v1597_v30  ;;  %v1651_v44 = vld [vmem:[%s2094_s1 + $0x1f0] sm:$0xff]  ;;  %v1642_v47 = vld [vmem:[%s2094_s1 + $0x1a8] sm:$0xff]  ;;  %v1633_v50 = vld [vmem:[%s2094_s1 + $0x160] sm:$0xff] }
  0x20   :  { %589 = vmatpush.bf16.msra.mxu2 %v1605_v31  ;;  %v1650_v48 = vld [vmem:[%s2094_s1 + $0x1e8] sm:$0xff]  ;;  %v1641_v51 = vld [vmem:[%s2094_s1 + $0x1a0] sm:$0xff]  ;;  %v1624_v53 = vld [vmem:[%s2094_s1 + $0x118] sm:$0xff] }
  0x21   :  { %602 = vmatpush.bf16.msra.mxu3 %v1613_v32  ;;  %564 = vmatmul.bf16.vlgmr.msra.gmra.mxu0 %v156_v39  ;;  %v1649_v52 = vld [vmem:[%s2094_s1 + $0x1e0] sm:$0xff]  ;;  %v1632_v54 = vld [vmem:[%s2094_s1 + $0x158] sm:$0xff]  ;;  %v1623_v57 = vld [vmem:[%s2094_s1 + $0x110] sm:$0xff] }
  0x22   :  { %608 = vmatpush.bf16.msrb.mxu0 %v1628_v33  ;;  %577 = vmatmul.bf16.vlgmr.msra.gmra.mxu1 %v157_v42  ;;  %v1640_v55 = vld [vmem:[%s2094_s1 + $0x198] sm:$0xff]  ;;  %v1631_v58 = vld [vmem:[%s2094_s1 + $0x150] sm:$0xff]  ;;  %v1622_v61 = vld [vmem:[%s2094_s1 + $0x108] sm:$0xff] }
  0x23   :  { %621 = vmatpush.bf16.msrb.mxu1 %v1636_v34  ;;  %590 = vmatmul.bf16.vlgmr.msra.gmra.mxu2 %v158_v38  ;;  %v1648_v56 = vld [vmem:[%s2094_s1 + $0x1d8] sm:$0xff]  ;;  %v1639_v59 = vld [vmem:[%s2094_s1 + $0x190] sm:$0xff]  ;;  %v1630_v62 = vld [vmem:[%s2094_s1 + $0x148] sm:$0xff] }
  0x24   :  { %634 = vmatpush.bf16.msrb.mxu2 %v1644_v35  ;;  %603 = vmatmul.bf16.vlgmr.msra.gmra.mxu3 %v159_v41  ;;  %v1647_v60 = vld [vmem:[%s2094_s1 + $0x1d0] sm:$0xff]  ;;  %v1638_v63 = vld [vmem:[%s2094_s1 + $0x188] sm:$0xff]  ;;  %v1621_v1 = vld [vmem:[%s2094_s1 + $0x100] sm:$0xff] }
  0x25   :  { %647 = vmatpush.bf16.msrb.mxu3 %v1652_v36  ;;  %v1646_v0 = vld [vmem:[%s2094_s1 + $0x1c8] sm:$0xff]  ;;  %v1629_v2 = vld [vmem:[%s2094_s1 + $0x140] sm:$0xff]  ;;  %v162_v7 = vld [vmem:[#allocation1 + $0x36] sm:$0xff] }
  0x26   :  { %609 = vmatpush.bf16.msrb.mxu0 %v1627_v37  ;;  %v1637_v3 = vld [vmem:[%s2094_s1 + $0x180] sm:$0xff]  ;;  %v161_v6 = vld [vmem:[#allocation1 + $0x2d] sm:$0xff]  ;;  %v1660_v9 = vld [vmem:[%s2096_s3 + $0x38] sm:$0xff] }
  0x27   :  { %622 = vmatpush.bf16.msrb.mxu1 %v1635_v40  ;;  %v1645_v4 = vld [vmem:[%s2094_s1 + $0x1c0] sm:$0xff]  ;;  %v1659_v10 = vld [vmem:[%s2096_s3 + $0x30] sm:$0xff]  ;;  %v1658_v11 = vld [vmem:[%s2096_s3 + $0x28] sm:$0xff] }
  0x28   :  { %635 = vmatpush.bf16.msrb.mxu2 %v1643_v43  ;;  %v160_v5 = vld [vmem:[#allocation1 + $0x24] sm:$0xff]  ;;  %v1656_v13 = vld [vmem:[%s2096_s3 + $0x18] sm:$0xff]  ;;  %v1655_v16 = vld [vmem:[%s2096_s3 + $0x10] sm:$0xff] }
  0x29   :  { %648 = vmatpush.bf16.msrb.mxu3 %v1651_v44  ;;  %v163_v8 = vld [vmem:[#allocation1 + $0x3f] sm:$0xff]  ;;  %v1654_v18 = vld [vmem:[%s2096_s3 + $0x8] sm:$0xff]  ;;  %v1667_v28 = vld [vmem:[%s2096_s3 + $0x70] sm:$0xff] }
  0x2a   :  { %610 = vmatpush.bf16.msrb.mxu0 %v1626_v45  ;;  %v1657_v12 = vld [vmem:[%s2096_s3 + $0x20] sm:$0xff]  ;;  %v1668_v26 = vld [vmem:[%s2096_s3 + $0x78] sm:$0xff]  ;;  %v1666_v30 = vld [vmem:[%s2096_s3 + $0x68] sm:$0xff] }
  0x2b   :  { %623 = vmatpush.bf16.msrb.mxu1 %v1634_v46  ;;  %v1653_v22 = vld [vmem:[%s2096_s3] sm:$0xff]  ;;  %v1664_v36 = vld [vmem:[%s2096_s3 + $0x58] sm:$0xff]  ;;  %v1663_v38 = vld [vmem:[%s2096_s3 + $0x50] sm:$0xff] }
  0x2c   :  { %636 = vmatpush.bf16.msrb.mxu2 %v1642_v47  ;;  %v1694_v23 = vld [vmem:[%s2095_s2] ss:$0 sm:$0xff] }
  0x2d   :  { %649 = vmatpush.bf16.msrb.mxu3 %v1650_v48  ;;  %v1665_v32 = vld [vmem:[%s2096_s3 + $0x60] sm:$0xff] }
  0x2e   :  { %611 = vmatpush.bf16.msrb.mxu0 %v1625_v49 }
  0x2f   :  { %624 = vmatpush.bf16.msrb.mxu1 %v1633_v50 }
  0x30   :  { %637 = vmatpush.bf16.msrb.mxu2 %v1641_v51  ;;  %v1662_v51 = vld [vmem:[%s2096_s3 + $0x48] sm:$0xff] }
  0x31   :  { %650 = vmatpush.bf16.msrb.mxu3 %v1649_v52  ;;  %v1661_v52 = vld [vmem:[%s2096_s3 + $0x40] sm:$0xff] }
  0x32   :  { %612 = vmatpush.bf16.msrb.mxu0 %v1624_v53  ;;  %v1676_v53 = vld [vmem:[%s2096_s3 + $0xb8] sm:$0xff] }
  0x33   :  { %625 = vmatpush.bf16.msrb.mxu1 %v1632_v54  ;;  %v1675_v54 = vld [vmem:[%s2096_s3 + $0xb0] sm:$0xff] }
  0x34   :  { %638 = vmatpush.bf16.msrb.mxu2 %v1640_v55  ;;  %v1674_v55 = vld [vmem:[%s2096_s3 + $0xa8] sm:$0xff] }
  0x35   :  { %651 = vmatpush.bf16.msrb.mxu3 %v1648_v56  ;;  %v1673_v56 = vld [vmem:[%s2096_s3 + $0xa0] sm:$0xff] }
  0x36   :  { %613 = vmatpush.bf16.msrb.mxu0 %v1623_v57  ;;  %v1672_v57 = vld [vmem:[%s2096_s3 + $0x98] sm:$0xff] }
  0x37   :  { %626 = vmatpush.bf16.msrb.mxu1 %v1631_v58  ;;  %v1671_v58 = vld [vmem:[%s2096_s3 + $0x90] sm:$0xff] }
  0x38   :  { %639 = vmatpush.bf16.msrb.mxu2 %v1639_v59  ;;  %v1695_v59 = vld [vmem:[%s2097_s4] ss:$0 sm:$0xff] }
  0x39   :  { %652 = vmatpush.bf16.msrb.mxu3 %v1647_v60 }
  0x3a   :  { %614 = vmatpush.bf16.msrb.mxu0 %v1622_v61 }
  0x3b   :  { %627 = vmatpush.bf16.msrb.mxu1 %v1630_v62 }
  0x3c   :  { %640 = vmatpush.bf16.msrb.mxu2 %v1638_v63 }
  0x3d   :  { %653 = vmatpush.bf16.msrb.mxu3 %v1646_v0 }
  0x3e   :  { %615 = vmatpush.bf16.msrb.mxu0 %v1621_v1 }
  0x3f   :  { %628 = vmatpush.bf16.msrb.mxu1 %v1629_v2  ;;  %v1670_v2 = vld [vmem:[%s2096_s3 + $0x88] sm:$0xff] }
  0x40   :  { %641 = vmatpush.bf16.msrb.mxu2 %v1637_v3  ;;  %v1669_v3 = vld [vmem:[%s2096_s3 + $0x80] sm:$0xff] }
  0x41   :  { %654 = vmatpush.bf16.msrb.mxu3 %v1645_v4  ;;  %616 = vmatmul.bf16.vlgmr.msrb.gmra.mxu0 %v160_v5  ;;  %v1684_v4 = vld [vmem:[%s2096_s3 + $0xf8] sm:$0xff]  ;;  %v1683_v5 = vld [vmem:[%s2096_s3 + $0xf0] sm:$0xff] }
  0x42   :  { %629 = vmatmul.bf16.vlgmr.msrb.gmra.mxu1 %v161_v6  ;;  %731 = vmatpush.bf16.msra.mxu0 %v1660_v9  ;;  %v1682_v6 = vld [vmem:[%s2096_s3 + $0xe8] sm:$0xff]  ;;  %v1679_v9 = vld [vmem:[%s2096_s3 + $0xd0] sm:$0xff] }
  0x43   :  { %642 = vmatmul.bf16.vlgmr.msrb.gmra.mxu2 %v162_v7  ;;  %817 = vmatpush.bf16.msra.mxu1 %v1668_v26  ;;  %v1681_v7 = vld [vmem:[%s2096_s3 + $0xe0] sm:$0xff] }
  0x44   :  { %655 = vmatmul.bf16.vlgmr.msrb.gmra.mxu3 %v163_v8  ;;  %903 = vmatpush.bf16.msra.mxu2 %v1676_v53  ;;  %v1680_v8 = vld [vmem:[%s2096_s3 + $0xd8] sm:$0xff] }
  0x45   :  { %989 = vmatpush.bf16.msra.mxu3 %v1684_v4 }
  0x46   :  { %732 = vmatpush.bf16.msra.mxu0 %v1659_v10  ;;  %v1696_v10 = vld [vmem:[%s2097_s4 + $0x1] ss:$0 sm:$0xff] }
  0x47   :  { %818 = vmatpush.bf16.msra.mxu1 %v1667_v28 }
  0x48   :  { %904 = vmatpush.bf16.msra.mxu2 %v1675_v54 }
  0x49   :  { %990 = vmatpush.bf16.msra.mxu3 %v1683_v5 }
  0x4a   :  { %733 = vmatpush.bf16.msra.mxu0 %v1658_v11 }
  0x4b   :  { %819 = vmatpush.bf16.msra.mxu1 %v1666_v30 }
  0x4c   :  { %905 = vmatpush.bf16.msra.mxu2 %v1674_v55 }
  0x4d   :  { %991 = vmatpush.bf16.msra.mxu3 %v1682_v6 }
  0x4e   :  { %734 = vmatpush.bf16.msra.mxu0 %v1657_v12 }
  0x4f   :  { %820 = vmatpush.bf16.msra.mxu1 %v1665_v32  ;;  %v1686_v32 = vld [vmem:[%s2096_s3 + $0x108] sm:$0xff] }
  0x50   :  { %906 = vmatpush.bf16.msra.mxu2 %v1673_v56 }
  0x51   :  { %992 = vmatpush.bf16.msra.mxu3 %v1681_v7 }
  0x52   :  { %735 = vmatpush.bf16.msra.mxu0 %v1656_v13 }
  0x53   :  { %821 = vmatpush.bf16.msra.mxu1 %v1664_v36 }
  0x54   :  { %907 = vmatpush.bf16.msra.mxu2 %v1672_v57 }
  0x55   :  { %993 = vmatpush.bf16.msra.mxu3 %v1680_v8 }
  0x56   :  { %736 = vmatpush.bf16.msra.mxu0 %v1655_v16 }
  0x57   :  { %822 = vmatpush.bf16.msra.mxu1 %v1663_v38 }
  0x58   :  { %908 = vmatpush.bf16.msra.mxu2 %v1671_v58 }
  0x59   :  { %994 = vmatpush.bf16.msra.mxu3 %v1679_v9 }
  0x5a   :  { %737 = vmatpush.bf16.msra.mxu0 %v1654_v18  ;;  %v1677_v18 = vld [vmem:[%s2096_s3 + $0xc0] sm:$0xff] }
  0x5b   :  { %823 = vmatpush.bf16.msra.mxu1 %v1662_v51 }
  0x5c   :  { %909 = vmatpush.bf16.msra.mxu2 %v1670_v2 }
  0x5e   :  { %738 = vmatpush.bf16.msra.mxu0 %v1653_v22  ;;  %v1689_v22 = vld [vmem:[%s2096_s3 + $0x120] sm:$0xff] }
  0x5f   :  { %824 = vmatpush.bf16.msra.mxu1 %v1661_v52 }
  0x60   :  { %910 = vmatpush.bf16.msra.mxu2 %v1669_v3 }
  0x9e   :  { %v565_v14 = vpop.f32.mrf.mxu0 }
  0x9f   :  { %v578_v15 = vpop.f32.mrf.mxu1  ;;  %v566_v27 = vadd.f32 %v1694_v23, %v565_v14  ;;  %v1688_v23 = vld [vmem:[%s2096_s3 + $0x118] sm:$0xff] }
  0xa1   :  { %v579_v29 = vadd.f32 %v578_v15, %v566_v27 }
  0xa6   :  { %v591_v17 = vpop.f32.mrf.mxu2  ;;  %v567_v20 = vpop.f32.mrf.mxu0 }
  0xa7   :  { %v604_v19 = vpop.f32.mrf.mxu3  ;;  %v580_v21 = vpop.f32.mrf.mxu1  ;;  %v592_v31 = vadd.f32 %v591_v17, %v579_v29  ;;  %v1678_v17 = vld [vmem:[%s2096_s3 + $0xc8] sm:$0xff]  ;;  %v1691_v20 = vld [vmem:[%s2096_s3 + $0x130] sm:$0xff] }
  0xa8   :  { %995 = vmatpush.bf16.msra.mxu3 %v1678_v17  ;;  %v1690_v21 = vld [vmem:[%s2096_s3 + $0x128] sm:$0xff] }
  0xa9   :  { %v605_v33 = vadd.f32 %v604_v19, %v592_v31  ;;  %v1692_v19 = vld [vmem:[%s2096_s3 + $0x138] sm:$0xff] }
  0xaa   :  { %1075 = vmatpush.bf16.msrb.mxu0 %v1692_v19 }
  0xac   :  { %996 = vmatpush.bf16.msra.mxu3 %v1677_v18 }
  0xae   :  { %v593_v24 = vpop.f32.mrf.mxu2  ;;  %1076 = vmatpush.bf16.msrb.mxu0 %v1691_v20 }
  0xaf   :  { %v606_v25 = vpop.f32.mrf.mxu3  ;;  %v1687_v24 = vld [vmem:[%s2096_s3 + $0x110] sm:$0xff] }
  0xb0   :  { %v1697_v25 = vld [vmem:[%s2097_s4 + $0x2] ss:$0 sm:$0xff] }
  0xb2   :  { %1077 = vmatpush.bf16.msrb.mxu0 %v1690_v21 }
  0xb6   :  { %1078 = vmatpush.bf16.msrb.mxu0 %v1689_v22 }
  0xba   :  { %1079 = vmatpush.bf16.msrb.mxu0 %v1688_v23 }
  0xbe   :  { %v617_v34 = vpop.f32.mrf.mxu0  ;;  %1080 = vmatpush.bf16.msrb.mxu0 %v1687_v24 }
  0xbf   :  { %v630_v35 = vpop.f32.mrf.mxu1  ;;  %v618_v37 = vadd.f32 %v617_v34, %v605_v33  ;;  %v1685_v33 = vld [vmem:[%s2096_s3 + $0x100] sm:$0xff] }
  0xc0   :  { %v1698_v34 = vld [vmem:[%s2097_s4 + $0x3] ss:$0 sm:$0xff] }
  0xc1   :  { %v631_v39 = vadd.f32 %v630_v35, %v618_v37 }
  0xc2   :  { %1081 = vmatpush.bf16.msrb.mxu0 %v1686_v32 }
  0xc6   :  { %v643_v40 = vpop.f32.mrf.mxu2  ;;  %v619_v43 = vpop.f32.mrf.mxu0  ;;  %1082 = vmatpush.bf16.msrb.mxu0 %v1685_v33 }
  0xc7   :  { %v656_v41 = vpop.f32.mrf.mxu3  ;;  %v644_v42 = vadd.f32 %v643_v40, %v631_v39  ;;  %v632_v44 = vpop.f32.mrf.mxu1 }
  0xc9   :  { %v657_v45 = vadd.f32 %v656_v41, %v644_v42  ;;  %v1699_v41 = vld [vmem:[%s2097_s4 + $0x4] ss:$0 sm:$0xff] }
  0xcb   :  { %v660_v46 = vmul.f32 0.01, %v657_v45 }
  0xcd   :  { %v661_v47 = vmax.f32 %v657_v45, %v660_v46 }
  0xce   :  { %v645_v48 = vpop.f32.mrf.mxu2 }
  0xcf   :  { %v658_v49 = vpop.f32.mrf.mxu3  ;;  %v662_v50 = vpack.c.bf16 %v661_v47, %v661_v47 }
  0xd1   :  { %739 = vmatmul.bf16.vlgmr.msra.gmra.mxu0 %v662_v50 }
 0x14e   :  { %v740_v60 = vpop.f32.mrf.mxu0 }
 0x14f   :  { %v741_v61 = vadd.f32 %v1695_v59, %v740_v60 }
 0x151   :  { %v744_v62 = vmul.f32 0.01, %v741_v61 }
 0x153   :  { %v745_v63 = vmax.f32 %v741_v61, %v744_v62 }
 0x155   :  { %v746_v0 = vpack.c.bf16 %v745_v63, %v745_v63 }
 0x156   :  { %v742_v1 = vpop.f32.mrf.mxu0 }
 0x157   :  { %825 = vmatmul.bf16.vlgmr.msra.gmra.mxu1 %v746_v0 }
 0x1d4   :  { %v826_v11 = vpop.f32.mrf.mxu1 }
 0x1d5   :  { %v827_v12 = vadd.f32 %v1696_v10, %v826_v11 }
 0x1d7   :  { %v830_v13 = vmul.f32 0.01, %v827_v12 }
 0x1d9   :  { %v831_v14 = vmax.f32 %v827_v12, %v830_v13 }
 0x1db   :  { %v832_v15 = vpack.c.bf16 %v831_v14, %v831_v14 }
 0x1dc   :  { %v828_v16 = vpop.f32.mrf.mxu1 }
 0x1dd   :  { %911 = vmatmul.bf16.vlgmr.msra.gmra.mxu2 %v832_v15 }
 0x260   :  { %v912_v26 = vpop.f32.mrf.mxu2 }
 0x261   :  { %v913_v27 = vadd.f32 %v1697_v25, %v912_v26 }
 0x263   :  { %v916_v28 = vmul.f32 0.01, %v913_v27 }
 0x265   :  { %v917_v29 = vmax.f32 %v913_v27, %v916_v28 }
 0x267   :  { %v918_v30 = vpack.c.bf16 %v917_v29, %v917_v29 }
 0x268   :  { %v914_v31 = vpop.f32.mrf.mxu2 }
 0x269   :  { %997 = vmatmul.bf16.vlgmr.msra.gmra.mxu3 %v918_v30 }
 0x2ec   :  { %v998_v35 = vpop.f32.mrf.mxu3 }
 0x2ed   :  { %v999_v36 = vadd.f32 %v1698_v34, %v998_v35 }
 0x2ef   :  { %v1002_v37 = vmul.f32 0.01, %v999_v36 }
 0x2f1   :  { %v1003_v38 = vmax.f32 %v999_v36, %v1002_v37 }
 0x2f3   :  { %v1004_v39 = vpack.c.bf16 %v1003_v38, %v1003_v38 }
 0x2f4   :  { %v1000_v40 = vpop.f32.mrf.mxu3 }
 0x2f5   :  { %1083 = vmatmul.bf16.vlgmr.msrb.gmra.mxu0 %v1004_v39 }
 0x372   :  { %v1084_v42 = vpop.f32.mrf.mxu0 }
 0x373   :  { %v1085_v43 = vadd.f32 %v1699_v41, %v1084_v42 }
 0x375   :  { %1088 = vst [vmem:[#allocation2] sm:$0x3] %v1085_v43 }
 0x376   :  { %1099 = dma.vmem_to_hbm [thread:$0]  %s1095_s27, 32, %s1097_s29, [#allocation3]  }
 0x37a   :  { %v1086_v44 = vpop.f32.mrf.mxu0 }
 0x37b   :  { %1724 = dma.done.wait [#allocation3], 32  }
 0x37c   :  { %1725 = vsyncadd [#allocation3], 4294967264 }
 0x37d   :  { %1104 = vsyncpa [#allocation3], 1 }

</bundles_post_ra>
